<compile_context>
chip_gen: v7x
topology: tpu7x:2x2x1
jax: 0.10.0
libtpu: 0.0.40
codegen_flags: <defaults>
</compile_context>

<pallas_src>
import functools

import jax
import jax.numpy as jnp
from jax import lax
from jax.experimental import pallas as pl
from jax.experimental.pallas import tpu as pltpu


def _db_block_kernel(x_ref, w1_ref, b1_ref, w2_ref, b2_ref, w3_ref, b3_ref,
                     out_ref, pad_ref, patch_ref, *, dilation: int):
    Nb, H, W, Cin = x_ref.shape
    Cmid = w1_ref.shape[1]
    d = dilation
    M = Nb * H * W

    x = x_ref[...].reshape(M, Cin)                      # f32, kept for residual

    # --- conv1: 1x1 conv (+ folded BN) + ReLU (bf16 operands, f32 accumulate) ---
    h1 = jnp.dot(x.astype(jnp.bfloat16), w1_ref[...],
                 preferred_element_type=jnp.float32)
    h1 = jnp.maximum(h1 + b1_ref[...], 0.0)             # (M, Cmid) f32

    # --- conv2: 3x3 dilated conv (+ folded BN) + ReLU as ONE matmul, K = 9*Cmid ---
    # Zero only the d-wide border of the padded scratch; the interior is fully
    # overwritten every step, so this stays correct under "parallel" semantics.
    zero_row = jnp.zeros((Nb, d, W + 2 * d, Cmid), pad_ref.dtype)
    zero_col = jnp.zeros((Nb, H + 2 * d, d, Cmid), pad_ref.dtype)
    pad_ref[:, 0:d, :, :] = zero_row
    pad_ref[:, d + H:, :, :] = zero_row
    pad_ref[:, :, 0:d, :] = zero_col
    pad_ref[:, :, d + W:, :] = zero_col
    pad_ref[:, d:d + H, d:d + W, :] = (
        h1.reshape(Nb, H, W, Cmid).astype(pad_ref.dtype))

    # Gather the 9 shifted windows once into a (M, 9*Cmid) patch tensor, then
    # run a single dense MXU matmul against the (9*Cmid, Cmid) weight.
    for a in range(3):
        for b in range(3):
            t = 3 * a + b
            win = pad_ref[:, a * d:a * d + H, b * d:b * d + W, :]
            patch_ref[:, t * Cmid:(t + 1) * Cmid] = win.reshape(M, Cmid)

    h2 = jnp.dot(patch_ref[...], w2_ref[...],
                 preferred_element_type=jnp.float32)
    h2 = jnp.maximum(h2 + b2_ref[...], 0.0)             # (M, Cmid) f32

    # --- conv3: 1x1 conv (+ folded BN) + ReLU, then residual add ----------------
    h3 = jnp.dot(h2.astype(jnp.bfloat16), w3_ref[...],
                 preferred_element_type=jnp.float32)
    h3 = jnp.maximum(h3 + b3_ref[...], 0.0)             # (M, Cin) f32

    out_ref[...] = (h3 + x).reshape(Nb, H, W, Cin)


def db_block_pallas(x_nhwc, w1, b1, w2, b2, w3, b3, *, dilation: int = 1,
                    batch_block: int | None = None):
    """x_nhwc: (N, H, W, Cin) float32.  Returns (N, H, W, Cin) float32."""
    N, H, W, Cin = x_nhwc.shape
    Cmid = w1.shape[1]
    d = dilation
    if batch_block is None:
        batch_block = N            # whole batch per grid step at small N
    assert N % batch_block == 0
    Nb = batch_block

    # bf16 matmul operands (weights); biases stay f32.
    w1b = w1.astype(jnp.bfloat16)                           # (Cin, Cmid)
    w2b = w2.reshape(9 * Cmid, Cmid).astype(jnp.bfloat16)   # (9*Cmid, Cmid)
    w3b = w3.astype(jnp.bfloat16)                           # (Cmid, Cin)

    kernel = functools.partial(_db_block_kernel, dilation=d)

    # TODO(synk): for production sizes (large H/W/C) tile over H rows with a
    # d-row halo instead of a full-image padded scratch (v7x VMEM is 64 MiB).
    return pl.pallas_call(
        kernel,
        out_shape=jax.ShapeDtypeStruct((N, H, W, Cin), jnp.float32),
        grid_spec=pltpu.PrefetchScalarGridSpec(
            num_scalar_prefetch=0,
            grid=(N // Nb,),
            in_specs=[
                pl.BlockSpec((Nb, H, W, Cin), lambda n: (n, 0, 0, 0)),
                pl.BlockSpec((Cin, Cmid), lambda n: (0, 0)),
                pl.BlockSpec((1, Cmid), lambda n: (0, 0)),
                pl.BlockSpec((9 * Cmid, Cmid), lambda n: (0, 0)),
                pl.BlockSpec((1, Cmid), lambda n: (0, 0)),
                pl.BlockSpec((Cmid, Cin), lambda n: (0, 0)),
                pl.BlockSpec((1, Cin), lambda n: (0, 0)),
            ],
            out_specs=pl.BlockSpec((Nb, H, W, Cin), lambda n: (n, 0, 0, 0)),
            scratch_shapes=[
                pltpu.VMEM((Nb, H + 2 * d, W + 2 * d, Cmid), jnp.bfloat16),
                pltpu.VMEM((Nb * H * W, 9 * Cmid), jnp.bfloat16),
            ],
        ),
        compiler_params=pltpu.CompilerParams(
            dimension_semantics=("parallel",)),
    )(x_nhwc, w1b, b1, w2b, b2, w3b, b3)


# --------------------------------------------------------------------------
# Parameter setup: deterministic init + BatchNorm (eval-mode) folding.
# --------------------------------------------------------------------------
def _fold_bn(conv_w, conv_b, gamma, beta, mean, var, eps=1e-5):
    """conv_w: (..., Cin, Cout); BN params per output channel (Cout,)."""
    scale = gamma / jnp.sqrt(var + eps)                       # (Cout,)
    w = conv_w * scale                                        # broadcast last dim
    b = beta + (conv_b - mean) * scale
    return w.astype(jnp.float32), b.reshape(1, -1).astype(jnp.float32)


def make_params(key, in_channels, mid_channels):
    ks = jax.random.split(key, 15)
    f = lambda k, shape, s=0.05: (s * jax.random.normal(k, shape)).astype(jnp.float32)

    # conv1: 1x1, Cin -> Cmid  (stored as (Cin, Cmid))
    w1 = f(ks[0], (in_channels, mid_channels))
    c1b = f(ks[1], (mid_channels,))
    g1 = 1.0 + f(ks[2], (mid_channels,))
    be1 = f(ks[3], (mid_channels,))
    m1 = f(ks[4], (mid_channels,))
    v1 = 0.5 + jax.random.uniform(ks[5], (mid_channels,), dtype=jnp.float32)

    # conv2: 3x3 dilated, Cmid -> Cmid (stored HWIO: (3, 3, Cmid, Cmid))
    w2 = f(ks[6], (3, 3, mid_channels, mid_channels))
    c2b = f(ks[7], (mid_channels,))
    g2 = 1.0 + f(ks[8], (mid_channels,))
    be2 = f(ks[9], (mid_channels,))
    m2 = f(ks[10], (mid_channels,))
    v2 = 0.5 + jax.random.uniform(ks[11], (mid_channels,), dtype=jnp.float32)

    # conv3: 1x1, Cmid -> Cin (stored as (Cmid, Cin))
    w3 = f(ks[12], (mid_channels, in_channels))
    c3b = f(ks[13], (in_channels,))
    g3 = jnp.ones((in_channels,), jnp.float32)
    be3 = jnp.zeros((in_channels,), jnp.float32)
    m3 = jnp.zeros((in_channels,), jnp.float32)
    v3 = 0.5 + jax.random.uniform(ks[14], (in_channels,), dtype=jnp.float32)

    w1f, b1f = _fold_bn(w1, c1b, g1, be1, m1, v1)
    w2f, b2f = _fold_bn(w2, c2b, g2, be2, m2, v2)
    w3f, b3f = _fold_bn(w3, c3b, g3, be3, m3, v3)
    return (w1f, b1f, w2f, b2f, w3f, b3f)


# --------------------------------------------------------------------------
# Pure-JAX reference (NHWC, f32) for verification.
# --------------------------------------------------------------------------
def db_block_ref(x, w1, b1, w2, b2, w3, b3, *, dilation=1):
    dn = ("NHWC", "HWIO", "NHWC")
    h1 = jax.nn.relu(
        lax.conv_general_dilated(x, w1.reshape(1, 1, *w1.shape), (1, 1),
                                 "VALID", dimension_numbers=dn) + b1.reshape(1, 1, 1, -1))
    h2 = jax.nn.relu(
        lax.conv_general_dilated(h1, w2, (1, 1),
                                 [(dilation, dilation), (dilation, dilation)],
                                 rhs_dilation=(dilation, dilation),
                                 dimension_numbers=dn) + b2.reshape(1, 1, 1, -1))
    h3 = jax.nn.relu(
        lax.conv_general_dilated(h2, w3.reshape(1, 1, *w3.shape), (1, 1),
                                 "VALID", dimension_numbers=dn) + b3.reshape(1, 1, 1, -1))
    return h3 + x


if __name__ == "__main__":
    # small shapes consistent with the module: N=2, in_channels=32, mid=16, 16x16
    N, H, W = 2, 16, 16
    in_channels, mid_channels = 32, 16

    key = jax.random.PRNGKey(0)
    kx, kp = jax.random.split(key)
    x_nhwc = jax.random.normal(kx, (N, H, W, in_channels), dtype=jnp.float32)
    params = make_params(kp, in_channels, mid_channels)

    for dilation in (1, 2):
        out = db_block_pallas(x_nhwc, *params, dilation=dilation)
        out = jax.block_until_ready(out)
        ref = db_block_ref(x_nhwc, *params, dilation=dilation)
        assert out.shape == (N, H, W, in_channels)
        # bf16 matmul operands with f32 accumulation -> small rounding vs f32 ref
        assert jnp.allclose(out, ref, atol=2e-2, rtol=2e-2), (
            dilation, float(jnp.max(jnp.abs(out - ref))))

    print("KERNEL_OK")
</pallas_src>

<mosaic_0001>
module attributes {stable_mosaic.version = 11 : i64} {
  func.func @_db_block_kernel(%arg0: i32, %arg1: memref<2x16x16x32xf32, #tpu.memory_space<vmem>>, %arg2: memref<32x16xbf16, #tpu.memory_space<vmem>>, %arg3: memref<1x16xf32, #tpu.memory_space<vmem>>, %arg4: memref<144x16xbf16, #tpu.memory_space<vmem>>, %arg5: memref<1x16xf32, #tpu.memory_space<vmem>>, %arg6: memref<16x32xbf16, #tpu.memory_space<vmem>>, %arg7: memref<1x32xf32, #tpu.memory_space<vmem>>, %arg8: memref<2x16x16x32xf32, #tpu.memory_space<vmem>>, %arg9: memref<2x18x18x16xbf16, #tpu.memory_space<vmem>>, %arg10: memref<512x144xbf16, #tpu.memory_space<vmem>>) attributes {dimension_semantics = [#tpu.dimension_semantics<parallel>], iteration_bounds = array<i64: 1>, scalar_prefetch = 0 : i64, scratch_operands = 2 : i64, tpu.core_type = #tpu.core_type<tc>, window_params = [{transform_indices = @transform_0, window_bounds = array<i64: 2, 16, 16, 32>}, {pipeline_mode = #tpu.pipeline_mode<synchronous>, transform_indices = @transform_1, window_bounds = array<i64: 32, 16>}, {pipeline_mode = #tpu.pipeline_mode<synchronous>, transform_indices = @transform_2, window_bounds = array<i64: 1, 16>}, {pipeline_mode = #tpu.pipeline_mode<synchronous>, transform_indices = @transform_3, window_bounds = array<i64: 144, 16>}, {pipeline_mode = #tpu.pipeline_mode<synchronous>, transform_indices = @transform_4, window_bounds = array<i64: 1, 16>}, {pipeline_mode = #tpu.pipeline_mode<synchronous>, transform_indices = @transform_5, window_bounds = array<i64: 16, 32>}, {pipeline_mode = #tpu.pipeline_mode<synchronous>, transform_indices = @transform_6, window_bounds = array<i64: 1, 32>}, {transform_indices = @transform_7, window_bounds = array<i64: 2, 16, 16, 32>}]} {
    %c0 = arith.constant 0 : index
    %c0_0 = arith.constant 0 : index
    %c0_1 = arith.constant 0 : index
    %c0_2 = arith.constant 0 : index
    %0 = vector.load %arg1[%c0, %c0_0, %c0_1, %c0_2] : memref<2x16x16x32xf32, #tpu.memory_space<vmem>>, vector<2x16x16x32xf32>
    %1 = vector.shape_cast %0 : vector<2x16x16x32xf32> to vector<512x32xf32>
    %2 = arith.truncf %1 : vector<512x32xf32> to vector<512x32xbf16>
    %c0_3 = arith.constant 0 : index
    %c0_4 = arith.constant 0 : index
    %3 = vector.load %arg2[%c0_3, %c0_4] : memref<32x16xbf16, #tpu.memory_space<vmem>>, vector<32x16xbf16>
    %cst = arith.constant dense<0.000000e+00> : vector<512x16xf32>
    %4 = tpu.matmul %2, %3, %cst {dimension_numbers = #tpu.dot_dimension_numbers<[1], [0], [0], [1], [0, 0, 1, 1], [], []>} : vector<512x32xbf16>, vector<32x16xbf16>, vector<512x16xf32> -> vector<512x16xf32>
    %c0_5 = arith.constant 0 : index
    %c0_6 = arith.constant 0 : index
    %5 = vector.load %arg3[%c0_5, %c0_6] : memref<1x16xf32, #tpu.memory_space<vmem>>, vector<1x16xf32>
    %6 = vector.broadcast %5 : vector<1x16xf32> to vector<512x16xf32>
    %7 = arith.addf %4, %6 : vector<512x16xf32>
    %cst_7 = arith.constant 0.000000e+00 : f32
    %8 = vector.broadcast %cst_7 : f32 to vector<512x16xf32>
    %9 = arith.maximumf %7, %8 : vector<512x16xf32>
    %cst_8 = arith.constant 0.000000e+00 : bf16
    %10 = vector.broadcast %cst_8 : bf16 to vector<2x1x18x16xbf16>
    %cst_9 = arith.constant 0.000000e+00 : bf16
    %11 = vector.broadcast %cst_9 : bf16 to vector<2x18x1x16xbf16>
    %c0_10 = arith.constant 0 : index
    %c0_11 = arith.constant 0 : index
    %c0_12 = arith.constant 0 : index
    %c0_13 = arith.constant 0 : index
    %12 = vector.load %arg9[%c0_10, %c0_11, %c0_12, %c0_13] : memref<2x18x18x16xbf16, #tpu.memory_space<vmem>>, vector<2x1x18x16xbf16>
    tpu.vector_store %arg9[%c0_10, %c0_11, %c0_12, %c0_13], %10 {strides = array<i32>} : memref<2x18x18x16xbf16, #tpu.memory_space<vmem>>, vector<2x1x18x16xbf16>,
    %c0_14 = arith.constant 0 : index
    %c17 = arith.constant 17 : index
    %c0_15 = arith.constant 0 : index
    %c0_16 = arith.constant 0 : index
    %13 = vector.load %arg9[%c0_14, %c17, %c0_15, %c0_16] : memref<2x18x18x16xbf16, #tpu.memory_space<vmem>>, vector<2x1x18x16xbf16>
    tpu.vector_store %arg9[%c0_14, %c17, %c0_15, %c0_16], %10 {strides = array<i32>} : memref<2x18x18x16xbf16, #tpu.memory_space<vmem>>, vector<2x1x18x16xbf16>,
    %c0_17 = arith.constant 0 : index
    %c0_18 = arith.constant 0 : index
    %c0_19 = arith.constant 0 : index
    %c0_20 = arith.constant 0 : index
    %14 = vector.load %arg9[%c0_17, %c0_18, %c0_19, %c0_20] : memref<2x18x18x16xbf16, #tpu.memory_space<vmem>>, vector<2x18x1x16xbf16>
    tpu.vector_store %arg9[%c0_17, %c0_18, %c0_19, %c0_20], %11 {strides = array<i32>} : memref<2x18x18x16xbf16, #tpu.memory_space<vmem>>, vector<2x18x1x16xbf16>,
    %c0_21 = arith.constant 0 : index
    %c0_22 = arith.constant 0 : index
    %c17_23 = arith.constant 17 : index
    %c0_24 = arith.constant 0 : index
    %15 = vector.load %arg9[%c0_21, %c0_22, %c17_23, %c0_24] : memref<2x18x18x16xbf16, #tpu.memory_space<vmem>>, vector<2x18x1x16xbf16>
    tpu.vector_store %arg9[%c0_21, %c0_22, %c17_23, %c0_24], %11 {strides = array<i32>} : memref<2x18x18x16xbf16, #tpu.memory_space<vmem>>, vector<2x18x1x16xbf16>,
    %16 = vector.shape_cast %9 : vector<512x16xf32> to vector<2x16x16x16xf32>
    %17 = arith.truncf %16 : vector<2x16x16x16xf32> to vector<2x16x16x16xbf16>
    %c0_25 = arith.constant 0 : index
    %c1 = arith.constant 1 : index
    %c1_26 = arith.constant 1 : index
    %c0_27 = arith.constant 0 : index
    %18 = vector.load %arg9[%c0_25, %c1, %c1_26, %c0_27] : memref<2x18x18x16xbf16, #tpu.memory_space<vmem>>, vector<2x16x16x16xbf16>
    tpu.vector_store %arg9[%c0_25, %c1, %c1_26, %c0_27], %17 {strides = array<i32>} : memref<2x18x18x16xbf16, #tpu.memory_space<vmem>>, vector<2x16x16x16xbf16>,
    %c0_28 = arith.constant 0 : index
    %c0_29 = arith.constant 0 : index
    %c0_30 = arith.constant 0 : index
    %c0_31 = arith.constant 0 : index
    %19 = vector.load %arg9[%c0_28, %c0_29, %c0_30, %c0_31] : memref<2x18x18x16xbf16, #tpu.memory_space<vmem>>, vector<2x16x16x16xbf16>
    %20 = vector.shape_cast %19 : vector<2x16x16x16xbf16> to vector<512x16xbf16>
    %c0_32 = arith.constant 0 : index
    %c0_33 = arith.constant 0 : index
    %21 = vector.load %arg10[%c0_32, %c0_33] : memref<512x144xbf16, #tpu.memory_space<vmem>>, vector<512x16xbf16>
    tpu.vector_store %arg10[%c0_32, %c0_33], %20 {strides = array<i32>} : memref<512x144xbf16, #tpu.memory_space<vmem>>, vector<512x16xbf16>,
    %c0_34 = arith.constant 0 : index
    %c0_35 = arith.constant 0 : index
    %c1_36 = arith.constant 1 : index
    %c0_37 = arith.constant 0 : index
    %22 = vector.load %arg9[%c0_34, %c0_35, %c1_36, %c0_37] : memref<2x18x18x16xbf16, #tpu.memory_space<vmem>>, vector<2x16x16x16xbf16>
    %23 = vector.shape_cast %22 : vector<2x16x16x16xbf16> to vector<512x16xbf16>
    %c0_38 = arith.constant 0 : index
    %c16 = arith.constant 16 : index
    %24 = vector.load %arg10[%c0_38, %c16] : memref<512x144xbf16, #tpu.memory_space<vmem>>, vector<512x16xbf16>
    tpu.vector_store %arg10[%c0_38, %c16], %23 {strides = array<i32>} : memref<512x144xbf16, #tpu.memory_space<vmem>>, vector<512x16xbf16>,
    %c0_39 = arith.constant 0 : index
    %c0_40 = arith.constant 0 : index
    %c2 = arith.constant 2 : index
    %c0_41 = arith.constant 0 : index
    %25 = vector.load %arg9[%c0_39, %c0_40, %c2, %c0_41] : memref<2x18x18x16xbf16, #tpu.memory_space<vmem>>, vector<2x16x16x16xbf16>
    %26 = vector.shape_cast %25 : vector<2x16x16x16xbf16> to vector<512x16xbf16>
    %c0_42 = arith.constant 0 : index
    %c32 = arith.constant 32 : index
    %27 = vector.load %arg10[%c0_42, %c32] : memref<512x144xbf16, #tpu.memory_space<vmem>>, vector<512x16xbf16>
    tpu.vector_store %arg10[%c0_42, %c32], %26 {strides = array<i32>} : memref<512x144xbf16, #tpu.memory_space<vmem>>, vector<512x16xbf16>,
    %c0_43 = arith.constant 0 : index
    %c1_44 = arith.constant 1 : index
    %c0_45 = arith.constant 0 : index
    %c0_46 = arith.constant 0 : index
    %28 = vector.load %arg9[%c0_43, %c1_44, %c0_45, %c0_46] : memref<2x18x18x16xbf16, #tpu.memory_space<vmem>>, vector<2x16x16x16xbf16>
    %29 = vector.shape_cast %28 : vector<2x16x16x16xbf16> to vector<512x16xbf16>
    %c0_47 = arith.constant 0 : index
    %c48 = arith.constant 48 : index
    %30 = vector.load %arg10[%c0_47, %c48] : memref<512x144xbf16, #tpu.memory_space<vmem>>, vector<512x16xbf16>
    tpu.vector_store %arg10[%c0_47, %c48], %29 {strides = array<i32>} : memref<512x144xbf16, #tpu.memory_space<vmem>>, vector<512x16xbf16>,
    %c0_48 = arith.constant 0 : index
    %c1_49 = arith.constant 1 : index
    %c1_50 = arith.constant 1 : index
    %c0_51 = arith.constant 0 : index
    %31 = vector.load %arg9[%c0_48, %c1_49, %c1_50, %c0_51] : memref<2x18x18x16xbf16, #tpu.memory_space<vmem>>, vector<2x16x16x16xbf16>
    %32 = vector.shape_cast %31 : vector<2x16x16x16xbf16> to vector<512x16xbf16>
    %c0_52 = arith.constant 0 : index
    %c64 = arith.constant 64 : index
    %33 = vector.load %arg10[%c0_52, %c64] : memref<512x144xbf16, #tpu.memory_space<vmem>>, vector<512x16xbf16>
    tpu.vector_store %arg10[%c0_52, %c64], %32 {strides = array<i32>} : memref<512x144xbf16, #tpu.memory_space<vmem>>, vector<512x16xbf16>,
    %c0_53 = arith.constant 0 : index
    %c1_54 = arith.constant 1 : index
    %c2_55 = arith.constant 2 : index
    %c0_56 = arith.constant 0 : index
    %34 = vector.load %arg9[%c0_53, %c1_54, %c2_55, %c0_56] : memref<2x18x18x16xbf16, #tpu.memory_space<vmem>>, vector<2x16x16x16xbf16>
    %35 = vector.shape_cast %34 : vector<2x16x16x16xbf16> to vector<512x16xbf16>
    %c0_57 = arith.constant 0 : index
    %c80 = arith.constant 80 : index
    %36 = vector.load %arg10[%c0_57, %c80] : memref<512x144xbf16, #tpu.memory_space<vmem>>, vector<512x16xbf16>
    tpu.vector_store %arg10[%c0_57, %c80], %35 {strides = array<i32>} : memref<512x144xbf16, #tpu.memory_space<vmem>>, vector<512x16xbf16>,
    %c0_58 = arith.constant 0 : index
    %c2_59 = arith.constant 2 : index
    %c0_60 = arith.constant 0 : index
    %c0_61 = arith.constant 0 : index
    %37 = vector.load %arg9[%c0_58, %c2_59, %c0_60, %c0_61] : memref<2x18x18x16xbf16, #tpu.memory_space<vmem>>, vector<2x16x16x16xbf16>
    %38 = vector.shape_cast %37 : vector<2x16x16x16xbf16> to vector<512x16xbf16>
    %c0_62 = arith.constant 0 : index
    %c96 = arith.constant 96 : index
    %39 = vector.load %arg10[%c0_62, %c96] : memref<512x144xbf16, #tpu.memory_space<vmem>>, vector<512x16xbf16>
    tpu.vector_store %arg10[%c0_62, %c96], %38 {strides = array<i32>} : memref<512x144xbf16, #tpu.memory_space<vmem>>, vector<512x16xbf16>,
    %c0_63 = arith.constant 0 : index
    %c2_64 = arith.constant 2 : index
    %c1_65 = arith.constant 1 : index
    %c0_66 = arith.constant 0 : index
    %40 = vector.load %arg9[%c0_63, %c2_64, %c1_65, %c0_66] : memref<2x18x18x16xbf16, #tpu.memory_space<vmem>>, vector<2x16x16x16xbf16>
    %41 = vector.shape_cast %40 : vector<2x16x16x16xbf16> to vector<512x16xbf16>
    %c0_67 = arith.constant 0 : index
    %c112 = arith.constant 112 : index
    %42 = vector.load %arg10[%c0_67, %c112] : memref<512x144xbf16, #tpu.memory_space<vmem>>, vector<512x16xbf16>
    tpu.vector_store %arg10[%c0_67, %c112], %41 {strides = array<i32>} : memref<512x144xbf16, #tpu.memory_space<vmem>>, vector<512x16xbf16>,
    %c0_68 = arith.constant 0 : index
    %c2_69 = arith.constant 2 : index
    %c2_70 = arith.constant 2 : index
    %c0_71 = arith.constant 0 : index
    %43 = vector.load %arg9[%c0_68, %c2_69, %c2_70, %c0_71] : memref<2x18x18x16xbf16, #tpu.memory_space<vmem>>, vector<2x16x16x16xbf16>
    %44 = vector.shape_cast %43 : vector<2x16x16x16xbf16> to vector<512x16xbf16>
    %c0_72 = arith.constant 0 : index
    %c128 = arith.constant 128 : index
    %45 = vector.load %arg10[%c0_72, %c128] : memref<512x144xbf16, #tpu.memory_space<vmem>>, vector<512x16xbf16>
    tpu.vector_store %arg10[%c0_72, %c128], %44 {strides = array<i32>} : memref<512x144xbf16, #tpu.memory_space<vmem>>, vector<512x16xbf16>,
    %c0_73 = arith.constant 0 : index
    %c0_74 = arith.constant 0 : index
    %46 = vector.load %arg10[%c0_73, %c0_74] : memref<512x144xbf16, #tpu.memory_space<vmem>>, vector<512x144xbf16>
    %c0_75 = arith.constant 0 : index
    %c0_76 = arith.constant 0 : index
    %47 = vector.load %arg4[%c0_75, %c0_76] : memref<144x16xbf16, #tpu.memory_space<vmem>>, vector<144x16xbf16>
    %cst_77 = arith.constant dense<0.000000e+00> : vector<512x16xf32>
    %48 = tpu.matmul %46, %47, %cst_77 {dimension_numbers = #tpu.dot_dimension_numbers<[1], [0], [0], [1], [0, 0, 1, 1], [], []>} : vector<512x144xbf16>, vector<144x16xbf16>, vector<512x16xf32> -> vector<512x16xf32>
    %c0_78 = arith.constant 0 : index
    %c0_79 = arith.constant 0 : index
    %49 = vector.load %arg5[%c0_78, %c0_79] : memref<1x16xf32, #tpu.memory_space<vmem>>, vector<1x16xf32>
    %50 = vector.broadcast %49 : vector<1x16xf32> to vector<512x16xf32>
    %51 = arith.addf %48, %50 : vector<512x16xf32>
    %cst_80 = arith.constant 0.000000e+00 : f32
    %52 = vector.broadcast %cst_80 : f32 to vector<512x16xf32>
    %53 = arith.maximumf %51, %52 : vector<512x16xf32>
    %54 = arith.truncf %53 : vector<512x16xf32> to vector<512x16xbf16>
    %c0_81 = arith.constant 0 : index
    %c0_82 = arith.constant 0 : index
    %55 = vector.load %arg6[%c0_81, %c0_82] : memref<16x32xbf16, #tpu.memory_space<vmem>>, vector<16x32xbf16>
    %cst_83 = arith.constant dense<0.000000e+00> : vector<512x32xf32>
    %56 = tpu.matmul %54, %55, %cst_83 {dimension_numbers = #tpu.dot_dimension_numbers<[1], [0], [0], [1], [0, 0, 1, 1], [], []>} : vector<512x16xbf16>, vector<16x32xbf16>, vector<512x32xf32> -> vector<512x32xf32>
    %c0_84 = arith.constant 0 : index
    %c0_85 = arith.constant 0 : index
    %57 = vector.load %arg7[%c0_84, %c0_85] : memref<1x32xf32, #tpu.memory_space<vmem>>, vector<1x32xf32>
    %58 = vector.broadcast %57 : vector<1x32xf32> to vector<512x32xf32>
    %59 = arith.addf %56, %58 : vector<512x32xf32>
    %cst_86 = arith.constant 0.000000e+00 : f32
    %60 = vector.broadcast %cst_86 : f32 to vector<512x32xf32>
    %61 = arith.maximumf %59, %60 : vector<512x32xf32>
    %62 = arith.addf %61, %1 : vector<512x32xf32>
    %63 = vector.shape_cast %62 : vector<512x32xf32> to vector<2x16x16x32xf32>
    %c0_87 = arith.constant 0 : index
    %c0_88 = arith.constant 0 : index
    %c0_89 = arith.constant 0 : index
    %c0_90 = arith.constant 0 : index
    %64 = vector.load %arg8[%c0_87, %c0_88, %c0_89, %c0_90] : memref<2x16x16x32xf32, #tpu.memory_space<vmem>>, vector<2x16x16x32xf32>
    tpu.vector_store %arg8[%c0_87, %c0_88, %c0_89, %c0_90], %63 {strides = array<i32>} : memref<2x16x16x32xf32, #tpu.memory_space<vmem>>, vector<2x16x16x32xf32>,
    return
  }
  func.func @transform_0(%arg0: i32) -> (i32, i32, i32, i32) {
    %c0_i32 = arith.constant 0 : i32
    %c0_i32_0 = arith.constant 0 : i32
    %c0_i32_1 = arith.constant 0 : i32
    %c0_i32_2 = arith.constant 0 : i32
    return %arg0, %c0_i32, %c0_i32_0, %c0_i32_1 : i32, i32, i32, i32
  }
  func.func @transform_1(%arg0: i32) -> (i32, i32) {
    %c0_i32 = arith.constant 0 : i32
    %c0_i32_0 = arith.constant 0 : i32
    %c0_i32_1 = arith.constant 0 : i32
    return %c0_i32, %c0_i32_0 : i32, i32
  }
  func.func @transform_2(%arg0: i32) -> (i32, i32) {
    %c0_i32 = arith.constant 0 : i32
    %c0_i32_0 = arith.constant 0 : i32
    %c0_i32_1 = arith.constant 0 : i32
    return %c0_i32, %c0_i32_0 : i32, i32
  }
  func.func @transform_3(%arg0: i32) -> (i32, i32) {
    %c0_i32 = arith.constant 0 : i32
    %c0_i32_0 = arith.constant 0 : i32
    %c0_i32_1 = arith.constant 0 : i32
    return %c0_i32, %c0_i32_0 : i32, i32
  }
  func.func @transform_4(%arg0: i32) -> (i32, i32) {
    %c0_i32 = arith.constant 0 : i32
    %c0_i32_0 = arith.constant 0 : i32
    %c0_i32_1 = arith.constant 0 : i32
    return %c0_i32, %c0_i32_0 : i32, i32
  }
  func.func @transform_5(%arg0: i32) -> (i32, i32) {
    %c0_i32 = arith.constant 0 : i32
    %c0_i32_0 = arith.constant 0 : i32
    %c0_i32_1 = arith.constant 0 : i32
    return %c0_i32, %c0_i32_0 : i32, i32
  }
  func.func @transform_6(%arg0: i32) -> (i32, i32) {
    %c0_i32 = arith.constant 0 : i32
    %c0_i32_0 = arith.constant 0 : i32
    %c0_i32_1 = arith.constant 0 : i32
    return %c0_i32, %c0_i32_0 : i32, i32
  }
  func.func @transform_7(%arg0: i32) -> (i32, i32, i32, i32) {
    %c0_i32 = arith.constant 0 : i32
    %c0_i32_0 = arith.constant 0 : i32
    %c0_i32_1 = arith.constant 0 : i32
    %c0_i32_2 = arith.constant 0 : i32
    return %arg0, %c0_i32, %c0_i32_0, %c0_i32_1 : i32, i32, i32, i32
  }
}

</mosaic_0001>

<bundles_post_ra>
// kernel: tpu_custom_call.1
= control target key start
LH: loop header
LB: loop body
LE: loop exit
PB: predicated region body
PF: predicated region fallthrough
CT: control target
= control target key end

     0   :  { %12 = vsyncpa [#allocation5], 0  ;;  %s13522_s0 = inlined_call_operand.hbm [shape: f32[2,16,16,32], index: 0, kind: input, shape index: {}]   ;;  %s13523_s1 = inlined_call_operand.vmem [shape: bf16[32,16], index: 1, kind: input, shape index: {}]   ;;  %s13524_s2 = inlined_call_operand.vmem [shape: f32[1,16], index: 2, kind: input, shape index: {}]   ;;  %s13525_s3 = inlined_call_operand.vmem [shape: bf16[144,16], index: 3, kind: input, shape index: {}]   ;;  %s13526_s4 = inlined_call_operand.vmem [shape: f32[1,16], index: 4, kind: input, shape index: {}]   ;;  %s13527_s5 = inlined_call_operand.vmem [shape: bf16[16,32], index: 5, kind: input, shape index: {}]   ;;  %s13528_s6 = inlined_call_operand.vmem [shape: f32[1,32], index: 6, kind: input, shape index: {}]   ;;  %s13529_s7 = inlined_call_operand.hbm [shape: f32[2,16,16,32], index: 7, kind: output, shape index: {}]  }
   0x1   :  { %13 = vsyncpa [#allocation6], 0  ;;  %s10350_s24 = smov [#allocation4]   ;;  %s10302_s28 = scalar_lea.hbm %s13522_s0, 8192 }
   0x2   :  { %s19_s25 = sshll.u32 %s10350_s24, 4  ;;  %p10303_p0 = scmp.ne.s32.totalorder %s13522_s0, %s10302_s28  ;;  %s20_s25 = int_to_ptr.vmem [resolvable:$true] %s19_s25 }
   0x3   :  { %p10306_p1 = scmp.lt.u32.totalorder %s10302_s28, %s13522_s0 }
   0x5   :  { %p10308_p2 = pnand %p10306_p1, %p10303_p0 }
   0x7   :  { %10311 = shalt.err (!%p10308_p2)
}
   0x8   :  { %s10312_s10 = scalar_lea.vmem %s20_s25, 8192  ;;  %p10317_p4 = scmp.lt.s32.totalorder %s20_s25, %s20_s25 }
   0x9   :  { %p10313_p3 = scmp.ne.s32.totalorder %s20_s25, %s10312_s10  ;;  %p10318_p5 = scmp.lt.s32.totalorder %s10312_s10, %s10312_s10 }
   0xb   :  { %p10319_p6 = por %p10318_p5, %p10317_p4 }
   0xd   :  { %p10320_p7 = pnand %p10319_p6, %p10313_p3 }
   0xf   :  { %10323 = shalt.err (!%p10320_p7)
}
  0x10   :  { %s10351_s11 = smov 128   ;;  %s10352_s12 = smov 8  }
  0x11   :  { %25 = dma.hbm_to_vmem [thread:$0]  %s13522_s0, 8192, %s20_s25, [#allocation5], %s10351_s11, %s10351_s11, %s10352_s12  }
  0x12   :  { %10346 = dma.done.wait [#allocation5], 8192  }
  0x13   :  { %10347 = vsyncadd [#allocation5], 4294959104  ;;  %v10122_v0 = vld [vmem:[%s13523_s1] sm:$0xff]   ;;  %v10123_v1 = vld [vmem:[%s13523_s1 + $0x8] sm:$0xff]   ;;  %vm161_vm0 = vcmask 261120   ;;  %vm611_vm1 = vcmask 125952  }
  0x14   :  { %9958 = vmatprep.subr.bf16.mxu0 %v10122_v0  ;;  %v42_v2 = vld [vmem:[#allocation4] sm:$0xff]  ;;  %v43_v3 = vld [vmem:[#allocation4 + $0x8] sm:$0xff]  ;;  %v44_v5 = vld [vmem:[#allocation4 + $0x10] sm:$0xff]  ;;  %vm614_vm2 = vcmask 122880   ;;  %vm627_vm3 = vsmask.f32 256 }
  0x15   :  { %9959 = vmatpush3.bf16.msra.mxu0 %v10122_v0  ;;  %v106_v4 = vpack.c.bf16 %v43_v3, %v42_v2  ;;  %v45_v6 = vld [vmem:[#allocation4 + $0x18] sm:$0xff]  ;;  %v46_v7 = vld [vmem:[#allocation4 + $0x20] sm:$0xff]  ;;  %v47_v8 = vld [vmem:[#allocation4 + $0x28] sm:$0xff]  ;;  %vm737_vm5 = vsmask.f32 7938  ;;  %vm3481_vm7 = vcmask 1042432  }
  0x16   :  { %9960 = vmatprep.subr.bf16.mxu0 %v10123_v1  ;;  %v107_v9 = vpack.c.bf16 %v45_v6, %v44_v5  ;;  %v108_v10 = vpack.c.bf16 %v47_v8, %v46_v7  ;;  %v48_v11 = vld [vmem:[#allocation4 + $0x30] sm:$0xff]  ;;  %v49_v12 = vld [vmem:[#allocation4 + $0x38] sm:$0xff]  ;;  %v50_v13 = vld [vmem:[#allocation4 + $0x40] sm:$0xff]  ;;  %vm3482_vm8 = vcmask 1046532   ;;  %s10354_s0 = smov 32   ;;  %s10355_s1 = smov 96  }
  0x17   :  { %9962 = vmatprep.mubr.msk.bf16.mxu0 %vm161_vm0, %v106_v4  ;;  %v51_v14 = vld [vmem:[#allocation4 + $0x48] sm:$0xff]  ;;  %v109_v15 = vpack.c.bf16 %v49_v12, %v48_v11  ;;  %v52_v17 = vld [vmem:[#allocation4 + $0x50] sm:$0xff]  ;;  %v53_v18 = vld [vmem:[#allocation4 + $0x58] sm:$0xff]  ;;  %vm2293_vm10 = vsmask.f32 3328  ;;  %s10356_s19 = smov 112  }
  0x18   :  { %v110_v16 = vpack.c.bf16 %v51_v14, %v50_v13  ;;  %v54_v19 = vld [vmem:[#allocation4 + $0x60] sm:$0xff]  ;;  %v55_v20 = vld [vmem:[#allocation4 + $0x68] sm:$0xff]  ;;  %v111_v21 = vpack.c.bf16 %v53_v18, %v52_v17  ;;  %v56_v23 = vld [vmem:[#allocation4 + $0x70] sm:$0xff]  ;;  %vm2294_vm11 = vsmask.f32 7440  ;;  %s10357_s20 = smov 16  }
  0x19   :  { %9961 = vmatpush3.bf16.msra.mxu0 %v10123_v1  ;;  %v112_v22 = vpack.c.bf16 %v55_v20, %v54_v19  ;;  %v57_v24 = vld [vmem:[#allocation4 + $0x78] sm:$0xff]  ;;  %v58_v25 = vld [vmem:[#allocation4 + $0x80] sm:$0xff]  ;;  %v59_v26 = vld [vmem:[#allocation4 + $0x88] sm:$0xff]  ;;  %v10353_v1 = vmov 0   ;;  %vm1039_vm13 = vsmask.f32 4368 }
  0x1a   :  { %v113_v27 = vpack.c.bf16 %v57_v24, %v56_v23  ;;  %v114_v28 = vpack.c.bf16 %v59_v26, %v58_v25  ;;  %v60_v29 = vld [vmem:[#allocation4 + $0x90] sm:$0xff]  ;;  %v61_v30 = vld [vmem:[#allocation4 + $0x98] sm:$0xff]  ;;  %v62_v31 = vld [vmem:[#allocation4 + $0xa0] sm:$0xff]  ;;  %616 = vst.msk [vmem:[#allocation2 + $0xd8] sm:$0xf] %vm611_vm1, %v10353_v1  ;;  %8274 = vmatprep.subr.bf16.mxu0 %v10353_v1  ;;  %10092 = vmatprep.subr.bf16.mxu1 %v10353_v1  ;;  %s10358_s23 = smov 48  }
  0x1b   :  { %v63_v32 = vld [vmem:[#allocation4 + $0xa8] sm:$0xff]  ;;  %v115_v33 = vpack.c.bf16 %v61_v30, %v60_v29  ;;  %v64_v35 = vld [vmem:[#allocation4 + $0xb0] sm:$0xff]  ;;  %v65_v36 = vld [vmem:[#allocation4 + $0xb8] sm:$0xff]  ;;  %617 = vst.msk [vmem:[#allocation2 + $0xdc] sm:$0xf] %vm611_vm1, %v10353_v1  ;;  %s10359_s24 = smov 80  }
  0x1c   :  { %9963 = vmatmul.mubr.msk.bf16.vlgmr.msra.gmra.mrb[0].mxu0 %vm161_vm0, %v107_v9  ;;  %v116_v34 = vpack.c.bf16 %v63_v32, %v62_v31  ;;  %v66_v37 = vld [vmem:[#allocation4 + $0xc0] sm:$0xff]  ;;  %v67_v38 = vld [vmem:[#allocation4 + $0xc8] sm:$0xff]  ;;  %v117_v39 = vpack.c.bf16 %v65_v36, %v64_v35  ;;  %v68_v41 = vld [vmem:[#allocation4 + $0xd0] sm:$0xff]  ;;  %612 = vst.msk [vmem:[#allocation2] sm:$0xf] %vm611_vm1, %v10353_v1  ;;  %s10360_s25 = smov 64  }
  0x1d   :  { %9966 = vmatprep.mubr.msk.bf16.mxu0 %vm161_vm0, %v108_v10  ;;  %v118_v40 = vpack.c.bf16 %v67_v38, %v66_v37  ;;  %v69_v42 = vld [vmem:[#allocation4 + $0xd8] sm:$0xff]  ;;  %v70_v43 = vld [vmem:[#allocation4 + $0xe0] sm:$0xff]  ;;  %v71_v44 = vld [vmem:[#allocation4 + $0xe8] sm:$0xff]  ;;  %613 = vst.msk [vmem:[#allocation2 + $0x4] sm:$0xf] %vm611_vm1, %v10353_v1 }
  0x1e   :  { %v119_v45 = vpack.c.bf16 %v69_v42, %v68_v41  ;;  %v120_v46 = vpack.c.bf16 %v71_v44, %v70_v43  ;;  %v72_v47 = vld [vmem:[#allocation4 + $0xf0] sm:$0xff]  ;;  %v73_v48 = vld [vmem:[#allocation4 + $0xf8] sm:$0xff]  ;;  %v74_v49 = vld [vmem:[#allocation4 + $0x100] sm:$0xff]  ;;  %620 = vst.msk [vmem:[#allocation2 + $0xcc] sm:$0xf] %vm611_vm1, %v10353_v1 }
  0x1f   :  { %v75_v50 = vld [vmem:[#allocation4 + $0x108] sm:$0xff]  ;;  %v121_v51 = vpack.c.bf16 %v73_v48, %v72_v47  ;;  %v76_v53 = vld [vmem:[#allocation4 + $0x110] sm:$0xff]  ;;  %v77_v54 = vld [vmem:[#allocation4 + $0x118] sm:$0xff]  ;;  %621 = vst.msk [vmem:[#allocation2 + $0xd0] sm:$0xf] %vm611_vm1, %v10353_v1 }
  0x20   :  { %v122_v52 = vpack.c.bf16 %v75_v50, %v74_v49  ;;  %v78_v55 = vld [vmem:[#allocation4 + $0x120] sm:$0xff]  ;;  %v79_v56 = vld [vmem:[#allocation4 + $0x128] sm:$0xff]  ;;  %v123_v57 = vpack.c.bf16 %v77_v54, %v76_v53  ;;  %v80_v59 = vld [vmem:[#allocation4 + $0x130] sm:$0xff]  ;;  %623 = vst.msk [vmem:[#allocation2 + $0x1a4] sm:$0xf] %vm611_vm1, %v10353_v1 }
  0x21   :  { %v124_v58 = vpack.c.bf16 %v79_v56, %v78_v55  ;;  %v81_v60 = vld [vmem:[#allocation4 + $0x138] sm:$0xff]  ;;  %v82_v61 = vld [vmem:[#allocation4 + $0x140] sm:$0xff]  ;;  %v83_v62 = vld [vmem:[#allocation4 + $0x148] sm:$0xff]  ;;  %624 = vst.msk [vmem:[#allocation2 + $0x1a8] sm:$0xf] %vm611_vm1, %v10353_v1 }
  0x22   :  { %v125_v63 = vpack.c.bf16 %v81_v60, %v80_v59  ;;  %v126_v0 = vpack.c.bf16 %v83_v62, %v82_v61  ;;  %618 = vst.msk [vmem:[#allocation2 + $0xe0] sm:$0x1] %vm614_vm2, %v10353_v1  ;;  %615 = vst.msk [vmem:[#allocation2 + $0x8] sm:$0x1] %vm614_vm2, %v10353_v1  ;;  %v84_v2 = vld [vmem:[#allocation4 + $0x150] sm:$0xff]  ;;  %v85_v3 = vld [vmem:[#allocation4 + $0x158] sm:$0xff] }
  0x23   :  { %622 = vst.msk [vmem:[#allocation2 + $0xd4] sm:$0x1] %vm614_vm2, %v10353_v1  ;;  %625 = vst.msk [vmem:[#allocation2 + $0x1ac] sm:$0x1] %vm614_vm2, %v10353_v1  ;;  %v127_v4 = vpack.c.bf16 %v85_v3, %v84_v2  ;;  %v683_v12 = vld [vmem:[#allocation2 + $0xd8] sm:$0x1] }
  0x24   :  { %9967 = vmatmul.mubr.msk.bf16.gmra.mrb[4].mxu0 %vm161_vm0, %v109_v15  ;;  %vm10467_vm4 = vmand %vm614_vm2, %vm627_vm3  ;;  %v86_v13 = vld [vmem:[#allocation4 + $0x160] sm:$0xff]  ;;  %v87_v14 = vld [vmem:[#allocation4 + $0x168] sm:$0xff] }
  0x25   :  { %9970 = vmatprep.mubr.msk.bf16.mxu0 %vm161_vm0, %v110_v16  ;;  %vm10472_vm6 = vmand %vm614_vm2, %vm737_vm5  ;;  %v680_v9 = vld [vmem:[#allocation2 + $0xcc] sm:$0x1]  ;;  %v3338_v15 = vld [vmem:[#allocation2 + $0xdc] sm:$0xf]  ;;  %v684_v17 = vsel %vm10467_vm4, 0, %v683_v12  ;;  %v128_v19 = vpack.c.bf16 %v87_v14, %v86_v13  ;;  %vm2164_vm2 = vcmask 130048  }
  0x26   :  { %v681_v10 = vsel %vm10467_vm4, 0, %v680_v9  ;;  %v635_v18 = vld [vmem:[#allocation2 + $0x18] sm:$0x1]  ;;  %v88_v20 = vld [vmem:[#allocation4 + $0x170] sm:$0xff]  ;;  %685 = vst [vmem:[#allocation2 + $0xd8] sm:$0x1] %v684_v17  ;;  %vm10495_vm9 = vmor %vm3481_vm7, %vm3482_vm8 }
  0x27   :  { %682 = vst [vmem:[#allocation2 + $0xcc] sm:$0x1] %v681_v10  ;;  %v636_v23 = vsel %vm10467_vm4, 0, %v635_v18  ;;  %v632_v24 = vld [vmem:[#allocation2 + $0xc] sm:$0x1]  ;;  %v90_v59 = vld [vmem:[#allocation4 + $0x180] sm:$0xff]  ;;  %vm10511_vm12 = vmor %vm2293_vm10, %vm2294_vm11 }
  0x28   :  { %v3337_v26 = vld [vmem:[#allocation2 + $0xd8] sm:$0xe]  ;;  %637 = vst [vmem:[#allocation2 + $0x18] sm:$0x1] %v636_v23  ;;  %v742_v31 = vld [vmem:[#allocation2 + $0x14] sm:$0x1]  ;;  %vm10586_vm14 = vmand %vm611_vm1, %vm737_vm5 }
  0x29   :  { %v793_v7 = vld [vmem:[#allocation2 + $0xe0] sm:$0x1]  ;;  %v9447_v32 = vrot.slane %v3337_v26, 9  ;;  %v739_v42 = vld [vmem:[#allocation2 + $0x8] sm:$0x1]  ;;  %vm10593_vm15 = vmor %vm627_vm3, %vm1039_vm13  ;;  %vm3256_vm3 = vcmask 261248  }
  0x2a   :  { %v794_v8 = vsel %vm10472_vm6, 0, %v793_v7  ;;  %v790_v11 = vld [vmem:[#allocation2 + $0xd4] sm:$0x1]  ;;  %v2246_v54 = vld [vmem:[#allocation2 + $0xdc] sm:$0xf]  ;;  %vm3900_vm5 = vcmask 392448  }
  0x2b   :  { %795 = vst [vmem:[#allocation2 + $0xe0] sm:$0x1] %v794_v8  ;;  %v791_v16 = vsel %vm10472_vm6, 0, %v790_v11  ;;  %v2690_v62 = vshll.u32 %v2246_v54, 16  ;;  %v2694_v2 = vshrl.u32 %v2246_v54, 16  ;;  %v91_v7 = vld [vmem:[#allocation4 + $0x188] sm:$0xff] }
  0x2c   :  { %9971 = vmatmul.mubr.msk.bf16.gmra.mrb[8].mxu0 %vm161_vm0, %v111_v21  ;;  %v89_v21 = vld [vmem:[#allocation4 + $0x178] sm:$0xff]  ;;  %792 = vst [vmem:[#allocation2 + $0xd4] sm:$0x1] %v791_v16  ;;  %v629_v11 = vld [vmem:[#allocation2] sm:$0x1]  ;;  %v130_v12 = vpack.c.bf16 %v91_v7, %v90_v59  ;;  %v99_v7 = vld [vmem:[#allocation4 + $0x1c8] sm:$0xff] }
  0x2d   :  { %9974 = vmatprep.mubr.msk.bf16.mxu0 %vm161_vm0, %v112_v22  ;;  %v3598_v22 = vrot.slane %v3338_v15, 5  ;;  %v129_v25 = vpack.c.bf16 %v89_v21, %v88_v20  ;;  %v92_v15 = vld [vmem:[#allocation4 + $0x190] sm:$0xff]  ;;  %v93_v16 = vld [vmem:[#allocation4 + $0x198] sm:$0xff]  ;;  %v2692_v21 = vrot.slane %v2690_v62, 5  ;;  %vm4253_vm7 = vcmask 523648  }
  0x2e   :  { %v6415_v37 = vld [vmem:[#allocation2 + $0xcc] sm:$0xf]  ;;  %v131_v18 = vpack.c.bf16 %v93_v16, %v92_v15  ;;  %v3290_v26 = vld [vmem:[#allocation2 + $0x4] sm:$0xf]  ;;  %vm5342_vm8 = vcmask 654848   ;;  %vm5983_vm10 = vcmask 786048  }
  0x2f   :  { %v3599_v38 = vsel %vm10495_vm9, %v9447_v32, %v3598_v22  ;;  %v6830_v41 = vshll.u32 %v6415_v37, 16  ;;  %v10124_v8 = vld [vmem:[#allocation2 + $0xcc] sm:$0xff]   ;;  %v2198_v32 = vld [vmem:[#allocation2 + $0x4] sm:$0xf]  ;;  %vm6337_vm11 = vcmask 917248   ;;  %vm7426_vm13 = vcmask 1048448  }
  0x30   :  { %6271 = vrot.lane.b32.xlu1 %v10124_v8, %s10355_s1  ;;  %v97_v59 = vld [vmem:[#allocation4 + $0x1b8] sm:$0xff] }
  0x31   :  { %v6832_v50 = vrot.slane %v6830_v41, 5  ;;  %v94_v41 = vld [vmem:[#allocation4 + $0x1a0] sm:$0xff] }
  0x32   :  { %v3339_v29 = vld [vmem:[#allocation2 + $0xe0] sm:$0x1] }
  0x33   :  { %v3601_v36 = vrot.slane %v3339_v29, 5  ;;  %v6417_v48 = vld [vmem:[#allocation2 + $0xd4] sm:$0x1]  ;;  %v2247_v17 = vld [vmem:[#allocation2 + $0xe0] sm:$0x1] }
  0x34   :  { %9975 = vmatmul.mubr.msk.bf16.gmra.mrb[12].mxu0 %vm161_vm0, %v113_v27  ;;  %v633_v27 = vsel %vm10467_vm4, 0, %v632_v24  ;;  %v2696_v24 = vrot.slane %v2694_v2, 4 }
  0x35   :  { %9978 = vmatprep.mubr.msk.bf16.mxu0 %vm161_vm0, %v114_v28  ;;  %v745_v28 = vld [vmem:[#allocation2 + $0x20] sm:$0x1]  ;;  %634 = vst [vmem:[#allocation2 + $0xc] sm:$0x1] %v633_v27 }
  0x36   :  { %v746_v30 = vsel %vm10472_vm6, 0, %v745_v28 }
  0x37   :  { %747 = vst [vmem:[#allocation2 + $0x20] sm:$0x1] %v746_v30 }
  0x3c   :  { %9979 = vmatmul.mubr.msk.bf16.gmra.mrb[16].mxu0 %vm161_vm0, %v115_v33  ;;  %v3600_v33 = vrot.slane %v3598_v22, 4  ;;  %v3289_v22 = vld [vmem:[#allocation2] sm:$0xe] }
  0x3d   :  { %9982 = vmatprep.mubr.msk.bf16.mxu0 %vm161_vm0, %v116_v34  ;;  %v743_v34 = vsel %vm10472_vm6, 0, %v742_v31  ;;  %v9431_v30 = vrot.slane %v3289_v22, 9  ;;  %v3486_v31 = vrot.slane %v3290_v26, 5  ;;  %v644_v22 = vld [vmem:[#allocation2 + $0x3c] sm:$0x1] }
  0x3e   :  { %744 = vst [vmem:[#allocation2 + $0x14] sm:$0x1] %v743_v34  ;;  %v3602_v43 = vsel %vm10495_vm9, %v3600_v33, %v3601_v36  ;;  %v2697_v33 = vor.u32 %v2696_v24, %v2692_v21  ;;  %v645_v26 = vsel %vm10467_vm4, 0, %v644_v22 }
  0x3f   :  { %v9479_v47 = vcombine.low %v3599_v38, %v3602_v43  ;;  %v2306_v43 = vshll.u32 %v2198_v32, 16  ;;  %646 = vst [vmem:[#allocation2 + $0x3c] sm:$0x1] %v645_v26 }
  0x41   :  { %3836 = vrot.lane.b32.xlu0 %v9479_v47, %s10354_s0 }
  0x44   :  { %9983 = vmatmul.mubr.msk.bf16.gmra.mrb[20].mxu0 %vm161_vm0, %v117_v39  ;;  %v6416_v39 = vld [vmem:[#allocation2 + $0xd0] sm:$0xf] }
  0x45   :  { %9986 = vmatprep.mubr.msk.bf16.mxu0 %vm161_vm0, %v118_v40  ;;  %v6827_v40 = vshrl.u32 %v6415_v37, 16  ;;  %v6836_v44 = vshll.u32 %v6416_v39, 16  ;;  %v630_v37 = vsel %vm10467_vm4, 0, %v629_v11  ;;  %v100_v11 = vld [vmem:[#allocation4 + $0x1d0] sm:$0xff] }
  0x46   :  { %631 = vst [vmem:[#allocation2] sm:$0x1] %v630_v37  ;;  %v653_v37 = vld [vmem:[#allocation2 + $0x60] sm:$0x1] }
  0x47   :  { %v6829_v49 = vrot.slane %v6827_v40, 4  ;;  %v3488_v40 = vrot.slane %v3486_v31, 4 }
  0x49   :  { %v6833_v55 = vor.u32 %v6832_v50, %v6829_v49 }
  0x4b   :  { %v6834_v60 = vrot.slane %v6833_v55, 4 }
  0x4c   :  { %9987 = vmatmul.mubr.msk.bf16.gmra.mrb[24].mxu0 %vm161_vm0, %v119_v45  ;;  %v6840_v45 = vshrl.u32 %v6416_v39, 16  ;;  %v3487_v39 = vsel %vm10495_vm9, %v9431_v30, %v3486_v31  ;;  %v103_v30 = vld [vmem:[#allocation4 + $0x1e8] sm:$0xff] }
  0x4d   :  { %9990 = vmatprep.mubr.msk.bf16.mxu0 %vm161_vm0, %v120_v46  ;;  %v740_v46 = vsel %vm10472_vm6, 0, %v739_v42  ;;  %v95_v42 = vld [vmem:[#allocation4 + $0x1a8] sm:$0xff] }
  0x4e   :  { %741 = vst [vmem:[#allocation2 + $0x8] sm:$0x1] %v740_v46  ;;  %v6842_v53 = vrot.slane %v6840_v45, 4  ;;  %v748_v45 = vld [vmem:[#allocation2 + $0x2c] sm:$0x1]  ;;  %v2698_v46 = vrot.slane %v2697_v33, 4  ;;  %v132_v47 = vpack.c.bf16 %v95_v42, %v94_v41 }
  0x4f   :  { %v749_v50 = vsel %vm10472_vm6, 0, %v748_v45  ;;  %v104_v33 = vld [vmem:[#allocation4 + $0x1f0] sm:$0xff]  ;;  %v763_v41 = vld [vmem:[#allocation2 + $0x68] sm:$0x1]  ;;  %v659_v45 = vld [vmem:[#allocation2 + $0x78] sm:$0x1] }
  0x50   :  { %750 = vst [vmem:[#allocation2 + $0x2c] sm:$0x1] %v749_v50  ;;  %v764_v42 = vsel %vm10472_vm6, 0, %v763_v41 }
  0x51   :  { %765 = vst [vmem:[#allocation2 + $0x68] sm:$0x1] %v764_v42 }
  0x54   :  { %9991 = vmatmul.mubr.msk.bf16.gmra.mrb[28].mxu0 %vm161_vm0, %v121_v51  ;;  %v2245_v51 = vld [vmem:[#allocation2 + $0xd8] sm:$0xf] }
  0x55   :  { %9994 = vmatprep.mubr.msk.bf16.mxu0 %vm161_vm0, %v122_v52  ;;  %v6838_v52 = vrot.slane %v6836_v44, 5  ;;  %v2684_v61 = vshll.u32 %v2245_v51, 16  ;;  %v3291_v27 = vld [vmem:[#allocation2 + $0x8] sm:$0x1]  ;;  %v751_v44 = vld [vmem:[#allocation2 + $0x38] sm:$0x1] }
  0x56   :  { %v3489_v36 = vrot.slane %v3291_v27, 5  ;;  %v752_v49 = vsel %vm10472_vm6, 0, %v751_v44 }
  0x57   :  { %v6843_v56 = vor.u32 %v6842_v53, %v6838_v52  ;;  %v6839_v13 = vsel %vm10511_vm12, %v6834_v60, %v6838_v52  ;;  %v2686_v20 = vrot.slane %v2684_v61, 5  ;;  %v2199_v53 = vld [vmem:[#allocation2 + $0x8] sm:$0x1]  ;;  %753 = vst [vmem:[#allocation2 + $0x38] sm:$0x1] %v752_v49 }
  0x58   :  { %v3490_v52 = vsel %vm10495_vm9, %v3488_v40, %v3489_v36  ;;  %v2316_v62 = vshll.u32 %v2199_v53, 16 }
  0x59   :  { %v6844_v10 = vrot.slane %v6843_v56, 4  ;;  %v9463_v55 = vcombine.low %v3487_v39, %v3490_v52  ;;  %v2308_v56 = vrot.slane %v2306_v43, 5  ;;  %v650_v39 = vld [vmem:[#allocation2 + $0x54] sm:$0x1]  ;;  %v760_v43 = vld [vmem:[#allocation2 + $0x5c] sm:$0x1] }
  0x5a   :  { %v2318_v8 = vrot.slane %v2316_v62, 5  ;;  %v651_v40 = vsel %vm10467_vm4, 0, %v650_v39  ;;  %v761_v44 = vsel %vm10472_vm6, 0, %v760_v43  ;;  %v766_v52 = vld [vmem:[#allocation2 + $0x74] sm:$0x1] }
  0x5b   :  { %3804 = vrot.lane.b32.xlu1 %v9463_v55, %s10354_s0  ;;  %652 = vst [vmem:[#allocation2 + $0x54] sm:$0x1] %v651_v40  ;;  %762 = vst [vmem:[#allocation2 + $0x5c] sm:$0x1] %v761_v44  ;;  %v1688_v43 = vld [vmem:[#allocation2 + $0x14] sm:$0x1] }
  0x5c   :  { %9995 = vmatmul.mubr.msk.bf16.gmra.mrb[32].mxu0 %vm161_vm0, %v123_v57  ;;  %v6846_v57 = vshll.u32 %v6417_v48, 16  ;;  %v2310_v48 = vshrl.u32 %v2198_v32, 16 }
  0x5d   :  { %9998 = vmatprep.mubr.msk.bf16.mxu0 %vm161_vm0, %v124_v58  ;;  %v2681_v58 = vshrl.u32 %v2245_v51, 16 }
  0x5e   :  { %v6848_v14 = vrot.slane %v6846_v57, 5  ;;  %v2312_v57 = vrot.slane %v2310_v48, 4  ;;  %v769_v48 = vld [vmem:[#allocation2 + $0x80] sm:$0x1] }
  0x5f   :  { %v770_v50 = vsel %vm10472_vm6, 0, %v769_v48 }
  0x60   :  { %v6849_v23 = vsel %vm10511_vm12, %v6844_v10, %v6848_v14  ;;  %771 = vst [vmem:[#allocation2 + $0x80] sm:$0x1] %v770_v50 }
  0x61   :  { %v9670_v28 = vcombine.low %v6839_v13, %v6849_v23  ;;  %v757_v23 = vld [vmem:[#allocation2 + $0x50] sm:$0x1] }
  0x62   :  { %v758_v27 = vsel %vm10472_vm6, 0, %v757_v23 }
  0x63   :  { %7360 = vrot.lane.b32.xlu0 %v9670_v28, %s10356_s19  ;;  %759 = vst [vmem:[#allocation2 + $0x50] sm:$0x1] %v758_v27  ;;  %v754_v28 = vld [vmem:[#allocation2 + $0x44] sm:$0x1] }
  0x64   :  { %9999 = vmatmul.mubr.msk.bf16.gmra.mrb[36].mxu0 %vm161_vm0, %v125_v63  ;;  %v641_v63 = vld [vmem:[#allocation2 + $0x30] sm:$0x1]  ;;  %v755_v31 = vsel %vm10472_vm6, 0, %v754_v28 }
  0x65   :  { %10002 = vmatprep.mubr.msk.bf16.mxu0 %vm161_vm0, %v126_v0  ;;  %v638_v0 = vld [vmem:[#allocation2 + $0x24] sm:$0x1]  ;;  %v642_v3 = vsel %vm10467_vm4, 0, %v641_v63  ;;  %v2313_v63 = vor.u32 %v2312_v57, %v2308_v56  ;;  %756 = vst [vmem:[#allocation2 + $0x44] sm:$0x1] %v755_v31 }
  0x66   :  { %643 = vst [vmem:[#allocation2 + $0x30] sm:$0x1] %v642_v3 }
  0x67   :  { %v2314_v15 = vrot.slane %v2313_v63, 4 }
  0x6c   :  { %10003 = vmatmul.mubr.msk.bf16.gmra.mrb[40].mxu0 %vm161_vm0, %v127_v4  ;;  %v639_v4 = vsel %vm10467_vm4, 0, %v638_v0  ;;  %v2197_v0 = vld [vmem:[#allocation2] sm:$0xf] }
  0x6d   :  { %10006 = vmatprep.mubr.msk.bf16.mxu0 %vm161_vm0, %v128_v19  ;;  %640 = vst [vmem:[#allocation2 + $0x24] sm:$0x1] %v639_v4  ;;  %v2683_v19 = vrot.slane %v2681_v58, 4  ;;  %v96_v58 = vld [vmem:[#allocation4 + $0x1b0] sm:$0xff]  ;;  %v2297_v2 = vshrl.u32 %v2197_v0, 16  ;;  %v2300_v3 = vshll.u32 %v2197_v0, 16 }
  0x6e   :  { %v133_v61 = vpack.c.bf16 %v97_v59, %v96_v58  ;;  %v98_v4 = vld [vmem:[#allocation4 + $0x1c0] sm:$0xff] }
  0x6f   :  { %v2687_v29 = vor.u32 %v2686_v20, %v2683_v19  ;;  %v134_v10 = vpack.c.bf16 %v99_v7, %v98_v4  ;;  %v2299_v13 = vrot.slane %v2297_v2, 4  ;;  %v2302_v14 = vrot.slane %v2300_v3, 5 }
  0x70   :  { %v2319_v19 = vsel %vm10511_vm12, %v2314_v15, %v2318_v8 }
  0x71   :  { %v2688_v38 = vrot.slane %v2687_v29, 4  ;;  %v102_v29 = vld [vmem:[#allocation4 + $0x1e0] sm:$0xff] }
  0x72   :  { %v136_v32 = vpack.c.bf16 %v103_v30, %v102_v29  ;;  %v1684_v29 = vld [vmem:[#allocation2 + $0xc] sm:$0xf] }
  0x73   :  { %v2693_v51 = vsel %vm10511_vm12, %v2688_v38, %v2692_v21  ;;  %v647_v21 = vld [vmem:[#allocation2 + $0x48] sm:$0x1]  ;;  %v654_v38 = vsel %vm10467_vm4, 0, %v653_v37  ;;  %v1695_v37 = vld [vmem:[#allocation2 + $0x20] sm:$0x1] }
  0x74   :  { %10007 = vmatmul.mubr.msk.bf16.gmra.mrb[44].mxu0 %vm161_vm0, %v129_v25  ;;  %v2700_v25 = vshll.u32 %v2247_v17, 16  ;;  %v2303_v17 = vor.u32 %v2302_v14, %v2299_v13  ;;  %655 = vst [vmem:[#allocation2 + $0x60] sm:$0x1] %v654_v38 }
  0x75   :  { %10010 = vmatprep.mubr.msk.bf16.mxu0 %vm161_vm0, %v130_v12  ;;  %v101_v12 = vld [vmem:[#allocation4 + $0x1d8] sm:$0xff] }
  0x76   :  { %v2702_v34 = vrot.slane %v2700_v25, 5  ;;  %v135_v16 = vpack.c.bf16 %v101_v12, %v100_v11  ;;  %v648_v25 = vsel %vm10467_vm4, 0, %v647_v21  ;;  %v1691_v21 = vld [vmem:[#allocation2 + $0x18] sm:$0xf] }
  0x77   :  { %649 = vst [vmem:[#allocation2 + $0x48] sm:$0x1] %v648_v25 }
  0x78   :  { %v2703_v54 = vsel %vm10511_vm12, %v2698_v46, %v2702_v34  ;;  %v105_v34 = vld [vmem:[#allocation4 + $0x1f8] sm:$0xff]  ;;  %v660_v46 = vsel %vm10467_vm4, 0, %v659_v45 }
  0x79   :  { %v9415_v60 = vcombine.low %v2693_v51, %v2703_v54  ;;  %v137_v36 = vpack.c.bf16 %v105_v34, %v104_v33  ;;  %661 = vst [vmem:[#allocation2 + $0x78] sm:$0x1] %v660_v46  ;;  %v10575_v51 = vld [vmem:[%s13524_s2] ss:$0 sm:$0xff]  ;;  %v767_v54 = vsel %vm10472_vm6, 0, %v766_v52 }
  0x7a   :  { %768 = vst [vmem:[#allocation2 + $0x74] sm:$0x1] %v767_v54 }
  0x7b   :  { %3192 = vrot.lane.b32.xlu0 %v9415_v60, %s10357_s20 }
  0x7c   :  { %10011 = vmatmul.mubr.msk.bf16.gmra.mrb[48].mxu0 %vm161_vm0, %v131_v18  ;;  %v2304_v18 = vrot.slane %v2303_v17, 4 }
  0x7d   :  { %10014 = vmatprep.mubr.msk.bf16.mxu0 %vm161_vm0, %v132_v47  ;;  %v656_v47 = vld [vmem:[#allocation2 + $0x6c] sm:$0x1] }
  0x7e   :  { %v2309_v20 = vsel %vm10511_vm12, %v2304_v18, %v2308_v56  ;;  %v657_v49 = vsel %vm10467_vm4, 0, %v656_v47 }
  0x7f   :  { %v9399_v24 = vcombine.low %v2309_v20, %v2319_v19  ;;  %658 = vst [vmem:[#allocation2 + $0x6c] sm:$0x1] %v657_v49 }
  0x81   :  { %3160 = vrot.lane.b32.xlu1 %v9399_v24, %s10357_s20 }
  0x84   :  { %10015 = vmatmul.mubr.msk.bf16.gmra.mrb[52].mxu0 %vm161_vm0, %v133_v61 }
  0x85   :  { %10018 = vmatprep.mubr.msk.bf16.mxu0 %vm161_vm0, %v134_v10 }
  0x8c   :  { %10019 = vmatmul.mubr.msk.bf16.gmra.mrb[56].mxu0 %vm161_vm0, %v135_v16 }
  0x8d   :  { %10022 = vmatprep.mubr.msk.bf16.mxu0 %vm161_vm0, %v136_v32 }
  0x94   :  { %10023 = vmatmul.mubr.msk.bf16.gmra.mrb[60].mxu0 %vm161_vm0, %v137_v36 }
  0xef   :  { %v9964_v53 = vpop.f32.mrb[0].mxu0 }
  0xf0   :  { %v301_v55 = vadd.f32 %v9964_v53, %v10575_v51  ;;  %v292_v56 = vpop.f32.mrb[1].mxu0 }
  0xf1   :  { %v293_v57 = vadd.f32 %v10575_v51, %v292_v56  ;;  %v9965_v58 = vpop.f32.mrb[2].mxu0 }
  0xf2   :  { %v549_v59 = vmax.f32 %v301_v55, 0.0  ;;  %v304_v60 = vadd.f32 %v9965_v58, %v10575_v51  ;;  %v295_v61 = vpop.f32.mrb[3].mxu0 }
  0xf3   :  { %v547_v62 = vmax.f32 %v293_v57, 0.0  ;;  %v296_v63 = vadd.f32 %v10575_v51, %v295_v61 }
  0xf4   :  { %v9829_v0 = vpack.c.bf16 %v549_v59, %v549_v59  ;;  %v550_v2 = vmax.f32 %v304_v60, 0.0 }
  0xf5   :  { %v9827_v3 = vpack.c.bf16 %v547_v62, %v547_v62  ;;  %v548_v4 = vmax.f32 %v296_v63, 0.0 }
  0xf6   :  { %v1059_v7 = vshrl.u32 %v9829_v0, 16  ;;  %v9830_v8 = vpack.c.bf16 %v550_v2, %v550_v2  ;;  %v1062_v10 = vshll.u32 %v9829_v0, 16  ;;  %v1705_v0 = vld [vmem:[#allocation2 + $0x30] sm:$0xf] }
  0xf7   :  { %v1042_v11 = vshrl.u32 %v9827_v3, 16  ;;  %v1045_v12 = vshll.u32 %v9827_v3, 16  ;;  %v9828_v13 = vpack.c.bf16 %v548_v4, %v548_v4  ;;  %v9968_v14 = vpop.f32.mrb[4].mxu0 }
  0xf8   :  { %v1061_v15 = vrot.slane %v1059_v7, 7  ;;  %v1067_v16 = vshrl.u32 %v9830_v8, 16  ;;  %v1070_v17 = vshll.u32 %v9830_v8, 16  ;;  %v317_v18 = vadd.f32 %v9968_v14, %v10575_v51  ;;  %v308_v19 = vpop.f32.mrb[5].mxu0 }
  0xf9   :  { %v1044_v22 = vrot.slane %v1042_v11, 7  ;;  %v1050_v23 = vshrl.u32 %v9828_v13, 16  ;;  %v1053_v24 = vshll.u32 %v9828_v13, 16  ;;  %v309_v25 = vadd.f32 %v10575_v51, %v308_v19  ;;  %v9969_v26 = vpop.f32.mrb[6].mxu0 }
  0xfa   :  { %v1064_v27 = vor.u32 %v1062_v10, %v1061_v15  ;;  %v1065_v28 = vrot.slane %v1061_v15, 4  ;;  %v1069_v30 = vrot.slane %v1067_v16, 7  ;;  %v553_v31 = vmax.f32 %v317_v18, 0.0  ;;  %v311_v32 = vpop.f32.mrb[7].mxu0  ;;  %v1698_v10 = vld [vmem:[#allocation2 + $0x24] sm:$0xf] }
  0xfb   :  { %v1047_v33 = vor.u32 %v1045_v12, %v1044_v22  ;;  %v1048_v34 = vrot.slane %v1044_v22, 4  ;;  %v1052_v38 = vrot.slane %v1050_v23, 7  ;;  %v551_v39 = vmax.f32 %v309_v25, 0.0 }
  0xfc   :  { %v1692_v40 = vsel %vm10586_vm14, %v1064_v27, %v1691_v21  ;;  %v1072_v41 = vor.u32 %v1070_v17, %v1069_v30  ;;  %v1074_v42 = vrot.slane %v1069_v30, 4  ;;  %v9833_v44 = vpack.c.bf16 %v553_v31, %v553_v31 }
  0xfd   :  { %1693 = vst [vmem:[#allocation2 + $0x18] sm:$0xf] %v1692_v40  ;;  %v1685_v45 = vsel %vm10586_vm14, %v1047_v33, %v1684_v29  ;;  %v1055_v46 = vor.u32 %v1053_v24, %v1052_v38  ;;  %v1057_v47 = vrot.slane %v1052_v38, 4  ;;  %v9831_v48 = vpack.c.bf16 %v551_v39, %v551_v39  ;;  %v1702_v33 = vld [vmem:[#allocation2 + $0x2c] sm:$0x1] }
  0xfe   :  { %1686 = vst [vmem:[#allocation2 + $0xc] sm:$0xf] %v1685_v45  ;;  %v1073_v49 = vsel %vm10593_vm15, %v1065_v28, %v1072_v41  ;;  %v1696_v50 = vsel %vm10467_vm4, %v1074_v42, %v1695_v37  ;;  %v1093_v52 = vshrl.u32 %v9833_v44, 16  ;;  %v1096_v53 = vshll.u32 %v9833_v44, 16 }
  0xff   :  { %1694 = vst.msk [vmem:[#allocation2 + $0x1c] sm:$0xf] %vm611_vm1, %v1073_v49  ;;  %1697 = vst [vmem:[#allocation2 + $0x20] sm:$0x1] %v1696_v50  ;;  %v1056_v54 = vsel %vm10593_vm15, %v1048_v34, %v1055_v46  ;;  %v1689_v55 = vsel %vm10467_vm4, %v1057_v47, %v1688_v43  ;;  %v1076_v56 = vshrl.u32 %v9831_v48, 16  ;;  %v1079_v57 = vshll.u32 %v9831_v48, 16 }
 0x100   :  { %v9972_v58 = vpop.f32.mrb[8].mxu0  ;;  %1687 = vst.msk [vmem:[#allocation2 + $0x10] sm:$0xf] %vm611_vm1, %v1056_v54  ;;  %1690 = vst [vmem:[#allocation2 + $0x14] sm:$0x1] %v1689_v55  ;;  %v10611_v59 = vrot.slane %v1093_v52, 7  ;;  %v320_v60 = vadd.f32 %v9969_v26, %v10575_v51  ;;  %v312_v61 = vadd.f32 %v10575_v51, %v311_v32 }
 0x101   :  { %v333_v62 = vadd.f32 %v9972_v58, %v10575_v51  ;;  %v324_v63 = vpop.f32.mrb[9].mxu0  ;;  %v1078_v2 = vrot.slane %v1076_v56, 7  ;;  %v1709_v32 = vld [vmem:[#allocation2 + $0x38] sm:$0x1]  ;;  %v1719_v46 = vld [vmem:[#allocation2 + $0x48] sm:$0xf] }
 0x102   :  { %v325_v3 = vadd.f32 %v10575_v51, %v324_v63  ;;  %v9973_v4 = vpop.f32.mrb[10].mxu0  ;;  %v1098_v7 = vor.u32 %v1096_v53, %v10611_v59  ;;  %v1099_v8 = vrot.slane %v10611_v59, 4  ;;  %v554_v11 = vmax.f32 %v320_v60, 0.0 }
 0x103   :  { %v552_v12 = vmax.f32 %v312_v61, 0.0  ;;  %v327_v13 = vpop.f32.mrb[11].mxu0  ;;  %v1081_v14 = vor.u32 %v1079_v57, %v1078_v2  ;;  %v1082_v15 = vrot.slane %v1078_v2, 4  ;;  %v557_v16 = vmax.f32 %v333_v62, 0.0 }
 0x104   :  { %v555_v17 = vmax.f32 %v325_v3, 0.0  ;;  %v1706_v18 = vsel %vm10586_vm14, %v1098_v7, %v1705_v0  ;;  %v9834_v19 = vpack.c.bf16 %v554_v11, %v554_v11  ;;  %v10621_v22 = vld [vmem:[#allocation2 + $0x18] sm:$0xe]  ;;  %v336_v26 = vadd.f32 %v9973_v4, %v10575_v51  ;;  %v1712_v4 = vld [vmem:[#allocation2 + $0x3c] sm:$0xf] }
 0x105   :  { %v9832_v21 = vpack.c.bf16 %v552_v12, %v552_v12  ;;  %1707 = vst [vmem:[#allocation2 + $0x30] sm:$0xf] %v1706_v18  ;;  %v1699_v23 = vsel %vm10586_vm14, %v1081_v14, %v1698_v10  ;;  %v9837_v24 = vpack.c.bf16 %v557_v16, %v557_v16  ;;  %v9560_v39 = vrot.slane %v10621_v22, 9  ;;  %v3295_v7 = vld [vmem:[#allocation2 + $0x18] sm:$0xe] }
 0x106   :  { %v9835_v25 = vpack.c.bf16 %v555_v17, %v555_v17  ;;  %v10626_v27 = vld [vmem:[#allocation2 + $0x1c] sm:$0xf]  ;;  %1700 = vst [vmem:[#allocation2 + $0x24] sm:$0xf] %v1699_v23  ;;  %v1101_v28 = vshrl.u32 %v9834_v19, 16  ;;  %v1104_v29 = vshll.u32 %v9834_v19, 16  ;;  %v328_v40 = vadd.f32 %v10575_v51, %v327_v13 }
 0x107   :  { %v1084_v30 = vshrl.u32 %v9832_v21, 16  ;;  %v1087_v31 = vshll.u32 %v9832_v21, 16  ;;  %v10125_v34 = vld [vmem:[#allocation2 + $0x18] sm:$0xff]   ;;  %v1127_v37 = vshrl.u32 %v9837_v24, 16  ;;  %v1130_v38 = vshll.u32 %v9837_v24, 16  ;;  %v10638_v62 = vpop.f32.mrb[12].mxu0 }
 0x108   :  { %v7653_v41 = vrot.slane %v10626_v27, 5  ;;  %v1103_v42 = vrot.slane %v1101_v28, 7  ;;  %v1110_v44 = vshrl.u32 %v9835_v25, 16  ;;  %4159 = vrot.lane.b32.xlu1 %v10125_v34, %s10358_s23  ;;  %v1113_v47 = vshll.u32 %v9835_v25, 16  ;;  %v5379_v55 = vld [vmem:[#allocation2 + $0x1c] sm:$0xf] }
 0x109   :  { %v1086_v43 = vrot.slane %v1084_v30, 7  ;;  %v10632_v45 = vrot.slane %v1127_v37, 7  ;;  %v558_v48 = vmax.f32 %v336_v26, 0.0  ;;  %v556_v49 = vmax.f32 %v328_v40, 0.0  ;;  %v10126_v59 = vld [vmem:[#allocation2 + $0x18] sm:$0xff]   ;;  %v10127_v14 = vld [vmem:[#allocation2 + $0xc] sm:$0xff]  }
 0x10a   :  { %v1106_v50 = vor.u32 %v1104_v29, %v1103_v42  ;;  %v1108_v52 = vrot.slane %v1103_v42, 4  ;;  %v10636_v58 = vrot.slane %v1110_v44, 7  ;;  %v5380_v61 = vld [vmem:[#allocation2 + $0x20] sm:$0x1]  ;;  %v3296_v10 = vld [vmem:[#allocation2 + $0x1c] sm:$0xf] }
 0x10b   :  { %v1089_v53 = vor.u32 %v1087_v31, %v1086_v43  ;;  %v1091_v54 = vrot.slane %v1086_v43, 4  ;;  %v1132_v56 = vor.u32 %v1130_v38, %v10632_v45  ;;  %v1133_v57 = vrot.slane %v10632_v45, 4  ;;  %v1723_v16 = vld [vmem:[#allocation2 + $0x50] sm:$0x1]  ;;  %v3297_v21 = vld [vmem:[#allocation2 + $0x20] sm:$0x1] }
 0x10c   :  { %v9838_v60 = vpack.c.bf16 %v558_v48, %v558_v48  ;;  %v1107_v63 = vsel %vm10593_vm15, %v1099_v8, %v1106_v50  ;;  %v1710_v0 = vsel %vm10467_vm4, %v1108_v52, %v1709_v32  ;;  %v1115_v11 = vor.u32 %v1113_v47, %v10636_v58  ;;  %6241 = vrot.lane.b32.xlu1 %v10126_v59, %s10355_s1  ;;  %v10655_v22 = vpop.f32.mrb[13].mxu0  ;;  %v5375_v28 = vld [vmem:[#allocation2 + $0xc] sm:$0xe]  ;;  %v5376_v34 = vld [vmem:[#allocation2 + $0x10] sm:$0xf] }
 0x10d   :  { %v1090_v2 = vsel %vm10593_vm15, %v1082_v15, %v1089_v53  ;;  %v1703_v3 = vsel %vm10467_vm4, %v1091_v54, %v1702_v33  ;;  %1708 = vst.msk [vmem:[#allocation2 + $0x34] sm:$0xf] %vm611_vm1, %v1107_v63  ;;  %1711 = vst [vmem:[#allocation2 + $0x38] sm:$0x1] %v1710_v0  ;;  %v1720_v8 = vsel %vm10586_vm14, %v1132_v56, %v1719_v46  ;;  %v1116_v12 = vrot.slane %v10636_v58, 4  ;;  %v10659_v29 = vpop.f32.mrb[14].mxu0 }
 0x10e   :  { %1701 = vst.msk [vmem:[#allocation2 + $0x28] sm:$0xf] %vm611_vm1, %v1090_v2  ;;  %1704 = vst [vmem:[#allocation2 + $0x2c] sm:$0x1] %v1703_v3  ;;  %v1135_v13 = vshrl.u32 %v9838_v60, 16  ;;  %v1138_v15 = vshll.u32 %v9838_v60, 16  ;;  %v9836_v19 = vpack.c.bf16 %v556_v49, %v556_v49  ;;  %v1713_v23 = vsel %vm10586_vm14, %v1115_v11, %v1712_v4 }
 0x10f   :  { %1721 = vst [vmem:[#allocation2 + $0x48] sm:$0xf] %v1720_v8  ;;  %v5576_v17 = vrot.slane %v5379_v55, 5  ;;  %v5579_v18 = vrot.slane %v5380_v61, 5  ;;  %v9433_v25 = vrot.slane %v3295_v7, 9  ;;  %v3500_v26 = vrot.slane %v3296_v10, 5 }
 0x110   :  { %v1137_v24 = vrot.slane %v1135_v13, 7  ;;  %1714 = vst [vmem:[#allocation2 + $0x3c] sm:$0xf] %v1713_v23  ;;  %v1118_v32 = vshrl.u32 %v9836_v19, 16  ;;  %v1121_v33 = vshll.u32 %v9836_v19, 16  ;;  %v10663_v37 = vpop.f32.mrb[15].mxu0  ;;  %4157 = vrot.lane.b32.xlu1 %v10127_v14, %s10358_s23 }
 0x111   :  { %v5577_v30 = vsel %vm10495_vm9, %v9560_v39, %v5576_v17  ;;  %v5578_v31 = vrot.slane %v5576_v17, 4  ;;  %v1716_v42 = vld [vmem:[#allocation2 + $0x44] sm:$0x1]  ;;  %v3501_v43 = vsel %vm10495_vm9, %v9433_v25, %v3500_v26  ;;  %v3502_v44 = vrot.slane %v3500_v26, 4  ;;  %v5377_v45 = vld [vmem:[#allocation2 + $0x14] sm:$0x1] }
 0x112   :  { %v1140_v38 = vor.u32 %v1138_v15, %v1137_v24  ;;  %v1142_v40 = vrot.slane %v1137_v24, 4  ;;  %v7459_v46 = vld [vmem:[#allocation2 + $0x18] sm:$0xe]  ;;  %v1120_v47 = vrot.slane %v1118_v32, 7  ;;  %v3503_v48 = vrot.slane %v3297_v21, 5  ;;  %v10670_v54 = vpop.f32.mrb[16].mxu0 }
 0x113   :  { %v5580_v39 = vsel %vm10495_vm9, %v5578_v31, %v5579_v18  ;;  %v9559_v49 = vrot.slane %v5375_v28, 9  ;;  %v7461_v50 = vld [vmem:[#allocation2 + $0x20] sm:$0x1]  ;;  %v3292_v52 = vld [vmem:[#allocation2 + $0xc] sm:$0xe]  ;;  %v5569_v60 = vrot.slane %v5376_v34, 5 }
 0x114   :  { %v3293_v53 = vld [vmem:[#allocation2 + $0x10] sm:$0xf]  ;;  %v1141_v55 = vsel %vm10593_vm15, %v1133_v57, %v1140_v38  ;;  %v1724_v56 = vsel %vm10467_vm4, %v1142_v40, %v1723_v16  ;;  %v9592_v59 = vcombine.low %v5577_v30, %v5580_v39  ;;  %v3294_v61 = vld [vmem:[#allocation2 + $0x14] sm:$0x1]  ;;  %v4289_v63 = vld [vmem:[#allocation2 + $0x18] sm:$0xf]  ;;  %v1123_v3 = vor.u32 %v1121_v33, %v1120_v47 }
 0x115   :  { %v10676_v0 = vpop.f32.mrb[17].mxu0  ;;  %v10678_v2 = vld [vmem:[#allocation2 + $0x34] sm:$0xf]  ;;  %1722 = vst.msk [vmem:[#allocation2 + $0x4c] sm:$0xf] %vm611_vm1, %v1141_v55  ;;  %v1125_v4 = vrot.slane %v1120_v47, 4  ;;  %v3504_v57 = vsel %vm10495_vm9, %v3502_v44, %v3503_v48  ;;  %v5570_v11 = vsel %vm10495_vm9, %v9559_v49, %v5569_v60 }
 0x116   :  { %13580 = vst [vmem:[#allocation10_spill] sm:$0xff] %v10678_v2  ;;  %1725 = vst [vmem:[#allocation2 + $0x50] sm:$0x1] %v1724_v56  ;;  %v5572_v7 = vrot.slane %v5377_v45, 5  ;;  %5889 = vrot.lane.b32.xlu0 %v9592_v59, %s10359_s24  ;;  %v9465_v8 = vcombine.low %v3501_v43, %v3504_v57  ;;  %v5571_v13 = vrot.slane %v5569_v60, 4  ;;  %v1124_v15 = vsel %vm10593_vm15, %v1116_v12, %v1123_v3  ;;  %v10714_v3 = vpop.f32.mrb[18].mxu0 }
 0x117   :  { %v4290_v14 = vld [vmem:[#allocation2 + $0x1c] sm:$0xf]  ;;  %v1717_v16 = vsel %vm10467_vm4, %v1125_v4, %v1716_v42  ;;  %v9687_v17 = vrot.slane %v7459_v46, 9  ;;  %v7655_v18 = vrot.slane %v7653_v41, 4  ;;  %v4291_v19 = vld [vmem:[#allocation2 + $0x20] sm:$0x1] }
 0x118   :  { %1715 = vst.msk [vmem:[#allocation2 + $0x40] sm:$0xf] %vm611_vm1, %v1124_v15  ;;  %1718 = vst [vmem:[#allocation2 + $0x44] sm:$0x1] %v1717_v16  ;;  %v5573_v21 = vsel %vm10495_vm9, %v5571_v13, %v5572_v7  ;;  %v7656_v23 = vrot.slane %v7461_v50, 5  ;;  %v9432_v24 = vrot.slane %v3292_v52, 9 }
 0x119   :  { %v3493_v58 = vrot.slane %v3293_v53, 5  ;;  %v9591_v25 = vcombine.low %v5570_v11, %v5573_v21  ;;  %v7654_v12 = vsel %vm10495_vm9, %v9687_v17, %v7653_v41  ;;  %v3496_v26 = vrot.slane %v3294_v61, 5  ;;  %v7462_v30 = vld [vmem:[#allocation2 + $0x24] sm:$0xe]  ;;  %v7463_v31 = vld [vmem:[#allocation2 + $0x28] sm:$0xf] }
 0x11a   :  { %v4407_v28 = vshrl.u32 %v4289_v63, 16  ;;  %3808 = vrot.lane.b32.xlu0 %v9465_v8, %s10354_s0  ;;  %v7657_v32 = vsel %vm10495_vm9, %v7655_v18, %v7656_v23  ;;  %v4410_v38 = vshll.u32 %v4289_v63, 16  ;;  %v7464_v40 = vld [vmem:[#allocation2 + $0x2c] sm:$0x1]  ;;  %v2203_v42 = vld [vmem:[#allocation2 + $0x18] sm:$0xf] }
 0x11b   :  { %v3494_v33 = vsel %vm10495_vm9, %v9432_v24, %v3493_v58  ;;  %v3495_v34 = vrot.slane %v3493_v58, 4  ;;  %5887 = vrot.lane.b32.xlu1 %v9591_v25, %s10359_s24  ;;  %v9719_v27 = vcombine.low %v7654_v12, %v7657_v32  ;;  %v4416_v43 = vshll.u32 %v4290_v14, 16  ;;  %v2204_v45 = vld [vmem:[#allocation2 + $0x1c] sm:$0xf]  ;;  %v2205_v63 = vld [vmem:[#allocation2 + $0x20] sm:$0x1] }
 0x11c   :  { %v4409_v41 = vrot.slane %v4407_v28, 4  ;;  %v4420_v44 = vshrl.u32 %v4290_v14, 16  ;;  %v10708_v46 = vld [vmem:[#allocation2 + $0x4c] sm:$0xf]  ;;  %v4412_v47 = vrot.slane %v4410_v38, 5  ;;  %v4426_v48 = vshll.u32 %v4291_v19, 16 }
 0x11d   :  { %13581 = vst [vmem:[#allocation11_spill] sm:$0xff] %v10708_v46  ;;  %v3497_v39 = vsel %vm10495_vm9, %v3495_v34, %v3496_v26  ;;  %v9688_v49 = vrot.slane %v7462_v30, 9  ;;  %8003 = vst.msk [vmem:[#allocation3 + $0x8] sm:$0xff] %vm2164_vm2, %v9719_v27  ;;  %v4418_v53 = vrot.slane %v4416_v43, 5  ;;  %v7660_v60 = vrot.slane %v7463_v31, 5  ;;  %v10128_v7 = vld [vmem:[#allocation2 + $0x30] sm:$0xff]  }
 0x11e   :  { %v9464_v52 = vcombine.low %v3494_v33, %v3497_v39  ;;  %v4422_v55 = vrot.slane %v4420_v44, 4  ;;  %v4413_v56 = vor.u32 %v4412_v47, %v4409_v41  ;;  %v4428_v59 = vrot.slane %v4426_v48, 5  ;;  %v2200_v18 = vld [vmem:[#allocation2 + $0xc] sm:$0xf]  ;;  %v10722_v19 = vpop.f32.mrb[19].mxu0  ;;  %v10130_v32 = vld [vmem:[#allocation2 + $0x30] sm:$0xff]  }
 0x11f   :  { %v7663_v61 = vrot.slane %v7464_v40, 5  ;;  %v10716_v4 = vld [vmem:[#allocation2 + $0x40] sm:$0xf]  ;;  %v2345_v8 = vshrl.u32 %v2203_v42, 16  ;;  %v2348_v11 = vshll.u32 %v2203_v42, 16  ;;  %v2354_v13 = vshll.u32 %v2204_v45, 16 }
 0x120   :  { %13582 = vst [vmem:[#allocation12_spill] sm:$0xff] %v10716_v4  ;;  %3806 = vrot.lane.b32.xlu0 %v9464_v52, %s10354_s0  ;;  %v4423_v57 = vor.u32 %v4422_v55, %v4418_v53  ;;  %v4414_v15 = vrot.slane %v4413_v56, 4  ;;  %v7661_v16 = vsel %vm10495_vm9, %v9688_v49, %v7660_v60  ;;  %v7662_v17 = vrot.slane %v7660_v60, 4  ;;  %v2201_v25 = vld [vmem:[#allocation2 + $0x10] sm:$0xf] }
 0x121   :  { %v2347_v23 = vrot.slane %v2345_v8, 4  ;;  %v2350_v24 = vrot.slane %v2348_v11, 5  ;;  %v2356_v58 = vrot.slane %v2354_v13, 5  ;;  %v2358_v28 = vshrl.u32 %v2204_v45, 16  ;;  %v2202_v38 = vld [vmem:[#allocation2 + $0x14] sm:$0x1] }
 0x122   :  { %v4424_v21 = vrot.slane %v4423_v57, 4  ;;  %v4419_v12 = vsel %vm10511_vm12, %v4414_v15, %v4418_v53  ;;  %v7664_v26 = vsel %vm10495_vm9, %v7662_v17, %v7663_v61  ;;  %v2364_v30 = vshll.u32 %v2205_v63, 16  ;;  %v5384_v42 = vld [vmem:[#allocation2 + $0x30] sm:$0xe]  ;;  %v5385_v47 = vld [vmem:[#allocation2 + $0x34] sm:$0xf] }
 0x123   :  { %v9720_v33 = vcombine.low %v7661_v16, %v7664_v26  ;;  %v2351_v34 = vor.u32 %v2350_v24, %v2347_v23  ;;  %v2321_v40 = vshrl.u32 %v2200_v18, 16  ;;  %v2360_v43 = vrot.slane %v2358_v28, 4  ;;  %v5386_v53 = vld [vmem:[#allocation2 + $0x38] sm:$0x1]  ;;  %v10734_v61 = vpop.f32.mrb[20].mxu0  ;;  %v10129_v13 = vld [vmem:[#allocation2 + $0x24] sm:$0xff]  }
 0x124   :  { %v4429_v31 = vsel %vm10511_vm12, %v4424_v21, %v4428_v59  ;;  %6245 = vrot.lane.b32.xlu0 %v10128_v7, %s10355_s1  ;;  %v8036_v27 = vld [vmem:[#allocation3 + $0x8] sm:$0xff]  ;;  %v2366_v44 = vrot.slane %v2364_v30, 5  ;;  %v2324_v39 = vshll.u32 %v2200_v18, 16  ;;  %v2330_v49 = vshll.u32 %v2201_v25, 16  ;;  %v10739_v11 = vpop.f32.mrb[21].mxu0 }
 0x125   :  { %v9528_v41 = vcombine.low %v4419_v12, %v4429_v31  ;;  %9761 = vmatprep.mubr.msk.bf16.mxu0 %vm2164_vm2, %v8036_v27  ;;  %8004 = vst.msk [vmem:[#allocation3 + $0x18] sm:$0xff] %vm2164_vm2, %v9720_v33  ;;  %v2352_v45 = vrot.slane %v2351_v34, 4  ;;  %v2323_v48 = vrot.slane %v2321_v40, 4  ;;  %v2334_v52 = vshrl.u32 %v2201_v25, 16  ;;  %v10741_v21 = vpop.f32.mrb[22].mxu0  ;;  %v10151_v33 = vld [vmem:[#allocation2 + $0x18] sm:$0xff]  }
 0x126   :  { %v2361_v55 = vor.u32 %v2360_v43, %v2356_v58  ;;  %v2326_v56 = vrot.slane %v2324_v39, 5  ;;  %v2340_v59 = vshll.u32 %v2202_v38, 16  ;;  %v9562_v60 = vrot.slane %v5384_v42, 9  ;;  %v10749_v12 = vpop.f32.mrb[23].mxu0  ;;  %v6371_v42 = vld [vmem:[#allocation2 + $0x1c] sm:$0xf] }
 0x127   :  { %5248 = vrot.lane.b32.xlu1 %v9528_v41, %s10360_s25  ;;  %v2357_v63 = vsel %vm10511_vm12, %v2352_v45, %v2356_v58  ;;  %v2332_v57 = vrot.slane %v2330_v49, 5  ;;  %v2336_v7 = vrot.slane %v2334_v52, 4  ;;  %v5590_v8 = vrot.slane %v5385_v47, 5  ;;  %v10142_v39 = vld [vmem:[#allocation2 + $0xd8] sm:$0xff]   ;;  %2167 = vst.msk [vmem:[#allocation3 + $0x20] sm:$0xff] %vm2164_vm2, %v10151_v33 }
 0x128   :  { %4163 = vrot.lane.b32.xlu0 %v10130_v32, %s10358_s23  ;;  %v2362_v15 = vrot.slane %v2361_v55, 4  ;;  %v2327_v16 = vor.u32 %v2326_v56, %v2323_v48  ;;  %v2342_v17 = vrot.slane %v2340_v59, 5  ;;  %v5593_v18 = vrot.slane %v5386_v53, 5  ;;  %v6370_v32 = vld [vmem:[#allocation2 + $0x18] sm:$0xf]  ;;  %2181 = vst.msk [vmem:[#allocation3 + $0x100] sm:$0xff] %vm2164_vm2, %v10142_v39 }
 0x129   :  { %v2337_v23 = vor.u32 %v2336_v7, %v2332_v57  ;;  %v10745_v24 = vsel %vm10495_vm9, %v9562_v60, %v5590_v8  ;;  %v5592_v25 = vrot.slane %v5590_v8, 4  ;;  %v349_v58 = vadd.f32 %v10638_v62, %v10575_v51  ;;  %v6372_v55 = vld [vmem:[#allocation2 + $0x20] sm:$0x1]  ;;  %v10153_v59 = vld [vmem:[#allocation2 + $0xc] sm:$0xff]   ;;  %v10131_v8 = vld [vmem:[#allocation2 + $0x24] sm:$0xff]  }
 0x12a   :  { %v2367_v26 = vsel %vm10511_vm12, %v2362_v15, %v2366_v44  ;;  %v2328_v28 = vrot.slane %v2327_v16, 4  ;;  %v341_v30 = vadd.f32 %v10575_v51, %v10655_v22  ;;  %v352_v31 = vadd.f32 %v10659_v29, %v10575_v51  ;;  %2166 = vst.msk [vmem:[#allocation3 + $0x10] sm:$0xff] %vm2164_vm2, %v10153_v59  ;;  %v3302_v39 = vld [vmem:[#allocation2 + $0x34] sm:$0xf] }
 0x12b   :  { %6243 = vrot.lane.b32.xlu1 %v10129_v13, %s10355_s1  ;;  %v9401_v34 = vcombine.low %v2357_v63, %v2367_v26  ;;  %v2338_v38 = vrot.slane %v2337_v23, 4  ;;  %v5594_v62 = vsel %vm10495_vm9, %v5592_v25, %v5593_v18  ;;  %v561_v40 = vmax.f32 %v349_v58, 0.0  ;;  %v1733_v13 = vld [vmem:[#allocation2 + $0x60] sm:$0xf] }
 0x12c   :  { %v8038_v27 = vld [vmem:[#allocation3 + $0x18] sm:$0xff]  ;;  %v2333_v41 = vsel %vm10511_vm12, %v2328_v28, %v2332_v57  ;;  %v9594_v43 = vcombine.low %v10745_v24, %v5594_v62  ;;  %v559_v44 = vmax.f32 %v341_v30, 0.0  ;;  %v562_v22 = vmax.f32 %v352_v31, 0.0  ;;  %v1726_v24 = vld [vmem:[#allocation2 + $0x54] sm:$0xf] }
 0x12d   :  { %9762 = vmatprep.mubr.msk.bf16.mxu1 %vm2164_vm2, %v8038_v27  ;;  %v2343_v29 = vsel %vm10511_vm12, %v2338_v38, %v2342_v17  ;;  %v9841_v47 = vpack.c.bf16 %v561_v40, %v561_v40  ;;  %v6467_v45 = vshrl.u32 %v6370_v32, 16  ;;  %v6470_v48 = vshll.u32 %v6370_v32, 16  ;;  %v1737_v31 = vld [vmem:[#allocation2 + $0x68] sm:$0x1]  ;;  %v3301_v27 = vld [vmem:[#allocation2 + $0x30] sm:$0xe] }
 0x12e   :  { %v9400_v49 = vcombine.low %v2333_v41, %v2343_v29  ;;  %v9839_v52 = vpack.c.bf16 %v559_v44, %v559_v44  ;;  %v9842_v53 = vpack.c.bf16 %v562_v22, %v562_v22  ;;  %v6476_v56 = vshll.u32 %v6371_v42, 16  ;;  %v3303_v29 = vld [vmem:[#allocation2 + $0x38] sm:$0x1] }
 0x12f   :  { %3164 = vrot.lane.b32.xlu1 %v9401_v34, %s10357_s20  ;;  %v1161_v60 = vshrl.u32 %v9841_v47, 16  ;;  %v1164_v63 = vshll.u32 %v9841_v47, 16  ;;  %v6469_v57 = vrot.slane %v6467_v45, 4  ;;  %v6472_v7 = vrot.slane %v6470_v48, 5  ;;  %v4286_v48 = vld [vmem:[#allocation2 + $0xc] sm:$0xf] }
 0x130   :  { %3162 = vrot.lane.b32.xlu0 %v9400_v49, %s10357_s20  ;;  %v1144_v15 = vshrl.u32 %v9839_v52, 16  ;;  %v1147_v16 = vshll.u32 %v9839_v52, 16  ;;  %v1169_v17 = vshrl.u32 %v9842_v53, 16  ;;  %v1172_v18 = vshll.u32 %v9842_v53, 16  ;;  %v4287_v49 = vld [vmem:[#allocation2 + $0x10] sm:$0xf] }
 0x131   :  { %v1163_v23 = vrot.slane %v1161_v60, 7  ;;  %v6473_v25 = vor.u32 %v6472_v7, %v6469_v57  ;;  %v6478_v58 = vrot.slane %v6476_v56, 5  ;;  %v6480_v26 = vshrl.u32 %v6371_v42, 16  ;;  %v10143_v52 = vld [vmem:[#allocation2] sm:$0xff]   ;;  %v4288_v7 = vld [vmem:[#allocation2 + $0x14] sm:$0x1] }
 0x132   :  { %v10772_v28 = vrot.slane %v1144_v15, 7  ;;  %v1171_v30 = vrot.slane %v1169_v17, 7  ;;  %v6486_v32 = vshll.u32 %v6372_v55, 16  ;;  %v344_v33 = vadd.f32 %v10575_v51, %v10663_v37  ;;  %2165 = vst.msk [vmem:[#allocation3] sm:$0xff] %vm2164_vm2, %v10143_v52  ;;  %v5381_v17 = vld [vmem:[#allocation2 + $0x24] sm:$0xe] }
 0x133   :  { %4161 = vrot.lane.b32.xlu1 %v10131_v8, %s10358_s23  ;;  %v1166_v34 = vor.u32 %v1164_v63, %v1163_v23  ;;  %v1167_v38 = vrot.slane %v1163_v23, 4  ;;  %v6474_v62 = vrot.slane %v6473_v25, 4  ;;  %v6482_v40 = vrot.slane %v6480_v26, 4  ;;  %v5382_v26 = vld [vmem:[#allocation2 + $0x28] sm:$0xf] }
 0x134   :  { %5893 = vrot.lane.b32.xlu0 %v9594_v43, %s10359_s24  ;;  %v1149_v41 = vor.u32 %v1147_v16, %v10772_v28  ;;  %v1150_v42 = vrot.slane %v10772_v28, 4  ;;  %v1174_v44 = vor.u32 %v1172_v18, %v1171_v30  ;;  %v1176_v22 = vrot.slane %v1171_v30, 4  ;;  %v10163_v18 = vld [vmem:[#allocation2 + $0x24] sm:$0xff]   ;;  %v5383_v30 = vld [vmem:[#allocation2 + $0x2c] sm:$0x1] }
 0x135   :  { %v1734_v47 = vsel %vm10586_vm14, %v1166_v34, %v1733_v13  ;;  %v6479_v51 = vsel %vm10511_vm12, %v6474_v62, %v6478_v58  ;;  %v6483_v37 = vor.u32 %v6482_v40, %v6478_v58  ;;  %v6488_v45 = vrot.slane %v6486_v32, 5  ;;  %v10795_v62 = vpop.f32.mrb[24].mxu0  ;;  %2168 = vst.msk [vmem:[#allocation3 + $0x30] sm:$0xff] %vm2164_vm2, %v10163_v18  ;;  %v1730_v40 = vld [vmem:[#allocation2 + $0x5c] sm:$0x1]  ;;  %v10132_v18 = vld [vmem:[#allocation2 + $0x48] sm:$0xff]  }
 0x136   :  { %1735 = vst [vmem:[#allocation2 + $0x60] sm:$0xf] %v1734_v47  ;;  %v1727_v43 = vsel %vm10586_vm14, %v1149_v41, %v1726_v24  ;;  %v1175_v53 = vsel %vm10593_vm15, %v1167_v38, %v1174_v44  ;;  %v1738_v55 = vsel %vm10467_vm4, %v1176_v22, %v1737_v31  ;;  %v560_v56 = vmax.f32 %v344_v33, 0.0  ;;  %v3298_v38 = vld [vmem:[#allocation2 + $0x24] sm:$0xe] }
 0x137   :  { %1728 = vst [vmem:[#allocation2 + $0x54] sm:$0xf] %v1727_v43  ;;  %1736 = vst.msk [vmem:[#allocation2 + $0x64] sm:$0xf] %vm611_vm1, %v1175_v53  ;;  %v6484_v59 = vrot.slane %v6483_v37, 4  ;;  %v9435_v60 = vrot.slane %v3301_v27, 9 }
 0x138   :  { %1739 = vst [vmem:[#allocation2 + $0x68] sm:$0x1] %v1738_v55  ;;  %v3514_v63 = vrot.slane %v3302_v39, 5  ;;  %v3517_v57 = vrot.slane %v3303_v29, 5  ;;  %v9840_v8 = vpack.c.bf16 %v560_v56, %v560_v56  ;;  %v4383_v13 = vshrl.u32 %v4286_v48, 16 }
 0x139   :  { %v4386_v15 = vshll.u32 %v4286_v48, 16  ;;  %v4392_v16 = vshll.u32 %v4287_v49, 16  ;;  %v6489_v23 = vsel %vm10511_vm12, %v6484_v59, %v6488_v45  ;;  %v4396_v58 = vshrl.u32 %v4287_v49, 16  ;;  %v3299_v39 = vld [vmem:[#allocation2 + $0x28] sm:$0xf]  ;;  %v10801_v48 = vpop.f32.mrb[25].mxu0 }
 0x13a   :  { %v3515_v24 = vsel %vm10495_vm9, %v9435_v60, %v3514_v63  ;;  %v3516_v25 = vrot.slane %v3514_v63, 4  ;;  %v9655_v31 = vcombine.low %v6479_v51, %v6489_v23  ;;  %v1152_v32 = vshrl.u32 %v9840_v8, 16  ;;  %v3300_v45 = vld [vmem:[#allocation2 + $0x2c] sm:$0x1]  ;;  %v6373_v55 = vld [vmem:[#allocation2 + $0x24] sm:$0xf] }
 0x13b   :  { %v1155_v33 = vshll.u32 %v9840_v8, 16  ;;  %v4385_v34 = vrot.slane %v4383_v13, 4  ;;  %v4388_v41 = vrot.slane %v4386_v15, 5  ;;  %v4394_v44 = vrot.slane %v4392_v16, 5 }
 0x13c   :  { %v3518_v27 = vsel %vm10495_vm9, %v3516_v25, %v3517_v57  ;;  %v4398_v22 = vrot.slane %v4396_v58, 4  ;;  %7330 = vrot.lane.b32.xlu1 %v9655_v31, %s10356_s19  ;;  %v1154_v29 = vrot.slane %v1152_v32, 7  ;;  %v4402_v51 = vshll.u32 %v4288_v7, 16  ;;  %v6374_v25 = vld [vmem:[#allocation2 + $0x28] sm:$0xf] }
 0x13d   :  { %v9467_v47 = vcombine.low %v3515_v24, %v3518_v27  ;;  %v9561_v37 = vrot.slane %v5381_v17, 9  ;;  %v4389_v49 = vor.u32 %v4388_v41, %v4385_v34  ;;  %v5583_v43 = vrot.slane %v5382_v26, 5 }
 0x13e   :  { %v4399_v52 = vor.u32 %v4398_v22, %v4394_v44  ;;  %v5586_v53 = vrot.slane %v5383_v30, 5  ;;  %v10803_v56 = vld [vmem:[#allocation2 + $0x64] sm:$0xf]  ;;  %v1157_v59 = vor.u32 %v1155_v33, %v1154_v29  ;;  %v1159_v60 = vrot.slane %v1154_v29, 4  ;;  %v6375_v30 = vld [vmem:[#allocation2 + $0x2c] sm:$0x1] }
 0x13f   :  { %13583 = vst [vmem:[#allocation13_spill] sm:$0xff] %v10803_v56  ;;  %3812 = vrot.lane.b32.xlu0 %v9467_v47, %s10354_s0  ;;  %v4404_v63 = vrot.slane %v4402_v51, 5  ;;  %v9434_v57 = vrot.slane %v3298_v38, 9  ;;  %v4390_v7 = vrot.slane %v4389_v49, 4  ;;  %v5584_v15 = vsel %vm10495_vm9, %v9561_v37, %v5583_v43  ;;  %v10133_v29 = vld [vmem:[#allocation2 + $0x48] sm:$0xff]  }
 0x140   :  { %v4400_v13 = vrot.slane %v4399_v52, 4  ;;  %v1158_v16 = vsel %vm10593_vm15, %v1150_v42, %v1157_v59  ;;  %v1731_v17 = vsel %vm10467_vm4, %v1159_v60, %v1730_v40  ;;  %v5585_v23 = vrot.slane %v5583_v43, 4  ;;  %v6376_v42 = vld [vmem:[#allocation2 + $0x30] sm:$0xf]  ;;  %v10825_v40 = vpop.f32.mrb[26].mxu0 }
 0x141   :  { %v3507_v24 = vrot.slane %v3299_v39, 5  ;;  %1729 = vst.msk [vmem:[#allocation2 + $0x58] sm:$0xf] %vm611_vm1, %v1158_v16  ;;  %1732 = vst [vmem:[#allocation2 + $0x5c] sm:$0x1] %v1731_v17  ;;  %v4395_v58 = vsel %vm10511_vm12, %v4390_v7, %v4394_v44  ;;  %v3510_v28 = vrot.slane %v3300_v45, 5 }
 0x142   :  { %v4405_v26 = vsel %vm10511_vm12, %v4400_v13, %v4404_v63  ;;  %v6491_v31 = vshrl.u32 %v6373_v55, 16  ;;  %v5587_v33 = vsel %vm10495_vm9, %v5585_v23, %v5586_v53  ;;  %v6494_v44 = vshll.u32 %v6373_v55, 16  ;;  %v6377_v39 = vld [vmem:[#allocation2 + $0x34] sm:$0xf]  ;;  %v6378_v45 = vld [vmem:[#allocation2 + $0x38] sm:$0x1] }
 0x143   :  { %v9527_v32 = vcombine.low %v4395_v58, %v4405_v26  ;;  %6249 = vrot.lane.b32.xlu0 %v10132_v18, %s10355_s1  ;;  %v3508_v34 = vsel %vm10495_vm9, %v9434_v57, %v3507_v24  ;;  %v3509_v38 = vrot.slane %v3507_v24, 4  ;;  %v9593_v27 = vcombine.low %v5584_v15, %v5587_v33  ;;  %v4292_v60 = vld [vmem:[#allocation2 + $0x24] sm:$0xf]  ;;  %v4293_v13 = vld [vmem:[#allocation2 + $0x28] sm:$0xf]  ;;  %v10831_v24 = vpop.f32.mrb[27].mxu0 }
 0x144   :  { %v6493_v41 = vrot.slane %v6491_v31, 4  ;;  %v6500_v22 = vshll.u32 %v6374_v25, 16  ;;  %v6504_v51 = vshrl.u32 %v6374_v25, 16  ;;  %v6510_v37 = vshll.u32 %v6375_v30, 16  ;;  %v4294_v23 = vld [vmem:[#allocation2 + $0x2c] sm:$0x1] }
 0x145   :  { %5246 = vrot.lane.b32.xlu1 %v9527_v32, %s10360_s25  ;;  %v3511_v47 = vsel %vm10495_vm9, %v3509_v38, %v3510_v28  ;;  %v6515_v49 = vshrl.u32 %v6376_v42, 16  ;;  %v6496_v43 = vrot.slane %v6494_v44, 5  ;;  %v6518_v59 = vshll.u32 %v6376_v42, 16  ;;  %v665_v31 = vld [vmem:[#allocation2 + $0x90] sm:$0x1] }
 0x146   :  { %v9466_v52 = vcombine.low %v3508_v34, %v3511_v47  ;;  %v6502_v53 = vrot.slane %v6500_v22, 5  ;;  %v6506_v55 = vrot.slane %v6504_v51, 4  ;;  %v6512_v63 = vrot.slane %v6510_v37, 5 }
 0x147   :  { %4167 = vrot.lane.b32.xlu0 %v10133_v29, %s10358_s23  ;;  %v6517_v57 = vrot.slane %v6515_v49, 4  ;;  %v6524_v7 = vshll.u32 %v6377_v39, 16  ;;  %v6497_v15 = vor.u32 %v6496_v43, %v6493_v41  ;;  %v6520_v16 = vrot.slane %v6518_v59, 5  ;;  %v4296_v43 = vld [vmem:[#allocation2 + $0x34] sm:$0xf] }
 0x148   :  { %v6528_v17 = vshrl.u32 %v6377_v39, 16  ;;  %v6534_v18 = vshll.u32 %v6378_v45, 16  ;;  %v10833_v25 = vld [vmem:[#allocation2 + $0x58] sm:$0xf]  ;;  %v6507_v58 = vor.u32 %v6506_v55, %v6502_v53  ;;  %v4431_v28 = vshrl.u32 %v4292_v60, 16 }
 0x149   :  { %13584 = vst [vmem:[#allocation14_spill] sm:$0xff] %v10833_v25  ;;  %5891 = vrot.lane.b32.xlu1 %v9593_v27, %s10359_s24  ;;  %v6526_v26 = vrot.slane %v6524_v7, 5  ;;  %v4434_v30 = vshll.u32 %v4292_v60, 16  ;;  %v6498_v42 = vrot.slane %v6497_v15, 4  ;;  %v6521_v32 = vor.u32 %v6520_v16, %v6517_v57  ;;  %v4295_v27 = vld [vmem:[#allocation2 + $0x30] sm:$0xf] }
 0x14a   :  { %v6530_v33 = vrot.slane %v6528_v17, 4  ;;  %v6508_v34 = vrot.slane %v6507_v58, 4  ;;  %v6536_v38 = vrot.slane %v6534_v18, 5  ;;  %v4433_v41 = vrot.slane %v4431_v28, 4  ;;  %v2206_v18 = vld [vmem:[#allocation2 + $0x24] sm:$0xf] }
 0x14b   :  { %v4436_v44 = vrot.slane %v4434_v30, 5  ;;  %v6503_v22 = vsel %vm10511_vm12, %v6498_v42, %v6502_v53  ;;  %v6522_v39 = vrot.slane %v6521_v32, 4  ;;  %v4440_v47 = vshll.u32 %v4293_v13, 16  ;;  %v4297_v53 = vld [vmem:[#allocation2 + $0x38] sm:$0x1] }
 0x14c   :  { %v6531_v29 = vor.u32 %v6530_v33, %v6526_v26  ;;  %v6513_v51 = vsel %vm10511_vm12, %v6508_v34, %v6512_v63  ;;  %v4444_v45 = vshrl.u32 %v4293_v13, 16  ;;  %v4450_v49 = vshll.u32 %v4294_v23, 16  ;;  %v2207_v58 = vld [vmem:[#allocation2 + $0x28] sm:$0xf]  ;;  %v4307_v25 = vld [vmem:[#allocation2 + $0x60] sm:$0xf] }
 0x14d   :  { %3810 = vrot.lane.b32.xlu1 %v9466_v52, %s10354_s0  ;;  %v4437_v37 = vor.u32 %v4436_v44, %v4433_v41  ;;  %v9656_v59 = vcombine.low %v6503_v22, %v6513_v51  ;;  %v6527_v60 = vsel %vm10511_vm12, %v6522_v39, %v6526_v26  ;;  %v4442_v57 = vrot.slane %v4440_v47, 5  ;;  %v10148_v26 = vld [vmem:[%s13525_s3] sm:$0xff]   ;;  %v2208_v22 = vld [vmem:[#allocation2 + $0x2c] sm:$0x1] }
 0x14e   :  { %v6532_v55 = vrot.slane %v6531_v29, 4  ;;  %v4446_v15 = vrot.slane %v4444_v45, 4  ;;  %v4452_v16 = vrot.slane %v4450_v49, 5  ;;  %v4455_v17 = vshrl.u32 %v4295_v27, 16  ;;  %8275 = vmatpush1.bf16.msra.mxu0 %v10148_v26  ;;  %10101 = vmatpush1.bf16.msra.mxu1 %v10148_v26  ;;  %v5390_v49 = vld [vmem:[#allocation2 + $0x48] sm:$0xe] }
 0x14f   :  { %v4438_v7 = vrot.slane %v4437_v37, 4  ;;  %7332 = vrot.lane.b32.xlu0 %v9656_v59, %s10356_s19  ;;  %v4458_v63 = vshll.u32 %v4295_v27, 16  ;;  %v4464_v13 = vshll.u32 %v4296_v43, 16  ;;  %v4468_v23 = vshrl.u32 %v4296_v43, 16  ;;  %8276 = vmatprep.subr.bf16.mxu0 %v10353_v1  ;;  %v5391_v43 = vld [vmem:[#allocation2 + $0x4c] sm:$0xf] }
 0x150   :  { %v6537_v52 = vsel %vm10511_vm12, %v6532_v55, %v6536_v38  ;;  %v4447_v42 = vor.u32 %v4446_v15, %v4442_v57  ;;  %v4457_v32 = vrot.slane %v4455_v17, 4  ;;  %v4474_v44 = vshll.u32 %v4297_v53, 16  ;;  %10093 = vmatprep.subr.bf16.mxu1 %v10353_v1  ;;  %v5392_v53 = vld [vmem:[#allocation2 + $0x50] sm:$0x1] }
 0x151   :  { %v9657_v28 = vcombine.low %v6527_v60, %v6537_v52  ;;  %v4443_v30 = vsel %vm10511_vm12, %v4438_v7, %v4442_v57  ;;  %v4460_v33 = vrot.slane %v4458_v63, 5  ;;  %v4466_v34 = vrot.slane %v4464_v13, 5  ;;  %v10149_v7 = vld [vmem:[%s13525_s3 + $0x8] sm:$0xff]  }
 0x152   :  { %v4470_v41 = vrot.slane %v4468_v23, 4  ;;  %v4448_v38 = vrot.slane %v4447_v42, 4  ;;  %v2369_v39 = vshrl.u32 %v2206_v18, 16  ;;  %v2372_v29 = vshll.u32 %v2206_v18, 16  ;;  %8277 = vmatpush1.bf16.msra.mxu0 %v10149_v7  ;;  %10102 = vmatpush1.bf16.msra.mxu1 %v10149_v7 }
 0x153   :  { %7334 = vrot.lane.b32.xlu1 %v9657_v28, %s10356_s19  ;;  %v2378_v47 = vshll.u32 %v2207_v58, 16  ;;  %v4461_v27 = vor.u32 %v4460_v33, %v4457_v32  ;;  %v4476_v37 = vrot.slane %v4474_v44, 5  ;;  %v2382_v45 = vshrl.u32 %v2207_v58, 16  ;;  %8278 = vmatprep.subr.bf16.mxu0 %v10353_v1 }
 0x154   :  { %v4471_v51 = vor.u32 %v4470_v41, %v4466_v34  ;;  %v4453_v59 = vsel %vm10511_vm12, %v4448_v38, %v4452_v16  ;;  %v2371_v60 = vrot.slane %v2369_v39, 4  ;;  %v2374_v55 = vrot.slane %v2372_v29, 5  ;;  %10094 = vmatprep.subr.bf16.mxu1 %v10353_v1 }
 0x155   :  { %v2380_v57 = vrot.slane %v2378_v47, 5  ;;  %v9529_v15 = vcombine.low %v4443_v30, %v4453_v59  ;;  %v4462_v17 = vrot.slane %v4461_v27, 4  ;;  %v2384_v52 = vrot.slane %v2382_v45, 4  ;;  %v2209_v30 = vld [vmem:[#allocation2 + $0x30] sm:$0xf] }
 0x156   :  { %v4472_v18 = vrot.slane %v4471_v51, 4  ;;  %v2375_v63 = vor.u32 %v2374_v55, %v2371_v60  ;;  %v2388_v13 = vshll.u32 %v2208_v22, 16  ;;  %v9564_v23 = vrot.slane %v5390_v49, 9  ;;  %v2210_v47 = vld [vmem:[#allocation2 + $0x34] sm:$0xf]  ;;  %v10134_v55 = vld [vmem:[#allocation2 + $0x3c] sm:$0xff]  }
 0x157   :  { %v5604_v58 = vrot.slane %v5391_v43, 5  ;;  %5250 = vrot.lane.b32.xlu0 %v9529_v15, %s10360_s25  ;;  %v4467_v16 = vsel %vm10511_vm12, %v4462_v17, %v4466_v34  ;;  %v2385_v28 = vor.u32 %v2384_v52, %v2380_v57  ;;  %v5607_v42 = vrot.slane %v5392_v53, 5  ;;  %v10872_v34 = vld [vmem:[%s13524_s2] ss:$0 sm:$0xff] }
 0x158   :  { %v4477_v26 = vsel %vm10511_vm12, %v4472_v18, %v4476_v37  ;;  %v2376_v33 = vrot.slane %v2375_v63, 4  ;;  %v2390_v41 = vrot.slane %v2388_v13, 5  ;;  %v365_v39 = vadd.f32 %v10872_v34, %v10670_v54 }
 0x159   :  { %v9530_v32 = vcombine.low %v4467_v16, %v4477_v26  ;;  %v5605_v44 = vsel %vm10495_vm9, %v9564_v23, %v5604_v58  ;;  %v2386_v38 = vrot.slane %v2385_v28, 4  ;;  %v5606_v22 = vrot.slane %v5604_v58, 4 }
 0x15a   :  { %v357_v29 = vadd.f32 %v10872_v34, %v10676_v0  ;;  %v2381_v27 = vsel %vm10511_vm12, %v2376_v33, %v2380_v57  ;;  %v368_v51 = vadd.f32 %v10872_v34, %v10714_v3  ;;  %v2393_v37 = vshrl.u32 %v2209_v30, 16  ;;  %v2211_v0 = vld [vmem:[#allocation2 + $0x38] sm:$0x1] }
 0x15b   :  { %5252 = vrot.lane.b32.xlu1 %v9530_v32, %s10360_s25  ;;  %v2396_v45 = vshll.u32 %v2209_v30, 16  ;;  %v2391_v49 = vsel %vm10511_vm12, %v2386_v38, %v2390_v41  ;;  %v5608_v54 = vsel %vm10495_vm9, %v5606_v22, %v5607_v42  ;;  %v565_v43 = vmax.f32 %v365_v39, 0.0  ;;  %v3307_v42 = vld [vmem:[#allocation2 + $0x48] sm:$0xe]  ;;  %v1747_v30 = vld [vmem:[#allocation2 + $0x78] sm:$0xf] }
 0x15c   :  { %v563_v59 = vmax.f32 %v357_v29, 0.0  ;;  %v9402_v60 = vcombine.low %v2381_v27, %v2391_v49  ;;  %v9596_v53 = vcombine.low %v5605_v44, %v5608_v54  ;;  %v566_v7 = vmax.f32 %v368_v51, 0.0  ;;  %v1740_v32 = vld [vmem:[#allocation2 + $0x6c] sm:$0xf]  ;;  %v10150_v22 = vld [vmem:[%s13525_s3 + $0x10] sm:$0xff]  }
 0x15d   :  { %v2395_v15 = vrot.slane %v2393_v37, 4  ;;  %v9845_v57 = vpack.c.bf16 %v565_v43, %v565_v43  ;;  %v2398_v18 = vrot.slane %v2396_v45, 5  ;;  %v2402_v3 = vshll.u32 %v2210_v47, 16  ;;  %v3308_v49 = vld [vmem:[#allocation2 + $0x4c] sm:$0xf]  ;;  %8279 = vmatpush1.bf16.msra.mxu0 %v10150_v22  ;;  %10103 = vmatpush1.bf16.msra.mxu1 %v10150_v22 }
 0x15e   :  { %v9843_v17 = vpack.c.bf16 %v563_v59, %v563_v59  ;;  %3166 = vrot.lane.b32.xlu0 %v9402_v60, %s10357_s20  ;;  %v9846_v52 = vpack.c.bf16 %v566_v7, %v566_v7  ;;  %v2406_v63 = vshrl.u32 %v2210_v47, 16  ;;  %v2412_v13 = vshll.u32 %v2211_v0, 16  ;;  %v1751_v47 = vld [vmem:[#allocation2 + $0x80] sm:$0x1]  ;;  %8280 = vmatprep.subr.bf16.mxu0 %v10353_v1  ;;  %v3306_v22 = vld [vmem:[#allocation2 + $0x44] sm:$0x1] }
 0x15f   :  { %6247 = vrot.lane.b32.xlu1 %v10134_v55, %s10355_s1  ;;  %v360_v23 = vadd.f32 %v10872_v34, %v10722_v19  ;;  %v1195_v58 = vshrl.u32 %v9845_v57, 16  ;;  %v1198_v16 = vshll.u32 %v9845_v57, 16  ;;  %v2399_v44 = vor.u32 %v2398_v18, %v2395_v15  ;;  %v3309_v55 = vld [vmem:[#allocation2 + $0x50] sm:$0x1]  ;;  %v10152_v18 = vld [vmem:[%s13525_s3 + $0x18] sm:$0xff]   ;;  %10095 = vmatprep.subr.bf16.mxu1 %v10353_v1 }
 0x160   :  { %v1178_v26 = vshrl.u32 %v9843_v17, 16  ;;  %v1181_v28 = vshll.u32 %v9843_v17, 16  ;;  %v1203_v33 = vshrl.u32 %v9846_v52, 16  ;;  %v1206_v41 = vshll.u32 %v9846_v52, 16  ;;  %v5387_v17 = vld [vmem:[#allocation2 + $0x3c] sm:$0xe] }
 0x161   :  { %v2404_v38 = vrot.slane %v2402_v3, 5  ;;  %v1197_v39 = vrot.slane %v1195_v58, 7  ;;  %v2408_v19 = vrot.slane %v2406_v63, 4  ;;  %v2414_v27 = vrot.slane %v2412_v13, 5  ;;  %v5389_v58 = vld [vmem:[#allocation2 + $0x44] sm:$0x1]  ;;  %8281 = vmatpush1.bf16.msra.mxu0 %v10152_v18  ;;  %10104 = vmatpush1.bf16.msra.mxu1 %v10152_v18 }
 0x162   :  { %v10894_v29 = vrot.slane %v1178_v26, 7  ;;  %5897 = vrot.lane.b32.xlu0 %v9596_v53, %s10359_s24  ;;  %v1205_v51 = vrot.slane %v1203_v33, 7  ;;  %v2400_v37 = vrot.slane %v2399_v44, 4  ;;  %v564_v45 = vmax.f32 %v360_v23, 0.0  ;;  %v5388_v23 = vld [vmem:[#allocation2 + $0x40] sm:$0xf]  ;;  %8282 = vmatprep.subr.bf16.mxu0 %v10353_v1 }
 0x163   :  { %v9437_v54 = vrot.slane %v3307_v42, 9  ;;  %v1200_v43 = vor.u32 %v1198_v16, %v1197_v39  ;;  %v1201_v59 = vrot.slane %v1197_v39, 4  ;;  %v2409_v57 = vor.u32 %v2408_v19, %v2404_v38  ;;  %v3304_v33 = vld [vmem:[#allocation2 + $0x3c] sm:$0xe]  ;;  %v10917_v39 = vpop.f32.mrb[28].mxu0  ;;  %10096 = vmatprep.subr.bf16.mxu1 %v10353_v1 }
 0x164   :  { %v1183_v0 = vor.u32 %v1181_v28, %v10894_v29  ;;  %v1184_v60 = vrot.slane %v10894_v29, 4  ;;  %v1208_v7 = vor.u32 %v1206_v41, %v1205_v51  ;;  %v1210_v15 = vrot.slane %v1205_v51, 4  ;;  %v3305_v41 = vld [vmem:[#allocation2 + $0x40] sm:$0xf] }
 0x165   :  { %v2405_v53 = vsel %vm10511_vm12, %v2400_v37, %v2404_v38  ;;  %v1748_v3 = vsel %vm10586_vm14, %v1200_v43, %v1747_v30  ;;  %v9844_v63 = vpack.c.bf16 %v564_v45, %v564_v45  ;;  %v3528_v13 = vrot.slane %v3308_v49, 5  ;;  %v6379_v45 = vld [vmem:[#allocation2 + $0x3c] sm:$0xf]  ;;  %v10922_v49 = vpop.f32.mrb[29].mxu0 }
 0x166   :  { %v1741_v52 = vsel %vm10586_vm14, %v1183_v0, %v1740_v32  ;;  %1749 = vst [vmem:[#allocation2 + $0x78] sm:$0xf] %v1748_v3  ;;  %v1209_v16 = vsel %vm10593_vm15, %v1201_v59, %v1208_v7  ;;  %v1752_v26 = vsel %vm10467_vm4, %v1210_v15, %v1751_v47  ;;  %v2410_v28 = vrot.slane %v2409_v57, 4 }
 0x167   :  { %1742 = vst [vmem:[#allocation2 + $0x6c] sm:$0xf] %v1741_v52  ;;  %v3531_v42 = vrot.slane %v3309_v55, 5  ;;  %1750 = vst.msk [vmem:[#allocation2 + $0x7c] sm:$0xf] %vm611_vm1, %v1209_v16  ;;  %v1186_v30 = vshrl.u32 %v9844_v63, 16  ;;  %v3529_v44 = vsel %vm10495_vm9, %v9437_v54, %v3528_v13 }
 0x168   :  { %1753 = vst [vmem:[#allocation2 + $0x80] sm:$0x1] %v1752_v26  ;;  %v1189_v32 = vshll.u32 %v9844_v63, 16  ;;  %v3530_v38 = vrot.slane %v3528_v13, 4  ;;  %v2415_v47 = vsel %vm10511_vm12, %v2410_v28, %v2414_v27  ;;  %v9563_v19 = vrot.slane %v5387_v17, 9  ;;  %v10135_v52 = vld [vmem:[#allocation2 + $0x3c] sm:$0xff]  }
 0x169   :  { %v5597_v51 = vrot.slane %v5388_v23, 5  ;;  %v5600_v37 = vrot.slane %v5389_v58, 5  ;;  %v9403_v43 = vcombine.low %v2405_v53, %v2415_v47  ;;  %v1188_v54 = vrot.slane %v1186_v30, 7  ;;  %v1744_v55 = vld [vmem:[#allocation2 + $0x74] sm:$0x1]  ;;  %v10155_v23 = vld [vmem:[%s13525_s3 + $0x20] sm:$0xff]  }
 0x16a   :  { %v3532_v59 = vsel %vm10495_vm9, %v3530_v38, %v3531_v42  ;;  %v9436_v0 = vrot.slane %v3304_v33, 9  ;;  %v3521_v57 = vrot.slane %v3305_v41, 5  ;;  %v6380_v17 = vld [vmem:[#allocation2 + $0x40] sm:$0xf]  ;;  %v3524_v63 = vrot.slane %v3306_v22, 5  ;;  %8283 = vmatpush1.bf16.msra.mxu0 %v10155_v23  ;;  %v10946_v22 = vpop.f32.mrb[30].mxu0  ;;  %10105 = vmatpush1.bf16.msra.mxu1 %v10155_v23 }
 0x16b   :  { %v9469_v7 = vcombine.low %v3529_v44, %v3532_v59  ;;  %v5598_v15 = vsel %vm10495_vm9, %v9563_v19, %v5597_v51  ;;  %v5599_v27 = vrot.slane %v5597_v51, 4  ;;  %3168 = vrot.lane.b32.xlu1 %v9403_v43, %s10357_s20  ;;  %v1191_v18 = vor.u32 %v1189_v32, %v1188_v54  ;;  %v6381_v53 = vld [vmem:[#allocation2 + $0x44] sm:$0x1]  ;;  %v6382_v42 = vld [vmem:[#allocation2 + $0x48] sm:$0xf]  ;;  %v10953_v43 = vpop.permute.xlu1 %6271  ;;  %8284 = vmatprep.subr.bf16.mxu0 %v10353_v1 }
 0x16c   :  { %v1193_v3 = vrot.slane %v1188_v54, 4  ;;  %v6539_v13 = vshrl.u32 %v6379_v45, 16  ;;  %v10938_v16 = vsel %vm10495_vm9, %v9436_v0, %v3521_v57  ;;  %v3523_v26 = vrot.slane %v3521_v57, 4  ;;  %v6383_v33 = vld [vmem:[#allocation2 + $0x4c] sm:$0xf]  ;;  %v10136_v19 = vld [vmem:[#allocation2 + $0x60] sm:$0xff]   ;;  %10097 = vmatprep.subr.bf16.mxu1 %v10353_v1 }
 0x16d   :  { %3816 = vrot.lane.b32.xlu0 %v9469_v7, %s10354_s0  ;;  %v5601_v58 = vsel %vm10495_vm9, %v5599_v27, %v5600_v37  ;;  %v6542_v28 = vshll.u32 %v6379_v45, 16  ;;  %v1192_v41 = vsel %vm10593_vm15, %v1184_v60, %v1191_v18  ;;  %v6384_v38 = vld [vmem:[#allocation2 + $0x50] sm:$0x1]  ;;  %v6548_v51 = vshll.u32 %v6380_v17, 16  ;;  %v4298_v45 = vld [vmem:[#allocation2 + $0x3c] sm:$0xf] }
 0x16e   :  { %v1745_v30 = vsel %vm10467_vm4, %v1193_v3, %v1744_v55  ;;  %v9595_v32 = vcombine.low %v5598_v15, %v5601_v58  ;;  %v6541_v44 = vrot.slane %v6539_v13, 4  ;;  %v10948_v47 = vld [vmem:[#allocation2 + $0x7c] sm:$0xf]  ;;  %1743 = vst.msk [vmem:[#allocation2 + $0x70] sm:$0xf] %vm611_vm1, %v1192_v41  ;;  %v3525_v29 = vsel %vm10495_vm9, %v3523_v26, %v3524_v63  ;;  %13586 = vst [vmem:[#allocation16_spill] sm:$0xff] %v10953_v43 }
 0x16f   :  { %13585 = vst [vmem:[#allocation15_spill] sm:$0xff] %v10948_v47  ;;  %1746 = vst [vmem:[#allocation2 + $0x74] sm:$0x1] %v1745_v30  ;;  %v6544_v60 = vrot.slane %v6542_v28, 5  ;;  %v6552_v37 = vshrl.u32 %v6380_v17, 16  ;;  %4165 = vrot.lane.b32.xlu1 %v10135_v52, %s10358_s23  ;;  %v9468_v59 = vcombine.low %v10938_v16, %v3525_v29  ;;  %v6558_v0 = vshll.u32 %v6381_v53, 16 }
 0x170   :  { %v6563_v55 = vshrl.u32 %v6382_v42, 16  ;;  %v6550_v15 = vrot.slane %v6548_v51, 5  ;;  %v6566_v57 = vshll.u32 %v6382_v42, 16  ;;  %v10137_v17 = vld [vmem:[#allocation2 + $0x60] sm:$0xff]   ;;  %v6572_v63 = vshll.u32 %v6383_v33, 16  ;;  %v10961_v41 = vpop.f32.mrb[31].mxu0 }
 0x171   :  { %6253 = vrot.lane.b32.xlu0 %v10136_v19, %s10355_s1  ;;  %v6545_v7 = vor.u32 %v6544_v60, %v6541_v44  ;;  %v6554_v27 = vrot.slane %v6552_v37, 4  ;;  %v6560_v18 = vrot.slane %v6558_v0, 5  ;;  %v6576_v13 = vshrl.u32 %v6383_v33, 16  ;;  %v4299_v52 = vld [vmem:[#allocation2 + $0x40] sm:$0xf]  ;;  %v11065_v50 = vpop.f32.mrb[32].mxu0 }
 0x172   :  { %v6565_v3 = vrot.slane %v6563_v55, 4  ;;  %v6568_v26 = vrot.slane %v6566_v57, 5  ;;  %v6582_v28 = vshll.u32 %v6384_v38, 16  ;;  %v6574_v53 = vrot.slane %v6572_v63, 5  ;;  %v4300_v60 = vld [vmem:[#allocation2 + $0x44] sm:$0x1]  ;;  %v10967_v38 = vpop.permute.xlu1 %3804 }
 0x173   :  { %v6546_v23 = vrot.slane %v6545_v7, 4  ;;  %v6555_v58 = vor.u32 %v6554_v27, %v6550_v15  ;;  %5895 = vrot.lane.b32.xlu1 %v9595_v32, %s10359_s24  ;;  %v6578_v16 = vrot.slane %v6576_v13, 4  ;;  %v4479_v30 = vshrl.u32 %v4298_v45, 16  ;;  %v4301_v51 = vld [vmem:[#allocation2 + $0x48] sm:$0xf] }
 0x174   :  { %v4482_v44 = vshll.u32 %v4298_v45, 16  ;;  %v6569_v33 = vor.u32 %v6568_v26, %v6565_v3  ;;  %v6584_v29 = vrot.slane %v6582_v28, 5  ;;  %v4488_v7 = vshll.u32 %v4299_v52, 16  ;;  %v3316_v2 = vld [vmem:[#allocation2 + $0x6c] sm:$0xe] }
 0x175   :  { %4171 = vrot.lane.b32.xlu0 %v10137_v17, %s10358_s23  ;;  %v6551_v42 = vsel %vm10511_vm12, %v6546_v23, %v6550_v15  ;;  %v6556_v19 = vrot.slane %v6555_v58, 4  ;;  %v10969_v37 = vld [vmem:[#allocation2 + $0x70] sm:$0xf]  ;;  %v6579_v0 = vor.u32 %v6578_v16, %v6574_v53  ;;  %v4481_v32 = vrot.slane %v4479_v30, 4  ;;  %v4302_v17 = vld [vmem:[#allocation2 + $0x4c] sm:$0xf] }
 0x176   :  { %13587 = vst [vmem:[#allocation17_spill] sm:$0xff] %v10969_v37  ;;  %v4484_v55 = vrot.slane %v4482_v44, 5  ;;  %v6570_v57 = vrot.slane %v6569_v33, 4  ;;  %v4492_v15 = vshrl.u32 %v4299_v52, 16  ;;  %v4490_v23 = vrot.slane %v4488_v7, 5  ;;  %v10977_v44 = vpop.permute.xlu0 %3836 }
 0x177   :  { %v6561_v27 = vsel %vm10511_vm12, %v6556_v19, %v6560_v18  ;;  %3814 = vrot.lane.b32.xlu1 %v9468_v59, %s10354_s0  ;;  %v6580_v63 = vrot.slane %v6579_v0, 4  ;;  %v4303_v58 = vld [vmem:[#allocation2 + $0x50] sm:$0x1]  ;;  %v4498_v16 = vshll.u32 %v4300_v60, 16  ;;  %v4503_v30 = vshrl.u32 %v4301_v51, 16 }
 0x178   :  { %v9658_v3 = vcombine.low %v6551_v42, %v6561_v27  ;;  %v4485_v13 = vor.u32 %v4484_v55, %v4481_v32  ;;  %v6575_v26 = vsel %vm10511_vm12, %v6570_v57, %v6574_v53  ;;  %v4494_v28 = vrot.slane %v4492_v15, 4  ;;  %v2212_v19 = vld [vmem:[#allocation2 + $0x3c] sm:$0xf]  ;;  %v2213_v7 = vld [vmem:[#allocation2 + $0x40] sm:$0xf]  ;;  %v10982_v53 = vpop.permute.xlu1 %3160 }
 0x179   :  { %v6585_v18 = vsel %vm10511_vm12, %v6580_v63, %v6584_v29  ;;  %v4506_v59 = vshll.u32 %v4301_v51, 16  ;;  %v4512_v42 = vshll.u32 %v4302_v17, 16  ;;  %v4500_v32 = vrot.slane %v4498_v16, 5  ;;  %v10156_v29 = vld [vmem:[%s13525_s3 + $0x28] sm:$0xff]   ;;  %3257 = vst.msk [vmem:[#allocation3] sm:$0xff] %vm3256_vm3, %v10982_v53 }
 0x17a   :  { %7336 = vrot.lane.b32.xlu0 %v9658_v3, %s10356_s19  ;;  %v4486_v52 = vrot.slane %v4485_v13, 4  ;;  %v9659_v33 = vcombine.low %v6575_v26, %v6585_v18  ;;  %v4495_v0 = vor.u32 %v4494_v28, %v4490_v23  ;;  %v4505_v55 = vrot.slane %v4503_v30, 4  ;;  %v2214_v3 = vld [vmem:[#allocation2 + $0x44] sm:$0x1]  ;;  %v5396_v28 = vld [vmem:[#allocation2 + $0x60] sm:$0xe]  ;;  %8285 = vmatpush1.bf16.msra.mxu0 %v10156_v29 }
 0x17b   :  { %v4508_v27 = vrot.slane %v4506_v59, 5  ;;  %v4514_v57 = vrot.slane %v4512_v42, 5  ;;  %v4516_v15 = vshrl.u32 %v4302_v17, 16  ;;  %v4522_v63 = vshll.u32 %v4303_v58, 16  ;;  %v10159_v17 = vld [vmem:[%s13525_s3 + $0x30] sm:$0xff]   ;;  %10106 = vmatpush1.bf16.msra.mxu1 %v10156_v29  ;;  %8286 = vmatprep.subr.bf16.mxu0 %v10353_v1  ;;  %3901 = vst.msk [vmem:[#allocation3] sm:$0xff] %vm3900_vm5, %v10967_v38 }
 0x17c   :  { %v4491_v60 = vsel %vm10511_vm12, %v4486_v52, %v4490_v23  ;;  %7338 = vrot.lane.b32.xlu1 %v9659_v33, %s10356_s19  ;;  %v4496_v51 = vrot.slane %v4495_v0, 4  ;;  %v2417_v13 = vshrl.u32 %v2212_v19, 16  ;;  %v2420_v26 = vshll.u32 %v2212_v19, 16  ;;  %v5397_v23 = vld [vmem:[#allocation2 + $0x64] sm:$0xf]  ;;  %v10995_v19 = vpop.permute.xlu0 %7360  ;;  %10098 = vmatprep.subr.bf16.mxu1 %v10353_v1 }
 0x17d   :  { %v4509_v16 = vor.u32 %v4508_v27, %v4505_v55  ;;  %v4518_v30 = vrot.slane %v4516_v15, 4  ;;  %v2426_v18 = vshll.u32 %v2213_v7, 16  ;;  %v2430_v54 = vshrl.u32 %v2213_v7, 16  ;;  %v5398_v33 = vld [vmem:[#allocation2 + $0x68] sm:$0x1]  ;;  %13588 = vst [vmem:[#allocation18_spill] sm:$0xff] %v10995_v19 }
 0x17e   :  { %v4501_v52 = vsel %vm10511_vm12, %v4496_v51, %v4500_v32  ;;  %v4524_v59 = vrot.slane %v4522_v63, 5  ;;  %v2419_v42 = vrot.slane %v2417_v13, 4  ;;  %v2422_v58 = vrot.slane %v2420_v26, 5  ;;  %v10999_v32 = vpop.permute.xlu1 %4159  ;;  %8287 = vmatpush1.bf16.msra.mxu0 %v10159_v17  ;;  %v6390_v19 = vld [vmem:[#allocation2 + $0x68] sm:$0x1] }
 0x17f   :  { %v9531_v0 = vcombine.low %v4491_v60, %v4501_v52  ;;  %v4510_v55 = vrot.slane %v4509_v16, 4  ;;  %v4519_v7 = vor.u32 %v4518_v30, %v4514_v57  ;;  %v2428_v27 = vrot.slane %v2426_v18, 5  ;;  %v10161_v60 = vld [vmem:[%s13525_s3 + $0x38] sm:$0xff]   ;;  %v662_v30 = vld [vmem:[#allocation2 + $0x84] sm:$0x1]  ;;  %8288 = vmatprep.subr.bf16.mxu0 %v10353_v1  ;;  %10107 = vmatpush1.bf16.msra.mxu1 %v10159_v17 }
 0x180   :  { %v2423_v15 = vor.u32 %v2422_v58, %v2419_v42  ;;  %v2432_v45 = vrot.slane %v2430_v54, 4  ;;  %v2436_v29 = vshll.u32 %v2214_v3, 16  ;;  %v9566_v8 = vrot.slane %v5396_v28, 9  ;;  %v775_v18 = vld [vmem:[#allocation2 + $0x98] sm:$0x1]  ;;  %10099 = vmatprep.subr.bf16.mxu1 %v10353_v1 }
 0x181   :  { %5254 = vrot.lane.b32.xlu0 %v9531_v0, %s10360_s25  ;;  %v4515_v51 = vsel %vm10511_vm12, %v4510_v55, %v4514_v57  ;;  %v4520_v63 = vrot.slane %v4519_v7, 4  ;;  %v5618_v13 = vrot.slane %v5397_v23, 5  ;;  %v5621_v26 = vrot.slane %v5398_v33, 5  ;;  %v2215_v17 = vld [vmem:[#allocation2 + $0x48] sm:$0xf]  ;;  %v11021_v0 = vpop.permute.xlu0 %3192 }
 0x182   :  { %v2424_v16 = vrot.slane %v2423_v15, 4  ;;  %v2433_v54 = vor.u32 %v2432_v45, %v2428_v27  ;;  %v2438_v3 = vrot.slane %v2436_v29, 5  ;;  %v381_v28 = vadd.f32 %v10872_v34, %v10734_v61  ;;  %v2216_v7 = vld [vmem:[#allocation2 + $0x4c] sm:$0xf]  ;;  %8289 = vmatpush1.bf16.msra.mxu0 %v10161_v60  ;;  %3273 = vst.msk [vmem:[#allocation3 + $0x100] sm:$0xff] %vm3256_vm3, %v11021_v0 }
 0x183   :  { %v4525_v57 = vsel %vm10511_vm12, %v4520_v63, %v4524_v59  ;;  %v11014_v23 = vsel %vm10495_vm9, %v9566_v8, %v5618_v13  ;;  %v5620_v52 = vrot.slane %v5618_v13, 4  ;;  %v666_v45 = vsel %vm10467_vm4, 0, %v665_v31  ;;  %v11040_v63 = vpop.permute.xlu1 %6241  ;;  %8290 = vmatprep.subr.bf16.mxu0 %v10353_v1  ;;  %10108 = vmatpush1.bf16.msra.mxu1 %v10161_v60  ;;  %v2220_v0 = vld [vmem:[#allocation2 + $0x5c] sm:$0x1]  ;;  %3917 = vst.msk [vmem:[#allocation3 + $0x100] sm:$0xff] %vm3900_vm5, %v10977_v44  ;;  %v10145_v44 = vld [vmem:[#allocation2 + $0x6c] sm:$0xff]  }
 0x184   :  { %v9532_v42 = vcombine.low %v4515_v51, %v4525_v57  ;;  %v2429_v61 = vsel %vm10511_vm12, %v2424_v16, %v2428_v27  ;;  %v2434_v58 = vrot.slane %v2433_v54, 4  ;;  %v569_v33 = vmax.f32 %v381_v28, 0.0  ;;  %667 = vst [vmem:[#allocation2 + $0x90] sm:$0x1] %v666_v45  ;;  %v10162_v27 = vld [vmem:[%s13525_s3 + $0x40] sm:$0xff]   ;;  %v10138_v28 = vld [vmem:[#allocation2 + $0x54] sm:$0xff]   ;;  %10100 = vmatprep.subr.bf16.mxu1 %v10353_v1 }
 0x185   :  { %v5622_v8 = vsel %vm10495_vm9, %v5620_v52, %v5621_v26  ;;  %v373_v59 = vadd.f32 %v10872_v34, %v10739_v11  ;;  %v663_v31 = vsel %vm10467_vm4, 0, %v662_v30  ;;  %v384_v55 = vadd.f32 %v10872_v34, %v10741_v21  ;;  %v2217_v16 = vld [vmem:[#allocation2 + $0x50] sm:$0x1] }
 0x186   :  { %5256 = vrot.lane.b32.xlu1 %v9532_v42, %s10360_s25  ;;  %v2439_v15 = vsel %vm10511_vm12, %v2434_v58, %v2438_v3  ;;  %v9598_v29 = vcombine.low %v11014_v23, %v5622_v8  ;;  %v9849_v11 = vpack.c.bf16 %v569_v33, %v569_v33  ;;  %664 = vst [vmem:[#allocation2 + $0x84] sm:$0x1] %v663_v31  ;;  %v776_v51 = vsel %vm10472_vm6, 0, %v775_v18 }
 0x187   :  { %v9404_v21 = vcombine.low %v2429_v61, %v2439_v15  ;;  %v567_v13 = vmax.f32 %v373_v59, 0.0  ;;  %v570_v26 = vmax.f32 %v384_v55, 0.0  ;;  %777 = vst [vmem:[#allocation2 + $0x98] sm:$0x1] %v776_v51  ;;  %v2441_v54 = vshrl.u32 %v2215_v17, 16  ;;  %8291 = vmatpush1.bf16.msra.mxu0 %v10162_v27  ;;  %10109 = vmatpush1.bf16.msra.mxu1 %v10162_v27 }
 0x188   :  { %v1229_v3 = vshrl.u32 %v9849_v11, 16  ;;  %v1232_v30 = vshll.u32 %v9849_v11, 16  ;;  %v2444_v57 = vshll.u32 %v2215_v17, 16  ;;  %v2450_v23 = vshll.u32 %v2216_v7, 16  ;;  %v11043_v52 = vpop.permute.xlu0 %5889  ;;  %v772_v59 = vld [vmem:[#allocation2 + $0x8c] sm:$0x1] }
 0x189   :  { %3170 = vrot.lane.b32.xlu0 %v9404_v21, %s10357_s20  ;;  %v9847_v18 = vpack.c.bf16 %v567_v13, %v567_v13  ;;  %v9850_v45 = vpack.c.bf16 %v570_v26, %v570_v26  ;;  %v2443_v42 = vrot.slane %v2441_v54, 4  ;;  %v2454_v61 = vshrl.u32 %v2216_v7, 16  ;;  %v3313_v26 = vld [vmem:[#allocation2 + $0x60] sm:$0xe]  ;;  %v3314_v7 = vld [vmem:[#allocation2 + $0x64] sm:$0xf]  ;;  %v11048_v54 = vpop.permute.xlu1 %4157 }
 0x18a   :  { %6251 = vrot.lane.b32.xlu1 %v10138_v28, %s10355_s1  ;;  %v1231_v58 = vrot.slane %v1229_v3, 7  ;;  %v2446_v60 = vrot.slane %v2444_v57, 5  ;;  %v2452_v33 = vrot.slane %v2450_v23, 5  ;;  %v2460_v8 = vshll.u32 %v2217_v16, 16  ;;  %v3315_v27 = vld [vmem:[#allocation2 + $0x68] sm:$0x1] }
 0x18b   :  { %v1761_v17 = vld [vmem:[#allocation2 + $0x90] sm:$0xf]  ;;  %v1212_v31 = vshrl.u32 %v9847_v18, 16  ;;  %v1215_v55 = vshll.u32 %v9847_v18, 16  ;;  %v1237_v15 = vshrl.u32 %v9850_v45, 16  ;;  %v1240_v11 = vshll.u32 %v9850_v45, 16 }
 0x18c   :  { %v1234_v1 = vor.u32 %v1232_v30, %v1231_v58  ;;  %v1235_v51 = vrot.slane %v1231_v58, 4  ;;  %v2447_v21 = vor.u32 %v2446_v60, %v2443_v42  ;;  %v2456_v13 = vrot.slane %v2454_v61, 4  ;;  %v11050_v28 = vpop.permute.xlu0 %3808  ;;  %v6387_v60 = vld [vmem:[#allocation2 + $0x5c] sm:$0x1]  ;;  %4254 = vst.msk [vmem:[#allocation3] sm:$0xff] %vm4253_vm7, %v11048_v54 }
 0x18d   :  { %5901 = vrot.lane.b32.xlu0 %v9598_v29, %s10359_s24  ;;  %v11053_v16 = vrot.slane %v1212_v31, 7  ;;  %v1239_v3 = vrot.slane %v1237_v15, 7  ;;  %v2462_v57 = vrot.slane %v2460_v8, 5  ;;  %v376_v23 = vadd.f32 %v10872_v34, %v10749_v12  ;;  %v1754_v18 = vld [vmem:[#allocation2 + $0x84] sm:$0xf] }
 0x18e   :  { %v1762_v30 = vsel %vm10586_vm14, %v1234_v1, %v1761_v17  ;;  %v1765_v45 = vld [vmem:[#allocation2 + $0x98] sm:$0x1]  ;;  %v2448_v42 = vrot.slane %v2447_v21, 4  ;;  %v2457_v61 = vor.u32 %v2456_v13, %v2452_v33  ;;  %v773_v58 = vsel %vm10472_vm6, 0, %v772_v59  ;;  %v5393_v12 = vld [vmem:[#allocation2 + $0x54] sm:$0xe] }
 0x18f   :  { %1763 = vst [vmem:[#allocation2 + $0x90] sm:$0xf] %v1762_v30  ;;  %v1217_v29 = vor.u32 %v1215_v55, %v11053_v16  ;;  %v1242_v8 = vor.u32 %v1240_v11, %v1239_v3  ;;  %v1244_v31 = vrot.slane %v1239_v3, 4  ;;  %774 = vst [vmem:[#allocation2 + $0x8c] sm:$0x1] %v773_v58  ;;  %v568_v1 = vmax.f32 %v376_v23, 0.0 }
 0x190   :  { %v5394_v34 = vld [vmem:[#allocation2 + $0x58] sm:$0xf]  ;;  %v2453_v17 = vsel %vm10511_vm12, %v2448_v42, %v2452_v33  ;;  %v2458_v15 = vrot.slane %v2457_v61, 4  ;;  %v9439_v21 = vrot.slane %v3313_v26, 9  ;;  %v5395_v13 = vld [vmem:[#allocation2 + $0x5c] sm:$0x1] }
 0x191   :  { %v1755_v59 = vsel %vm10586_vm14, %v1217_v29, %v1754_v18  ;;  %v1243_v55 = vsel %vm10593_vm15, %v1235_v51, %v1242_v8  ;;  %v1766_v11 = vsel %vm10467_vm4, %v1244_v31, %v1765_v45  ;;  %v3542_v3 = vrot.slane %v3314_v7, 5  ;;  %v3310_v30 = vld [vmem:[#allocation2 + $0x54] sm:$0xe]  ;;  %v3311_v58 = vld [vmem:[#allocation2 + $0x58] sm:$0xf]  ;;  %v11075_v33 = vpop.f32.mrb[33].mxu0  ;;  %v11080_v45 = vpop.permute.xlu1 %5887 }
 0x192   :  { %v11073_v14 = vpop.permute.xlu0 %3806  ;;  %1756 = vst [vmem:[#allocation2 + $0x84] sm:$0xf] %v1755_v59  ;;  %1764 = vst.msk [vmem:[#allocation2 + $0x94] sm:$0xf] %vm611_vm1, %v1243_v55  ;;  %v2463_v26 = vsel %vm10511_vm12, %v2458_v15, %v2462_v57  ;;  %v9848_v23 = vpack.c.bf16 %v568_v1, %v568_v1  ;;  %v3545_v18 = vrot.slane %v3315_v27, 5  ;;  %v9565_v51 = vrot.slane %v5393_v12, 9 }
 0x193   :  { %1767 = vst [vmem:[#allocation2 + $0x98] sm:$0x1] %v1766_v11  ;;  %v3312_v42 = vld [vmem:[#allocation2 + $0x5c] sm:$0x1]  ;;  %v6385_v61 = vld [vmem:[#allocation2 + $0x54] sm:$0xf]  ;;  %v9405_v7 = vcombine.low %v2453_v17, %v2463_v26  ;;  %v3543_v29 = vsel %vm10495_vm9, %v9439_v21, %v3542_v3 }
 0x194   :  { %v3544_v8 = vrot.slane %v3542_v3, 4  ;;  %v5611_v31 = vrot.slane %v5394_v34, 5  ;;  %v1220_v59 = vshrl.u32 %v9848_v23, 16  ;;  %v1223_v10 = vshll.u32 %v9848_v23, 16  ;;  %v10139_v27 = vld [vmem:[#allocation2 + $0x54] sm:$0xff]  }
 0x195   :  { %v5614_v55 = vrot.slane %v5395_v13, 5  ;;  %v9438_v11 = vrot.slane %v3310_v30, 9  ;;  %3172 = vrot.lane.b32.xlu1 %v9405_v7, %s10357_s20  ;;  %v3535_v17 = vrot.slane %v3311_v58, 5  ;;  %v6386_v1 = vld [vmem:[#allocation2 + $0x58] sm:$0xf]  ;;  %v3538_v34 = vrot.slane %v3312_v42, 5 }
 0x196   :  { %v3546_v57 = vsel %vm10495_vm9, %v3544_v8, %v3545_v18  ;;  %v5612_v12 = vsel %vm10495_vm9, %v9565_v51, %v5611_v31  ;;  %v5613_v15 = vrot.slane %v5611_v31, 4  ;;  %v1222_v26 = vrot.slane %v1220_v59, 7  ;;  %v1758_v21 = vld [vmem:[#allocation2 + $0x8c] sm:$0x1]  ;;  %v11089_v13 = vpop.permute.xlu0 %6245  ;;  %v11091_v30 = vpop.f32.mrb[34].mxu0 }
 0x197   :  { %v9471_v3 = vcombine.low %v3543_v29, %v3546_v57  ;;  %v6587_v23 = vshrl.u32 %v6385_v61, 16  ;;  %v3536_v7 = vsel %vm10495_vm9, %v9438_v11, %v3535_v17  ;;  %v3537_v51 = vrot.slane %v3535_v17, 4  ;;  %v6388_v58 = vld [vmem:[#allocation2 + $0x60] sm:$0xf]  ;;  %v6389_v57 = vld [vmem:[#allocation2 + $0x64] sm:$0xf] }
 0x198   :  { %v5615_v18 = vsel %vm10495_vm9, %v5613_v15, %v5614_v55  ;;  %v6590_v8 = vshll.u32 %v6385_v61, 16  ;;  %v1225_v31 = vor.u32 %v1223_v10, %v1222_v26  ;;  %v1227_v59 = vrot.slane %v1222_v26, 4  ;;  %v6393_v54 = vld [vmem:[#allocation2 + $0x74] sm:$0x1] }
 0x199   :  { %3820 = vrot.lane.b32.xlu0 %v9471_v3, %s10354_s0  ;;  %v9597_v42 = vcombine.low %v5612_v12, %v5615_v18  ;;  %v6589_v29 = vrot.slane %v6587_v23, 4  ;;  %v11098_v43 = vpop.permute.xlu1 %5248  ;;  %v11100_v47 = vld [vmem:[#allocation2 + $0x94] sm:$0xf]  ;;  %4169 = vrot.lane.b32.xlu1 %v10139_v27, %s10358_s23  ;;  %v3539_v55 = vsel %vm10495_vm9, %v3537_v51, %v3538_v34  ;;  %v6596_v61 = vshll.u32 %v6386_v1, 16  ;;  %v10140_v3 = vld [vmem:[#allocation2 + $0x78] sm:$0xff]  }
 0x19a   :  { %13589 = vst [vmem:[#allocation19_spill] sm:$0xff] %v11100_v47  ;;  %v6592_v11 = vrot.slane %v6590_v8, 5  ;;  %v6600_v15 = vshrl.u32 %v6386_v1, 16  ;;  %v13590_v17 = vrot.slane %v11053_v16, 4  ;;  %v1759_v26 = vsel %vm10467_vm4, %v1227_v59, %v1758_v21  ;;  %v4304_v18 = vld [vmem:[#allocation2 + $0x54] sm:$0xf]  ;;  %v11116_v21 = vpop.permute.xlu0 %4163 }
 0x19b   :  { %v9470_v23 = vcombine.low %v3536_v7, %v3539_v55  ;;  %1760 = vst [vmem:[#allocation2 + $0x8c] sm:$0x1] %v1759_v26  ;;  %v6598_v34 = vrot.slane %v6596_v61, 5  ;;  %v6606_v1 = vshll.u32 %v6387_v60, 16  ;;  %v10165_v8 = vld [vmem:[#allocation2 + $0x30] sm:$0xff]   ;;  %v6611_v16 = vshrl.u32 %v6388_v58, 16 }
 0x19c   :  { %v1226_v12 = vsel %vm10593_vm15, %v13590_v17, %v1225_v31  ;;  %v6593_v27 = vor.u32 %v6592_v11, %v6589_v29  ;;  %v6602_v51 = vrot.slane %v6600_v15, 4  ;;  %v6614_v10 = vshll.u32 %v6388_v58, 16  ;;  %v4305_v17 = vld [vmem:[#allocation2 + $0x58] sm:$0xf]  ;;  %v11119_v60 = vpop.f32.mrb[35].mxu0  ;;  %2169 = vst.msk [vmem:[#allocation3 + $0x40] sm:$0xff] %vm2164_vm2, %v10165_v8 }
 0x19d   :  { %1757 = vst.msk [vmem:[#allocation2 + $0x88] sm:$0xf] %vm611_vm1, %v1226_v12  ;;  %6257 = vrot.lane.b32.xlu0 %v10140_v3, %s10355_s1  ;;  %v6620_v47 = vshll.u32 %v6389_v57, 16  ;;  %v6624_v31 = vshrl.u32 %v6389_v57, 16  ;;  %v11114_v37 = vpop.permute.xlu1 %6243  ;;  %5899 = vrot.lane.b32.xlu1 %v9597_v42, %s10359_s24  ;;  %v10141_v7 = vld [vmem:[#allocation2 + $0x78] sm:$0xff]   ;;  %v6608_v55 = vrot.slane %v6606_v1, 5 }
 0x19e   :  { %v6594_v59 = vrot.slane %v6593_v27, 4  ;;  %v6603_v29 = vor.u32 %v6602_v51, %v6598_v34  ;;  %v6630_v11 = vshll.u32 %v6390_v19, 16  ;;  %v6613_v61 = vrot.slane %v6611_v16, 4  ;;  %v4306_v12 = vld [vmem:[#allocation2 + $0x5c] sm:$0x1] }
 0x19f   :  { %v6616_v58 = vrot.slane %v6614_v10, 5  ;;  %v6622_v15 = vrot.slane %v6620_v47, 5  ;;  %v6626_v57 = vrot.slane %v6624_v31, 4  ;;  %v4527_v42 = vshrl.u32 %v4304_v18, 16  ;;  %v4308_v31 = vld [vmem:[#allocation2 + $0x64] sm:$0xf] }
 0x1a0   :  { %v6599_v26 = vsel %vm10511_vm12, %v6594_v59, %v6598_v34  ;;  %v6604_v3 = vrot.slane %v6603_v29, 4  ;;  %v6632_v56 = vrot.slane %v6630_v11, 5  ;;  %v4530_v19 = vshll.u32 %v4304_v18, 16  ;;  %v4309_v34 = vld [vmem:[#allocation2 + $0x68] sm:$0x1] }
 0x1a1   :  { %4175 = vrot.lane.b32.xlu0 %v10141_v7, %s10358_s23  ;;  %v6617_v27 = vor.u32 %v6616_v58, %v6613_v61  ;;  %v6627_v51 = vor.u32 %v6626_v57, %v6622_v15  ;;  %v4536_v1 = vshll.u32 %v4305_v17, 16  ;;  %3818 = vrot.lane.b32.xlu1 %v9470_v23, %s10354_s0  ;;  %v4529_v10 = vrot.slane %v4527_v42, 4  ;;  %v3165_v58 = vpop.permute.xlu1 %3164  ;;  %v5399_v57 = vld [vmem:[#allocation2 + $0x6c] sm:$0xe] }
 0x1a2   :  { %v6609_v47 = vsel %vm10511_vm12, %v6604_v3, %v6608_v55  ;;  %v4540_v8 = vshrl.u32 %v4305_v17, 16  ;;  %v4546_v16 = vshll.u32 %v4306_v12, 16  ;;  %v4532_v61 = vrot.slane %v4530_v19, 5  ;;  %v3163_v18 = vpop.permute.xlu0 %3162  ;;  %v2219_v19 = vld [vmem:[#allocation2 + $0x58] sm:$0xf]  ;;  %3259 = vst.msk [vmem:[#allocation3 + $0x20] sm:$0xff] %vm3256_vm3, %v3165_v58 }
 0x1a3   :  { %v9660_v29 = vcombine.low %v6599_v26, %v6609_v47  ;;  %v6618_v11 = vrot.slane %v6617_v27, 4  ;;  %v6628_v7 = vrot.slane %v6627_v51, 4  ;;  %v4538_v46 = vrot.slane %v4536_v1, 5  ;;  %v2218_v26 = vld [vmem:[#allocation2 + $0x54] sm:$0xf]  ;;  %3258 = vst.msk [vmem:[#allocation3 + $0x10] sm:$0xff] %vm3256_vm3, %v3163_v18 }
 0x1a4   :  { %v11128_v59 = vld [vmem:[#allocation2 + $0x88] sm:$0xf]  ;;  %v4542_v23 = vrot.slane %v4540_v8, 4  ;;  %v4548_v4 = vrot.slane %v4546_v16, 5  ;;  %v4533_v12 = vor.u32 %v4532_v61, %v4529_v10  ;;  %v4551_v27 = vshrl.u32 %v4307_v25, 16  ;;  %v10169_v58 = vld [vmem:[#allocation2 + $0x3c] sm:$0xff]  }
 0x1a5   :  { %13591 = vst [vmem:[#allocation20_spill] sm:$0xff] %v11128_v59  ;;  %7340 = vrot.lane.b32.xlu0 %v9660_v29, %s10356_s19  ;;  %v6623_v17 = vsel %vm10511_vm12, %v6618_v11, %v6622_v15  ;;  %v6633_v55 = vsel %vm10511_vm12, %v6628_v7, %v6632_v56  ;;  %v4554_v51 = vshll.u32 %v4307_v25, 16  ;;  %v4560_v56 = vshll.u32 %v4308_v31, 16  ;;  %v5402_v61 = vld [vmem:[#allocation2 + $0x78] sm:$0xe]  ;;  %2170 = vst.msk [vmem:[#allocation3 + $0x50] sm:$0xff] %vm2164_vm2, %v10169_v58  ;;  %v11153_v58 = vpop.permute.xlu1 %4161 }
 0x1a6   :  { %v9661_v3 = vcombine.low %v6623_v17, %v6633_v55  ;;  %v4543_v42 = vor.u32 %v4542_v23, %v4538_v46  ;;  %v4534_v15 = vrot.slane %v4533_v12, 4  ;;  %v4564_v1 = vshrl.u32 %v4308_v31, 16  ;;  %v5403_v17 = vld [vmem:[#allocation2 + $0x7c] sm:$0xf]  ;;  %v5401_v59 = vld [vmem:[#allocation2 + $0x74] sm:$0x1] }
 0x1a7   :  { %v4570_v47 = vshll.u32 %v4309_v34, 16  ;;  %v4553_v8 = vrot.slane %v4551_v27, 4  ;;  %v4556_v16 = vrot.slane %v4554_v51, 5  ;;  %v2465_v29 = vshrl.u32 %v2218_v26, 16  ;;  %v5404_v27 = vld [vmem:[#allocation2 + $0x80] sm:$0x1] }
 0x1a8   :  { %7342 = vrot.lane.b32.xlu1 %v9661_v3, %s10356_s19  ;;  %v4544_v10 = vrot.slane %v4543_v42, 4  ;;  %v4539_v25 = vsel %vm10511_vm12, %v4534_v15, %v4538_v46  ;;  %v4562_v11 = vrot.slane %v4560_v56, 5  ;;  %v4566_v53 = vrot.slane %v4564_v1, 4  ;;  %3903 = vst.msk [vmem:[#allocation3 + $0x20] sm:$0xff] %vm3900_vm5, %v11050_v28  ;;  %3902 = vst.msk [vmem:[#allocation3 + $0x10] sm:$0xff] %vm3900_vm5, %v11073_v14 }
 0x1a9   :  { %v4572_v7 = vrot.slane %v4570_v47, 5  ;;  %v4557_v31 = vor.u32 %v4556_v16, %v4553_v8  ;;  %v2467_v34 = vrot.slane %v2465_v29, 4  ;;  %v2468_v23 = vshll.u32 %v2218_v26, 16  ;;  %v671_v8 = vld [vmem:[#allocation2 + $0xa8] sm:$0x1]  ;;  %v11149_v26 = vpop.permute.xlu0 %5893  ;;  %4255 = vst.msk [vmem:[#allocation3 + $0x10] sm:$0xff] %vm4253_vm7, %v10999_v32 }
 0x1aa   :  { %v4549_v18 = vsel %vm10511_vm12, %v4544_v10, %v4548_v4  ;;  %v4567_v12 = vor.u32 %v4566_v53, %v4562_v11  ;;  %v2474_v3 = vshll.u32 %v2219_v19, 16  ;;  %v2478_v42 = vshrl.u32 %v2219_v19, 16  ;;  %v668_v53 = vld [vmem:[#allocation2 + $0x9c] sm:$0x1]  ;;  %4256 = vst.msk [vmem:[#allocation3 + $0x20] sm:$0xff] %vm4253_vm7, %v11153_v58 }
 0x1ab   :  { %v9533_v55 = vcombine.low %v4539_v25, %v4549_v18  ;;  %v4558_v46 = vrot.slane %v4557_v31, 4  ;;  %v2470_v51 = vrot.slane %v2468_v23, 5  ;;  %v2484_v15 = vshll.u32 %v2220_v0, 16  ;;  %5344 = vst.msk [vmem:[#allocation3 + $0x10] sm:$0xff] %vm5342_vm8, %v11098_v43 }
 0x1ac   :  { %v9568_v56 = vrot.slane %v5402_v61, 9  ;;  %v4568_v1 = vrot.slane %v4567_v12, 4  ;;  %v2476_v47 = vrot.slane %v2474_v3, 5  ;;  %v2480_v4 = vrot.slane %v2478_v42, 4  ;;  %v781_v12 = vld [vmem:[#allocation2 + $0xb0] sm:$0x1] }
 0x1ad   :  { %5258 = vrot.lane.b32.xlu0 %v9533_v55, %s10360_s25  ;;  %v5632_v10 = vrot.slane %v5403_v17, 5  ;;  %v4563_v16 = vsel %vm10511_vm12, %v4558_v46, %v4562_v11  ;;  %v2471_v19 = vor.u32 %v2470_v51, %v2467_v34  ;;  %v2486_v29 = vrot.slane %v2484_v15, 5  ;;  %v11162_v11 = vld [vmem:[%s13524_s2] ss:$0 sm:$0xff]  ;;  %5985 = vst.msk [vmem:[#allocation3 + $0x10] sm:$0xff] %vm5983_vm10, %v11043_v52 }
 0x1ae   :  { %v5635_v25 = vrot.slane %v5404_v27, 5  ;;  %v4573_v0 = vsel %vm10511_vm12, %v4568_v1, %v4572_v7  ;;  %v2481_v61 = vor.u32 %v2480_v4, %v2476_v47  ;;  %v397_v34 = vadd.f32 %v11162_v11, %v10795_v62  ;;  %v2221_v7 = vld [vmem:[#allocation2 + $0x60] sm:$0xf]  ;;  %v2222_v1 = vld [vmem:[#allocation2 + $0x64] sm:$0xf]  ;;  %6339 = vst.msk [vmem:[#allocation3 + $0x10] sm:$0xff] %vm6337_vm11, %v11114_v37 }
 0x1af   :  { %v5633_v18 = vsel %vm10495_vm9, %v9568_v56, %v5632_v10  ;;  %v5634_v31 = vrot.slane %v5632_v10, 4  ;;  %v9534_v23 = vcombine.low %v4563_v16, %v4573_v0  ;;  %v2472_v17 = vrot.slane %v2471_v19, 4 }
 0x1b0   :  { %v672_v55 = vsel %vm10467_vm4, 0, %v671_v8  ;;  %v2482_v3 = vrot.slane %v2481_v61, 4  ;;  %v389_v27 = vadd.f32 %v11162_v11, %v10801_v48  ;;  %v669_v46 = vsel %vm10467_vm4, 0, %v668_v53  ;;  %v11185_v61 = vpop.permute.xlu1 %7330 }
 0x1b1   :  { %v5636_v42 = vsel %vm10495_vm9, %v5634_v31, %v5635_v25  ;;  %673 = vst [vmem:[#allocation2 + $0xa8] sm:$0x1] %v672_v55  ;;  %5260 = vrot.lane.b32.xlu1 %v9534_v23, %s10360_s25  ;;  %v2477_v62 = vsel %vm10511_vm12, %v2472_v17, %v2476_v47  ;;  %v573_v15 = vmax.f32 %v397_v34, 0.0  ;;  %670 = vst [vmem:[#allocation2 + $0x9c] sm:$0x1] %v669_v46  ;;  %v782_v48 = vsel %vm10472_vm6, 0, %v781_v12  ;;  %v11183_v16 = vpop.permute.xlu0 %3812 }
 0x1b2   :  { %v9600_v51 = vcombine.low %v5633_v18, %v5636_v42  ;;  %v400_v56 = vadd.f32 %v11162_v11, %v10825_v40  ;;  %v2487_v4 = vsel %vm10511_vm12, %v2482_v3, %v2486_v29  ;;  %v571_v10 = vmax.f32 %v389_v27, 0.0  ;;  %v10144_v25 = vld [vmem:[#allocation2 + $0x6c] sm:$0xff]   ;;  %783 = vst [vmem:[#allocation2 + $0xb0] sm:$0x1] %v782_v48  ;;  %v2223_v55 = vld [vmem:[#allocation2 + $0x68] sm:$0x1] }
 0x1b3   :  { %v2489_v8 = vshrl.u32 %v2221_v7, 16  ;;  %v9406_v19 = vcombine.low %v2477_v62, %v2487_v4  ;;  %v9853_v47 = vpack.c.bf16 %v573_v15, %v573_v15  ;;  %v2492_v0 = vshll.u32 %v2221_v7, 16  ;;  %v10172_v3 = vld [vmem:[#allocation2 + $0x48] sm:$0xff]  }
 0x1b4   :  { %v574_v53 = vmax.f32 %v400_v56, 0.0  ;;  %v9851_v40 = vpack.c.bf16 %v571_v10, %v571_v10  ;;  %v2498_v31 = vshll.u32 %v2222_v1, 16  ;;  %v2502_v23 = vshrl.u32 %v2222_v1, 16  ;;  %v778_v10 = vld [vmem:[#allocation2 + $0xa4] sm:$0x1]  ;;  %2171 = vst.msk [vmem:[#allocation3 + $0x60] sm:$0xff] %vm2164_vm2, %v10172_v3 }
 0x1b5   :  { %v2491_v18 = vrot.slane %v2489_v8, 4  ;;  %3174 = vrot.lane.b32.xlu0 %v9406_v19, %s10357_s20  ;;  %6255 = vrot.lane.b32.xlu1 %v10144_v25, %s10355_s1  ;;  %v1263_v29 = vshrl.u32 %v9853_v47, 16  ;;  %v1266_v17 = vshll.u32 %v9853_v47, 16  ;;  %v2494_v12 = vrot.slane %v2492_v0, 5  ;;  %v3319_v47 = vld [vmem:[#allocation2 + $0x78] sm:$0xe] }
 0x1b6   :  { %v9854_v34 = vpack.c.bf16 %v574_v53, %v574_v53  ;;  %v1246_v42 = vshrl.u32 %v9851_v40, 16  ;;  %v1249_v27 = vshll.u32 %v9851_v40, 16  ;;  %v2500_v46 = vrot.slane %v2498_v31, 5  ;;  %v11194_v53 = vpop.permute.xlu0 %6249 }
 0x1b7   :  { %v2504_v7 = vrot.slane %v2502_v23, 4  ;;  %v1265_v62 = vrot.slane %v1263_v29, 7  ;;  %v2495_v4 = vor.u32 %v2494_v12, %v2491_v18  ;;  %v2508_v19 = vshll.u32 %v2223_v55, 16  ;;  %v3320_v29 = vld [vmem:[#allocation2 + $0x7c] sm:$0xf]  ;;  %v11197_v12 = vpop.permute.xlu1 %5246 }
 0x1b8   :  { %v1271_v15 = vshrl.u32 %v9854_v34, 16  ;;  %v1274_v56 = vshll.u32 %v9854_v34, 16  ;;  %v1775_v1 = vld [vmem:[#allocation2 + $0xa8] sm:$0xf]  ;;  %v11190_v48 = vrot.slane %v1246_v42, 7  ;;  %v392_v25 = vadd.f32 %v11162_v11, %v10831_v24  ;;  %5343 = vst.msk [vmem:[#allocation3] sm:$0xff] %vm5342_vm8, %v11197_v12 }
 0x1b9   :  { %v2505_v8 = vor.u32 %v2504_v7, %v2500_v46  ;;  %5905 = vrot.lane.b32.xlu0 %v9600_v51, %s10359_s24  ;;  %v1268_v0 = vor.u32 %v1266_v17, %v1265_v62  ;;  %v1269_v40 = vrot.slane %v1265_v62, 4  ;;  %v1768_v31 = vld [vmem:[#allocation2 + $0x9c] sm:$0xf]  ;;  %v2496_v23 = vrot.slane %v2495_v4, 4  ;;  %v3321_v34 = vld [vmem:[#allocation2 + $0x80] sm:$0x1] }
 0x1ba   :  { %v1273_v18 = vrot.slane %v1271_v15, 7  ;;  %v1251_v3 = vor.u32 %v1249_v27, %v11190_v48  ;;  %v1779_v42 = vld [vmem:[#allocation2 + $0xb0] sm:$0x1]  ;;  %v2510_v7 = vrot.slane %v2508_v19, 5  ;;  %v779_v19 = vsel %vm10472_vm6, 0, %v778_v10  ;;  %5984 = vst.msk [vmem:[#allocation3] sm:$0xff] %vm5983_vm10, %v11080_v45 }
 0x1bb   :  { %v2506_v24 = vrot.slane %v2505_v8, 4  ;;  %v1776_v51 = vsel %vm10586_vm14, %v1268_v0, %v1775_v1  ;;  %v2501_v15 = vsel %vm10511_vm12, %v2496_v23, %v2500_v46  ;;  %v5400_v4 = vld [vmem:[#allocation2 + $0x70] sm:$0xf]  ;;  %v572_v8 = vmax.f32 %v392_v25, 0.0  ;;  %780 = vst [vmem:[#allocation2 + $0xa4] sm:$0x1] %v779_v19 }
 0x1bc   :  { %v1276_v17 = vor.u32 %v1274_v56, %v1273_v18  ;;  %v1278_v62 = vrot.slane %v1273_v18, 4  ;;  %1777 = vst [vmem:[#allocation2 + $0xa8] sm:$0xf] %v1776_v51  ;;  %v1769_v27 = vsel %vm10586_vm14, %v1251_v3, %v1768_v31  ;;  %v3317_v1 = vld [vmem:[#allocation2 + $0x70] sm:$0xf]  ;;  %v9441_v18 = vrot.slane %v3319_v47, 9 }
 0x1bd   :  { %v2511_v55 = vsel %vm10511_vm12, %v2506_v24, %v2510_v7  ;;  %1770 = vst [vmem:[#allocation2 + $0x9c] sm:$0xf] %v1769_v27  ;;  %v3318_v31 = vld [vmem:[#allocation2 + $0x74] sm:$0x1]  ;;  %v11215_v23 = vld [vmem:[#allocation2 + $0x6c] sm:$0xf]  ;;  %v9852_v25 = vpack.c.bf16 %v572_v8, %v572_v8  ;;  %v11218_v24 = vpop.permute.xlu0 %4167 }
 0x1be   :  { %v1277_v56 = vsel %vm10593_vm15, %v1269_v40, %v1276_v17  ;;  %v1780_v46 = vsel %vm10467_vm4, %v1278_v62, %v1779_v42  ;;  %v9407_v0 = vcombine.low %v2501_v15, %v2511_v55  ;;  %v3556_v10 = vrot.slane %v3320_v29, 5  ;;  %v11229_v29 = vpop.permute.xlu1 %5891  ;;  %v6392_v51 = vld [vmem:[#allocation2 + $0x70] sm:$0xf]  ;;  %v6394_v8 = vld [vmem:[#allocation2 + $0x78] sm:$0xf]  ;;  %6338 = vst.msk [vmem:[#allocation3] sm:$0xff] %vm6337_vm11, %v11040_v63 }
 0x1bf   :  { %1778 = vst.msk [vmem:[#allocation2 + $0xac] sm:$0xf] %vm611_vm1, %v1277_v56  ;;  %1781 = vst [vmem:[#allocation2 + $0xb0] sm:$0x1] %v1780_v46  ;;  %v3559_v3 = vrot.slane %v3321_v34, 5  ;;  %v9567_v47 = vrot.slane %v5399_v57, 9 }
 0x1c0   :  { %3176 = vrot.lane.b32.xlu1 %v9407_v0, %s10357_s20  ;;  %v5625_v40 = vrot.slane %v5400_v4, 5  ;;  %v5628_v55 = vrot.slane %v5401_v59, 5  ;;  %v1254_v34 = vshrl.u32 %v9852_v25, 16  ;;  %v1257_v42 = vshll.u32 %v9852_v25, 16  ;;  %v6395_v19 = vld [vmem:[#allocation2 + $0x7c] sm:$0xf] }
 0x1c1   :  { %v3557_v38 = vsel %vm10495_vm9, %v9441_v18, %v3556_v10  ;;  %v3558_v7 = vrot.slane %v3556_v10, 4  ;;  %v9440_v59 = vrot.slane %v3316_v2, 9  ;;  %v3549_v57 = vrot.slane %v3317_v1, 5  ;;  %v11249_v25 = vpop.permute.xlu0 %7332  ;;  %7427 = vst.msk [vmem:[#allocation3] sm:$0xff] %vm7426_vm13, %v11185_v61 }
 0x1c2   :  { %v5626_v14 = vsel %vm10495_vm9, %v9567_v47, %v5625_v40  ;;  %v5627_v28 = vrot.slane %v5625_v40, 4  ;;  %v1256_v17 = vrot.slane %v1254_v34, 7  ;;  %v3552_v15 = vrot.slane %v3318_v31, 5  ;;  %v1772_v46 = vld [vmem:[#allocation2 + $0xa4] sm:$0x1]  ;;  %v11257_v34 = vpop.permute.xlu1 %3810  ;;  %7428 = vst.msk [vmem:[#allocation3 + $0x10] sm:$0xff] %vm7426_vm13, %v11249_v25 }
 0x1c3   :  { %v3560_v62 = vsel %vm10495_vm9, %v3558_v7, %v3559_v3  ;;  %v6635_v4 = vshrl.u32 %v11215_v23, 16  ;;  %v3550_v27 = vsel %vm10495_vm9, %v9440_v59, %v3549_v57  ;;  %v3551_v2 = vrot.slane %v3549_v57, 4  ;;  %v6396_v31 = vld [vmem:[#allocation2 + $0x80] sm:$0x1] }
 0x1c4   :  { %v9473_v32 = vcombine.low %v3557_v38, %v3560_v62  ;;  %4173 = vrot.lane.b32.xlu1 %v10145_v44, %s10358_s23  ;;  %v5629_v58 = vsel %vm10495_vm9, %v5627_v28, %v5628_v55  ;;  %v1259_v1 = vor.u32 %v1257_v42, %v1256_v17  ;;  %v1261_v56 = vrot.slane %v1256_v17, 4  ;;  %v10146_v28 = vld [vmem:[#allocation2 + $0x90] sm:$0xff]   ;;  %v5410_v42 = vld [vmem:[#allocation2 + $0x98] sm:$0x1] }
 0x1c5   :  { %v9599_v0 = vcombine.low %v5626_v14, %v5629_v58  ;;  %v6637_v18 = vrot.slane %v6635_v4, 4  ;;  %v3553_v3 = vsel %vm10495_vm9, %v3551_v2, %v3552_v15  ;;  %v6638_v47 = vshll.u32 %v11215_v23, 16  ;;  %v4310_v4 = vld [vmem:[#allocation2 + $0x6c] sm:$0xf] }
 0x1c6   :  { %v11251_v10 = vld [vmem:[#allocation2 + $0xac] sm:$0xf]  ;;  %3824 = vrot.lane.b32.xlu0 %v9473_v32, %s10354_s0  ;;  %v6644_v40 = vshll.u32 %v6392_v51, 16  ;;  %v6648_v55 = vshrl.u32 %v6392_v51, 16  ;;  %v13593_v38 = vrot.slane %v11190_v48, 4  ;;  %v1773_v44 = vsel %vm10467_vm4, %v1261_v56, %v1772_v46 }
 0x1c7   :  { %13592 = vst [vmem:[#allocation21_spill] sm:$0xff] %v11251_v10  ;;  %v9472_v14 = vcombine.low %v3550_v27, %v3553_v3  ;;  %1774 = vst [vmem:[#allocation2 + $0xa4] sm:$0x1] %v1773_v44  ;;  %v6640_v23 = vrot.slane %v6638_v47, 5  ;;  %v6654_v51 = vshll.u32 %v6393_v54, 16  ;;  %v6659_v17 = vshrl.u32 %v6394_v8, 16 }
 0x1c8   :  { %v1260_v7 = vsel %vm10593_vm15, %v13593_v38, %v1259_v1  ;;  %5903 = vrot.lane.b32.xlu1 %v9599_v0, %s10359_s24  ;;  %v6646_v59 = vrot.slane %v6644_v40, 5  ;;  %v6650_v57 = vrot.slane %v6648_v55, 4  ;;  %v6662_v62 = vshll.u32 %v6394_v8, 16  ;;  %v4311_v1 = vld [vmem:[#allocation2 + $0x70] sm:$0xf]  ;;  %v11272_v38 = vpop.permute.xlu1 %7334 }
 0x1c9   :  { %1771 = vst.msk [vmem:[#allocation2 + $0xa0] sm:$0xf] %vm611_vm1, %v1260_v7  ;;  %v6668_v48 = vshll.u32 %v6395_v19, 16  ;;  %v6672_v15 = vshrl.u32 %v6395_v19, 16  ;;  %v6641_v32 = vor.u32 %v6640_v23, %v6637_v18  ;;  %v6656_v27 = vrot.slane %v6654_v51, 5  ;;  %v11269_v47 = vpop.permute.xlu0 %5250  ;;  %v10147_v40 = vld [vmem:[#allocation2 + $0x90] sm:$0xff]  }
 0x1ca   :  { %6261 = vrot.lane.b32.xlu0 %v10146_v28, %s10355_s1  ;;  %v6651_v58 = vor.u32 %v6650_v57, %v6646_v59  ;;  %v6678_v2 = vshll.u32 %v6396_v31, 16  ;;  %v6661_v56 = vrot.slane %v6659_v17, 4  ;;  %v6664_v46 = vrot.slane %v6662_v62, 5  ;;  %v4312_v44 = vld [vmem:[#allocation2 + $0x74] sm:$0x1]  ;;  %5345 = vst.msk [vmem:[#allocation3 + $0x20] sm:$0xff] %vm5342_vm8, %v11269_v47 }
 0x1cb   :  { %v6670_v3 = vrot.slane %v6668_v48, 5  ;;  %v6674_v0 = vrot.slane %v6672_v15, 4  ;;  %v6642_v54 = vrot.slane %v6641_v32, 4  ;;  %v4575_v55 = vshrl.u32 %v4310_v4, 16  ;;  %v4313_v17 = vld [vmem:[#allocation2 + $0x78] sm:$0xf] }
 0x1cc   :  { %3822 = vrot.lane.b32.xlu1 %v9472_v14, %s10354_s0  ;;  %v6652_v8 = vrot.slane %v6651_v58, 4  ;;  %v6680_v19 = vrot.slane %v6678_v2, 5  ;;  %v6665_v18 = vor.u32 %v6664_v46, %v6661_v56  ;;  %v4578_v31 = vshll.u32 %v4310_v4, 16  ;;  %v4314_v62 = vld [vmem:[#allocation2 + $0x7c] sm:$0xf]  ;;  %5986 = vst.msk [vmem:[#allocation3 + $0x20] sm:$0xff] %vm5983_vm10, %v11229_v29 }
 0x1cd   :  { %v6675_v7 = vor.u32 %v6674_v0, %v6670_v3  ;;  %v4584_v28 = vshll.u32 %v4311_v1, 16  ;;  %v6647_v23 = vsel %vm10511_vm12, %v6642_v54, %v6646_v59  ;;  %v4577_v14 = vrot.slane %v4575_v55, 4  ;;  %v4315_v4 = vld [vmem:[#allocation2 + $0x80] sm:$0x1]  ;;  %6340 = vst.msk [vmem:[#allocation3 + $0x20] sm:$0xff] %vm6337_vm11, %v11089_v13 }
 0x1ce   :  { %4179 = vrot.lane.b32.xlu0 %v10147_v40, %s10358_s23  ;;  %v6657_v57 = vsel %vm10511_vm12, %v6652_v8, %v6656_v27  ;;  %v4588_v51 = vshrl.u32 %v4311_v1, 16  ;;  %v6666_v32 = vrot.slane %v6665_v18, 4  ;;  %v4580_v2 = vrot.slane %v4578_v31, 5  ;;  %v2224_v8 = vld [vmem:[#allocation2 + $0x6c] sm:$0xf]  ;;  %7429 = vst.msk [vmem:[#allocation3 + $0x20] sm:$0xff] %vm7426_vm13, %v11272_v38 }
 0x1cf   :  { %v9662_v15 = vcombine.low %v6647_v23, %v6657_v57  ;;  %v6676_v58 = vrot.slane %v6675_v7, 4  ;;  %v4586_v46 = vrot.slane %v4584_v28, 5  ;;  %v4594_v40 = vshll.u32 %v4312_v44, 16  ;;  %v11287_v57 = vpop.permute.xlu1 %5252 }
 0x1d0   :  { %v11279_v48 = vld [vmem:[#allocation2 + $0xa0] sm:$0xf]  ;;  %v4590_v0 = vrot.slane %v4588_v51, 4  ;;  %v6671_v59 = vsel %vm10511_vm12, %v6666_v32, %v6670_v3  ;;  %v4581_v1 = vor.u32 %v4580_v2, %v4577_v14  ;;  %v4599_v54 = vshrl.u32 %v4313_v17, 16  ;;  %v3167_v55 = vpop.permute.xlu0 %3166  ;;  %v2225_v32 = vld [vmem:[#allocation2 + $0x70] sm:$0xf] }
 0x1d1   :  { %v6681_v27 = vsel %vm10511_vm12, %v6676_v58, %v6680_v19  ;;  %v4596_v31 = vrot.slane %v4594_v40, 5  ;;  %v4602_v23 = vshll.u32 %v4313_v17, 16  ;;  %3260 = vst.msk [vmem:[#allocation3 + $0x30] sm:$0xff] %vm3256_vm3, %v3167_v55  ;;  %v4608_v3 = vshll.u32 %v4314_v62, 16  ;;  %v2226_v58 = vld [vmem:[#allocation2 + $0x74] sm:$0x1] }
 0x1d2   :  { %7344 = vrot.lane.b32.xlu0 %v9662_v15, %s10356_s19  ;;  %v9663_v18 = vcombine.low %v6671_v59, %v6681_v27  ;;  %v4591_v7 = vor.u32 %v4590_v0, %v4586_v46  ;;  %v4582_v44 = vrot.slane %v4581_v1, 4  ;;  %v4601_v28 = vrot.slane %v4599_v54, 4  ;;  %3904 = vst.msk [vmem:[#allocation3 + $0x30] sm:$0xff] %vm3900_vm5, %v11257_v34  ;;  %v5408_v59 = vld [vmem:[#allocation2 + $0x90] sm:$0xe]  ;;  %v11297_v27 = vpop.f32.mrb[36].mxu0 }
 0x1d3   :  { %v4612_v51 = vshrl.u32 %v4314_v62, 16  ;;  %v4604_v14 = vrot.slane %v4602_v23, 5  ;;  %v4618_v15 = vshll.u32 %v4315_v4, 16  ;;  %v2513_v2 = vshrl.u32 %v2224_v8, 16  ;;  %4257 = vst.msk [vmem:[#allocation3 + $0x30] sm:$0xff] %vm4253_vm7, %v11116_v21 }
 0x1d4   :  { %7346 = vrot.lane.b32.xlu1 %v9663_v18, %s10356_s19  ;;  %v4592_v19 = vrot.slane %v4591_v7, 4  ;;  %v4587_v17 = vsel %vm10511_vm12, %v4582_v44, %v4586_v46  ;;  %v4610_v0 = vrot.slane %v4608_v3, 5  ;;  %v2516_v62 = vshll.u32 %v2224_v8, 16  ;;  %v5409_v55 = vld [vmem:[#allocation2 + $0x94] sm:$0xf]  ;;  %v11301_v8 = vpop.permute.xlu1 %6247  ;;  %5346 = vst.msk [vmem:[#allocation3 + $0x30] sm:$0xff] %vm5342_vm8, %v11287_v57 }
 0x1d5   :  { %v4614_v40 = vrot.slane %v4612_v51, 4  ;;  %v4605_v1 = vor.u32 %v4604_v14, %v4601_v28  ;;  %v4620_v54 = vrot.slane %v4618_v15, 5  ;;  %v2515_v4 = vrot.slane %v2513_v2, 4  ;;  %v11304_v14 = vpop.permute.xlu0 %5897  ;;  %v11306_v15 = vpop.f32.mrb[37].mxu0  ;;  %5987 = vst.msk [vmem:[#allocation3 + $0x30] sm:$0xff] %vm5983_vm10, %v11149_v26 }
 0x1d6   :  { %v4597_v34 = vsel %vm10511_vm12, %v4592_v19, %v4596_v31  ;;  %v2518_v23 = vrot.slane %v2516_v62, 5  ;;  %v2522_v21 = vshll.u32 %v2225_v32, 16  ;;  %v2526_v46 = vshrl.u32 %v2225_v32, 16  ;;  %v677_v19 = vld [vmem:[#allocation2 + $0xc0] sm:$0x1]  ;;  %v11310_v62 = vpop.f32.mrb[38].mxu0 }
 0x1d7   :  { %v9535_v18 = vcombine.low %v4587_v17, %v4597_v34  ;;  %v4615_v7 = vor.u32 %v4614_v40, %v4610_v0  ;;  %v4606_v56 = vrot.slane %v4605_v1, 4  ;;  %v2532_v44 = vshll.u32 %v2226_v58, 16  ;;  %v674_v40 = vld [vmem:[#allocation2 + $0xb4] sm:$0x1]  ;;  %6341 = vst.msk [vmem:[#allocation3 + $0x30] sm:$0xff] %vm6337_vm11, %v11301_v8 }
 0x1d8   :  { %v9570_v3 = vrot.slane %v5408_v59, 9  ;;  %v2519_v10 = vor.u32 %v2518_v23, %v2515_v4  ;;  %v2524_v31 = vrot.slane %v2522_v21, 5  ;;  %v5646_v28 = vrot.slane %v5409_v55, 5  ;;  %v11322_v23 = vpop.f32.mrb[39].mxu0 }
 0x1d9   :  { %5262 = vrot.lane.b32.xlu0 %v9535_v18, %s10360_s25  ;;  %v4616_v51 = vrot.slane %v4615_v7, 4  ;;  %v4611_v2 = vsel %vm10511_vm12, %v4606_v56, %v4610_v0  ;;  %v2528_v17 = vrot.slane %v2526_v46, 4  ;;  %v2534_v32 = vrot.slane %v2532_v44, 5  ;;  %v787_v0 = vld [vmem:[#allocation2 + $0xc8] sm:$0x1]  ;;  %v10176_v44 = vld [vmem:[#allocation2 + $0x54] sm:$0xff]  }
 0x1da   :  { %v5649_v58 = vrot.slane %v5410_v42, 5  ;;  %v2520_v34 = vrot.slane %v2519_v10, 4  ;;  %v11316_v1 = vsel %vm10495_vm9, %v9570_v3, %v5646_v28  ;;  %v5648_v4 = vrot.slane %v5646_v28, 4  ;;  %v2227_v7 = vld [vmem:[#allocation2 + $0x78] sm:$0xf]  ;;  %2172 = vst.msk [vmem:[#allocation3 + $0x70] sm:$0xff] %vm2164_vm2, %v10176_v44 }
 0x1db   :  { %v4621_v59 = vsel %vm10511_vm12, %v4616_v51, %v4620_v54  ;;  %v2529_v18 = vor.u32 %v2528_v17, %v2524_v31  ;;  %v413_v56 = vadd.f32 %v11162_v11, %v10917_v39  ;;  %v678_v42 = vsel %vm10467_vm4, 0, %v677_v19  ;;  %v2228_v46 = vld [vmem:[#allocation2 + $0x7c] sm:$0xf] }
 0x1dc   :  { %v9536_v55 = vcombine.low %v4611_v2, %v4621_v59  ;;  %v2525_v10 = vsel %vm10511_vm12, %v2520_v34, %v2524_v31  ;;  %v5650_v54 = vsel %vm10495_vm9, %v5648_v4, %v5649_v58  ;;  %679 = vst [vmem:[#allocation2 + $0xc0] sm:$0x1] %v678_v42  ;;  %v405_v21 = vadd.f32 %v11162_v11, %v10922_v49  ;;  %v10154_v34 = vld [vmem:[#allocation2 + $0x84] sm:$0xff]  }
 0x1dd   :  { %v675_v39 = vsel %vm10467_vm4, 0, %v674_v40  ;;  %v2530_v3 = vrot.slane %v2529_v18, 4  ;;  %v9602_v51 = vcombine.low %v11316_v1, %v5650_v54  ;;  %v577_v28 = vmax.f32 %v413_v56, 0.0  ;;  %v3169_v19 = vpop.permute.xlu1 %3168  ;;  %v2229_v56 = vld [vmem:[#allocation2 + $0x80] sm:$0x1] }
 0x1de   :  { %5264 = vrot.lane.b32.xlu1 %v9536_v55, %s10360_s25  ;;  %676 = vst [vmem:[#allocation2 + $0xb4] sm:$0x1] %v675_v39  ;;  %v416_v31 = vadd.f32 %v11162_v11, %v10946_v22  ;;  %v575_v2 = vmax.f32 %v405_v21, 0.0  ;;  %v788_v49 = vsel %vm10472_vm6, 0, %v787_v0  ;;  %v2537_v17 = vshrl.u32 %v2227_v7, 16  ;;  %3261 = vst.msk [vmem:[#allocation3 + $0x40] sm:$0xff] %vm3256_vm3, %v3169_v19 }
 0x1df   :  { %v2540_v58 = vshll.u32 %v2227_v7, 16  ;;  %v11339_v40 = vpop.permute.xlu0 %3816  ;;  %v2535_v59 = vsel %vm10511_vm12, %v2530_v3, %v2534_v32  ;;  %v9857_v1 = vpack.c.bf16 %v577_v28, %v577_v28  ;;  %789 = vst [vmem:[#allocation2 + $0xc8] sm:$0x1] %v788_v49  ;;  %v2546_v22 = vshll.u32 %v2228_v46, 16  ;;  %3905 = vst.msk [vmem:[#allocation3 + $0x40] sm:$0xff] %vm3900_vm5, %v11183_v16 }
 0x1e0   :  { %v578_v4 = vmax.f32 %v416_v31, 0.0  ;;  %v9408_v55 = vcombine.low %v2525_v10, %v2535_v59  ;;  %v9855_v18 = vpack.c.bf16 %v575_v2, %v575_v2  ;;  %v2539_v42 = vrot.slane %v2537_v17, 4  ;;  %v784_v17 = vld [vmem:[#allocation2 + $0xbc] sm:$0x1] }
 0x1e1   :  { %v2542_v0 = vrot.slane %v2540_v58, 5  ;;  %v1297_v7 = vshrl.u32 %v9857_v1, 16  ;;  %v1300_v54 = vshll.u32 %v9857_v1, 16  ;;  %v11347_v39 = vrot.slane %v2546_v22, 5  ;;  %v4166_v32 = vpop.permute.xlu1 %4165  ;;  %v3325_v58 = vld [vmem:[#allocation2 + $0x90] sm:$0xe] }
 0x1e2   :  { %6259 = vrot.lane.b32.xlu1 %v10154_v34, %s10355_s1  ;;  %v9858_v21 = vpack.c.bf16 %v578_v4, %v578_v4  ;;  %3178 = vrot.lane.b32.xlu0 %v9408_v55, %s10357_s20  ;;  %v1280_v44 = vshrl.u32 %v9855_v18, 16  ;;  %v1283_v3 = vshll.u32 %v9855_v18, 16  ;;  %v2550_v31 = vshrl.u32 %v2228_v46, 16  ;;  %4258 = vst.msk [vmem:[#allocation3 + $0x40] sm:$0xff] %vm4253_vm7, %v4166_v32  ;;  %v10177_v55 = vld [vmem:[#allocation2 + $0x60] sm:$0xff]  }
 0x1e3   :  { %v2543_v28 = vor.u32 %v2542_v0, %v2539_v42  ;;  %v11351_v16 = vpop.permute.xlu0 %6253  ;;  %v1299_v10 = vrot.slane %v1297_v7, 7  ;;  %v2556_v49 = vshll.u32 %v2229_v56, 16  ;;  %v1789_v59 = vld [vmem:[#allocation2 + $0xc0] sm:$0xf]  ;;  %v408_v22 = vadd.f32 %v11162_v11, %v10961_v41  ;;  %v3326_v41 = vld [vmem:[#allocation2 + $0x94] sm:$0xf] }
 0x1e4   :  { %v1305_v19 = vshrl.u32 %v9858_v21, 16  ;;  %v1308_v2 = vshll.u32 %v9858_v21, 16  ;;  %v11353_v34 = vrot.slane %v1280_v44, 7  ;;  %v2552_v4 = vrot.slane %v2550_v31, 4  ;;  %2173 = vst.msk [vmem:[#allocation3 + $0x80] sm:$0xff] %vm2164_vm2, %v10177_v55 }
 0x1e5   :  { %v2544_v1 = vrot.slane %v2543_v28, 4  ;;  %v1302_v46 = vor.u32 %v1300_v54, %v1299_v10  ;;  %v1303_v18 = vrot.slane %v1299_v10, 4  ;;  %v1782_v42 = vld [vmem:[#allocation2 + $0xb4] sm:$0xf]  ;;  %v2558_v32 = vrot.slane %v2556_v49, 5 }
 0x1e6   :  { %v1307_v0 = vrot.slane %v1305_v19, 7  ;;  %5909 = vrot.lane.b32.xlu0 %v9602_v51, %s10359_s24  ;;  %v1285_v56 = vor.u32 %v1283_v3, %v11353_v34  ;;  %v1793_v21 = vld [vmem:[#allocation2 + $0xc8] sm:$0x1]  ;;  %v2553_v28 = vor.u32 %v2552_v4, %v11347_v39  ;;  %v576_v3 = vmax.f32 %v408_v22, 0.0  ;;  %v3327_v10 = vld [vmem:[#allocation2 + $0x98] sm:$0x1] }
 0x1e7   :  { %v2549_v44 = vsel %vm10511_vm12, %v2544_v1, %v11347_v39  ;;  %v11364_v11 = vpop.permute.xlu0 %4171  ;;  %v1790_v54 = vsel %vm10586_vm14, %v1302_v46, %v1789_v59  ;;  %v11369_v19 = vld [vmem:[#allocation2 + $0x84] sm:$0xe]  ;;  %v785_v39 = vsel %vm10472_vm6, 0, %v784_v17  ;;  %v9443_v4 = vrot.slane %v3325_v58, 9  ;;  %v11375_v7 = vld [vmem:[#allocation2 + $0x88] sm:$0xf] }
 0x1e8   :  { %v1310_v51 = vor.u32 %v1308_v2, %v1307_v0  ;;  %v1312_v31 = vrot.slane %v1307_v0, 4  ;;  %1791 = vst [vmem:[#allocation2 + $0xc0] sm:$0xf] %v1790_v54  ;;  %v1783_v49 = vsel %vm10586_vm14, %v1285_v56, %v1782_v42  ;;  %v2554_v1 = vrot.slane %v2553_v28, 4  ;;  %v11377_v55 = vld [vmem:[#allocation2 + $0x8c] sm:$0x1]  ;;  %v11381_v2 = vpop.permute.xlu1 %5895 }
 0x1e9   :  { %v11379_v59 = vld [vmem:[#allocation2 + $0x84] sm:$0xe]  ;;  %1784 = vst [vmem:[#allocation2 + $0xb4] sm:$0xf] %v1783_v49  ;;  %786 = vst [vmem:[#allocation2 + $0xbc] sm:$0x1] %v785_v39  ;;  %v9856_v42 = vpack.c.bf16 %v576_v3, %v576_v3 }
 0x1ea   :  { %v1311_v22 = vsel %vm10593_vm15, %v1303_v18, %v1310_v51  ;;  %v1794_v46 = vsel %vm10467_vm4, %v1312_v31, %v1793_v21  ;;  %v3570_v0 = vrot.slane %v3326_v41, 5  ;;  %v3323_v17 = vld [vmem:[#allocation2 + $0x88] sm:$0xf]  ;;  %v11387_v58 = vld [vmem:[#allocation2 + $0x8c] sm:$0x1]  ;;  %v2559_v56 = vsel %vm10511_vm12, %v2554_v1, %v2558_v32 }
 0x1eb   :  { %1792 = vst.msk [vmem:[#allocation2 + $0xc4] sm:$0xf] %vm611_vm1, %v1311_v22  ;;  %1795 = vst [vmem:[#allocation2 + $0xc8] sm:$0x1] %v1794_v46  ;;  %v3573_v28 = vrot.slane %v3327_v10, 5  ;;  %v9409_v18 = vcombine.low %v2549_v44, %v2559_v56  ;;  %v1288_v51 = vshrl.u32 %v9856_v42, 16 }
 0x1ec   :  { %v11392_v54 = vld [vmem:[#allocation2 + $0x84] sm:$0xf]  ;;  %v1291_v21 = vshll.u32 %v9856_v42, 16  ;;  %v3571_v41 = vsel %vm10495_vm9, %v9443_v4, %v3570_v0  ;;  %v7337_v32 = vpop.permute.xlu0 %7336  ;;  %v3572_v31 = vrot.slane %v3570_v0, 4  ;;  %v9569_v12 = vrot.slane %v11369_v19, 9  ;;  %v11435_v13 = vpop.permute.xlu1 %3814 }
 0x1ed   :  { %v6398_v44 = vld [vmem:[#allocation2 + $0x88] sm:$0xf]  ;;  %3180 = vrot.lane.b32.xlu1 %v9409_v18, %s10357_s20  ;;  %v1290_v43 = vrot.slane %v1288_v51, 7  ;;  %v5639_v52 = vrot.slane %v11375_v7, 5  ;;  %v5642_v45 = vrot.slane %v11377_v55, 5  ;;  %v9442_v47 = vrot.slane %v11379_v59, 9 }
 0x1ee   :  { %v3574_v26 = vsel %vm10495_vm9, %v3572_v31, %v3573_v28  ;;  %v3563_v63 = vrot.slane %v3323_v17, 5  ;;  %v3566_v37 = vrot.slane %v11387_v58, 5  ;;  %v6683_v29 = vshrl.u32 %v11392_v54, 16  ;;  %7430 = vst.msk [vmem:[#allocation3 + $0x30] sm:$0xff] %vm7426_vm13, %v7337_v32  ;;  %v10157_v3 = vld [vmem:[#allocation2 + $0x84] sm:$0xff]  }
 0x1ef   :  { %v1293_v57 = vor.u32 %v1291_v21, %v1290_v43  ;;  %v1295_v8 = vrot.slane %v1290_v43, 4  ;;  %v9475_v7 = vcombine.low %v3571_v41, %v3574_v26  ;;  %v5640_v61 = vsel %vm10495_vm9, %v9569_v12, %v5639_v52  ;;  %v6399_v10 = vld [vmem:[#allocation2 + $0x8c] sm:$0x1]  ;;  %v6400_v19 = vld [vmem:[#allocation2 + $0x90] sm:$0xf] }
 0x1f0   :  { %v1786_v49 = vld [vmem:[#allocation2 + $0xbc] sm:$0x1]  ;;  %v5641_v1 = vrot.slane %v5639_v52, 4  ;;  %v11442_v25 = vsel %vm10495_vm9, %v9442_v47, %v3563_v63  ;;  %v3565_v38 = vrot.slane %v3563_v63, 4  ;;  %v6685_v39 = vrot.slane %v6683_v29, 4  ;;  %v10158_v18 = vld [vmem:[#allocation2 + $0xa8] sm:$0xff]   ;;  %v7339_v26 = vpop.permute.xlu1 %7338 }
 0x1f1   :  { %v6401_v4 = vld [vmem:[#allocation2 + $0x94] sm:$0xf]  ;;  %v13594_v59 = vrot.slane %v11353_v34, 4  ;;  %v1787_v46 = vsel %vm10467_vm4, %v1295_v8, %v1786_v49  ;;  %3828 = vrot.lane.b32.xlu0 %v9475_v7, %s10354_s0  ;;  %4177 = vrot.lane.b32.xlu1 %v10157_v3, %s10358_s23  ;;  %v6686_v42 = vshll.u32 %v11392_v54, 16  ;;  %v6692_v0 = vshll.u32 %v6398_v44, 16  ;;  %v10160_v8 = vld [vmem:[#allocation2 + $0xa8] sm:$0xff]  }
 0x1f2   :  { %v11444_v55 = vld [vmem:[#allocation2 + $0xc4] sm:$0xf]  ;;  %1788 = vst [vmem:[#allocation2 + $0xbc] sm:$0x1] %v1787_v46  ;;  %v5643_v34 = vsel %vm10495_vm9, %v5641_v1, %v5642_v45  ;;  %v3567_v58 = vsel %vm10495_vm9, %v3565_v38, %v3566_v37  ;;  %v6696_v56 = vshrl.u32 %v6398_v44, 16  ;;  %v6702_v12 = vshll.u32 %v6399_v10, 16 }
 0x1f3   :  { %v1294_v22 = vsel %vm10593_vm15, %v13594_v59, %v1293_v57  ;;  %v6402_v28 = vld [vmem:[#allocation2 + $0x98] sm:$0x1]  ;;  %v9601_v51 = vcombine.low %v5640_v61, %v5643_v34  ;;  %v9474_v21 = vcombine.low %v11442_v25, %v3567_v58  ;;  %v6688_v41 = vrot.slane %v6686_v42, 5  ;;  %v5255_v32 = vpop.permute.xlu0 %5254  ;;  %v4316_v47 = vld [vmem:[#allocation2 + $0x84] sm:$0xf]  ;;  %v8035_v29 = vld [vmem:[#allocation3] sm:$0xff] }
 0x1f4   :  { %1785 = vst.msk [vmem:[#allocation2 + $0xb8] sm:$0xf] %vm611_vm1, %v1294_v22  ;;  %v6694_v54 = vrot.slane %v6692_v0, 5  ;;  %v6698_v31 = vrot.slane %v6696_v56, 4  ;;  %v6707_v43 = vshrl.u32 %v6400_v19, 16  ;;  %v6710_v52 = vshll.u32 %v6400_v19, 16  ;;  %8307 = vmatmul.mubr.bf16.vlgmr.msra.gmra.mrb[64].mxu0 %v8035_v29 }
 0x1f5   :  { %5347 = vst.msk [vmem:[#allocation3 + $0x40] sm:$0xff] %vm5342_vm8, %v5255_v32  ;;  %6265 = vrot.lane.b32.xlu0 %v10158_v18, %s10355_s1  ;;  %5907 = vrot.lane.b32.xlu1 %v9601_v51, %s10359_s24  ;;  %v6689_v44 = vor.u32 %v6688_v41, %v6685_v39  ;;  %v6716_v45 = vshll.u32 %v6401_v4, 16  ;;  %v6720_v63 = vshrl.u32 %v6401_v4, 16  ;;  %v6726_v37 = vshll.u32 %v6402_v28, 16  ;;  %v8037_v57 = vld [vmem:[#allocation3 + $0x10] sm:$0xff]  ;;  %v11470_v0 = vpop.f32.mrb[40].mxu0 }
 0x1f6   :  { %5988 = vst.msk [vmem:[#allocation3 + $0x40] sm:$0xff] %vm5983_vm10, %v11381_v2  ;;  %v6699_v7 = vor.u32 %v6698_v31, %v6694_v54  ;;  %v6704_v3 = vrot.slane %v6702_v12, 5  ;;  %v6709_v61 = vrot.slane %v6707_v43, 4  ;;  %v6712_v10 = vrot.slane %v6710_v52, 5  ;;  %v4317_v19 = vld [vmem:[#allocation2 + $0x88] sm:$0xf]  ;;  %8315 = vmatmul.mubr.bf16.vlgmr.msra.gmra.mrb[0].mxu1 %v8037_v57 }
 0x1f7   :  { %6342 = vst.msk [vmem:[#allocation3 + $0x40] sm:$0xff] %vm6337_vm11, %v11194_v53  ;;  %v6690_v49 = vrot.slane %v6689_v44, 4  ;;  %v6718_v1 = vrot.slane %v6716_v45, 5  ;;  %v6722_v25 = vrot.slane %v6720_v63, 4  ;;  %v6728_v38 = vrot.slane %v6726_v37, 5  ;;  %v11484_v63 = vpop.f32.mrb[41].mxu0 }
 0x1f8   :  { %v4318_v39 = vld [vmem:[#allocation2 + $0x8c] sm:$0x1]  ;;  %v4319_v4 = vld [vmem:[#allocation2 + $0x90] sm:$0xf]  ;;  %7431 = vst.msk [vmem:[#allocation3 + $0x40] sm:$0xff] %vm7426_vm13, %v7339_v26  ;;  %v6700_v2 = vrot.slane %v6699_v7, 4  ;;  %v6713_v59 = vor.u32 %v6712_v10, %v6709_v61  ;;  %v5257_v31 = vpop.permute.xlu1 %5256 }
 0x1f9   :  { %v4623_v22 = vshrl.u32 %v4316_v47, 16  ;;  %v4626_v46 = vshll.u32 %v4316_v47, 16  ;;  %v4320_v42 = vld [vmem:[#allocation2 + $0x94] sm:$0xf]  ;;  %4183 = vrot.lane.b32.xlu0 %v10160_v8, %s10358_s23  ;;  %3826 = vrot.lane.b32.xlu1 %v9474_v21, %s10354_s0  ;;  %v6695_v53 = vsel %vm10511_vm12, %v6690_v49, %v6694_v54  ;;  %v6723_v58 = vor.u32 %v6722_v25, %v6718_v1  ;;  %v4321_v57 = vld [vmem:[#allocation2 + $0x98] sm:$0x1] }
 0x1fa   :  { %v4632_v56 = vshll.u32 %v4317_v19, 16  ;;  %v4636_v28 = vshrl.u32 %v4317_v19, 16  ;;  %v6705_v51 = vsel %vm10511_vm12, %v6700_v2, %v6704_v3  ;;  %v6714_v41 = vrot.slane %v6713_v59, 4  ;;  %v2230_v3 = vld [vmem:[#allocation2 + $0x84] sm:$0xf]  ;;  %v11493_v25 = vpop.f32.mrb[42].mxu0 }
 0x1fb   :  { %v11472_v34 = vld [vmem:[#allocation2 + $0xb8] sm:$0xf]  ;;  %v4625_v32 = vrot.slane %v4623_v22, 4  ;;  %v9664_v12 = vcombine.low %v6695_v53, %v6705_v51  ;;  %v6724_v43 = vrot.slane %v6723_v58, 4  ;;  %v4628_v52 = vrot.slane %v4626_v46, 5  ;;  %v3171_v26 = vpop.permute.xlu0 %3170 }
 0x1fc   :  { %v4634_v47 = vrot.slane %v4632_v56, 5  ;;  %v6719_v21 = vsel %vm10511_vm12, %v6714_v41, %v6718_v1  ;;  %v4638_v54 = vrot.slane %v4636_v28, 4  ;;  %v4642_v44 = vshll.u32 %v4318_v39, 16  ;;  %3262 = vst.msk [vmem:[#allocation3 + $0x50] sm:$0xff] %vm3256_vm3, %v3171_v26  ;;  %v2231_v1 = vld [vmem:[#allocation2 + $0x88] sm:$0xf]  ;;  %v6252_v53 = vpop.permute.xlu1 %6251 }
 0x1fd   :  { %v4647_v45 = vshrl.u32 %v4319_v4, 16  ;;  %7348 = vrot.lane.b32.xlu0 %v9664_v12, %s10356_s19  ;;  %v6729_v37 = vsel %vm10511_vm12, %v6724_v43, %v6728_v38  ;;  %v4629_v29 = vor.u32 %v4628_v52, %v4625_v32  ;;  %v4650_v8 = vshll.u32 %v4319_v4, 16  ;;  %3906 = vst.msk [vmem:[#allocation3 + $0x50] sm:$0xff] %vm3900_vm5, %v11435_v13  ;;  %v2232_v28 = vld [vmem:[#allocation2 + $0x8c] sm:$0x1]  ;;  %v11504_v43 = vpop.f32.mrb[43].mxu0 }
 0x1fe   :  { %v4656_v7 = vshll.u32 %v4320_v42, 16  ;;  %v9665_v61 = vcombine.low %v6719_v21, %v6729_v37  ;;  %v4639_v10 = vor.u32 %v4638_v54, %v4634_v47  ;;  %v4644_v19 = vrot.slane %v4642_v44, 5  ;;  %4259 = vst.msk [vmem:[#allocation3 + $0x50] sm:$0xff] %vm4253_vm7, %v11218_v24  ;;  %v689_v12 = vld [vmem:[#allocation2 + $0xf0] sm:$0x1] }
 0x1ff   :  { %v4649_v49 = vrot.slane %v4647_v45, 4  ;;  %v4630_v39 = vrot.slane %v4629_v29, 4  ;;  %v4652_v38 = vrot.slane %v4650_v8, 5  ;;  %v4660_v59 = vshrl.u32 %v4320_v42, 16  ;;  %5348 = vst.msk [vmem:[#allocation3 + $0x50] sm:$0xff] %vm5342_vm8, %v5257_v31 }
 0x200   :  { %v4658_v2 = vrot.slane %v4656_v7, 5  ;;  %7350 = vrot.lane.b32.xlu1 %v9665_v61, %s10356_s19  ;;  %v4640_v4 = vrot.slane %v4639_v10, 4  ;;  %v4666_v13 = vshll.u32 %v4321_v57, 16  ;;  %v2561_v22 = vshrl.u32 %v2230_v3, 16  ;;  %5989 = vst.msk [vmem:[#allocation3 + $0x50] sm:$0xff] %vm5983_vm10, %v11304_v14  ;;  %v11513_v57 = vpop.permute.xlu0 %5901 }
 0x201   :  { %v2564_v46 = vshll.u32 %v2230_v3, 16  ;;  %v4635_v24 = vsel %vm10511_vm12, %v4630_v39, %v4634_v47  ;;  %v4653_v58 = vor.u32 %v4652_v38, %v4649_v49  ;;  %v4662_v56 = vrot.slane %v4660_v59, 4  ;;  %6343 = vst.msk [vmem:[#allocation3 + $0x50] sm:$0xff] %vm6337_vm11, %v6252_v53  ;;  %v11509_v45 = vld [vmem:[%s13524_s2] ss:$0 sm:$0xff] }
 0x202   :  { %v2570_v51 = vshll.u32 %v2231_v1, 16  ;;  %v4645_v42 = vsel %vm10511_vm12, %v4640_v4, %v4644_v19  ;;  %v4668_v41 = vrot.slane %v4666_v13, 5  ;;  %v2563_v32 = vrot.slane %v2561_v22, 4  ;;  %v686_v29 = vld [vmem:[#allocation2 + $0xe4] sm:$0x1] }
 0x203   :  { %v2566_v31 = vrot.slane %v2564_v46, 5  ;;  %v9537_v14 = vcombine.low %v4635_v24, %v4645_v42  ;;  %v4654_v52 = vrot.slane %v4653_v58, 4  ;;  %v4663_v26 = vor.u32 %v4662_v56, %v4658_v2  ;;  %v796_v4 = vld [vmem:[#allocation2 + $0xec] sm:$0x1] }
 0x204   :  { %v2572_v21 = vrot.slane %v2570_v51, 5  ;;  %v2574_v54 = vshrl.u32 %v2231_v1, 16  ;;  %v2580_v44 = vshll.u32 %v2232_v28, 16  ;;  %v429_v37 = vadd.f32 %v11509_v45, %v11065_v50  ;;  %v799_v50 = vld [vmem:[#allocation2 + $0xf8] sm:$0x1] }
 0x205   :  { %v2567_v47 = vor.u32 %v2566_v31, %v2563_v32  ;;  %5266 = vrot.lane.b32.xlu0 %v9537_v14, %s10360_s25  ;;  %v4659_v8 = vsel %vm10511_vm12, %v4654_v52, %v4658_v2  ;;  %v4664_v7 = vrot.slane %v4663_v26, 4  ;;  %v690_v3 = vsel %vm10467_vm4, 0, %v689_v12  ;;  %v5415_v51 = vld [vmem:[#allocation2 + $0xac] sm:$0xf] }
 0x206   :  { %v421_v61 = vadd.f32 %v11509_v45, %v11075_v33  ;;  %v2576_v19 = vrot.slane %v2574_v54, 4  ;;  %v2582_v49 = vrot.slane %v2580_v44, 5  ;;  %v581_v1 = vmax.f32 %v429_v37, 0.0  ;;  %691 = vst [vmem:[#allocation2 + $0xf0] sm:$0x1] %v690_v3  ;;  %v10164_v44 = vld [vmem:[#allocation2 + $0x9c] sm:$0xff]  }
 0x207   :  { %v2568_v10 = vrot.slane %v2567_v47, 4  ;;  %v4669_v39 = vsel %vm10511_vm12, %v4664_v7, %v4668_v41  ;;  %v687_v2 = vsel %vm10467_vm4, 0, %v686_v29  ;;  %v432_v59 = vadd.f32 %v11509_v45, %v11091_v30  ;;  %v3173_v13 = vpop.permute.xlu1 %3172  ;;  %v5414_v30 = vld [vmem:[#allocation2 + $0xa8] sm:$0xe]  ;;  %v10182_v47 = vld [vmem:[#allocation2 + $0x6c] sm:$0xff]  }
 0x208   :  { %v579_v38 = vmax.f32 %v421_v61, 0.0  ;;  %v9538_v22 = vcombine.low %v4659_v8, %v4669_v39  ;;  %v2577_v46 = vor.u32 %v2576_v19, %v2572_v21  ;;  %v9861_v53 = vpack.c.bf16 %v581_v1, %v581_v1  ;;  %688 = vst [vmem:[#allocation2 + $0xe4] sm:$0x1] %v687_v2  ;;  %3263 = vst.msk [vmem:[#allocation3 + $0x60] sm:$0xff] %vm3256_vm3, %v3173_v13  ;;  %v5416_v37 = vld [vmem:[#allocation2 + $0xb0] sm:$0x1] }
 0x209   :  { %v2573_v33 = vsel %vm10511_vm12, %v2568_v10, %v2572_v21  ;;  %v582_v58 = vmax.f32 %v432_v59, 0.0  ;;  %v800_v56 = vsel %vm10472_vm6, 0, %v799_v50  ;;  %v424_v28 = vadd.f32 %v11509_v45, %v11119_v60  ;;  %3907 = vst.msk [vmem:[#allocation3 + $0x60] sm:$0xff] %vm3900_vm5, %v11339_v40  ;;  %v7465_v7 = vld [vmem:[#allocation2 + $0x30] sm:$0xe] }
 0x20a   :  { %v9859_v24 = vpack.c.bf16 %v579_v38, %v579_v38  ;;  %5268 = vrot.lane.b32.xlu1 %v9538_v22, %s10360_s25  ;;  %v2578_v42 = vrot.slane %v2577_v46, 4  ;;  %v1331_v41 = vshrl.u32 %v9861_v53, 16  ;;  %v1334_v32 = vshll.u32 %v9861_v53, 16  ;;  %801 = vst [vmem:[#allocation2 + $0xf8] sm:$0x1] %v800_v56  ;;  %2174 = vst.msk [vmem:[#allocation3 + $0x90] sm:$0xff] %vm2164_vm2, %v10182_v47 }
 0x20b   :  { %v797_v31 = vsel %vm10472_vm6, 0, %v796_v4  ;;  %v11540_v12 = vpop.permute.xlu0 %3820  ;;  %v9862_v26 = vpack.c.bf16 %v582_v58, %v582_v58  ;;  %v580_v60 = vmax.f32 %v424_v28, 0.0  ;;  %v4170_v21 = vpop.permute.xlu1 %4169  ;;  %v9572_v29 = vrot.slane %v5414_v30, 9  ;;  %v7467_v2 = vld [vmem:[#allocation2 + $0x38] sm:$0x1]  ;;  %v13595_v47 = vld [vmem:[#allocation10_spill] sm:$0xff] }
 0x20c   :  { %v1314_v14 = vshrl.u32 %v9859_v24, 16  ;;  %v1317_v52 = vshll.u32 %v9859_v24, 16  ;;  %798 = vst [vmem:[#allocation2 + $0xec] sm:$0x1] %v797_v31  ;;  %v2583_v40 = vsel %vm10511_vm12, %v2578_v42, %v2582_v49  ;;  %v1333_v54 = vrot.slane %v1331_v41, 7  ;;  %4260 = vst.msk [vmem:[#allocation3 + $0x60] sm:$0xff] %vm4253_vm7, %v4170_v21 }
 0x20d   :  { %v5660_v8 = vrot.slane %v5415_v51, 5  ;;  %v9410_v3 = vcombine.low %v2573_v33, %v2583_v40  ;;  %v1803_v61 = vld [vmem:[#allocation2 + $0xf0] sm:$0xf]  ;;  %v1339_v19 = vshrl.u32 %v9862_v26, 16  ;;  %v1342_v1 = vshll.u32 %v9862_v26, 16  ;;  %v10184_v51 = vld [vmem:[#allocation2 + $0x78] sm:$0xff]  }
 0x20e   :  { %v11545_v10 = vrot.slane %v1314_v14, 7  ;;  %v1336_v50 = vor.u32 %v1334_v32, %v1333_v54  ;;  %v1337_v39 = vrot.slane %v1333_v54, 4  ;;  %6263 = vrot.lane.b32.xlu1 %v10164_v44, %s10355_s1  ;;  %v9860_v49 = vpack.c.bf16 %v580_v60, %v580_v60  ;;  %v2233_v53 = vld [vmem:[#allocation2 + $0x90] sm:$0xf]  ;;  %v2234_v30 = vld [vmem:[#allocation2 + $0x94] sm:$0xf] }
 0x20f   :  { %v5661_v38 = vsel %vm10495_vm9, %v9572_v29, %v5660_v8  ;;  %v11551_v59 = vpop.permute.xlu0 %6257  ;;  %3182 = vrot.lane.b32.xlu0 %v9410_v3, %s10357_s20  ;;  %v1796_v22 = vld [vmem:[#allocation2 + $0xe4] sm:$0xf]  ;;  %v1341_v33 = vrot.slane %v1339_v19, 7  ;;  %v5662_v46 = vrot.slane %v5660_v8, 4  ;;  %v5663_v28 = vrot.slane %v5416_v37, 5  ;;  %2175 = vst.msk [vmem:[#allocation3 + $0xa0] sm:$0xff] %vm2164_vm2, %v10184_v51 }
 0x210   :  { %v1319_v4 = vor.u32 %v1317_v52, %v11545_v10  ;;  %v1320_v13 = vrot.slane %v11545_v10, 4  ;;  %v1804_v24 = vsel %vm10586_vm14, %v1336_v50, %v1803_v61  ;;  %v1322_v58 = vshrl.u32 %v9860_v49, 16  ;;  %v2235_v52 = vld [vmem:[#allocation2 + $0x98] sm:$0x1]  ;;  %v3331_v37 = vld [vmem:[#allocation2 + $0xa8] sm:$0xe] }
 0x211   :  { %v1325_v56 = vshll.u32 %v9860_v49, 16  ;;  %1805 = vst [vmem:[#allocation2 + $0xf0] sm:$0xf] %v1804_v24  ;;  %v1344_v41 = vor.u32 %v1342_v1, %v1341_v33  ;;  %v1346_v32 = vrot.slane %v1341_v33, 4  ;;  %v1807_v31 = vld [vmem:[#allocation2 + $0xf8] sm:$0x1]  ;;  %v5664_v21 = vsel %vm10495_vm9, %v5662_v46, %v5663_v28  ;;  %v11575_v49 = vpop.permute.xlu1 %5899 }
 0x212   :  { %v1797_v42 = vsel %vm10586_vm14, %v1319_v4, %v1796_v22  ;;  %v9689_v14 = vrot.slane %v7465_v7, 9  ;;  %v1324_v26 = vrot.slane %v1322_v58, 7  ;;  %v13596_v40 = vrot.slane %v13595_v47, 5  ;;  %v3332_v19 = vld [vmem:[#allocation2 + $0xac] sm:$0xf] }
 0x213   :  { %1798 = vst [vmem:[#allocation2 + $0xe4] sm:$0xf] %v1797_v42  ;;  %v1800_v60 = vld [vmem:[#allocation2 + $0xec] sm:$0x1]  ;;  %v7670_v44 = vrot.slane %v7467_v2, 5  ;;  %v11564_v29 = vpop.permute.xlu0 %4175  ;;  %v1345_v8 = vsel %vm10593_vm15, %v1337_v39, %v1344_v41  ;;  %v1808_v7 = vsel %vm10467_vm4, %v1346_v32, %v1807_v31  ;;  %v9604_v3 = vcombine.low %v5661_v38, %v5664_v21 }
 0x214   :  { %v7669_v54 = vrot.slane %v13596_v40, 4  ;;  %v13597_v61 = vmov %v13596_v40  ;;  %v3333_v1 = vld [vmem:[#allocation2 + $0xb0] sm:$0x1]  ;;  %v7468_v50 = vld [vmem:[#allocation2 + $0x3c] sm:$0xe]  ;;  %v1327_v2 = vor.u32 %v1325_v56, %v1324_v26  ;;  %v1329_v4 = vrot.slane %v1324_v26, 4 }
 0x215   :  { %v7668_v10 = vsel %vm10495_vm9, %v9689_v14, %v13597_v61  ;;  %1806 = vst.msk [vmem:[#allocation2 + $0xf4] sm:$0xf] %vm611_vm1, %v1345_v8  ;;  %1809 = vst [vmem:[#allocation2 + $0xf8] sm:$0x1] %v1808_v7  ;;  %v2585_v22 = vshrl.u32 %v2233_v53, 16  ;;  %5913 = vrot.lane.b32.xlu0 %v9604_v3, %s10359_s24  ;;  %v2588_v46 = vshll.u32 %v2233_v53, 16 }
 0x216   :  { %v7671_v39 = vsel %vm10495_vm9, %v7669_v54, %v7670_v44  ;;  %v7470_v38 = vld [vmem:[#allocation2 + $0x44] sm:$0x1]  ;;  %v2594_v24 = vshll.u32 %v2234_v30, 16  ;;  %v2598_v58 = vshrl.u32 %v2234_v30, 16  ;;  %v5411_v28 = vld [vmem:[#allocation2 + $0x9c] sm:$0xe]  ;;  %v1328_v51 = vsel %vm10593_vm15, %v1320_v13, %v1327_v2  ;;  %v11590_v2 = vpop.permute.xlu1 %3818 }
 0x217   :  { %v9721_v33 = vcombine.low %v7668_v10, %v7671_v39  ;;  %v1801_v42 = vsel %vm10467_vm4, %v1329_v4, %v1800_v60  ;;  %v2587_v56 = vrot.slane %v2585_v22, 4  ;;  %v2604_v41 = vshll.u32 %v2235_v52, 16  ;;  %v5412_v32 = vld [vmem:[#allocation2 + $0xa0] sm:$0xf]  ;;  %v7341_v31 = vpop.permute.xlu0 %7340  ;;  %1799 = vst.msk [vmem:[#allocation2 + $0xe8] sm:$0xf] %vm611_vm1, %v1328_v51 }
 0x218   :  { %1802 = vst [vmem:[#allocation2 + $0xec] sm:$0x1] %v1801_v42  ;;  %v2590_v14 = vrot.slane %v2588_v46, 5  ;;  %v2596_v53 = vrot.slane %v2594_v24, 5  ;;  %v2600_v26 = vrot.slane %v2598_v58, 4  ;;  %v9445_v30 = vrot.slane %v3331_v37, 9 }
 0x219   :  { %8005 = vst.msk [vmem:[#allocation3 + $0x28] sm:$0xff] %vm2164_vm2, %v9721_v33  ;;  %v5413_v21 = vld [vmem:[#allocation2 + $0xa4] sm:$0x1]  ;;  %v2606_v13 = vrot.slane %v2604_v41, 5  ;;  %v3584_v47 = vrot.slane %v3332_v19, 5  ;;  %v3587_v40 = vrot.slane %v3333_v1, 5 }
 0x21a   :  { %7432 = vst.msk [vmem:[#allocation3 + $0x50] sm:$0xff] %vm7426_vm13, %v7341_v31  ;;  %v9690_v60 = vrot.slane %v7468_v50, 9  ;;  %v2591_v54 = vor.u32 %v2590_v14, %v2587_v56  ;;  %v2601_v52 = vor.u32 %v2600_v26, %v2596_v53  ;;  %v13598_v44 = vld [vmem:[#allocation12_spill] sm:$0xff]  ;;  %v7677_v3 = vrot.slane %v7470_v38, 5  ;;  %v3328_v61 = vld [vmem:[#allocation2 + $0x9c] sm:$0xe] }
 0x21b   :  { %v13599_v8 = vrot.slane %v13598_v44, 5  ;;  %v3329_v10 = vld [vmem:[#allocation2 + $0xa0] sm:$0xf]  ;;  %v3585_v37 = vsel %vm10495_vm9, %v9445_v30, %v3584_v47  ;;  %v3586_v4 = vrot.slane %v3584_v47, 4  ;;  %v9571_v1 = vrot.slane %v5411_v28, 9  ;;  %v8039_v30 = vld [vmem:[#allocation3 + $0x20] sm:$0xff] }
 0x21c   :  { %v3330_v50 = vld [vmem:[#allocation2 + $0xa4] sm:$0x1]  ;;  %v6403_v22 = vld [vmem:[#allocation2 + $0x9c] sm:$0xf]  ;;  %v6404_v33 = vld [vmem:[#allocation2 + $0xa0] sm:$0xf] }
 0x21d   :  { %v7676_v7 = vrot.slane %v13599_v8, 4  ;;  %v13600_v39 = vmov %v13599_v8  ;;  %v11598_v46 = vld [vmem:[#allocation2 + $0xf4] sm:$0xf]  ;;  %v2592_v38 = vrot.slane %v2591_v54, 4  ;;  %v2602_v24 = vrot.slane %v2601_v52, 4 }
 0x21e   :  { %v7675_v19 = vsel %vm10495_vm9, %v9690_v60, %v13600_v39  ;;  %v5653_v51 = vrot.slane %v5412_v32, 5  ;;  %v3588_v56 = vsel %vm10495_vm9, %v3586_v4, %v3587_v40  ;;  %v5656_v31 = vrot.slane %v5413_v21, 5  ;;  %v6405_v32 = vld [vmem:[#allocation2 + $0xa4] sm:$0x1] }
 0x21f   :  { %v7678_v58 = vsel %vm10495_vm9, %v7676_v7, %v7677_v3  ;;  %v2597_v28 = vsel %vm10511_vm12, %v2592_v38, %v2596_v53  ;;  %v2607_v14 = vsel %vm10511_vm12, %v2602_v24, %v2606_v13  ;;  %v9477_v26 = vcombine.low %v3585_v37, %v3588_v56  ;;  %v5259_v44 = vpop.permute.xlu0 %5258  ;;  %v6406_v3 = vld [vmem:[#allocation2 + $0xa8] sm:$0xf]  ;;  %v7343_v37 = vpop.permute.xlu1 %7342 }
 0x220   :  { %v9722_v41 = vcombine.low %v7675_v19, %v7678_v58  ;;  %v11611_v47 = vsel %vm10495_vm9, %v9571_v1, %v5653_v51  ;;  %v8040_v60 = vld [vmem:[#allocation3 + $0x28] sm:$0xff]  ;;  %v9411_v54 = vcombine.low %v2597_v28, %v2607_v14  ;;  %v5655_v40 = vrot.slane %v5653_v51, 4  ;;  %5349 = vst.msk [vmem:[#allocation3 + $0x60] sm:$0xff] %vm5342_vm8, %v5259_v44  ;;  %v6407_v19 = vld [vmem:[#allocation2 + $0xac] sm:$0xf]  ;;  %v11629_v51 = vpop.f32.mrb[44].mxu0 }
 0x221   :  { %v9444_v52 = vrot.slane %v3328_v61, 9  ;;  %v3577_v21 = vrot.slane %v3329_v10, 5  ;;  %9763 = vmatprep.mubr.msk.bf16.mxu1 %vm2164_vm2, %v8040_v60  ;;  %3832 = vrot.lane.b32.xlu0 %v9477_v26, %s10354_s0  ;;  %v3580_v53 = vrot.slane %v3330_v50, 5  ;;  %v6731_v13 = vshrl.u32 %v6403_v22, 16  ;;  %5990 = vst.msk [vmem:[#allocation3 + $0x60] sm:$0xff] %vm5983_vm10, %v11575_v49  ;;  %v10166_v1 = vld [vmem:[#allocation2 + $0x9c] sm:$0xff]  }
 0x222   :  { %8006 = vst.msk [vmem:[#allocation3 + $0x38] sm:$0xff] %vm2164_vm2, %v9722_v41  ;;  %v6734_v8 = vshll.u32 %v6403_v22, 16  ;;  %v6740_v7 = vshll.u32 %v6404_v33, 16  ;;  %3184 = vrot.lane.b32.xlu1 %v9411_v54, %s10357_s20  ;;  %8323 = vmatmul.mubr.bf16.gmra.mrb[4].mxu1 %v8039_v30  ;;  %v5657_v61 = vsel %vm10495_vm9, %v5655_v40, %v5656_v31  ;;  %v6744_v39 = vshrl.u32 %v6404_v33, 16  ;;  %v10167_v50 = vld [vmem:[#allocation2 + $0xc0] sm:$0xff]   ;;  %v11636_v28 = vpop.f32.mrb[45].mxu0 }
 0x223   :  { %v11622_v10 = vsel %vm10495_vm9, %v9444_v52, %v3577_v21  ;;  %v3579_v4 = vrot.slane %v3577_v21, 4  ;;  %v9603_v22 = vcombine.low %v11611_v47, %v5657_v61  ;;  %v6733_v38 = vrot.slane %v6731_v13, 4  ;;  %6344 = vst.msk [vmem:[#allocation3 + $0x60] sm:$0xff] %vm6337_vm11, %v11351_v16  ;;  %v6408_v31 = vld [vmem:[#allocation2 + $0xb0] sm:$0x1]  ;;  %v10168_v54 = vld [vmem:[#allocation2 + $0xc0] sm:$0xff]  }
 0x224   :  { %v6736_v24 = vrot.slane %v6734_v8, 5  ;;  %v6742_v58 = vrot.slane %v6740_v7, 5  ;;  %v6746_v33 = vrot.slane %v6744_v39, 4  ;;  %v6750_v41 = vshll.u32 %v6405_v32, 16  ;;  %7433 = vst.msk [vmem:[#allocation3 + $0x60] sm:$0xff] %vm7426_vm13, %v7343_v37  ;;  %v11642_v44 = vpop.f32.mrb[46].mxu0 }
 0x225   :  { %v11633_v56 = vsel %vm10495_vm9, %v3579_v4, %v3580_v53  ;;  %v6755_v49 = vshrl.u32 %v6406_v3, 16  ;;  %6269 = vrot.lane.b32.xlu0 %v10167_v50, %s10355_s1  ;;  %v6758_v26 = vshll.u32 %v6406_v3, 16  ;;  %v6764_v30 = vshll.u32 %v6407_v19, 16  ;;  %v4322_v47 = vld [vmem:[#allocation2 + $0x9c] sm:$0xf]  ;;  %v8041_v61 = vld [vmem:[#allocation3 + $0x30] sm:$0xff] }
 0x226   :  { %v9476_v14 = vcombine.low %v11622_v10, %v11633_v56  ;;  %v6737_v16 = vor.u32 %v6736_v24, %v6733_v38  ;;  %v4323_v60 = vld [vmem:[#allocation2 + $0xa0] sm:$0xf]  ;;  %4181 = vrot.lane.b32.xlu1 %v10166_v1, %s10358_s23  ;;  %v6747_v32 = vor.u32 %v6746_v33, %v6742_v58  ;;  %v6752_v40 = vrot.slane %v6750_v41, 5  ;;  %v5261_v10 = vpop.permute.xlu1 %5260  ;;  %v4324_v24 = vld [vmem:[#allocation2 + $0xa4] sm:$0x1] }
 0x227   :  { %v6757_v52 = vrot.slane %v6755_v49, 4  ;;  %v6768_v21 = vshrl.u32 %v6407_v19, 16  ;;  %v6760_v8 = vrot.slane %v6758_v26, 5  ;;  %v6766_v7 = vrot.slane %v6764_v30, 5  ;;  %v4325_v33 = vld [vmem:[#allocation2 + $0xa8] sm:$0xf]  ;;  %v3175_v41 = vpop.permute.xlu0 %3174 }
 0x228   :  { %v6738_v13 = vrot.slane %v6737_v16, 4  ;;  %v6774_v37 = vshll.u32 %v6408_v31, 16  ;;  %v6748_v3 = vrot.slane %v6747_v32, 4  ;;  %v4671_v39 = vshrl.u32 %v4322_v47, 16  ;;  %v4326_v30 = vld [vmem:[#allocation2 + $0xac] sm:$0xf] }
 0x229   :  { %v8042_v53 = vld [vmem:[#allocation3 + $0x38] sm:$0xff]  ;;  %v6770_v4 = vrot.slane %v6768_v21, 4  ;;  %v4674_v1 = vshll.u32 %v4322_v47, 16  ;;  %4187 = vrot.lane.b32.xlu0 %v10168_v54, %s10358_s23  ;;  %v6761_v50 = vor.u32 %v6760_v8, %v6757_v52  ;;  %v4680_v56 = vshll.u32 %v4323_v60, 16  ;;  %3264 = vst.msk [vmem:[#allocation3 + $0x70] sm:$0xff] %vm3256_vm3, %v3175_v41 }
 0x22a   :  { %9764 = vmatprep.mubr.msk.bf16.mxu1 %vm2164_vm2, %v8042_v53  ;;  %v6743_v19 = vsel %vm10511_vm12, %v6738_v13, %v6742_v58  ;;  %v6776_v38 = vrot.slane %v6774_v37, 5  ;;  %5911 = vrot.lane.b32.xlu1 %v9603_v22, %s10359_s24  ;;  %v6753_v31 = vsel %vm10511_vm12, %v6748_v3, %v6752_v40  ;;  %v4673_v16 = vrot.slane %v4671_v39, 4  ;;  %3908 = vst.msk [vmem:[#allocation3 + $0x70] sm:$0xff] %vm3900_vm5, %v11590_v2  ;;  %v4327_v53 = vld [vmem:[#allocation2 + $0xb0] sm:$0x1]  ;;  %v11656_v40 = vpop.f32.mrb[47].mxu0  ;;  %v6256_v2 = vpop.permute.xlu1 %6255 }
 0x22b   :  { %v6771_v49 = vor.u32 %v6770_v4, %v6766_v7  ;;  %v4676_v26 = vrot.slane %v4674_v1, 5  ;;  %8331 = vmatmul.mubr.bf16.gmra.mrb[8].mxu1 %v8041_v61  ;;  %v9666_v47 = vcombine.low %v6743_v19, %v6753_v31  ;;  %v6762_v58 = vrot.slane %v6761_v50, 4  ;;  %4261 = vst.msk [vmem:[#allocation3 + $0x70] sm:$0xff] %vm4253_vm7, %v11364_v11  ;;  %v2236_v3 = vld [vmem:[#allocation2 + $0x9c] sm:$0xf] }
 0x22c   :  { %v4682_v54 = vrot.slane %v4680_v56, 5  ;;  %v4684_v32 = vshrl.u32 %v4323_v60, 16  ;;  %v4690_v22 = vshll.u32 %v4324_v24, 16  ;;  %v4695_v13 = vshrl.u32 %v4325_v33, 16  ;;  %5350 = vst.msk [vmem:[#allocation3 + $0x70] sm:$0xff] %vm5342_vm8, %v5261_v10 }
 0x22d   :  { %v6772_v52 = vrot.slane %v6771_v49, 4  ;;  %v4677_v21 = vor.u32 %v4676_v26, %v4673_v16  ;;  %7352 = vrot.lane.b32.xlu0 %v9666_v47, %s10356_s19  ;;  %v6767_v8 = vsel %vm10511_vm12, %v6762_v58, %v6766_v7  ;;  %v4698_v60 = vshll.u32 %v4325_v33, 16  ;;  %v2237_v19 = vld [vmem:[#allocation2 + $0xa0] sm:$0xf]  ;;  %5991 = vst.msk [vmem:[#allocation3 + $0x70] sm:$0xff] %vm5983_vm10, %v11513_v57  ;;  %v10188_v7 = vld [vmem:[#allocation2 + $0x84] sm:$0xff]  }
 0x22e   :  { %v4686_v37 = vrot.slane %v4684_v32, 4  ;;  %v4704_v61 = vshll.u32 %v4326_v30, 16  ;;  %3830 = vrot.lane.b32.xlu1 %v9476_v14, %s10354_s0  ;;  %v4692_v39 = vrot.slane %v4690_v22, 5  ;;  %v4697_v1 = vrot.slane %v4695_v13, 4  ;;  %6345 = vst.msk [vmem:[#allocation3 + $0x70] sm:$0xff] %vm6337_vm11, %v6256_v2 }
 0x22f   :  { %v6777_v4 = vsel %vm10511_vm12, %v6772_v52, %v6776_v38  ;;  %v4678_v11 = vrot.slane %v4677_v21, 4  ;;  %v4700_v56 = vrot.slane %v4698_v60, 5  ;;  %v4708_v10 = vshrl.u32 %v4326_v30, 16  ;;  %v2238_v38 = vld [vmem:[#allocation2 + $0xa4] sm:$0x1]  ;;  %2176 = vst.msk [vmem:[#allocation3 + $0xb0] sm:$0xff] %vm2164_vm2, %v10188_v7 }
 0x230   :  { %v9667_v50 = vcombine.low %v6767_v8, %v6777_v4  ;;  %v4687_v24 = vor.u32 %v4686_v37, %v4682_v54  ;;  %v4706_v33 = vrot.slane %v4704_v61, 5  ;;  %v4714_v41 = vshll.u32 %v4327_v53, 16  ;;  %v5420_v47 = vld [vmem:[#allocation2 + $0xc0] sm:$0xe]  ;;  %v5421_v22 = vld [vmem:[#allocation2 + $0xc4] sm:$0xf]  ;;  %v11674_v37 = vpop.permute.xlu0 %5905 }
 0x231   :  { %v4683_v14 = vsel %vm10511_vm12, %v4678_v11, %v4682_v54  ;;  %v2609_v31 = vshrl.u32 %v2236_v3, 16  ;;  %v4701_v16 = vor.u32 %v4700_v56, %v4697_v1  ;;  %v2612_v26 = vshll.u32 %v2236_v3, 16  ;;  %v5422_v8 = vld [vmem:[#allocation2 + $0xc8] sm:$0x1]  ;;  %v7471_v11 = vld [vmem:[#allocation2 + $0x48] sm:$0xe] }
 0x232   :  { %v4688_v49 = vrot.slane %v4687_v24, 4  ;;  %v2618_v57 = vshll.u32 %v2237_v19, 16  ;;  %7354 = vrot.lane.b32.xlu1 %v9667_v50, %s10356_s19  ;;  %v4710_v58 = vrot.slane %v4708_v10, 4  ;;  %v4716_v32 = vrot.slane %v4714_v41, 5  ;;  %v3177_v60 = vpop.permute.xlu1 %3176  ;;  %v7473_v50 = vld [vmem:[#allocation2 + $0x50] sm:$0x1] }
 0x233   :  { %v2611_v52 = vrot.slane %v2609_v31, 4  ;;  %v2622_v21 = vshrl.u32 %v2237_v19, 16  ;;  %v4702_v54 = vrot.slane %v4701_v16, 4  ;;  %v2614_v53 = vrot.slane %v2612_v26, 5  ;;  %3265 = vst.msk [vmem:[#allocation3 + $0x80] sm:$0xff] %vm3256_vm3, %v3177_v60 }
 0x234   :  { %v4693_v30 = vsel %vm10511_vm12, %v4688_v49, %v4692_v39  ;;  %v2620_v13 = vrot.slane %v2618_v57, 5  ;;  %v4711_v3 = vor.u32 %v4710_v58, %v4706_v33  ;;  %v2628_v4 = vshll.u32 %v2238_v38, 16  ;;  %3909 = vst.msk [vmem:[#allocation3 + $0x80] sm:$0xff] %vm3900_vm5, %v11540_v12  ;;  %v695_v60 = vld [vmem:[#allocation2 + $0x108] sm:$0x1] }
 0x235   :  { %v9539_v61 = vcombine.low %v4683_v14, %v4693_v30  ;;  %v2624_v2 = vrot.slane %v2622_v21, 4  ;;  %v4707_v1 = vsel %vm10511_vm12, %v4702_v54, %v4706_v33  ;;  %v2615_v19 = vor.u32 %v2614_v53, %v2611_v52  ;;  %v2239_v33 = vld [vmem:[#allocation2 + $0xa8] sm:$0xf]  ;;  %v2240_v21 = vld [vmem:[#allocation2 + $0xac] sm:$0xf] }
 0x236   :  { %v9574_v7 = vrot.slane %v5420_v47, 9  ;;  %v5674_v39 = vrot.slane %v5421_v22, 5  ;;  %v4712_v24 = vrot.slane %v4711_v3, 4  ;;  %v2630_v14 = vrot.slane %v2628_v4, 5  ;;  %v4174_v16 = vpop.permute.xlu1 %4173  ;;  %v13601_v47 = vld [vmem:[#allocation11_spill] sm:$0xff] }
 0x237   :  { %5270 = vrot.lane.b32.xlu0 %v9539_v61, %s10360_s25  ;;  %v2625_v56 = vor.u32 %v2624_v2, %v2620_v13  ;;  %v5677_v10 = vrot.slane %v5422_v8, 5  ;;  %v2616_v41 = vrot.slane %v2615_v19, 4  ;;  %v9691_v49 = vrot.slane %v7471_v11, 9  ;;  %4262 = vst.msk [vmem:[#allocation3 + $0x80] sm:$0xff] %vm4253_vm7, %v4174_v16  ;;  %v2241_v8 = vld [vmem:[#allocation2 + $0xb0] sm:$0x1] }
 0x238   :  { %v5675_v38 = vsel %vm10495_vm9, %v9574_v7, %v5674_v39  ;;  %v5676_v31 = vrot.slane %v5674_v39, 4  ;;  %v4717_v26 = vsel %vm10511_vm12, %v4712_v24, %v4716_v32  ;;  %v13602_v12 = vrot.slane %v13601_v47, 5  ;;  %v11697_v61 = vpop.permute.xlu0 %3824  ;;  %v692_v39 = vld [vmem:[#allocation2 + $0xfc] sm:$0x1]  ;;  %v802_v16 = vld [vmem:[#allocation2 + $0x104] sm:$0x1] }
 0x239   :  { %v2626_v57 = vrot.slane %v2625_v56, 4  ;;  %v7684_v52 = vrot.slane %v7473_v50, 5  ;;  %v9540_v22 = vcombine.low %v4707_v1, %v4717_v26  ;;  %v2621_v30 = vsel %vm10511_vm12, %v2616_v41, %v2620_v13  ;;  %v805_v41 = vld [vmem:[#allocation2 + $0x110] sm:$0x1] }
 0x23a   :  { %v7683_v58 = vrot.slane %v13602_v12, 4  ;;  %v5678_v54 = vsel %vm10495_vm9, %v5676_v31, %v5677_v10  ;;  %v13603_v53 = vmov %v13602_v12  ;;  %v2633_v13 = vshrl.u32 %v2239_v33, 16 }
 0x23b   :  { %v7682_v32 = vsel %vm10495_vm9, %v9691_v49, %v13603_v53  ;;  %v2631_v3 = vsel %vm10511_vm12, %v2626_v57, %v2630_v14  ;;  %v9606_v2 = vcombine.low %v5675_v38, %v5678_v54  ;;  %5272 = vrot.lane.b32.xlu1 %v9540_v22, %s10360_s25  ;;  %v2636_v19 = vshll.u32 %v2239_v33, 16  ;;  %v10170_v14 = vld [vmem:[#allocation2 + $0xb4] sm:$0xff]  }
 0x23c   :  { %v7685_v4 = vsel %vm10495_vm9, %v7683_v58, %v7684_v52  ;;  %v9412_v11 = vcombine.low %v2621_v30, %v2631_v3  ;;  %v2642_v7 = vshll.u32 %v2240_v21, 16  ;;  %v2635_v50 = vrot.slane %v2633_v13, 4  ;;  %v11712_v26 = vpop.permute.xlu0 %6261  ;;  %v7474_v58 = vld [vmem:[#allocation2 + $0x54] sm:$0xe] }
 0x23d   :  { %v9723_v1 = vcombine.low %v7682_v32, %v7685_v4  ;;  %v2646_v24 = vshrl.u32 %v2240_v21, 16  ;;  %v2652_v56 = vshll.u32 %v2241_v8, 16  ;;  %v445_v10 = vadd.f32 %v11509_v45, %v11297_v27 }
 0x23e   :  { %3186 = vrot.lane.b32.xlu0 %v9412_v11, %s10357_s20  ;;  %v2638_v38 = vrot.slane %v2636_v19, 5  ;;  %v2644_v31 = vrot.slane %v2642_v7, 5  ;;  %v696_v49 = vsel %vm10467_vm4, 0, %v695_v60  ;;  %v437_v33 = vadd.f32 %v11509_v45, %v11306_v15  ;;  %v10190_v7 = vld [vmem:[#allocation2 + $0x90] sm:$0xff]  }
 0x23f   :  { %8007 = vst.msk [vmem:[#allocation3 + $0x48] sm:$0xff] %vm2164_vm2, %v9723_v1  ;;  %v2648_v57 = vrot.slane %v2646_v24, 4  ;;  %v2654_v47 = vrot.slane %v2652_v56, 5  ;;  %v585_v27 = vmax.f32 %v445_v10, 0.0  ;;  %697 = vst [vmem:[#allocation2 + $0x108] sm:$0x1] %v696_v49  ;;  %6267 = vrot.lane.b32.xlu1 %v10170_v14, %s10355_s1  ;;  %v448_v22 = vadd.f32 %v11509_v45, %v11310_v62  ;;  %v11730_v10 = vpop.permute.xlu1 %5903 }
 0x240   :  { %v693_v12 = vsel %vm10467_vm4, 0, %v692_v39  ;;  %v2639_v52 = vor.u32 %v2638_v38, %v2635_v50  ;;  %v583_v21 = vmax.f32 %v437_v33, 0.0  ;;  %v806_v15 = vsel %vm10472_vm6, 0, %v805_v41  ;;  %v11726_v62 = vpop.permute.xlu0 %4179  ;;  %v7476_v56 = vld [vmem:[#allocation2 + $0x5c] sm:$0x1]  ;;  %v13604_v33 = vld [vmem:[#allocation14_spill] sm:$0xff] }
 0x241   :  { %694 = vst [vmem:[#allocation2 + $0xfc] sm:$0x1] %v693_v12  ;;  %v2649_v30 = vor.u32 %v2648_v57, %v2644_v31  ;;  %v9865_v54 = vpack.c.bf16 %v585_v27, %v585_v27  ;;  %807 = vst [vmem:[#allocation2 + $0x110] sm:$0x1] %v806_v15  ;;  %v440_v53 = vadd.f32 %v11509_v45, %v11322_v23  ;;  %v803_v32 = vsel %vm10472_vm6, 0, %v802_v16  ;;  %v10171_v45 = vld [vmem:[#allocation2 + $0xf0] sm:$0xff]  }
 0x242   :  { %5917 = vrot.lane.b32.xlu0 %v9606_v2, %s10359_s24  ;;  %v2640_v8 = vrot.slane %v2639_v52, 4  ;;  %v9863_v60 = vpack.c.bf16 %v583_v21, %v583_v21  ;;  %v586_v3 = vmax.f32 %v448_v22, 0.0  ;;  %804 = vst [vmem:[#allocation2 + $0x104] sm:$0x1] %v803_v32  ;;  %v9692_v4 = vrot.slane %v7474_v58, 9  ;;  %v8043_v2 = vld [vmem:[#allocation3 + $0x40] sm:$0xff] }
 0x243   :  { %v2650_v13 = vrot.slane %v2649_v30, 4  ;;  %v1365_v11 = vshrl.u32 %v9865_v54, 16  ;;  %v1368_v1 = vshll.u32 %v9865_v54, 16  ;;  %v584_v19 = vmax.f32 %v440_v53, 0.0  ;;  %v5418_v27 = vld [vmem:[#allocation2 + $0xb8] sm:$0xf] }
 0x244   :  { %v2645_v23 = vsel %vm10511_vm12, %v2640_v8, %v2644_v31  ;;  %v1348_v39 = vshrl.u32 %v9863_v60, 16  ;;  %v1351_v50 = vshll.u32 %v9863_v60, 16  ;;  %v9866_v24 = vpack.c.bf16 %v586_v3, %v586_v3  ;;  %v5417_v31 = vld [vmem:[#allocation2 + $0xb4] sm:$0xe]  ;;  %2177 = vst.msk [vmem:[#allocation3 + $0xc0] sm:$0xff] %vm2164_vm2, %v10190_v7  ;;  %v7345_v22 = vpop.permute.xlu0 %7344 }
 0x245   :  { %v2655_v14 = vsel %vm10511_vm12, %v2650_v13, %v2654_v47  ;;  %v1367_v38 = vrot.slane %v1365_v11, 7  ;;  %v9864_v49 = vpack.c.bf16 %v584_v19, %v584_v19  ;;  %v13605_v16 = vrot.slane %v13604_v33, 5  ;;  %7434 = vst.msk [vmem:[#allocation3 + $0x70] sm:$0xff] %vm7426_vm13, %v7345_v22  ;;  %v5419_v19 = vld [vmem:[#allocation2 + $0xbc] sm:$0x1]  ;;  %v11752_v33 = vpop.permute.xlu1 %3822 }
 0x246   :  { %v8044_v41 = vld [vmem:[#allocation3 + $0x48] sm:$0xff]  ;;  %v9413_v12 = vcombine.low %v2645_v23, %v2655_v14  ;;  %v1817_v58 = vld [vmem:[#allocation2 + $0x108] sm:$0xf]  ;;  %6273 = vrot.lane.b32.xlu0 %v10171_v45, %s10355_s1  ;;  %v1350_v52 = vrot.slane %v1348_v39, 7  ;;  %v1373_v47 = vshrl.u32 %v9866_v24, 16  ;;  %v1376_v21 = vshll.u32 %v9866_v24, 16 }
 0x247   :  { %v11738_v57 = vsel %vm10495_vm9, %v9692_v4, %v13605_v16  ;;  %9765 = vmatprep.mubr.msk.bf16.mxu1 %vm2164_vm2, %v8044_v41  ;;  %v1370_v15 = vor.u32 %v1368_v1, %v1367_v38  ;;  %v1371_v30 = vrot.slane %v1367_v38, 4  ;;  %v1356_v53 = vshrl.u32 %v9864_v49, 16  ;;  %v10174_v4 = vld [vmem:[#allocation2 + $0xe4] sm:$0xff]   ;;  %v10173_v45 = vld [vmem:[#allocation2 + $0xb4] sm:$0xff]  }
 0x248   :  { %v1810_v54 = vld [vmem:[#allocation2 + $0xfc] sm:$0xf]  ;;  %v1359_v32 = vshll.u32 %v9864_v49, 16  ;;  %8339 = vmatmul.mubr.bf16.gmra.mrb[12].mxu1 %v8043_v2  ;;  %3188 = vrot.lane.b32.xlu1 %v9413_v12, %s10357_s20  ;;  %v1353_v8 = vor.u32 %v1351_v50, %v1350_v52  ;;  %v1354_v60 = vrot.slane %v1350_v52, 4  ;;  %v1375_v3 = vrot.slane %v1373_v47, 7 }
 0x249   :  { %v13606_v13 = vmov %v13605_v16  ;;  %v1818_v1 = vsel %vm10586_vm14, %v1370_v15, %v1817_v58  ;;  %v1821_v7 = vld [vmem:[#allocation2 + $0x110] sm:$0x1]  ;;  %v1358_v23 = vrot.slane %v1356_v53, 7  ;;  %v7691_v39 = vrot.slane %v7476_v56, 5  ;;  %v1814_v14 = vld [vmem:[#allocation2 + $0x104] sm:$0x1] }
 0x24a   :  { %v7690_v11 = vrot.slane %v13606_v13, 4  ;;  %v9573_v24 = vrot.slane %v5417_v31, 9  ;;  %1819 = vst [vmem:[#allocation2 + $0x108] sm:$0xf] %v1818_v1  ;;  %v1811_v2 = vsel %vm10586_vm14, %v1353_v8, %v1810_v54  ;;  %v1378_v50 = vor.u32 %v1376_v21, %v1375_v3  ;;  %4189 = vrot.lane.b32.xlu0 %v10174_v4, %s10358_s23  ;;  %v6409_v49 = vld [vmem:[#allocation2 + $0xb4] sm:$0xf] }
 0x24b   :  { %v1380_v41 = vrot.slane %v1375_v3, 4  ;;  %v5667_v38 = vrot.slane %v5418_v27, 5  ;;  %1812 = vst [vmem:[#allocation2 + $0xfc] sm:$0xf] %v1811_v2  ;;  %v1361_v16 = vor.u32 %v1359_v32, %v1358_v23  ;;  %v1363_v12 = vrot.slane %v1358_v23, 4  ;;  %v5263_v4 = vpop.permute.xlu0 %5262 }
 0x24c   :  { %v7692_v56 = vsel %vm10495_vm9, %v7690_v11, %v7691_v39  ;;  %v5670_v31 = vrot.slane %v5419_v19, 5  ;;  %v6410_v58 = vld [vmem:[#allocation2 + $0xb8] sm:$0xf]  ;;  %v6411_v52 = vld [vmem:[#allocation2 + $0xbc] sm:$0x1]  ;;  %v1379_v47 = vsel %vm10593_vm15, %v1371_v30, %v1378_v50  ;;  %4185 = vrot.lane.b32.xlu1 %v10173_v45, %s10358_s23  ;;  %v6779_v8 = vshrl.u32 %v6409_v49, 16 }
 0x24d   :  { %v1822_v21 = vsel %vm10467_vm4, %v1380_v41, %v1821_v7  ;;  %v9724_v27 = vcombine.low %v11738_v57, %v7692_v56  ;;  %v5668_v22 = vsel %vm10495_vm9, %v9573_v24, %v5667_v38  ;;  %v3334_v15 = vld [vmem:[#allocation2 + $0xb4] sm:$0xe]  ;;  %v3335_v54 = vld [vmem:[#allocation2 + $0xb8] sm:$0xf]  ;;  %1820 = vst.msk [vmem:[#allocation2 + $0x10c] sm:$0xf] %vm611_vm1, %v1379_v47  ;;  %v1362_v53 = vsel %vm10593_vm15, %v1354_v60, %v1361_v16 }
 0x24e   :  { %1823 = vst [vmem:[#allocation2 + $0x110] sm:$0x1] %v1822_v21  ;;  %v1815_v30 = vsel %vm10467_vm4, %v1363_v12, %v1814_v14  ;;  %v5669_v32 = vrot.slane %v5667_v38, 4  ;;  %v3336_v3 = vld [vmem:[#allocation2 + $0xbc] sm:$0x1]  ;;  %v6782_v57 = vshll.u32 %v6409_v49, 16  ;;  %v7347_v38 = vpop.permute.xlu1 %7346 }
 0x24f   :  { %1813 = vst.msk [vmem:[#allocation2 + $0x100] sm:$0xf] %vm611_vm1, %v1362_v53  ;;  %1816 = vst [vmem:[#allocation2 + $0x104] sm:$0x1] %v1815_v30  ;;  %v6788_v13 = vshll.u32 %v6410_v58, 16  ;;  %v6792_v11 = vshrl.u32 %v6410_v58, 16 }
 0x250   :  { %8008 = vst.msk [vmem:[#allocation3 + $0x58] sm:$0xff] %vm2164_vm2, %v9724_v27  ;;  %v6798_v19 = vshll.u32 %v6411_v52, 16  ;;  %v4328_v1 = vld [vmem:[#allocation2 + $0xb4] sm:$0xf]  ;;  %v5671_v60 = vsel %vm10495_vm9, %v5669_v32, %v5670_v31  ;;  %v6781_v7 = vrot.slane %v6779_v8, 4  ;;  %v9446_v23 = vrot.slane %v3334_v15, 9 }
 0x251   :  { %5351 = vst.msk [vmem:[#allocation3 + $0x80] sm:$0xff] %vm5342_vm8, %v5263_v4  ;;  %v3591_v45 = vrot.slane %v3335_v54, 5  ;;  %v4329_v39 = vld [vmem:[#allocation2 + $0xb8] sm:$0xf]  ;;  %v9605_v24 = vcombine.low %v5668_v22, %v5671_v60  ;;  %v6784_v2 = vrot.slane %v6782_v57, 5  ;;  %v6790_v50 = vrot.slane %v6788_v13, 5 }
 0x252   :  { %5992 = vst.msk [vmem:[#allocation3 + $0x80] sm:$0xff] %vm5983_vm10, %v11730_v10  ;;  %v6794_v41 = vrot.slane %v6792_v11, 4  ;;  %v4330_v14 = vld [vmem:[#allocation2 + $0xbc] sm:$0x1]  ;;  %v6800_v49 = vrot.slane %v6798_v19, 5  ;;  %v3594_v56 = vrot.slane %v3336_v3, 5 }
 0x253   :  { %6346 = vst.msk [vmem:[#allocation3 + $0x80] sm:$0xff] %vm6337_vm11, %v11551_v59  ;;  %v3592_v16 = vsel %vm10495_vm9, %v9446_v23, %v3591_v45  ;;  %v3593_v12 = vrot.slane %v3591_v45, 4  ;;  %v11781_v31 = vpop.f32.mrb[48].mxu0  ;;  %5915 = vrot.lane.b32.xlu1 %v9605_v24, %s10359_s24  ;;  %v6785_v10 = vor.u32 %v6784_v2, %v6781_v7  ;;  %v4719_v52 = vshrl.u32 %v4328_v1, 16  ;;  %v2242_v21 = vld [vmem:[#allocation2 + $0xb4] sm:$0xf] }
 0x254   :  { %7435 = vst.msk [vmem:[#allocation3 + $0x80] sm:$0xff] %vm7426_vm13, %v7347_v38  ;;  %v6795_v58 = vor.u32 %v6794_v41, %v6790_v50  ;;  %v4722_v47 = vshll.u32 %v4328_v1, 16  ;;  %v4728_v27 = vshll.u32 %v4329_v39, 16  ;;  %v4732_v22 = vshrl.u32 %v4329_v39, 16  ;;  %v2243_v54 = vld [vmem:[#allocation2 + $0xb8] sm:$0xf]  ;;  %v5265_v38 = vpop.permute.xlu1 %5264 }
 0x255   :  { %v3595_v59 = vsel %vm10495_vm9, %v3593_v12, %v3594_v56  ;;  %v4738_v15 = vshll.u32 %v4330_v14, 16  ;;  %v11786_v53 = vpop.f32.mrb[49].mxu0  ;;  %v11788_v30 = vld [vmem:[#allocation2 + $0x10c] sm:$0xf]  ;;  %v6786_v32 = vrot.slane %v6785_v10, 4  ;;  %v4721_v4 = vrot.slane %v4719_v52, 4 }
 0x256   :  { %v6796_v8 = vrot.slane %v6795_v58, 4  ;;  %v9478_v3 = vcombine.low %v3592_v16, %v3595_v59  ;;  %v2244_v57 = vld [vmem:[#allocation2 + $0xbc] sm:$0x1]  ;;  %v6412_v13 = vld [vmem:[#allocation2 + $0xc0] sm:$0xf]  ;;  %v4724_v7 = vrot.slane %v4722_v47, 5 }
 0x257   :  { %v8045_v11 = vld [vmem:[#allocation3 + $0x50] sm:$0xff]  ;;  %v8046_v60 = vld [vmem:[#allocation3 + $0x58] sm:$0xff]  ;;  %v4730_v23 = vrot.slane %v4728_v27, 5  ;;  %v6791_v2 = vsel %vm10511_vm12, %v6786_v32, %v6790_v50  ;;  %v4734_v14 = vrot.slane %v4732_v22, 4  ;;  %v4740_v56 = vrot.slane %v4738_v15, 5  ;;  %v10175_v52 = vld [vmem:[#allocation2 + $0xf0] sm:$0xff]  }
 0x258   :  { %v11791_v1 = vld [vmem:[#allocation2 + $0x100] sm:$0xf]  ;;  %9766 = vmatprep.mubr.msk.bf16.mxu1 %vm2164_vm2, %v8046_v60  ;;  %v6801_v41 = vsel %vm10511_vm12, %v6796_v8, %v6800_v49  ;;  %3834 = vrot.lane.b32.xlu1 %v9478_v3, %s10354_s0  ;;  %v4725_v12 = vor.u32 %v4724_v7, %v4721_v4  ;;  %v2657_v10 = vshrl.u32 %v2242_v21, 16  ;;  %v2660_v47 = vshll.u32 %v2242_v21, 16  ;;  %v6413_v22 = vld [vmem:[#allocation2 + $0xc4] sm:$0xf] }
 0x259   :  { %v11796_v45 = vld [vmem:[%s13524_s2] ss:$0 sm:$0xff]  ;;  %v9668_v16 = vcombine.low %v6791_v2, %v6801_v41  ;;  %8347 = vmatmul.mubr.bf16.gmra.mrb[16].mxu1 %v8045_v11  ;;  %v4735_v58 = vor.u32 %v4734_v14, %v4730_v23  ;;  %v2666_v59 = vshll.u32 %v2243_v54, 16  ;;  %v2670_v27 = vshrl.u32 %v2243_v54, 16  ;;  %v6414_v11 = vld [vmem:[#allocation2 + $0xc8] sm:$0x1] }
 0x25a   :  { %v11800_v39 = vadd.f32 %v11796_v45, %v11470_v0  ;;  %v3179_v0 = vpop.permute.xlu0 %3178  ;;  %v4726_v50 = vrot.slane %v4725_v12, 4  ;;  %v2659_v49 = vrot.slane %v2657_v10, 4  ;;  %v2676_v32 = vshll.u32 %v2244_v57, 16  ;;  %v5423_v2 = vld [vmem:[#allocation2 + $0xe4] sm:$0xe] }
 0x25b   :  { %3266 = vst.msk [vmem:[#allocation3 + $0x90] sm:$0xff] %vm3256_vm3, %v3179_v0  ;;  %7356 = vrot.lane.b32.xlu0 %v9668_v16, %s10356_s19  ;;  %v6803_v8 = vshrl.u32 %v6412_v13, 16  ;;  %v4736_v15 = vrot.slane %v4735_v58, 4  ;;  %v2662_v3 = vrot.slane %v2660_v47, 5  ;;  %v2668_v4 = vrot.slane %v2666_v59, 5  ;;  %v11823_v0 = vpop.f32.mrb[50].mxu0 }
 0x25c   :  { %3910 = vst.msk [vmem:[#allocation3 + $0x90] sm:$0xff] %vm3900_vm5, %v11752_v33  ;;  %4191 = vrot.lane.b32.xlu1 %v10175_v52, %s10358_s23  ;;  %v2672_v21 = vrot.slane %v2670_v27, 4  ;;  %v4731_v54 = vsel %vm10511_vm12, %v4726_v50, %v4730_v23  ;;  %v2678_v60 = vrot.slane %v2676_v32, 5  ;;  %v6806_v7 = vshll.u32 %v6412_v13, 16  ;;  %v5424_v12 = vld [vmem:[#allocation2 + $0xe8] sm:$0xf] }
 0x25d   :  { %4263 = vst.msk [vmem:[#allocation3 + $0x90] sm:$0xff] %vm4253_vm7, %v11564_v29  ;;  %v6805_v57 = vrot.slane %v6803_v8, 4  ;;  %v4741_v33 = vsel %vm10511_vm12, %v4736_v15, %v4740_v56  ;;  %v2663_v41 = vor.u32 %v2662_v3, %v2659_v49  ;;  %v6812_v16 = vshll.u32 %v6413_v22, 16  ;;  %v4331_v10 = vld [vmem:[#allocation2 + $0xc0] sm:$0xf]  ;;  %v6260_v29 = vpop.permute.xlu1 %6259 }
 0x25e   :  { %5352 = vst.msk [vmem:[#allocation3 + $0x90] sm:$0xff] %vm5342_vm8, %v5265_v38  ;;  %v2673_v14 = vor.u32 %v2672_v21, %v2668_v4  ;;  %v9541_v23 = vcombine.low %v4731_v54, %v4741_v33  ;;  %v6808_v58 = vrot.slane %v6806_v7, 5  ;;  %v6816_v13 = vshrl.u32 %v6413_v22, 16  ;;  %v5425_v47 = vld [vmem:[#allocation2 + $0xec] sm:$0x1]  ;;  %v11826_v38 = vpop.f32.mrb[51].mxu0  ;;  %v11833_v33 = vpop.permute.xlu0 %5909 }
 0x25f   :  { %5993 = vst.msk [vmem:[#allocation3 + $0x90] sm:$0xff] %vm5983_vm10, %v11674_v37  ;;  %v6822_v52 = vshll.u32 %v6414_v11, 16  ;;  %v2664_v56 = vrot.slane %v2663_v41, 4  ;;  %v6814_v27 = vrot.slane %v6812_v16, 5  ;;  %v9575_v50 = vrot.slane %v5423_v2, 9  ;;  %v10194_v3 = vld [vmem:[#allocation2 + $0x9c] sm:$0xff]  }
 0x260   :  { %6347 = vst.msk [vmem:[#allocation3 + $0x90] sm:$0xff] %vm6337_vm11, %v6260_v29  ;;  %v2674_v59 = vrot.slane %v2673_v14, 4  ;;  %5274 = vrot.lane.b32.xlu0 %v9541_v23, %s10360_s25  ;;  %v6809_v49 = vor.u32 %v6808_v58, %v6805_v57  ;;  %v6818_v37 = vrot.slane %v6816_v13, 4  ;;  %v5681_v8 = vrot.slane %v5424_v12, 5  ;;  %v4332_v15 = vld [vmem:[#allocation2 + $0xc4] sm:$0xf] }
 0x261   :  { %v6824_v32 = vrot.slane %v6822_v52, 5  ;;  %v2669_v22 = vsel %vm10511_vm12, %v2664_v56, %v2668_v4  ;;  %v5684_v11 = vrot.slane %v5425_v47, 5  ;;  %v4333_v54 = vld [vmem:[#allocation2 + $0xc8] sm:$0x1]  ;;  %v4743_v7 = vshrl.u32 %v4331_v10, 16  ;;  %2178 = vst.msk [vmem:[#allocation3 + $0xd0] sm:$0xff] %vm2164_vm2, %v10194_v3  ;;  %v3181_v13 = vpop.permute.xlu1 %3180 }
 0x262   :  { %v2679_v21 = vsel %vm10511_vm12, %v2674_v59, %v2678_v60  ;;  %v6810_v41 = vrot.slane %v6809_v49, 4  ;;  %v6819_v14 = vor.u32 %v6818_v37, %v6814_v27  ;;  %v5682_v57 = vsel %vm10495_vm9, %v9575_v50, %v5681_v8  ;;  %v3340_v16 = vld [vmem:[#allocation2 + $0xe4] sm:$0xe]  ;;  %v3341_v58 = vld [vmem:[#allocation2 + $0xe8] sm:$0xf]  ;;  %3267 = vst.msk [vmem:[#allocation3 + $0xa0] sm:$0xff] %vm3256_vm3, %v3181_v13 }
 0x263   :  { %v9414_v2 = vcombine.low %v2669_v22, %v2679_v21  ;;  %v5683_v12 = vrot.slane %v5681_v8, 4  ;;  %v4745_v29 = vrot.slane %v4743_v7, 4  ;;  %v4746_v4 = vshll.u32 %v4331_v10, 16  ;;  %v7477_v60 = vld [vmem:[#allocation2 + $0x60] sm:$0xe]  ;;  %3911 = vst.msk [vmem:[#allocation3 + $0xa0] sm:$0xff] %vm3900_vm5, %v11697_v61  ;;  %v11848_v13 = vpop.permute.xlu0 %3828 }
 0x264   :  { %v4752_v23 = vshll.u32 %v4332_v15, 16  ;;  %v6815_v52 = vsel %vm10511_vm12, %v6810_v41, %v6814_v27  ;;  %v6820_v47 = vrot.slane %v6819_v14, 4  ;;  %v4756_v56 = vshrl.u32 %v4332_v15, 16  ;;  %v3342_v49 = vld [vmem:[#allocation2 + $0xec] sm:$0x1] }
 0x265   :  { %3190 = vrot.lane.b32.xlu0 %v9414_v2, %s10357_s20  ;;  %v4762_v59 = vshll.u32 %v4333_v54, 16  ;;  %v5685_v50 = vsel %vm10495_vm9, %v5683_v12, %v5684_v11  ;;  %v4748_v37 = vrot.slane %v4746_v4, 5  ;;  %v9448_v8 = vrot.slane %v3340_v16, 9  ;;  %v7479_v3 = vld [vmem:[#allocation2 + $0x68] sm:$0x1]  ;;  %v4178_v11 = vpop.permute.xlu1 %4177 }
 0x266   :  { %v4754_v10 = vrot.slane %v4752_v23, 5  ;;  %v6825_v22 = vsel %vm10511_vm12, %v6820_v47, %v6824_v32  ;;  %v9607_v27 = vcombine.low %v5682_v57, %v5685_v50  ;;  %v4758_v21 = vrot.slane %v4756_v56, 4  ;;  %v701_v14 = vld [vmem:[#allocation2 + $0x120] sm:$0x1]  ;;  %v13607_v4 = vld [vmem:[#allocation13_spill] sm:$0xff]  ;;  %4264 = vst.msk [vmem:[#allocation3 + $0xa0] sm:$0xff] %vm4253_vm7, %v4178_v11 }
 0x267   :  { %v4764_v15 = vrot.slane %v4762_v59, 5  ;;  %v9669_v54 = vcombine.low %v6815_v52, %v6825_v22  ;;  %v4749_v7 = vor.u32 %v4748_v37, %v4745_v29  ;;  %v3605_v2 = vrot.slane %v3341_v58, 5  ;;  %v698_v52 = vld [vmem:[#allocation2 + $0x114] sm:$0x1]  ;;  %v5426_v50 = vld [vmem:[#allocation2 + $0xf0] sm:$0xe] }
 0x268   :  { %v3608_v41 = vrot.slane %v3342_v49, 5  ;;  %v4759_v16 = vor.u32 %v4758_v21, %v4754_v10  ;;  %v9693_v12 = vrot.slane %v7477_v60, 9  ;;  %v13608_v61 = vrot.slane %v13607_v4, 5  ;;  %v5427_v22 = vld [vmem:[#allocation2 + $0xf4] sm:$0xf]  ;;  %v11870_v21 = vpop.permute.xlu0 %6265 }
 0x269   :  { %5919 = vrot.lane.b32.xlu0 %v9607_v27, %s10359_s24  ;;  %v7698_v19 = vrot.slane %v7479_v3, 5  ;;  %7358 = vrot.lane.b32.xlu1 %v9669_v54, %s10356_s19  ;;  %v4750_v32 = vrot.slane %v4749_v7, 4  ;;  %v3606_v57 = vsel %vm10495_vm9, %v9448_v8, %v3605_v2  ;;  %v3607_v29 = vrot.slane %v3605_v2, 4  ;;  %v5428_v27 = vld [vmem:[#allocation2 + $0xf8] sm:$0x1] }
 0x26a   :  { %v7697_v23 = vrot.slane %v13608_v61, 4  ;;  %v589_v58 = vmax.f32 %v11800_v39, 0.0  ;;  %v4760_v47 = vrot.slane %v4759_v16, 4  ;;  %v13609_v56 = vmov %v13608_v61  ;;  %v811_v2 = vld [vmem:[#allocation2 + $0x128] sm:$0x1] }
 0x26b   :  { %v7696_v60 = vsel %vm10495_vm9, %v9693_v12, %v13609_v56  ;;  %v702_v49 = vsel %vm10467_vm4, 0, %v701_v14  ;;  %v4755_v37 = vsel %vm10511_vm12, %v4750_v32, %v4754_v10  ;;  %v3609_v39 = vsel %vm10495_vm9, %v3607_v29, %v3608_v41  ;;  %v6418_v14 = vld [vmem:[#allocation2 + $0xf0] sm:$0xf] }
 0x26c   :  { %v7699_v59 = vsel %vm10495_vm9, %v7697_v23, %v7698_v19  ;;  %703 = vst [vmem:[#allocation2 + $0x120] sm:$0x1] %v702_v49  ;;  %v9869_v3 = vpack.c.bf16 %v589_v58, %v589_v58  ;;  %v4765_v19 = vsel %vm10511_vm12, %v4760_v47, %v4764_v15  ;;  %v9480_v54 = vcombine.low %v3606_v57, %v3609_v39  ;;  %v11887_v58 = vpop.permute.xlu0 %4183 }
 0x26d   :  { %v9725_v8 = vcombine.low %v7696_v60, %v7699_v59  ;;  %v453_v7 = vadd.f32 %v11796_v45, %v11484_v63  ;;  %v699_v10 = vsel %vm10467_vm4, 0, %v698_v52  ;;  %v9542_v41 = vcombine.low %v4755_v37, %v4765_v19  ;;  %v6419_v59 = vld [vmem:[#allocation2 + $0xf4] sm:$0xf]  ;;  %v6420_v19 = vld [vmem:[#allocation2 + $0xf8] sm:$0x1] }
 0x26e   :  { %v1399_v11 = vshrl.u32 %v9869_v3, 16  ;;  %v1402_v16 = vshll.u32 %v9869_v3, 16  ;;  %700 = vst [vmem:[#allocation2 + $0x114] sm:$0x1] %v699_v10  ;;  %v9576_v12 = vrot.slane %v5426_v50, 9  ;;  %3838 = vrot.lane.b32.xlu0 %v9480_v54, %s10354_s0  ;;  %v5688_v15 = vrot.slane %v5427_v22, 5  ;;  %v11895_v54 = vpop.permute.xlu1 %5907 }
 0x26f   :  { %8009 = vst.msk [vmem:[#allocation3 + $0x68] sm:$0xff] %vm2164_vm2, %v9725_v8  ;;  %v587_v4 = vmax.f32 %v453_v7, 0.0  ;;  %v5691_v61 = vrot.slane %v5428_v27, 5  ;;  %v464_v63 = vadd.f32 %v11796_v45, %v11493_v25  ;;  %5276 = vrot.lane.b32.xlu1 %v9542_v41, %s10360_s25  ;;  %v812_v32 = vsel %vm10472_vm6, 0, %v811_v2  ;;  %v808_v41 = vld [vmem:[#allocation2 + $0x11c] sm:$0x1] }
 0x270   :  { %v11883_v23 = vrot.slane %v1399_v11, 7  ;;  %v6851_v57 = vshrl.u32 %v6418_v14, 16  ;;  %v6854_v29 = vshll.u32 %v6418_v14, 16  ;;  %v5689_v47 = vsel %vm10495_vm9, %v9576_v12, %v5688_v15  ;;  %813 = vst [vmem:[#allocation2 + $0x128] sm:$0x1] %v812_v32  ;;  %v8047_v11 = vld [vmem:[#allocation3 + $0x60] sm:$0xff] }
 0x271   :  { %v9867_v52 = vpack.c.bf16 %v587_v4, %v587_v4  ;;  %v5690_v56 = vrot.slane %v5688_v15, 4  ;;  %v590_v60 = vmax.f32 %v464_v63, 0.0  ;;  %v6860_v14 = vshll.u32 %v6419_v59, 16  ;;  %v10196_v12 = vld [vmem:[#allocation2 + $0xa8] sm:$0xff]   ;;  %v3343_v32 = vld [vmem:[#allocation2 + $0xf0] sm:$0xe] }
 0x272   :  { %v1404_v25 = vor.u32 %v1402_v16, %v11883_v23  ;;  %v1405_v49 = vrot.slane %v11883_v23, 4  ;;  %v6853_v50 = vrot.slane %v6851_v57, 4  ;;  %v6856_v37 = vrot.slane %v6854_v29, 5  ;;  %v7349_v16 = vpop.permute.xlu0 %7348  ;;  %v3344_v57 = vld [vmem:[#allocation2 + $0xf4] sm:$0xf]  ;;  %2179 = vst.msk [vmem:[#allocation3 + $0xe0] sm:$0xff] %vm2164_vm2, %v10196_v12  ;;  %v11915_v12 = vpop.permute.xlu1 %3826 }
 0x273   :  { %v1831_v39 = vld [vmem:[#allocation2 + $0x120] sm:$0xf]  ;;  %v1382_v8 = vshrl.u32 %v9867_v52, 16  ;;  %v1385_v3 = vshll.u32 %v9867_v52, 16  ;;  %v5692_v22 = vsel %vm10495_vm9, %v5690_v56, %v5691_v61  ;;  %v9870_v27 = vpack.c.bf16 %v590_v60, %v590_v60  ;;  %v3345_v29 = vld [vmem:[#allocation2 + $0xf8] sm:$0x1] }
 0x274   :  { %v1832_v7 = vsel %vm10586_vm14, %v1404_v25, %v1831_v39  ;;  %v9608_v10 = vcombine.low %v5689_v47, %v5692_v22  ;;  %v6857_v2 = vor.u32 %v6856_v37, %v6853_v50  ;;  %v456_v23 = vadd.f32 %v11796_v45, %v11504_v43  ;;  %7436 = vst.msk [vmem:[#allocation3 + $0x90] sm:$0xff] %vm7426_vm13, %v7349_v16 }
 0x275   :  { %1833 = vst [vmem:[#allocation2 + $0x120] sm:$0xf] %v1832_v7  ;;  %v11899_v15 = vrot.slane %v1382_v8, 7  ;;  %v1407_v63 = vshrl.u32 %v9870_v27, 16  ;;  %v1410_v61 = vshll.u32 %v9870_v27, 16  ;;  %v6862_v56 = vrot.slane %v6860_v14, 5 }
 0x276   :  { %v8048_v4 = vld [vmem:[#allocation3 + $0x68] sm:$0xff]  ;;  %v1824_v52 = vld [vmem:[#allocation2 + $0x114] sm:$0xf]  ;;  %5921 = vrot.lane.b32.xlu1 %v9608_v10, %s10359_s24  ;;  %v6858_v47 = vrot.slane %v6857_v2, 4  ;;  %v6864_v60 = vshrl.u32 %v6419_v59, 16  ;;  %v6870_v25 = vshll.u32 %v6420_v19, 16 }
 0x277   :  { %9767 = vmatprep.mubr.msk.bf16.mxu1 %vm2164_vm2, %v8048_v4  ;;  %v1387_v50 = vor.u32 %v1385_v3, %v11899_v15  ;;  %v1388_v43 = vrot.slane %v11899_v15, 4  ;;  %v1409_v37 = vrot.slane %v1407_v63, 7  ;;  %v588_v39 = vmax.f32 %v456_v23, 0.0  ;;  %v4337_v8 = vld [vmem:[#allocation2 + $0xf0] sm:$0xf] }
 0x278   :  { %8355 = vmatmul.mubr.bf16.gmra.mrb[20].mxu1 %v8047_v11  ;;  %v1835_v22 = vld [vmem:[#allocation2 + $0x128] sm:$0x1]  ;;  %v6863_v27 = vsel %vm10511_vm12, %v6858_v47, %v6862_v56  ;;  %v6866_v7 = vrot.slane %v6864_v60, 4  ;;  %v6872_v10 = vrot.slane %v6870_v25, 5  ;;  %v809_v59 = vsel %vm10472_vm6, 0, %v808_v41 }
 0x279   :  { %v4338_v19 = vld [vmem:[#allocation2 + $0xf4] sm:$0xf]  ;;  %v1825_v2 = vsel %vm10586_vm14, %v1387_v50, %v1824_v52  ;;  %v1412_v3 = vor.u32 %v1410_v61, %v1409_v37  ;;  %v1414_v14 = vrot.slane %v1409_v37, 4  ;;  %810 = vst [vmem:[#allocation2 + $0x11c] sm:$0x1] %v809_v59  ;;  %v9868_v16 = vpack.c.bf16 %v588_v39, %v588_v39 }
 0x27a   :  { %1826 = vst [vmem:[#allocation2 + $0x114] sm:$0xf] %v1825_v2  ;;  %v6867_v11 = vor.u32 %v6866_v7, %v6862_v56  ;;  %v9449_v4 = vrot.slane %v3343_v32, 9  ;;  %v3612_v15 = vrot.slane %v3344_v57, 5  ;;  %v3615_v63 = vrot.slane %v3345_v29, 5  ;;  %v5267_v57 = vpop.permute.xlu0 %5266 }
 0x27b   :  { %v1413_v23 = vsel %vm10593_vm15, %v1405_v49, %v1412_v3  ;;  %v1836_v41 = vsel %vm10467_vm4, %v1414_v14, %v1835_v22  ;;  %v1390_v47 = vshrl.u32 %v9868_v16, 16  ;;  %v1393_v60 = vshll.u32 %v9868_v16, 16  ;;  %v4339_v52 = vld [vmem:[#allocation2 + $0xf8] sm:$0x1]  ;;  %5353 = vst.msk [vmem:[#allocation3 + $0xa0] sm:$0xff] %vm5342_vm8, %v5267_v57  ;;  %v8053_v42 = vld [vmem:[#allocation3 + $0x90] sm:$0xff] }
 0x27c   :  { %1834 = vst.msk [vmem:[#allocation2 + $0x124] sm:$0xf] %vm611_vm1, %v1413_v23  ;;  %1837 = vst [vmem:[#allocation2 + $0x128] sm:$0x1] %v1836_v41  ;;  %v6868_v61 = vrot.slane %v6867_v11, 4  ;;  %v3613_v25 = vsel %vm10495_vm9, %v9449_v4, %v3612_v15  ;;  %v3614_v56 = vrot.slane %v3612_v15, 4  ;;  %v7351_v15 = vpop.permute.xlu1 %7350 }
 0x27d   :  { %v4791_v32 = vshrl.u32 %v4337_v8, 16  ;;  %v1392_v29 = vrot.slane %v1390_v47, 7  ;;  %v4794_v50 = vshll.u32 %v4337_v8, 16  ;;  %v4800_v37 = vshll.u32 %v4338_v19, 16  ;;  %v7480_v2 = vld [vmem:[#allocation2 + $0x6c] sm:$0xe] }
 0x27e   :  { %v4804_v49 = vshrl.u32 %v4338_v19, 16  ;;  %v6873_v39 = vsel %vm10511_vm12, %v6868_v61, %v6872_v10  ;;  %v3616_v22 = vsel %vm10495_vm9, %v3614_v56, %v3615_v63  ;;  %v4810_v59 = vshll.u32 %v4339_v52, 16  ;;  %v7482_v3 = vld [vmem:[#allocation2 + $0x74] sm:$0x1]  ;;  %5994 = vst.msk [vmem:[#allocation3 + $0xa0] sm:$0xff] %vm5983_vm10, %v11895_v54  ;;  %v13610_v52 = vld [vmem:[#allocation17_spill] sm:$0xff] }
 0x27f   :  { %v4793_v7 = vrot.slane %v4791_v32, 4  ;;  %v9671_v14 = vcombine.low %v6863_v27, %v6873_v39  ;;  %v1395_v16 = vor.u32 %v1393_v60, %v1392_v29  ;;  %v1397_v8 = vrot.slane %v1392_v29, 4  ;;  %v2251_v19 = vld [vmem:[#allocation2 + $0xf0] sm:$0xf]  ;;  %v2252_v4 = vld [vmem:[#allocation2 + $0xf4] sm:$0xf] }
 0x280   :  { %v9481_v11 = vcombine.low %v3613_v25, %v3616_v22  ;;  %6348 = vst.msk [vmem:[#allocation3 + $0xa0] sm:$0xff] %vm6337_vm11, %v11712_v26  ;;  %v1828_v10 = vld [vmem:[#allocation2 + $0x11c] sm:$0x1]  ;;  %v4796_v23 = vrot.slane %v4794_v50, 5  ;;  %v4802_v63 = vrot.slane %v4800_v37, 5  ;;  %v4806_v41 = vrot.slane %v4804_v49, 4 }
 0x281   :  { %v4812_v47 = vrot.slane %v4810_v59, 5  ;;  %7437 = vst.msk [vmem:[#allocation3 + $0xa0] sm:$0xff] %vm7426_vm13, %v7351_v15  ;;  %7362 = vrot.lane.b32.xlu0 %v9671_v14, %s10356_s19  ;;  %v1396_v54 = vsel %vm10593_vm15, %v1388_v43, %v1395_v16  ;;  %v1829_v27 = vsel %vm10467_vm4, %v1397_v8, %v1828_v10  ;;  %v9694_v60 = vrot.slane %v7480_v2, 9  ;;  %v2253_v57 = vld [vmem:[#allocation2 + $0xf8] sm:$0x1]  ;;  %v10178_v39 = vld [vmem:[#allocation2 + $0x108] sm:$0xff]  }
 0x282   :  { %3840 = vrot.lane.b32.xlu1 %v9481_v11, %s10354_s0  ;;  %v13611_v26 = vrot.slane %v13610_v52, 5  ;;  %1827 = vst.msk [vmem:[#allocation2 + $0x118] sm:$0xf] %vm611_vm1, %v1396_v54  ;;  %1830 = vst [vmem:[#allocation2 + $0x11c] sm:$0x1] %v1829_v27  ;;  %v4797_v25 = vor.u32 %v4796_v23, %v4793_v7  ;;  %v4807_v56 = vor.u32 %v4806_v41, %v4802_v63  ;;  %v7705_v32 = vrot.slane %v7482_v3, 5  ;;  %v5269_v41 = vpop.permute.xlu1 %5268 }
 0x283   :  { %v2729_v29 = vshrl.u32 %v2251_v19, 16  ;;  %v2248_v50 = vld [vmem:[#allocation2 + $0xe4] sm:$0xf]  ;;  %v2732_v22 = vshll.u32 %v2251_v19, 16  ;;  %v2738_v59 = vshll.u32 %v2252_v4, 16  ;;  %v2742_v2 = vshrl.u32 %v2252_v4, 16 }
 0x284   :  { %v7704_v61 = vrot.slane %v13611_v26, 4  ;;  %v11943_v37 = vld [vmem:[#allocation2 + $0x124] sm:$0xf]  ;;  %v13613_v43 = vmov %v13611_v26  ;;  %v2249_v14 = vld [vmem:[#allocation2 + $0xe8] sm:$0xf]  ;;  %v4798_v7 = vrot.slane %v4797_v25, 4 }
 0x285   :  { %13612 = vst [vmem:[#allocation10_spill] sm:$0xff] %v11943_v37  ;;  %v7703_v49 = vsel %vm10495_vm9, %v9694_v60, %v13613_v43  ;;  %v4808_v8 = vrot.slane %v4807_v56, 4  ;;  %v2731_v15 = vrot.slane %v2729_v29, 4  ;;  %v2734_v10 = vrot.slane %v2732_v22, 5  ;;  %v11953_v54 = vpop.f32.mrb[52].mxu0  ;;  %v10180_v27 = vld [vmem:[#allocation2 + $0x108] sm:$0xff]  }
 0x286   :  { %v7706_v3 = vsel %vm10495_vm9, %v7704_v61, %v7705_v32  ;;  %6277 = vrot.lane.b32.xlu1 %v10178_v39, %s10355_s1  ;;  %v2740_v23 = vrot.slane %v2738_v59, 5  ;;  %v4803_v19 = vsel %vm10511_vm12, %v4798_v7, %v4802_v63  ;;  %v2744_v60 = vrot.slane %v2742_v2, 4  ;;  %v2250_v26 = vld [vmem:[#allocation2 + $0xec] sm:$0x1]  ;;  %v3183_v61 = vpop.permute.xlu0 %3182  ;;  %v5432_v43 = vld [vmem:[#allocation2 + $0x108] sm:$0xe] }
 0x287   :  { %v9726_v11 = vcombine.low %v7703_v49, %v7706_v3  ;;  %v4813_v4 = vsel %vm10511_vm12, %v4808_v8, %v4812_v47  ;;  %v2748_v52 = vshll.u32 %v2253_v57, 16  ;;  %v2735_v56 = vor.u32 %v2734_v10, %v2731_v15  ;;  %v5433_v49 = vld [vmem:[#allocation2 + $0x10c] sm:$0xf]  ;;  %3268 = vst.msk [vmem:[#allocation3 + $0xb0] sm:$0xff] %vm3256_vm3, %v3183_v61  ;;  %v5434_v47 = vld [vmem:[#allocation2 + $0x110] sm:$0x1] }
 0x288   :  { %v9544_v25 = vcombine.low %v4803_v19, %v4813_v4  ;;  %v2705_v32 = vshrl.u32 %v2248_v50, 16  ;;  %v2708_v29 = vshll.u32 %v2248_v50, 16  ;;  %v2745_v39 = vor.u32 %v2744_v60, %v2740_v23  ;;  %v4334_v7 = vld [vmem:[#allocation2 + $0xe4] sm:$0xf]  ;;  %3912 = vst.msk [vmem:[#allocation3 + $0xb0] sm:$0xff] %vm3900_vm5, %v11915_v12  ;;  %v10179_v12 = vld [vmem:[#allocation2 + $0xfc] sm:$0xff]  }
 0x289   :  { %8010 = vst.msk [vmem:[#allocation3 + $0x78] sm:$0xff] %vm2164_vm2, %v9726_v11  ;;  %v2750_v63 = vrot.slane %v2748_v52, 5  ;;  %v2714_v22 = vshll.u32 %v2249_v14, 16  ;;  %v2718_v59 = vshrl.u32 %v2249_v14, 16  ;;  %v11963_v57 = vld [vmem:[#allocation2 + $0x118] sm:$0xf] }
 0x28a   :  { %5280 = vrot.lane.b32.xlu0 %v9544_v25, %s10360_s25  ;;  %4195 = vrot.lane.b32.xlu1 %v10180_v27, %s10358_s23  ;;  %v2736_v50 = vrot.slane %v2735_v56, 4  ;;  %v2707_v2 = vrot.slane %v2705_v32, 4  ;;  %v2710_v8 = vrot.slane %v2708_v29, 5  ;;  %v2724_v3 = vshll.u32 %v2250_v26, 16  ;;  %v4335_v11 = vld [vmem:[#allocation2 + $0xe8] sm:$0xf]  ;;  %v6264_v26 = vpop.permute.xlu1 %6263 }
 0x28b   :  { %4265 = vst.msk [vmem:[#allocation3 + $0xb0] sm:$0xff] %vm4253_vm7, %v11726_v62  ;;  %v2746_v15 = vrot.slane %v2745_v39, 4  ;;  %v2716_v10 = vrot.slane %v2714_v22, 5  ;;  %v2720_v19 = vrot.slane %v2718_v59, 4  ;;  %v9578_v52 = vrot.slane %v5432_v43, 9  ;;  %v8049_v29 = vld [vmem:[#allocation3 + $0x70] sm:$0xff] }
 0x28c   :  { %5354 = vst.msk [vmem:[#allocation3 + $0xb0] sm:$0xff] %vm5342_vm8, %v5269_v41  ;;  %v2741_v4 = vsel %vm10511_vm12, %v2736_v50, %v2740_v23  ;;  %v2711_v27 = vor.u32 %v2710_v8, %v2707_v2  ;;  %v2726_v60 = vrot.slane %v2724_v3, 5  ;;  %v5702_v25 = vrot.slane %v5433_v49, 5  ;;  %v4336_v32 = vld [vmem:[#allocation2 + $0xec] sm:$0x1]  ;;  %v11979_v59 = vpop.f32.mrb[53].mxu0 }
 0x28d   :  { %5995 = vst.msk [vmem:[#allocation3 + $0xb0] sm:$0xff] %vm5983_vm10, %v11833_v33  ;;  %v2751_v62 = vsel %vm10511_vm12, %v2746_v15, %v2750_v63  ;;  %v2721_v61 = vor.u32 %v2720_v19, %v2716_v10  ;;  %v5705_v56 = vrot.slane %v5434_v47, 5  ;;  %v4767_v39 = vshrl.u32 %v4334_v7, 16  ;;  %v3349_v22 = vld [vmem:[#allocation2 + $0x108] sm:$0xe] }
 0x28e   :  { %6349 = vst.msk [vmem:[#allocation3 + $0xb0] sm:$0xff] %vm6337_vm11, %v6264_v26  ;;  %6275 = vrot.lane.b32.xlu0 %v10179_v12, %s10355_s1  ;;  %v9417_v23 = vcombine.low %v2741_v4, %v2751_v62  ;;  %v2712_v41 = vrot.slane %v2711_v27, 4  ;;  %v4770_v43 = vshll.u32 %v4334_v7, 16  ;;  %v5703_v63 = vsel %vm10495_vm9, %v9578_v52, %v5702_v25  ;;  %v3350_v2 = vld [vmem:[#allocation2 + $0x10c] sm:$0xf]  ;;  %v11986_v12 = vpop.f32.mrb[54].mxu0 }
 0x28f   :  { %v2722_v50 = vrot.slane %v2721_v61, 4  ;;  %v5704_v49 = vrot.slane %v5702_v25, 4  ;;  %v4776_v47 = vshll.u32 %v4335_v11, 16  ;;  %v4769_v3 = vrot.slane %v4767_v39, 4  ;;  %v3351_v7 = vld [vmem:[#allocation2 + $0x110] sm:$0x1]  ;;  %v11992_v25 = vpop.permute.xlu0 %5913 }
 0x290   :  { %v8050_v33 = vld [vmem:[#allocation3 + $0x78] sm:$0xff]  ;;  %v2717_v8 = vsel %vm10511_vm12, %v2712_v41, %v2716_v10  ;;  %v4772_v15 = vrot.slane %v4770_v43, 5  ;;  %v4780_v19 = vshrl.u32 %v4335_v11, 16  ;;  %v4786_v26 = vshll.u32 %v4336_v32, 16  ;;  %v5429_v62 = vld [vmem:[#allocation2 + $0xfc] sm:$0xe] }
 0x291   :  { %9768 = vmatprep.mubr.msk.bf16.mxu1 %vm2164_vm2, %v8050_v33  ;;  %v2727_v4 = vsel %vm10511_vm12, %v2722_v50, %v2726_v60  ;;  %v5706_v27 = vsel %vm10495_vm9, %v5704_v49, %v5705_v56  ;;  %v4778_v52 = vrot.slane %v4776_v47, 5  ;;  %v5430_v61 = vld [vmem:[#allocation2 + $0x100] sm:$0xf]  ;;  %v5431_v43 = vld [vmem:[#allocation2 + $0x104] sm:$0x1]  ;;  %v11995_v16 = vpop.f32.mrb[55].mxu0 }
 0x292   :  { %8363 = vmatmul.mubr.bf16.gmra.mrb[24].mxu1 %v8049_v29  ;;  %3196 = vrot.lane.b32.xlu0 %v9417_v23, %s10357_s20  ;;  %v9416_v10 = vcombine.low %v2717_v8, %v2727_v4  ;;  %v9610_v11 = vcombine.low %v5703_v63, %v5706_v27  ;;  %v4773_v41 = vor.u32 %v4772_v15, %v4769_v3  ;;  %v4782_v39 = vrot.slane %v4780_v19, 4  ;;  %v7483_v33 = vld [vmem:[#allocation2 + $0x78] sm:$0xe]  ;;  %v7485_v32 = vld [vmem:[#allocation2 + $0x80] sm:$0x1] }
 0x293   :  { %v4788_v60 = vrot.slane %v4786_v26, 5  ;;  %v9451_v50 = vrot.slane %v3349_v22, 9  ;;  %v3626_v56 = vrot.slane %v3350_v2, 5  ;;  %v3629_v49 = vrot.slane %v3351_v7, 5  ;;  %v10181_v29 = vld [vmem:[#allocation2 + $0xfc] sm:$0xff]   ;;  %v10199_v8 = vld [vmem:[#allocation2 + $0xb4] sm:$0xff]  }
 0x294   :  { %3194 = vrot.lane.b32.xlu1 %v9416_v10, %s10357_s20  ;;  %v4774_v47 = vrot.slane %v4773_v41, 4  ;;  %v4783_v14 = vor.u32 %v4782_v39, %v4778_v52  ;;  %v9577_v24 = vrot.slane %v5429_v62, 9  ;;  %v5695_v23 = vrot.slane %v5430_v61, 5  ;;  %v707_v27 = vld [vmem:[#allocation2 + $0x138] sm:$0x1]  ;;  %2180 = vst.msk [vmem:[#allocation3 + $0xf0] sm:$0xff] %vm2164_vm2, %v10199_v8 }
 0x295   :  { %v3627_v63 = vsel %vm10495_vm9, %v9451_v50, %v3626_v56  ;;  %v3628_v3 = vrot.slane %v3626_v56, 4  ;;  %v5698_v15 = vrot.slane %v5431_v43, 5  ;;  %v9695_v19 = vrot.slane %v7483_v33, 9  ;;  %v13614_v62 = vld [vmem:[#allocation15_spill] sm:$0xff]  ;;  %v12014_v43 = vpop.permute.xlu0 %3832 }
 0x296   :  { %4193 = vrot.lane.b32.xlu0 %v10181_v29, %s10358_s23  ;;  %v4779_v22 = vsel %vm10511_vm12, %v4774_v47, %v4778_v52  ;;  %v4784_v2 = vrot.slane %v4783_v14, 4  ;;  %v5696_v7 = vsel %vm10495_vm9, %v9577_v24, %v5695_v23  ;;  %v5697_v4 = vrot.slane %v5695_v23, 4  ;;  %v704_v14 = vld [vmem:[#allocation2 + $0x12c] sm:$0x1]  ;;  %v3346_v29 = vld [vmem:[#allocation2 + $0xfc] sm:$0xe]  ;;  %v3185_v23 = vpop.permute.xlu1 %3184 }
 0x297   :  { %v3630_v26 = vsel %vm10495_vm9, %v3628_v3, %v3629_v49  ;;  %v13615_v61 = vrot.slane %v13614_v62, 5  ;;  %v7712_v52 = vrot.slane %v7485_v32, 5  ;;  %v477_v56 = vadd.f32 %v11796_v45, %v11629_v51  ;;  %v817_v49 = vld [vmem:[#allocation2 + $0x140] sm:$0x1]  ;;  %3269 = vst.msk [vmem:[#allocation3 + $0xc0] sm:$0xff] %vm3256_vm3, %v3185_v23 }
 0x298   :  { %5925 = vrot.lane.b32.xlu1 %v9610_v11, %s10359_s24  ;;  %v4789_v24 = vsel %vm10511_vm12, %v4784_v2, %v4788_v60  ;;  %v9483_v33 = vcombine.low %v3627_v63, %v3630_v26  ;;  %v5699_v50 = vsel %vm10495_vm9, %v5697_v4, %v5698_v15  ;;  %v3347_v47 = vld [vmem:[#allocation2 + $0x100] sm:$0xf]  ;;  %v708_v11 = vsel %vm10467_vm4, 0, %v707_v27  ;;  %v3348_v60 = vld [vmem:[#allocation2 + $0x104] sm:$0x1]  ;;  %3913 = vst.msk [vmem:[#allocation3 + $0xc0] sm:$0xff] %vm3900_vm5, %v11848_v13 }
 0x299   :  { %v7710_v10 = vsel %vm10495_vm9, %v9695_v19, %v13615_v61  ;;  %v13616_v41 = vmov %v13615_v61  ;;  %v9543_v32 = vcombine.low %v4779_v22, %v4789_v24  ;;  %v9609_v8 = vcombine.low %v5696_v7, %v5699_v50  ;;  %709 = vst [vmem:[#allocation2 + $0x138] sm:$0x1] %v708_v11  ;;  %v814_v22 = vld [vmem:[#allocation2 + $0x134] sm:$0x1]  ;;  %v12039_v26 = vpop.permute.xlu0 %6269  ;;  %v10183_v13 = vld [vmem:[#allocation2 + $0x120] sm:$0xff]  }
 0x29a   :  { %v7711_v39 = vrot.slane %v13616_v41, 4  ;;  %v593_v15 = vmax.f32 %v477_v56, 0.0  ;;  %v469_v51 = vadd.f32 %v11796_v45, %v11636_v28  ;;  %v705_v19 = vsel %vm10467_vm4, 0, %v704_v14  ;;  %v4182_v41 = vpop.permute.xlu1 %4181 }
 0x29b   :  { %5278 = vrot.lane.b32.xlu0 %v9543_v32, %s10360_s25  ;;  %706 = vst [vmem:[#allocation2 + $0x12c] sm:$0x1] %v705_v19  ;;  %v480_v2 = vadd.f32 %v11796_v45, %v11642_v44  ;;  %v818_v7 = vsel %vm10472_vm6, 0, %v817_v49  ;;  %v9450_v4 = vrot.slane %v3346_v29, 9  ;;  %v3619_v27 = vrot.slane %v3347_v47, 5  ;;  %4266 = vst.msk [vmem:[#allocation3 + $0xc0] sm:$0xff] %vm4253_vm7, %v4182_v41 }
 0x29c   :  { %v7713_v3 = vsel %vm10495_vm9, %v7711_v39, %v7712_v52  ;;  %3844 = vrot.lane.b32.xlu1 %v9483_v33, %s10354_s0  ;;  %v9873_v28 = vpack.c.bf16 %v593_v15, %v593_v15  ;;  %v591_v62 = vmax.f32 %v469_v51, 0.0  ;;  %819 = vst [vmem:[#allocation2 + $0x140] sm:$0x1] %v818_v7  ;;  %v3622_v61 = vrot.slane %v3348_v60, 5  ;;  %v6424_v44 = vld [vmem:[#allocation2 + $0x108] sm:$0xf] }
 0x29d   :  { %v9727_v63 = vcombine.low %v7710_v10, %v7713_v3  ;;  %v472_v10 = vadd.f32 %v11796_v45, %v11656_v40  ;;  %v594_v39 = vmax.f32 %v480_v2, 0.0  ;;  %v3620_v52 = vsel %vm10495_vm9, %v9450_v4, %v3619_v27  ;;  %v12053_v32 = vpop.permute.xlu0 %4187  ;;  %v10185_v15 = vld [vmem:[#allocation2 + $0x120] sm:$0xff]   ;;  %v6425_v51 = vld [vmem:[#allocation2 + $0x10c] sm:$0xf] }
 0x29e   :  { %v3621_v14 = vrot.slane %v3619_v27, 4  ;;  %v815_v24 = vsel %vm10472_vm6, 0, %v814_v22  ;;  %v1433_v33 = vshrl.u32 %v9873_v28, 16  ;;  %v1436_v50 = vshll.u32 %v9873_v28, 16  ;;  %v12056_v19 = vpop.permute.xlu1 %5911 }
 0x29f   :  { %8011 = vst.msk [vmem:[#allocation3 + $0x88] sm:$0xff] %vm2164_vm2, %v9727_v63  ;;  %v9871_v56 = vpack.c.bf16 %v591_v62, %v591_v62  ;;  %v592_v49 = vmax.f32 %v472_v10, 0.0  ;;  %816 = vst [vmem:[#allocation2 + $0x134] sm:$0x1] %v815_v24  ;;  %5923 = vrot.lane.b32.xlu0 %v9609_v8, %s10359_s24  ;;  %v9874_v40 = vpack.c.bf16 %v594_v39, %v594_v39  ;;  %v6899_v47 = vshrl.u32 %v6424_v44, 16 }
 0x2a0   :  { %v3623_v29 = vsel %vm10495_vm9, %v3621_v14, %v3622_v61  ;;  %v6902_v23 = vshll.u32 %v6424_v44, 16  ;;  %v1435_v3 = vrot.slane %v1433_v33, 7  ;;  %6281 = vrot.lane.b32.xlu1 %v10183_v13, %s10355_s1  ;;  %v1845_v22 = vld [vmem:[#allocation2 + $0x138] sm:$0xf]  ;;  %v8051_v61 = vld [vmem:[#allocation3 + $0x80] sm:$0xff]  ;;  %v12061_v24 = vadd.f32 %v11796_v45, %v11781_v31 }
 0x2a1   :  { %v1416_v11 = vshrl.u32 %v9871_v56, 16  ;;  %v1419_v60 = vshll.u32 %v9871_v56, 16  ;;  %v9482_v63 = vcombine.low %v3620_v52, %v3623_v29  ;;  %v1441_v8 = vshrl.u32 %v9874_v40, 16  ;;  %v6426_v10 = vld [vmem:[#allocation2 + $0x110] sm:$0x1]  ;;  %v7353_v33 = vpop.permute.xlu0 %7352 }
 0x2a2   :  { %v1444_v2 = vshll.u32 %v9874_v40, 16  ;;  %v9872_v7 = vpack.c.bf16 %v592_v49, %v592_v49  ;;  %v6901_v4 = vrot.slane %v6899_v47, 4  ;;  %v1438_v27 = vor.u32 %v1436_v50, %v1435_v3  ;;  %v1838_v39 = vld [vmem:[#allocation2 + $0x12c] sm:$0xf]  ;;  %v7486_v47 = vld [vmem:[#allocation2 + $0x84] sm:$0xe] }
 0x2a3   :  { %v1439_v28 = vrot.slane %v1435_v3, 4  ;;  %v1418_v62 = vrot.slane %v1416_v11, 7  ;;  %v6904_v44 = vrot.slane %v6902_v23, 5  ;;  %v1443_v14 = vrot.slane %v1441_v8, 7  ;;  %3842 = vrot.lane.b32.xlu0 %v9482_v63, %s10354_s0  ;;  %v1849_v40 = vld [vmem:[#allocation2 + $0x140] sm:$0x1]  ;;  %v12068_v63 = vpop.permute.xlu1 %3830 }
 0x2a4   :  { %v1424_v13 = vshrl.u32 %v9872_v7, 16  ;;  %v1427_v52 = vshll.u32 %v9872_v7, 16  ;;  %v1846_v50 = vsel %vm10586_vm14, %v1438_v27, %v1845_v22  ;;  %4199 = vrot.lane.b32.xlu1 %v10185_v15, %s10358_s23  ;;  %7438 = vst.msk [vmem:[#allocation3 + $0xb0] sm:$0xff] %vm7426_vm13, %v7353_v33  ;;  %v6908_v45 = vshll.u32 %v6425_v51, 16  ;;  %v7488_v11 = vld [vmem:[#allocation2 + $0x8c] sm:$0x1] }
 0x2a5   :  { %v1421_v56 = vor.u32 %v1419_v60, %v1418_v62  ;;  %v1422_v49 = vrot.slane %v1418_v62, 4  ;;  %v6905_v29 = vor.u32 %v6904_v44, %v6901_v4  ;;  %1847 = vst [vmem:[#allocation2 + $0x138] sm:$0xf] %v1846_v50  ;;  %v1446_v23 = vor.u32 %v1444_v2, %v1443_v14 }
 0x2a6   :  { %v8052_v41 = vld [vmem:[#allocation3 + $0x88] sm:$0xff]  ;;  %v1448_v3 = vrot.slane %v1443_v14, 4  ;;  %v1426_v31 = vrot.slane %v1424_v13, 7  ;;  %v1842_v22 = vld [vmem:[#allocation2 + $0x134] sm:$0x1]  ;;  %v6912_v7 = vshrl.u32 %v6425_v51, 16 }
 0x2a7   :  { %9769 = vmatprep.mubr.msk.bf16.mxu1 %vm2164_vm2, %v8052_v41  ;;  %v1839_v60 = vsel %vm10586_vm14, %v1421_v56, %v1838_v39  ;;  %v6906_v8 = vrot.slane %v6905_v29, 4  ;;  %v6918_v15 = vshll.u32 %v6426_v10, 16  ;;  %v1447_v4 = vsel %vm10593_vm15, %v1439_v28, %v1446_v23  ;;  %v6422_v13 = vld [vmem:[#allocation2 + $0x100] sm:$0xf]  ;;  %v6423_v56 = vld [vmem:[#allocation2 + $0x104] sm:$0x1] }
 0x2a8   :  { %8371 = vmatmul.mubr.bf16.gmra.mrb[28].mxu1 %v8051_v61  ;;  %1840 = vst [vmem:[#allocation2 + $0x12c] sm:$0xf] %v1839_v60  ;;  %v1850_v2 = vsel %vm10467_vm4, %v1448_v3, %v1849_v40  ;;  %v1429_v27 = vor.u32 %v1427_v52, %v1426_v31  ;;  %v1431_v62 = vrot.slane %v1426_v31, 4  ;;  %v6421_v61 = vld [vmem:[#allocation2 + $0xfc] sm:$0xf]  ;;  %v6910_v44 = vrot.slane %v6908_v45, 5 }
 0x2a9   :  { %1848 = vst.msk [vmem:[#allocation2 + $0x13c] sm:$0xf] %vm611_vm1, %v1447_v4  ;;  %1851 = vst [vmem:[#allocation2 + $0x140] sm:$0x1] %v1850_v2  ;;  %v6914_v41 = vrot.slane %v6912_v7, 4  ;;  %v6920_v39 = vrot.slane %v6918_v15, 5  ;;  %v7355_v7 = vpop.permute.xlu1 %7354 }
 0x2aa   :  { %v9696_v14 = vrot.slane %v7486_v47, 9  ;;  %v1430_v51 = vsel %vm10593_vm15, %v1422_v49, %v1429_v27  ;;  %v1843_v28 = vsel %vm10467_vm4, %v1431_v62, %v1842_v22  ;;  %v13617_v10 = vld [vmem:[#allocation20_spill] sm:$0xff]  ;;  %v7719_v52 = vrot.slane %v7488_v11, 5  ;;  %v4343_v3 = vld [vmem:[#allocation2 + $0x108] sm:$0xf] }
 0x2ab   :  { %v13618_v33 = vrot.slane %v13617_v10, 5  ;;  %1841 = vst.msk [vmem:[#allocation2 + $0x130] sm:$0xf] %vm611_vm1, %v1430_v51  ;;  %1844 = vst [vmem:[#allocation2 + $0x134] sm:$0x1] %v1843_v28  ;;  %v6911_v40 = vsel %vm10511_vm12, %v6906_v8, %v6910_v44  ;;  %v6915_v29 = vor.u32 %v6914_v41, %v6910_v44  ;;  %v6875_v23 = vshrl.u32 %v6421_v61, 16  ;;  %v5271_v44 = vpop.permute.xlu0 %5270 }
 0x2ac   :  { %v6878_v45 = vshll.u32 %v6421_v61, 16  ;;  %v6884_v11 = vshll.u32 %v6422_v13, 16  ;;  %v6888_v60 = vshrl.u32 %v6422_v13, 16  ;;  %v4344_v22 = vld [vmem:[#allocation2 + $0x10c] sm:$0xf]  ;;  %v6894_v8 = vshll.u32 %v6423_v56, 16 }
 0x2ad   :  { %v7718_v50 = vrot.slane %v13618_v33, 4  ;;  %v13619_v47 = vmov %v13618_v33  ;;  %v6916_v15 = vrot.slane %v6915_v29, 4  ;;  %v6877_v2 = vrot.slane %v6875_v23, 4  ;;  %v4345_v27 = vld [vmem:[#allocation2 + $0x110] sm:$0x1]  ;;  %5355 = vst.msk [vmem:[#allocation3 + $0xc0] sm:$0xff] %vm5342_vm8, %v5271_v44 }
 0x2ae   :  { %v7717_v49 = vsel %vm10495_vm9, %v9696_v14, %v13619_v47  ;;  %v4340_v62 = vld [vmem:[#allocation2 + $0xfc] sm:$0xf]  ;;  %v6880_v41 = vrot.slane %v6878_v45, 5  ;;  %v6886_v51 = vrot.slane %v6884_v11, 5  ;;  %v6890_v14 = vrot.slane %v6888_v60, 4  ;;  %5996 = vst.msk [vmem:[#allocation3 + $0xc0] sm:$0xff] %vm5983_vm10, %v12056_v19 }
 0x2af   :  { %v7720_v31 = vsel %vm10495_vm9, %v7718_v50, %v7719_v52  ;;  %v4839_v28 = vshrl.u32 %v4343_v3, 16  ;;  %v6921_v61 = vsel %vm10511_vm12, %v6916_v15, %v6920_v39  ;;  %v6896_v13 = vrot.slane %v6894_v8, 5  ;;  %v12098_v50 = vpop.f32.mrb[56].mxu0  ;;  %6350 = vst.msk [vmem:[#allocation3 + $0xc0] sm:$0xff] %vm6337_vm11, %v11870_v21  ;;  %v4341_v45 = vld [vmem:[#allocation2 + $0x100] sm:$0xf]  ;;  %v5273_v8 = vpop.permute.xlu1 %5272 }
 0x2b0   :  { %v9728_v4 = vcombine.low %v7717_v49, %v7720_v31  ;;  %v4842_v10 = vshll.u32 %v4343_v3, 16  ;;  %v4848_v33 = vshll.u32 %v4344_v22, 16  ;;  %v12100_v52 = vld [vmem:[#allocation2 + $0x13c] sm:$0xf]  ;;  %v9673_v56 = vcombine.low %v6911_v40, %v6921_v61  ;;  %v4342_v11 = vld [vmem:[#allocation2 + $0x104] sm:$0x1] }
 0x2b1   :  { %13620 = vst [vmem:[#allocation12_spill] sm:$0xff] %v12100_v52  ;;  %v6881_v29 = vor.u32 %v6880_v41, %v6877_v2  ;;  %v6891_v47 = vor.u32 %v6890_v14, %v6886_v51  ;;  %v4841_v49 = vrot.slane %v4839_v28, 4  ;;  %v4852_v3 = vshrl.u32 %v4344_v22, 16  ;;  %v2254_v60 = vld [vmem:[#allocation2 + $0xfc] sm:$0xf]  ;;  %7439 = vst.msk [vmem:[#allocation3 + $0xc0] sm:$0xff] %vm7426_vm13, %v7355_v7 }
 0x2b2   :  { %8012 = vst.msk [vmem:[#allocation3 + $0x98] sm:$0xff] %vm2164_vm2, %v9728_v4  ;;  %v4844_v23 = vrot.slane %v4842_v10, 5  ;;  %v4850_v31 = vrot.slane %v4848_v33, 5  ;;  %v12106_v19 = vld [vmem:[#allocation2 + $0x130] sm:$0xf]  ;;  %7366 = vrot.lane.b32.xlu0 %v9673_v56, %s10356_s19  ;;  %v4858_v4 = vshll.u32 %v4345_v27, 16  ;;  %v3187_v33 = vpop.permute.xlu0 %3186 }
 0x2b3   :  { %13621 = vst [vmem:[#allocation11_spill] sm:$0xff] %v12106_v19  ;;  %v6882_v40 = vrot.slane %v6881_v29, 4  ;;  %v6892_v15 = vrot.slane %v6891_v47, 4  ;;  %v4815_v2 = vshrl.u32 %v4340_v62, 16  ;;  %v4854_v41 = vrot.slane %v4852_v3, 4  ;;  %3270 = vst.msk [vmem:[#allocation3 + $0xd0] sm:$0xff] %vm3256_vm3, %v3187_v33 }
 0x2b4   :  { %v4845_v44 = vor.u32 %v4844_v23, %v4841_v49  ;;  %v4818_v14 = vshll.u32 %v4340_v62, 16  ;;  %v4860_v28 = vrot.slane %v4858_v4, 5  ;;  %v2255_v10 = vld [vmem:[#allocation2 + $0x100] sm:$0xf]  ;;  %v2256_v39 = vld [vmem:[#allocation2 + $0x104] sm:$0x1] }
 0x2b5   :  { %v6887_v22 = vsel %vm10511_vm12, %v6882_v40, %v6886_v51  ;;  %v6897_v7 = vsel %vm10511_vm12, %v6892_v15, %v6896_v13  ;;  %v4817_v61 = vrot.slane %v4815_v2, 4  ;;  %v4855_v27 = vor.u32 %v4854_v41, %v4850_v31  ;;  %3914 = vst.msk [vmem:[#allocation3 + $0xd0] sm:$0xff] %vm3900_vm5, %v12068_v63  ;;  %v12117_v13 = vpop.f32.mrb[57].mxu0  ;;  %v2257_v63 = vld [vmem:[#allocation2 + $0x108] sm:$0xf] }
 0x2b6   :  { %v9672_v56 = vcombine.low %v6887_v22, %v6897_v7  ;;  %v4846_v29 = vrot.slane %v4845_v44, 4  ;;  %v4820_v47 = vrot.slane %v4818_v14, 5  ;;  %v4824_v62 = vshll.u32 %v4341_v45, 16  ;;  %4267 = vst.msk [vmem:[#allocation3 + $0xd0] sm:$0xff] %vm4253_vm7, %v11887_v58  ;;  %v6268_v14 = vpop.permute.xlu1 %6267  ;;  %v12126_v22 = vpop.permute.xlu0 %5917  ;;  %v3360_v17 = vld [vmem:[#allocation2 + $0x134] sm:$0x1] }
 0x2b7   :  { %v4828_v23 = vshrl.u32 %v4341_v45, 16  ;;  %v4834_v3 = vshll.u32 %v4342_v11, 16  ;;  %v2753_v51 = vshrl.u32 %v2254_v60, 16  ;;  %v4856_v15 = vrot.slane %v4855_v27, 4  ;;  %5356 = vst.msk [vmem:[#allocation3 + $0xd0] sm:$0xff] %vm5342_vm8, %v5273_v8 }
 0x2b8   :  { %7364 = vrot.lane.b32.xlu1 %v9672_v56, %s10356_s19  ;;  %v4851_v40 = vsel %vm10511_vm12, %v4846_v29, %v4850_v31  ;;  %v4821_v4 = vor.u32 %v4820_v47, %v4817_v61  ;;  %v2756_v2 = vshll.u32 %v2254_v60, 16  ;;  %v4826_v45 = vrot.slane %v4824_v62, 5  ;;  %5997 = vst.msk [vmem:[#allocation3 + $0xd0] sm:$0xff] %vm5983_vm10, %v11992_v25  ;;  %v2258_v27 = vld [vmem:[#allocation2 + $0x10c] sm:$0xf]  ;;  %v13658_v6 = vld [vmem:[#allocation12_spill] sm:$0xff] }
 0x2b9   :  { %v8054_v49 = vld [vmem:[#allocation3 + $0x98] sm:$0xff]  ;;  %v4830_v11 = vrot.slane %v4828_v23, 4  ;;  %v4836_v44 = vrot.slane %v4834_v3, 5  ;;  %v2755_v41 = vrot.slane %v2753_v51, 4  ;;  %v4861_v31 = vsel %vm10511_vm12, %v4856_v15, %v4860_v28  ;;  %6351 = vst.msk [vmem:[#allocation3 + $0xd0] sm:$0xff] %vm6337_vm11, %v6268_v14 }
 0x2ba   :  { %9770 = vmatprep.mubr.msk.bf16.mxu1 %vm2164_vm2, %v8054_v49  ;;  %v4822_v7 = vrot.slane %v4821_v4, 4  ;;  %v2758_v61 = vrot.slane %v2756_v2, 5  ;;  %v2762_v60 = vshll.u32 %v2255_v10, 16  ;;  %v9546_v58 = vcombine.low %v4851_v40, %v4861_v31  ;;  %v2259_v49 = vld [vmem:[#allocation2 + $0x110] sm:$0x1] }
 0x2bb   :  { %8379 = vmatmul.mubr.bf16.gmra.mrb[32].mxu1 %v8053_v42  ;;  %v4831_v33 = vor.u32 %v4830_v11, %v4826_v45  ;;  %v2766_v56 = vshrl.u32 %v2255_v10, 16  ;;  %v2772_v29 = vshll.u32 %v2256_v39, 16  ;;  %v2777_v28 = vshrl.u32 %v2257_v63, 16  ;;  %v5438_v62 = vld [vmem:[#allocation2 + $0x120] sm:$0xe]  ;;  %v12136_v10 = vpop.permute.xlu0 %6273 }
 0x2bc   :  { %v4827_v42 = vsel %vm10511_vm12, %v4822_v7, %v4826_v45  ;;  %v2759_v8 = vor.u32 %v2758_v61, %v2755_v41  ;;  %v2764_v47 = vrot.slane %v2762_v60, 5  ;;  %5284 = vrot.lane.b32.xlu0 %v9546_v58, %s10360_s25  ;;  %v2780_v51 = vshll.u32 %v2257_v63, 16  ;;  %v3355_v40 = vld [vmem:[#allocation2 + $0x120] sm:$0xe]  ;;  %v5439_v11 = vld [vmem:[#allocation2 + $0x124] sm:$0xf]  ;;  %v3189_v60 = vpop.permute.xlu1 %3188 }
 0x2bd   :  { %v4832_v23 = vrot.slane %v4831_v33, 4  ;;  %v2768_v3 = vrot.slane %v2766_v56, 4  ;;  %v2774_v25 = vrot.slane %v2772_v29, 5  ;;  %v2779_v15 = vrot.slane %v2777_v28, 4  ;;  %v10186_v41 = vld [vmem:[#allocation2 + $0x114] sm:$0xff]   ;;  %3271 = vst.msk [vmem:[#allocation3 + $0xe0] sm:$0xff] %vm3256_vm3, %v3189_v60 }
 0x2be   :  { %v2760_v39 = vrot.slane %v2759_v8, 4  ;;  %v2786_v4 = vshll.u32 %v2258_v27, 16  ;;  %v2790_v2 = vshrl.u32 %v2258_v27, 16  ;;  %v2782_v31 = vrot.slane %v2780_v51, 5  ;;  %v5440_v61 = vld [vmem:[#allocation2 + $0x128] sm:$0x1] }
 0x2bf   :  { %v4837_v45 = vsel %vm10511_vm12, %v4832_v23, %v4836_v44  ;;  %v2769_v14 = vor.u32 %v2768_v3, %v2764_v47  ;;  %v2796_v7 = vshll.u32 %v2259_v49, 16  ;;  %v3356_v29 = vld [vmem:[#allocation2 + $0x124] sm:$0xf]  ;;  %v3357_v8 = vld [vmem:[#allocation2 + $0x128] sm:$0x1]  ;;  %v9580_v23 = vrot.slane %v5438_v62, 9 }
 0x2c0   :  { %v9545_v58 = vcombine.low %v4827_v42, %v4837_v45  ;;  %v2765_v63 = vsel %vm10511_vm12, %v2760_v39, %v2764_v47  ;;  %v2788_v33 = vrot.slane %v2786_v4, 5  ;;  %v2792_v56 = vrot.slane %v2790_v2, 4  ;;  %6279 = vrot.lane.b32.xlu0 %v10186_v41, %s10355_s1  ;;  %v5435_v3 = vld [vmem:[#allocation2 + $0x114] sm:$0xe]  ;;  %3915 = vst.msk [vmem:[#allocation3 + $0xe0] sm:$0xff] %vm3900_vm5, %v12014_v43  ;;  %v4190_v42 = vpop.permute.xlu0 %4189  ;;  %v12146_v49 = vpop.f32.mrb[58].mxu0 }
 0x2c1   :  { %v2770_v27 = vrot.slane %v2769_v14, 4  ;;  %v2783_v44 = vor.u32 %v2782_v31, %v2779_v15  ;;  %v2798_v28 = vrot.slane %v2796_v7, 5  ;;  %v5716_v51 = vrot.slane %v5439_v11, 5  ;;  %v5436_v2 = vld [vmem:[#allocation2 + $0x118] sm:$0xf]  ;;  %4270 = vst.msk [vmem:[#allocation3 + $0x100] sm:$0xff] %vm4253_vm7, %v4190_v42  ;;  %v4186_v31 = vpop.permute.xlu1 %4185 }
 0x2c2   :  { %5282 = vrot.lane.b32.xlu1 %v9545_v58, %s10360_s25  ;;  %v2793_v47 = vor.u32 %v2792_v56, %v2788_v33  ;;  %v5719_v39 = vrot.slane %v5440_v61, 5  ;;  %v9453_v4 = vrot.slane %v3355_v40, 9  ;;  %v12150_v45 = vpop.f32.mrb[59].mxu0  ;;  %v3640_v41 = vrot.slane %v3356_v29, 5  ;;  %v5437_v14 = vld [vmem:[#allocation2 + $0x11c] sm:$0x1] }
 0x2c3   :  { %v2775_v62 = vsel %vm10511_vm12, %v2770_v27, %v2774_v25  ;;  %v2784_v15 = vrot.slane %v2783_v44, 4  ;;  %v3643_v43 = vrot.slane %v3357_v8, 5  ;;  %v5717_v11 = vsel %vm10495_vm9, %v9580_v23, %v5716_v51  ;;  %v7489_v40 = vld [vmem:[#allocation2 + $0x90] sm:$0xe]  ;;  %4268 = vst.msk [vmem:[#allocation3 + $0xe0] sm:$0xff] %vm4253_vm7, %v4186_v31 }
 0x2c4   :  { %v9418_v7 = vcombine.low %v2765_v63, %v2775_v62  ;;  %v2794_v60 = vrot.slane %v2793_v47, 4  ;;  %v5718_v61 = vrot.slane %v5716_v51, 4  ;;  %v3641_v25 = vsel %vm10495_vm9, %v9453_v4, %v3640_v41  ;;  %v7491_v23 = vld [vmem:[#allocation2 + $0x98] sm:$0x1]  ;;  %v713_v42 = vld [vmem:[#allocation2 + $0x150] sm:$0x1] }
 0x2c5   :  { %v2789_v58 = vsel %vm10511_vm12, %v2784_v15, %v2788_v33  ;;  %v3642_v56 = vrot.slane %v3640_v41, 4  ;;  %v9579_v29 = vrot.slane %v5435_v3, 9  ;;  %v5709_v27 = vrot.slane %v5436_v2, 5  ;;  %v710_v62 = vld [vmem:[#allocation2 + $0x144] sm:$0x1] }
 0x2c6   :  { %3198 = vrot.lane.b32.xlu1 %v9418_v7, %s10357_s20  ;;  %v2799_v63 = vsel %vm10511_vm12, %v2794_v60, %v2798_v28  ;;  %v5720_v8 = vsel %vm10495_vm9, %v5718_v61, %v5719_v39  ;;  %v5712_v44 = vrot.slane %v5437_v14, 5  ;;  %v9697_v4 = vrot.slane %v7489_v40, 9  ;;  %v13622_v28 = vld [vmem:[#allocation19_spill] sm:$0xff]  ;;  %v3352_v61 = vld [vmem:[#allocation2 + $0x114] sm:$0xe] }
 0x2c7   :  { %v9419_v47 = vcombine.low %v2789_v58, %v2799_v63  ;;  %v9612_v51 = vcombine.low %v5717_v11, %v5720_v8  ;;  %v3644_v33 = vsel %vm10495_vm9, %v3642_v56, %v3643_v43  ;;  %v5710_v15 = vsel %vm10495_vm9, %v9579_v29, %v5709_v27  ;;  %v823_v39 = vld [vmem:[#allocation2 + $0x158] sm:$0x1]  ;;  %v12186_v58 = vld [vmem:[%s13524_s2] ss:$0 sm:$0xff]  ;;  %v3354_v63 = vld [vmem:[#allocation2 + $0x11c] sm:$0x1] }
 0x2c8   :  { %v9485_v3 = vcombine.low %v3641_v25, %v3644_v33  ;;  %v5711_v41 = vrot.slane %v5709_v27, 4  ;;  %v13623_v31 = vrot.slane %v13622_v28, 5  ;;  %v7726_v60 = vrot.slane %v7491_v23, 5  ;;  %v3353_v29 = vld [vmem:[#allocation2 + $0x118] sm:$0xf] }
 0x2c9   :  { %3200 = vrot.lane.b32.xlu0 %v9419_v47, %s10357_s20  ;;  %v597_v43 = vmax.f32 %v12061_v24, 0.0  ;;  %v714_v11 = vsel %vm10467_vm4, 0, %v713_v42  ;;  %v485_v25 = vadd.f32 %v12186_v58, %v11786_v53  ;;  %v711_v24 = vsel %vm10467_vm4, 0, %v710_v62  ;;  %v10187_v8 = vld [vmem:[#allocation2 + $0x114] sm:$0xff]   ;;  %v820_v47 = vld [vmem:[#allocation2 + $0x14c] sm:$0x1] }
 0x2ca   :  { %v7725_v7 = vrot.slane %v13623_v31, 4  ;;  %v13624_v2 = vmov %v13623_v31  ;;  %5929 = vrot.lane.b32.xlu1 %v9612_v51, %s10359_s24  ;;  %v5713_v40 = vsel %vm10495_vm9, %v5711_v41, %v5712_v44  ;;  %715 = vst [vmem:[#allocation2 + $0x150] sm:$0x1] %v714_v11  ;;  %v496_v56 = vadd.f32 %v12186_v58, %v11823_v0  ;;  %712 = vst [vmem:[#allocation2 + $0x144] sm:$0x1] %v711_v24  ;;  %v10202_v0 = vld [vmem:[#allocation2 + $0xf0] sm:$0xff]  }
 0x2cb   :  { %v7724_v14 = vsel %vm10495_vm9, %v9697_v4, %v13624_v2  ;;  %v9611_v27 = vcombine.low %v5710_v15, %v5713_v40  ;;  %v9877_v23 = vpack.c.bf16 %v597_v43, %v597_v43  ;;  %v824_v42 = vsel %vm10472_vm6, 0, %v823_v39  ;;  %v12198_v62 = vld [vmem:[#allocation2 + $0x120] sm:$0xf]  ;;  %v10189_v2 = vld [vmem:[#allocation2 + $0x138] sm:$0xff]   ;;  %2183 = vst.msk [vmem:[#allocation3 + $0x120] sm:$0xff] %vm2164_vm2, %v10202_v0  ;;  %v10203_v11 = vld [vmem:[#allocation2 + $0xe4] sm:$0xff]  }
 0x2cc   :  { %v7727_v44 = vsel %vm10495_vm9, %v7725_v7, %v7726_v60  ;;  %v595_v51 = vmax.f32 %v485_v25, 0.0  ;;  %v598_v33 = vmax.f32 %v496_v56, 0.0  ;;  %825 = vst [vmem:[#allocation2 + $0x158] sm:$0x1] %v824_v42  ;;  %v9452_v4 = vrot.slane %v3352_v61, 9  ;;  %v12201_v7 = vpop.permute.xlu1 %5915  ;;  %2182 = vst.msk [vmem:[#allocation3 + $0x110] sm:$0xff] %vm2164_vm2, %v10203_v11 }
 0x2cd   :  { %v9729_v53 = vcombine.low %v7724_v14, %v7727_v44  ;;  %4197 = vrot.lane.b32.xlu0 %v10187_v8, %s10358_s23  ;;  %v1467_v15 = vshrl.u32 %v9877_v23, 16  ;;  %v1470_v41 = vshll.u32 %v9877_v23, 16  ;;  %v3633_v28 = vrot.slane %v3353_v29, 5  ;;  %v6431_v8 = vld [vmem:[#allocation2 + $0x124] sm:$0xf]  ;;  %v10191_v0 = vld [vmem:[#allocation2 + $0x138] sm:$0xff]  }
 0x2ce   :  { %v3636_v31 = vrot.slane %v3354_v63, 5  ;;  %3848 = vrot.lane.b32.xlu1 %v9485_v3, %s10354_s0  ;;  %v9875_v39 = vpack.c.bf16 %v595_v51, %v595_v51  ;;  %v9878_v14 = vpack.c.bf16 %v598_v33, %v598_v33  ;;  %v488_v60 = vadd.f32 %v12186_v58, %v11826_v38  ;;  %v7357_v38 = vpop.permute.xlu0 %7356 }
 0x2cf   :  { %8013 = vst.msk [vmem:[#allocation3 + $0xa8] sm:$0xff] %vm2164_vm2, %v9729_v53  ;;  %v821_v43 = vsel %vm10472_vm6, 0, %v820_v47  ;;  %v1469_v61 = vrot.slane %v1467_v15, 7  ;;  %v3634_v40 = vsel %vm10495_vm9, %v9452_v4, %v3633_v28  ;;  %v3635_v25 = vrot.slane %v3633_v28, 4  ;;  %v8055_v15 = vld [vmem:[#allocation3 + $0xa0] sm:$0xff] }
 0x2d0   :  { %822 = vst [vmem:[#allocation2 + $0x14c] sm:$0x1] %v821_v43  ;;  %v6947_v3 = vshrl.u32 %v12198_v62, 16  ;;  %v1450_v24 = vshrl.u32 %v9875_v39, 16  ;;  %v1453_v56 = vshll.u32 %v9875_v39, 16  ;;  %v1475_v29 = vshrl.u32 %v9878_v14, 16 }
 0x2d1   :  { %v1478_v63 = vshll.u32 %v9878_v14, 16  ;;  %5927 = vrot.lane.b32.xlu0 %v9611_v27, %s10359_s24  ;;  %v1472_v44 = vor.u32 %v1470_v41, %v1469_v61  ;;  %v1473_v23 = vrot.slane %v1469_v61, 4  ;;  %v1859_v42 = vld [vmem:[#allocation2 + $0x150] sm:$0xf]  ;;  %v3637_v47 = vsel %vm10495_vm9, %v3635_v25, %v3636_v31  ;;  %7440 = vst.msk [vmem:[#allocation3 + $0xd0] sm:$0xff] %vm7426_vm13, %v7357_v38 }
 0x2d2   :  { %v596_v53 = vmax.f32 %v488_v60, 0.0  ;;  %v12218_v51 = vrot.slane %v1450_v24, 7  ;;  %6285 = vrot.lane.b32.xlu1 %v10189_v2, %s10355_s1  ;;  %v1477_v33 = vrot.slane %v1475_v29, 7  ;;  %v9484_v4 = vcombine.low %v3634_v40, %v3637_v47  ;;  %v6432_v28 = vld [vmem:[#allocation2 + $0x128] sm:$0x1]  ;;  %v3835_v2 = vpop.permute.xlu1 %3834 }
 0x2d3   :  { %v6949_v39 = vrot.slane %v6947_v3, 4  ;;  %v7492_v27 = vld [vmem:[#allocation2 + $0x9c] sm:$0xe]  ;;  %v1860_v41 = vsel %vm10586_vm14, %v1472_v44, %v1859_v42  ;;  %v1852_v14 = vld [vmem:[#allocation2 + $0x144] sm:$0xf]  ;;  %v6950_v60 = vshll.u32 %v12198_v62, 16 }
 0x2d4   :  { %v1863_v43 = vld [vmem:[#allocation2 + $0x158] sm:$0x1]  ;;  %v9876_v31 = vpack.c.bf16 %v596_v53, %v596_v53  ;;  %v6956_v11 = vshll.u32 %v6431_v8, 16  ;;  %v7494_v61 = vld [vmem:[#allocation2 + $0xa4] sm:$0x1]  ;;  %v1455_v40 = vor.u32 %v1453_v56, %v12218_v51  ;;  %v1456_v24 = vrot.slane %v12218_v51, 4 }
 0x2d5   :  { %v12224_v25 = vld [vmem:[#allocation2 + $0x114] sm:$0xf]  ;;  %1861 = vst [vmem:[#allocation2 + $0x150] sm:$0xf] %v1860_v41  ;;  %v1480_v3 = vor.u32 %v1478_v63, %v1477_v33  ;;  %v1482_v29 = vrot.slane %v1477_v33, 4  ;;  %3846 = vrot.lane.b32.xlu0 %v9484_v4, %s10354_s0  ;;  %v6952_v47 = vrot.slane %v6950_v60, 5  ;;  %v5275_v33 = vpop.permute.xlu0 %5274 }
 0x2d6   :  { %v8056_v38 = vld [vmem:[#allocation3 + $0xa8] sm:$0xff]  ;;  %v1458_v44 = vshrl.u32 %v9876_v31, 16  ;;  %v1461_v42 = vshll.u32 %v9876_v31, 16  ;;  %v12229_v53 = vrot.slane %v6956_v11, 5  ;;  %v1853_v62 = vsel %vm10586_vm14, %v1455_v40, %v1852_v14  ;;  %4203 = vrot.lane.b32.xlu1 %v10191_v0, %s10358_s23  ;;  %5357 = vst.msk [vmem:[#allocation3 + $0xe0] sm:$0xff] %vm5342_vm8, %v5275_v33 }
 0x2d7   :  { %9771 = vmatprep.mubr.msk.bf16.mxu1 %vm2164_vm2, %v8056_v38  ;;  %v1481_v56 = vsel %vm10593_vm15, %v1473_v23, %v1480_v3  ;;  %v1864_v63 = vsel %vm10467_vm4, %v1482_v29, %v1863_v43  ;;  %v6960_v51 = vshrl.u32 %v6431_v8, 16  ;;  %1854 = vst [vmem:[#allocation2 + $0x144] sm:$0xf] %v1853_v62  ;;  %v6953_v41 = vor.u32 %v6952_v47, %v6949_v39  ;;  %v1856_v14 = vld [vmem:[#allocation2 + $0x14c] sm:$0x1] }
 0x2d8   :  { %1862 = vst.msk [vmem:[#allocation2 + $0x154] sm:$0xf] %vm611_vm1, %v1481_v56  ;;  %1865 = vst [vmem:[#allocation2 + $0x158] sm:$0x1] %v1864_v63  ;;  %v1460_v4 = vrot.slane %v1458_v44, 7  ;;  %8387 = vmatmul.mubr.bf16.gmra.mrb[36].mxu1 %v8055_v15  ;;  %v6966_v31 = vshll.u32 %v6432_v28, 16 }
 0x2d9   :  { %v9698_v60 = vrot.slane %v7492_v27, 9  ;;  %v6962_v23 = vrot.slane %v6960_v51, 4  ;;  %v13625_v11 = vrot.slane %v11279_v48, 5  ;;  %v7733_v40 = vrot.slane %v7494_v61, 5  ;;  %v4349_v0 = vld [vmem:[#allocation2 + $0x120] sm:$0xf]  ;;  %v12248_v27 = vpop.permute.xlu1 %4191  ;;  %v3191_v56 = vpop.permute.xlu0 %3190 }
 0x2da   :  { %v6923_v8 = vshrl.u32 %v12224_v25, 16  ;;  %5998 = vst.msk [vmem:[#allocation3 + $0xe0] sm:$0xff] %vm5983_vm10, %v12201_v7  ;;  %v1463_v3 = vor.u32 %v1461_v42, %v1460_v4  ;;  %v1465_v29 = vrot.slane %v1460_v4, 4  ;;  %v6954_v15 = vrot.slane %v6953_v41, 4  ;;  %v6428_v28 = vld [vmem:[#allocation2 + $0x118] sm:$0xf] }
 0x2db   :  { %v7732_v43 = vrot.slane %v13625_v11, 4  ;;  %v6968_v39 = vrot.slane %v6966_v31, 5  ;;  %6352 = vst.msk [vmem:[#allocation3 + $0xe0] sm:$0xff] %vm6337_vm11, %v12039_v26  ;;  %v6963_v38 = vor.u32 %v6962_v23, %v12229_v53  ;;  %v13626_v61 = vmov %v13625_v11  ;;  %v6429_v42 = vld [vmem:[#allocation2 + $0x11c] sm:$0x1] }
 0x2dc   :  { %v7731_v44 = vsel %vm10495_vm9, %v9698_v60, %v13626_v61  ;;  %v6925_v47 = vrot.slane %v6923_v8, 4  ;;  %v4350_v62 = vld [vmem:[#allocation2 + $0x124] sm:$0xf]  ;;  %v1464_v63 = vsel %vm10593_vm15, %v1456_v24, %v1463_v3  ;;  %v1857_v26 = vsel %vm10467_vm4, %v1465_v29, %v1856_v14  ;;  %3272 = vst.msk [vmem:[#allocation3 + $0xf0] sm:$0xff] %vm3256_vm3, %v3191_v56  ;;  %v4351_v60 = vld [vmem:[#allocation2 + $0x128] sm:$0x1] }
 0x2dd   :  { %v7734_v7 = vsel %vm10495_vm9, %v7732_v43, %v7733_v40  ;;  %v6959_v48 = vsel %vm10511_vm12, %v6954_v15, %v12229_v53  ;;  %1855 = vst.msk [vmem:[#allocation2 + $0x148] sm:$0xf] %vm611_vm1, %v1464_v63  ;;  %1858 = vst [vmem:[#allocation2 + $0x14c] sm:$0x1] %v1857_v26  ;;  %v6964_v33 = vrot.slane %v6963_v38, 4  ;;  %v6926_v4 = vshll.u32 %v12224_v25, 16  ;;  %v7359_v61 = vpop.permute.xlu1 %7358 }
 0x2de   :  { %v9730_v51 = vcombine.low %v7731_v44, %v7734_v7  ;;  %v6932_v41 = vshll.u32 %v6428_v28, 16  ;;  %v6936_v31 = vshrl.u32 %v6428_v28, 16  ;;  %v4346_v24 = vld [vmem:[#allocation2 + $0x114] sm:$0xf]  ;;  %3916 = vst.msk [vmem:[#allocation3 + $0xf0] sm:$0xff] %vm3900_vm5, %v3835_v2  ;;  %v6942_v14 = vshll.u32 %v6429_v42, 16  ;;  %v12303_v2 = vpop.permute.xlu0 %5919 }
 0x2df   :  { %v4887_v23 = vshrl.u32 %v4349_v0, 16  ;;  %v4890_v53 = vshll.u32 %v4349_v0, 16  ;;  %v4896_v11 = vshll.u32 %v4350_v62, 16  ;;  %v4347_v43 = vld [vmem:[#allocation2 + $0x118] sm:$0xf]  ;;  %4269 = vst.msk [vmem:[#allocation3 + $0xf0] sm:$0xff] %vm4253_vm7, %v12053_v32  ;;  %v6969_v25 = vsel %vm10511_vm12, %v6964_v33, %v6968_v39 }
 0x2e0   :  { %8014 = vst.msk [vmem:[#allocation3 + $0xb8] sm:$0xff] %vm2164_vm2, %v9730_v51  ;;  %v12271_v40 = vld [vmem:[#allocation2 + $0x154] sm:$0xf]  ;;  %v6928_v8 = vrot.slane %v6926_v4, 5  ;;  %v6934_v3 = vrot.slane %v6932_v41, 5  ;;  %v6938_v29 = vrot.slane %v6936_v31, 4  ;;  %v9675_v15 = vcombine.low %v6959_v48, %v6969_v25 }
 0x2e1   :  { %13627 = vst [vmem:[#allocation14_spill] sm:$0xff] %v12271_v40  ;;  %v6944_v28 = vrot.slane %v6942_v14, 5  ;;  %v4889_v38 = vrot.slane %v4887_v23, 4  ;;  %v4892_v7 = vrot.slane %v4890_v53, 5  ;;  %v4898_v42 = vrot.slane %v4896_v11, 5  ;;  %7441 = vst.msk [vmem:[#allocation3 + $0xe0] sm:$0xff] %vm7426_vm13, %v7359_v61 }
 0x2e2   :  { %v6929_v0 = vor.u32 %v6928_v8, %v6925_v47  ;;  %v6939_v44 = vor.u32 %v6938_v29, %v6934_v3  ;;  %7370 = vrot.lane.b32.xlu0 %v9675_v15, %s10356_s19  ;;  %v4900_v32 = vshrl.u32 %v4350_v62, 16  ;;  %v4906_v56 = vshll.u32 %v4351_v60, 16  ;;  %v4348_v39 = vld [vmem:[#allocation2 + $0x11c] sm:$0x1]  ;;  %v2260_v51 = vld [vmem:[#allocation2 + $0x114] sm:$0xf] }
 0x2e3   :  { %v4863_v63 = vshrl.u32 %v4346_v24, 16  ;;  %v4866_v26 = vshll.u32 %v4346_v24, 16  ;;  %v4893_v48 = vor.u32 %v4892_v7, %v4889_v38  ;;  %v4872_v41 = vshll.u32 %v4347_v43, 16  ;;  %v2261_v31 = vld [vmem:[#allocation2 + $0x118] sm:$0xf]  ;;  %v8057_v14 = vld [vmem:[#allocation3 + $0xb0] sm:$0xff] }
 0x2e4   :  { %v6930_v33 = vrot.slane %v6929_v0, 4  ;;  %v6940_v4 = vrot.slane %v6939_v44, 4  ;;  %v12278_v47 = vld [vmem:[#allocation2 + $0x148] sm:$0xf]  ;;  %v4902_v23 = vrot.slane %v4900_v32, 4  ;;  %v4908_v53 = vrot.slane %v4906_v56, 5  ;;  %v5277_v44 = vpop.permute.xlu1 %5276 }
 0x2e5   :  { %13628 = vst [vmem:[#allocation13_spill] sm:$0xff] %v12278_v47  ;;  %v4865_v11 = vrot.slane %v4863_v63, 4  ;;  %v4868_v25 = vrot.slane %v4866_v26, 5  ;;  %v4894_v29 = vrot.slane %v4893_v48, 4  ;;  %v4874_v0 = vrot.slane %v4872_v41, 5  ;;  %5358 = vst.msk [vmem:[#allocation3 + $0xf0] sm:$0xff] %vm5342_vm8, %v5277_v44 }
 0x2e6   :  { %v6935_v60 = vsel %vm10511_vm12, %v6930_v33, %v6934_v3  ;;  %v6945_v24 = vsel %vm10511_vm12, %v6940_v4, %v6944_v28  ;;  %v4903_v38 = vor.u32 %v4902_v23, %v4898_v42  ;;  %v4876_v32 = vshrl.u32 %v4347_v43, 16  ;;  %v2262_v63 = vld [vmem:[#allocation2 + $0x11c] sm:$0x1]  ;;  %v12289_v3 = vpop.f32.mrb[60].mxu0  ;;  %v2263_v41 = vld [vmem:[#allocation2 + $0x120] sm:$0xf] }
 0x2e7   :  { %v8058_v62 = vld [vmem:[#allocation3 + $0xb8] sm:$0xff]  ;;  %v9674_v15 = vcombine.low %v6935_v60, %v6945_v24  ;;  %v4869_v61 = vor.u32 %v4868_v25, %v4865_v11  ;;  %v4899_v7 = vsel %vm10511_vm12, %v4894_v29, %v4898_v42  ;;  %v4882_v56 = vshll.u32 %v4348_v39, 16  ;;  %5999 = vst.msk [vmem:[#allocation3 + $0xf0] sm:$0xff] %vm5983_vm10, %v12126_v22  ;;  %v2264_v11 = vld [vmem:[#allocation2 + $0x124] sm:$0xf]  ;;  %v13630_v24 = vld [vmem:[#allocation18_spill] sm:$0xff] }
 0x2e8   :  { %9772 = vmatprep.mubr.msk.bf16.mxu1 %vm2164_vm2, %v8058_v62  ;;  %v2801_v26 = vshrl.u32 %v2260_v51, 16  ;;  %v4904_v28 = vrot.slane %v4903_v38, 4  ;;  %v2804_v4 = vshll.u32 %v2260_v51, 16  ;;  %v2810_v48 = vshll.u32 %v2261_v31, 16 }
 0x2e9   :  { %8395 = vmatmul.mubr.bf16.gmra.mrb[40].mxu1 %v8057_v14  ;;  %7368 = vrot.lane.b32.xlu1 %v9674_v15, %s10356_s19  ;;  %v4870_v33 = vrot.slane %v4869_v61, 4  ;;  %v4878_v42 = vrot.slane %v4876_v32, 4  ;;  %v4884_v43 = vrot.slane %v4882_v56, 5  ;;  %v2814_v23 = vshrl.u32 %v2261_v31, 16  ;;  %v13629_v14 = vld [vmem:[#allocation16_spill] sm:$0xff] }
 0x2ea   :  { %v2803_v39 = vrot.slane %v2801_v26, 4  ;;  %6353 = vst.msk [vmem:[#allocation3 + $0xf0] sm:$0xff] %vm6337_vm11, %v13629_v14  ;;  %v4909_v25 = vsel %vm10511_vm12, %v4904_v28, %v4908_v53  ;;  %v2806_v51 = vrot.slane %v2804_v4, 5  ;;  %v2812_v60 = vrot.slane %v2810_v48, 5  ;;  %v2265_v31 = vld [vmem:[#allocation2 + $0x128] sm:$0x1] }
 0x2eb   :  { %v4875_v62 = vsel %vm10511_vm12, %v4870_v33, %v4874_v0  ;;  %7442 = vst.msk [vmem:[#allocation3 + $0xf0] sm:$0xff] %vm7426_vm13, %v13630_v24  ;;  %v9548_v22 = vcombine.low %v4899_v7, %v4909_v25  ;;  %v4879_v29 = vor.u32 %v4878_v42, %v4874_v0  ;;  %v2816_v15 = vrot.slane %v2814_v23, 4  ;;  %v5444_v26 = vld [vmem:[#allocation2 + $0x138] sm:$0xe]  ;;  %v10192_v28 = vld [vmem:[#allocation2 + $0x12c] sm:$0xff]   ;;  %v12305_v7 = vpop.f32.mrb[61].mxu0 }
 0x2ec   :  { %v2820_v38 = vshll.u32 %v2262_v63, 16  ;;  %v2807_v61 = vor.u32 %v2806_v51, %v2803_v39  ;;  %v2825_v44 = vshrl.u32 %v2263_v41, 16  ;;  %v2828_v32 = vshll.u32 %v2263_v41, 16  ;;  %v5445_v14 = vld [vmem:[#allocation2 + $0x13c] sm:$0xf] }
 0x2ed   :  { %v2834_v56 = vshll.u32 %v2264_v11, 16  ;;  %5288 = vrot.lane.b32.xlu0 %v9548_v22, %s10360_s25  ;;  %v4880_v53 = vrot.slane %v4879_v29, 4  ;;  %v2817_v33 = vor.u32 %v2816_v15, %v2812_v60  ;;  %v2838_v48 = vshrl.u32 %v2264_v11, 16  ;;  %v5446_v23 = vld [vmem:[#allocation2 + $0x140] sm:$0x1]  ;;  %v12309_v29 = vpop.f32.mrb[62].mxu0 }
 0x2ee   :  { %v2822_v4 = vrot.slane %v2820_v38, 5  ;;  %v2808_v0 = vrot.slane %v2807_v61, 4  ;;  %v2827_v63 = vrot.slane %v2825_v44, 4  ;;  %v2830_v42 = vrot.slane %v2828_v32, 5  ;;  %v3361_v22 = vld [vmem:[#allocation2 + $0x138] sm:$0xe] }
 0x2ef   :  { %v2836_v39 = vrot.slane %v2834_v56, 5  ;;  %v4885_v41 = vsel %vm10511_vm12, %v4880_v53, %v4884_v43  ;;  %v2818_v25 = vrot.slane %v2817_v33, 4  ;;  %v2840_v51 = vrot.slane %v2838_v48, 4  ;;  %v3362_v61 = vld [vmem:[#allocation2 + $0x13c] sm:$0xf]  ;;  %v12316_v48 = vpop.permute.xlu1 %5921 }
 0x2f0   :  { %v2844_v24 = vshll.u32 %v2265_v31, 16  ;;  %v9547_v11 = vcombine.low %v4875_v62, %v4885_v41  ;;  %v2813_v15 = vsel %vm10511_vm12, %v2808_v0, %v2812_v60  ;;  %v2831_v38 = vor.u32 %v2830_v42, %v2827_v63  ;;  %v3363_v44 = vld [vmem:[#allocation2 + $0x140] sm:$0x1]  ;;  %v5441_v31 = vld [vmem:[#allocation2 + $0x12c] sm:$0xe] }
 0x2f1   :  { %v9582_v8 = vrot.slane %v5444_v26, 9  ;;  %6283 = vrot.lane.b32.xlu0 %v10192_v28, %s10355_s1  ;;  %v2823_v32 = vsel %vm10511_vm12, %v2818_v25, %v2822_v4  ;;  %v2841_v43 = vor.u32 %v2840_v51, %v2836_v39  ;;  %v5730_v53 = vrot.slane %v5445_v14, 5  ;;  %v5442_v33 = vld [vmem:[#allocation2 + $0x130] sm:$0xf]  ;;  %v7495_v4 = vld [vmem:[#allocation2 + $0xa8] sm:$0xe]  ;;  %v12321_v25 = vpop.permute.xlu0 %3838 }
 0x2f2   :  { %v2846_v56 = vrot.slane %v2844_v24, 5  ;;  %5286 = vrot.lane.b32.xlu1 %v9547_v11, %s10360_s25  ;;  %v9420_v62 = vcombine.low %v2813_v15, %v2823_v32  ;;  %v2832_v60 = vrot.slane %v2831_v38, 4  ;;  %v5733_v0 = vrot.slane %v5446_v23, 5  ;;  %v5443_v24 = vld [vmem:[#allocation2 + $0x134] sm:$0x1]  ;;  %v12333_v32 = vpop.f32.mrb[63].mxu0 }
 0x2f3   :  { %v9455_v26 = vrot.slane %v3361_v22, 9  ;;  %v2842_v63 = vrot.slane %v2841_v43, 4  ;;  %v5731_v28 = vsel %vm10495_vm9, %v9582_v8, %v5730_v53  ;;  %v5732_v42 = vrot.slane %v5730_v53, 4  ;;  %v7497_v38 = vld [vmem:[#allocation2 + $0xb0] sm:$0x1] }
 0x2f4   :  { %v3654_v41 = vrot.slane %v3362_v61, 5  ;;  %v2837_v14 = vsel %vm10511_vm12, %v2832_v60, %v2836_v39  ;;  %v3657_v51 = vrot.slane %v3363_v44, 5  ;;  %v9581_v21 = vrot.slane %v5441_v31, 9  ;;  %v719_v61 = vld [vmem:[#allocation2 + $0x168] sm:$0x1] }
 0x2f5   :  { %v5723_v11 = vrot.slane %v5442_v33, 5  ;;  %v2847_v23 = vsel %vm10511_vm12, %v2842_v63, %v2846_v56  ;;  %v5734_v22 = vsel %vm10495_vm9, %v5732_v42, %v5733_v0  ;;  %v3358_v53 = vld [vmem:[#allocation2 + $0x12c] sm:$0xe]  ;;  %v3359_v31 = vld [vmem:[#allocation2 + $0x130] sm:$0xf]  ;;  %v10209_v33 = vld [vmem:[#allocation2 + $0xfc] sm:$0xff]  }
 0x2f6   :  { %v12331_v8 = vsel %vm10495_vm9, %v9455_v26, %v3654_v41  ;;  %v3656_v15 = vrot.slane %v3654_v41, 4  ;;  %3202 = vrot.lane.b32.xlu1 %v9420_v62, %s10357_s20  ;;  %v9421_v39 = vcombine.low %v2837_v14, %v2847_v23  ;;  %v9614_v44 = vcombine.low %v5731_v28, %v5734_v22  ;;  %v13631_v63 = vld [vmem:[#allocation21_spill] sm:$0xff]  ;;  %v12344_v62 = vpop.permute.xlu1 %3840  ;;  %2184 = vst.msk [vmem:[#allocation3 + $0x130] sm:$0xff] %vm2164_vm2, %v10209_v33 }
 0x2f7   :  { %v12338_v43 = vsel %vm10495_vm9, %v9581_v21, %v5723_v11  ;;  %v5725_v56 = vrot.slane %v5723_v11, 4  ;;  %v5726_v0 = vrot.slane %v5443_v24, 5  ;;  %v9699_v26 = vrot.slane %v7495_v4, 9  ;;  %v10210_v28 = vld [vmem:[#allocation2 + $0x108] sm:$0xff]  }
 0x2f8   :  { %v3658_v60 = vsel %vm10495_vm9, %v3656_v15, %v3657_v51  ;;  %v13632_v42 = vrot.slane %v13631_v63, 5  ;;  %3204 = vrot.lane.b32.xlu0 %v9421_v39, %s10357_s20  ;;  %v7740_v14 = vrot.slane %v7497_v38, 5  ;;  %v509_v11 = vadd.f32 %v12186_v58, %v11953_v54  ;;  %v716_v15 = vld [vmem:[#allocation2 + $0x15c] sm:$0x1]  ;;  %v829_v38 = vld [vmem:[#allocation2 + $0x170] sm:$0x1]  ;;  %v12359_v39 = vpop.permute.xlu0 %7362 }
 0x2f9   :  { %v9487_v21 = vcombine.low %v12331_v8, %v3658_v60  ;;  %v720_v51 = vsel %vm10467_vm4, 0, %v719_v61  ;;  %v5727_v4 = vsel %vm10495_vm9, %v5725_v56, %v5726_v0  ;;  %v9454_v22 = vrot.slane %v3358_v53, 9  ;;  %2185 = vst.msk [vmem:[#allocation3 + $0x140] sm:$0xff] %vm2164_vm2, %v10210_v28  ;;  %v10193_v54 = vld [vmem:[#allocation2 + $0x12c] sm:$0xff]   ;;  %v826_v0 = vld [vmem:[#allocation2 + $0x164] sm:$0x1] }
 0x2fa   :  { %v7739_v41 = vrot.slane %v13632_v42, 4  ;;  %v13633_v24 = vmov %v13632_v42  ;;  %721 = vst [vmem:[#allocation2 + $0x168] sm:$0x1] %v720_v51  ;;  %v3647_v8 = vrot.slane %v3359_v31, 5  ;;  %5933 = vrot.lane.b32.xlu1 %v9614_v44, %s10359_s24  ;;  %v9613_v61 = vcombine.low %v12338_v43, %v5727_v4  ;;  %v12370_v42 = vpop.f32.mrb[64].mxu0 }
 0x2fb   :  { %v7738_v23 = vsel %vm10495_vm9, %v9699_v26, %v13633_v24  ;;  %v601_v33 = vmax.f32 %v509_v11, 0.0  ;;  %v3650_v60 = vrot.slane %v3360_v17, 5  ;;  %v501_v63 = vadd.f32 %v12186_v58, %v11979_v59  ;;  %v6436_v28 = vld [vmem:[#allocation2 + $0x138] sm:$0xf]  ;;  %v12386_v24 = vpop.permute.xlu1 %6277 }
 0x2fc   :  { %v7741_v56 = vsel %vm10495_vm9, %v7739_v41, %v7740_v14  ;;  %v3648_v53 = vsel %vm10495_vm9, %v9454_v22, %v3647_v8  ;;  %v3649_v31 = vrot.slane %v3647_v8, 4  ;;  %4201 = vrot.lane.b32.xlu0 %v10193_v54, %s10358_s23  ;;  %v717_v43 = vsel %vm10467_vm4, 0, %v716_v15  ;;  %v8310_v14 = vpop.f32.mrb[65].mxu0  ;;  %v10195_v22 = vld [vmem:[#allocation2 + $0x150] sm:$0xff]  }
 0x2fd   :  { %v9731_v26 = vcombine.low %v7738_v23, %v7741_v56  ;;  %v9881_v44 = vpack.c.bf16 %v601_v33, %v601_v33  ;;  %v512_v17 = vadd.f32 %v12186_v58, %v11986_v12  ;;  %v830_v41 = vsel %vm10472_vm6, 0, %v829_v38  ;;  %718 = vst [vmem:[#allocation2 + $0x15c] sm:$0x1] %v717_v43  ;;  %v6437_v12 = vld [vmem:[#allocation2 + $0x13c] sm:$0xf]  ;;  %v12388_v23 = vpop.f32.mrb[66].mxu0 }
 0x2fe   :  { %v3651_v59 = vsel %vm10495_vm9, %v3649_v31, %v3650_v60  ;;  %v599_v11 = vmax.f32 %v501_v63, 0.0  ;;  %831 = vst [vmem:[#allocation2 + $0x170] sm:$0x1] %v830_v41  ;;  %v504_v51 = vadd.f32 %v12186_v58, %v11995_v16  ;;  %v827_v4 = vsel %vm10472_vm6, 0, %v826_v0  ;;  %3852 = vrot.lane.b32.xlu1 %v9487_v21, %s10354_s0  ;;  %v8313_v56 = vpop.f32.mrb[67].mxu0  ;;  %v12391_v31 = vpop.permute.xlu0 %5280 }
 0x2ff   :  { %8015 = vst.msk [vmem:[#allocation3 + $0xc8] sm:$0xff] %vm2164_vm2, %v9731_v26  ;;  %v1501_v8 = vshrl.u32 %v9881_v44, 16  ;;  %v1504_v15 = vshll.u32 %v9881_v44, 16  ;;  %v9486_v38 = vcombine.low %v3648_v53, %v3651_v59  ;;  %v602_v54 = vmax.f32 %v512_v17, 0.0  ;;  %828 = vst [vmem:[#allocation2 + $0x164] sm:$0x1] %v827_v4 }
 0x300   :  { %v9879_v33 = vpack.c.bf16 %v599_v11, %v599_v11  ;;  %v600_v60 = vmax.f32 %v504_v51, 0.0  ;;  %v6995_v16 = vshrl.u32 %v6436_v28, 16  ;;  %v6998_v26 = vshll.u32 %v6436_v28, 16  ;;  %5931 = vrot.lane.b32.xlu0 %v9613_v61, %s10359_s24  ;;  %v8059_v53 = vld [vmem:[#allocation3 + $0xc0] sm:$0xff] }
 0x301   :  { %v1503_v0 = vrot.slane %v1501_v8, 7  ;;  %v1873_v63 = vld [vmem:[#allocation2 + $0x168] sm:$0xf]  ;;  %v9882_v43 = vpack.c.bf16 %v602_v54, %v602_v54  ;;  %v7004_v41 = vshll.u32 %v6437_v12, 16  ;;  %v7008_v21 = vshrl.u32 %v6437_v12, 16  ;;  %v10197_v4 = vld [vmem:[#allocation2 + $0x150] sm:$0xff]   ;;  %v12397_v54 = vpop.permute.xlu1 %4195 }
 0x302   :  { %v1484_v14 = vshrl.u32 %v9879_v33, 16  ;;  %v1487_v18 = vshll.u32 %v9879_v33, 16  ;;  %v9880_v44 = vpack.c.bf16 %v600_v60, %v600_v60  ;;  %v6997_v17 = vrot.slane %v6995_v16, 4  ;;  %6289 = vrot.lane.b32.xlu1 %v10195_v22, %s10355_s1  ;;  %v12395_v47 = vpop.permute.xlu0 %6275  ;;  %v6438_v60 = vld [vmem:[#allocation2 + $0x140] sm:$0x1] }
 0x303   :  { %v1506_v59 = vor.u32 %v1504_v15, %v1503_v0  ;;  %v1507_v11 = vrot.slane %v1503_v0, 4  ;;  %v1509_v51 = vshrl.u32 %v9882_v43, 16  ;;  %v1512_v28 = vshll.u32 %v9882_v43, 16  ;;  %v7498_v16 = vld [vmem:[#allocation2 + $0xb4] sm:$0xe] }
 0x304   :  { %v1486_v56 = vrot.slane %v1484_v14, 7  ;;  %v1492_v40 = vshrl.u32 %v9880_v44, 16  ;;  %v1495_v61 = vshll.u32 %v9880_v44, 16  ;;  %v7000_v8 = vrot.slane %v6998_v26, 5  ;;  %3850 = vrot.lane.b32.xlu0 %v9486_v38, %s10354_s0  ;;  %v1866_v22 = vld [vmem:[#allocation2 + $0x15c] sm:$0xf] }
 0x305   :  { %v1874_v33 = vsel %vm10586_vm14, %v1506_v59, %v1873_v63  ;;  %v1511_v15 = vrot.slane %v1509_v51, 7  ;;  %v12404_v0 = vadd.f32 %v12186_v58, %v12098_v50  ;;  %v12408_v26 = vadd.f32 %v12186_v58, %v12117_v13  ;;  %v1877_v63 = vld [vmem:[#allocation2 + $0x170] sm:$0x1]  ;;  %v12411_v59 = vpop.f32.mrb[0].mxu1 }
 0x306   :  { %v8060_v12 = vld [vmem:[#allocation3 + $0xc8] sm:$0xff]  ;;  %1875 = vst [vmem:[#allocation2 + $0x168] sm:$0xf] %v1874_v33  ;;  %v1489_v43 = vor.u32 %v1487_v18, %v1486_v56  ;;  %v1490_v14 = vrot.slane %v1486_v56, 4  ;;  %v1494_v44 = vrot.slane %v1492_v40, 7  ;;  %v7001_v38 = vor.u32 %v7000_v8, %v6997_v17  ;;  %4207 = vrot.lane.b32.xlu1 %v10197_v4, %s10358_s23  ;;  %v8318_v13 = vpop.f32.mrb[1].mxu1  ;;  %v3197_v17 = vpop.permute.xlu0 %3196 }
 0x307   :  { %9773 = vmatprep.mubr.msk.bf16.mxu1 %vm2164_vm2, %v8060_v12  ;;  %v1514_v51 = vor.u32 %v1512_v28, %v1511_v15  ;;  %v1516_v52 = vrot.slane %v1511_v15, 4  ;;  %v1870_v19 = vld [vmem:[#allocation2 + $0x164] sm:$0x1]  ;;  %v7006_v50 = vrot.slane %v7004_v41, 5  ;;  %v7010_v37 = vrot.slane %v7008_v21, 4  ;;  %3275 = vst.msk [vmem:[#allocation3 + $0x120] sm:$0xff] %vm3256_vm3, %v3197_v17 }
 0x308   :  { %8403 = vmatmul.mubr.bf16.gmra.mrb[44].mxu1 %v8059_v53  ;;  %v1867_v58 = vsel %vm10586_vm14, %v1489_v43, %v1866_v22  ;;  %v1497_v12 = vor.u32 %v1495_v61, %v1494_v44  ;;  %v1499_v18 = vrot.slane %v1494_v44, 4  ;;  %v7002_v56 = vrot.slane %v7001_v38, 4  ;;  %v7500_v33 = vld [vmem:[#allocation2 + $0xbc] sm:$0x1]  ;;  %v6433_v40 = vld [vmem:[#allocation2 + $0x12c] sm:$0xf] }
 0x309   :  { %1868 = vst [vmem:[#allocation2 + $0x15c] sm:$0xf] %v1867_v58  ;;  %v1515_v28 = vsel %vm10593_vm15, %v1507_v11, %v1514_v51  ;;  %v1878_v4 = vsel %vm10467_vm4, %v1516_v52, %v1877_v63  ;;  %v7011_v53 = vor.u32 %v7010_v37, %v7006_v50  ;;  %v7014_v41 = vshll.u32 %v6438_v60, 16  ;;  %v6434_v21 = vld [vmem:[#allocation2 + $0x130] sm:$0xf]  ;;  %v12421_v8 = vpop.f32.mrb[2].mxu1  ;;  %v3195_v60 = vpop.permute.xlu1 %3194 }
 0x30a   :  { %v10208_v61 = vld [vmem:[%s13527_s5] sm:$0xff]   ;;  %1876 = vst.msk [vmem:[#allocation2 + $0x16c] sm:$0xf] %vm611_vm1, %v1515_v28  ;;  %1879 = vst [vmem:[#allocation2 + $0x170] sm:$0x1] %v1878_v4  ;;  %v1498_v11 = vsel %vm10593_vm15, %v1490_v14, %v1497_v12  ;;  %v1871_v52 = vsel %vm10467_vm4, %v1499_v18, %v1870_v19  ;;  %v7007_v37 = vsel %vm10511_vm12, %v7002_v56, %v7006_v50  ;;  %v9700_v22 = vrot.slane %v7498_v16, 9  ;;  %v4194_v18 = vpop.permute.xlu0 %4193 }
 0x30b   :  { %v6435_v15 = vld [vmem:[#allocation2 + $0x134] sm:$0x1]  ;;  %3919 = vst.msk [vmem:[#allocation3 + $0x120] sm:$0xff] %vm3900_vm5, %v12344_v62  ;;  %v8321_v43 = vpop.f32.mrb[3].mxu1  ;;  %1872 = vst [vmem:[#allocation2 + $0x164] sm:$0x1] %v1871_v52  ;;  %10026 = vmatprep.subr.bf16.mxu0 %v10208_v61 }
 0x30c   :  { %1869 = vst.msk [vmem:[#allocation2 + $0x160] sm:$0xf] %vm611_vm1, %v1498_v11  ;;  %v7012_v63 = vrot.slane %v7011_v53, 4  ;;  %v7016_v44 = vrot.slane %v7014_v41, 5  ;;  %v13634_v14 = vrot.slane %v11472_v34, 5  ;;  %v7747_v51 = vrot.slane %v7500_v33, 5  ;;  %10027 = vmatpush3.bf16.msra.mxu0 %v10208_v61 }
 0x30d   :  { %v4355_v19 = vld [vmem:[#allocation2 + $0x138] sm:$0xf]  ;;  %3274 = vst.msk [vmem:[#allocation3 + $0x110] sm:$0xff] %vm3256_vm3, %v3195_v60  ;;  %v6971_v50 = vshrl.u32 %v6433_v40, 16  ;;  %v6974_v13 = vshll.u32 %v6433_v40, 16  ;;  %v6980_v58 = vshll.u32 %v6434_v21, 16 }
 0x30e   :  { %v7746_v38 = vrot.slane %v13634_v14, 4  ;;  %v13635_v16 = vmov %v13634_v14  ;;  %v4356_v12 = vld [vmem:[#allocation2 + $0x13c] sm:$0xf]  ;;  %3918 = vst.msk [vmem:[#allocation3 + $0x110] sm:$0xff] %vm3900_vm5, %v12321_v25  ;;  %v7017_v56 = vsel %vm10511_vm12, %v7012_v63, %v7016_v44  ;;  %v6984_v17 = vshrl.u32 %v6434_v21, 16 }
 0x30f   :  { %v7745_v62 = vsel %vm10495_vm9, %v9700_v22, %v13635_v16  ;;  %v6990_v34 = vshll.u32 %v6435_v15, 16  ;;  %4271 = vst.msk [vmem:[#allocation3 + $0x110] sm:$0xff] %vm4253_vm7, %v12248_v27  ;;  %4272 = vst.msk [vmem:[#allocation3 + $0x120] sm:$0xff] %vm4253_vm7, %v4194_v18  ;;  %v9677_v40 = vcombine.low %v7007_v37, %v7017_v56  ;;  %v6973_v4 = vrot.slane %v6971_v50, 4  ;;  %v4357_v25 = vld [vmem:[#allocation2 + $0x140] sm:$0x1] }
 0x310   :  { %v7748_v33 = vsel %vm10495_vm9, %v7746_v38, %v7747_v51  ;;  %v6976_v53 = vrot.slane %v6974_v13, 5  ;;  %v4352_v41 = vld [vmem:[#allocation2 + $0x12c] sm:$0xf]  ;;  %5360 = vst.msk [vmem:[#allocation3 + $0x110] sm:$0xff] %vm5342_vm8, %v12391_v31  ;;  %v6982_v61 = vrot.slane %v6980_v58, 5  ;;  %v6986_v11 = vrot.slane %v6984_v17, 4  ;;  %v5279_v38 = vpop.permute.xlu0 %5278 }
 0x311   :  { %v9732_v28 = vcombine.low %v7745_v62, %v7748_v33  ;;  %v6992_v52 = vrot.slane %v6990_v34, 5  ;;  %v4935_v22 = vshrl.u32 %v4355_v19, 16  ;;  %6001 = vst.msk [vmem:[#allocation3 + $0x110] sm:$0xff] %vm5983_vm10, %v12316_v48  ;;  %7374 = vrot.lane.b32.xlu0 %v9677_v40, %s10356_s19  ;;  %v4938_v21 = vshll.u32 %v4355_v19, 16  ;;  %v4353_v60 = vld [vmem:[#allocation2 + $0x130] sm:$0xf] }
 0x312   :  { %v6977_v27 = vor.u32 %v6976_v53, %v6973_v4  ;;  %v4944_v37 = vshll.u32 %v4356_v12, 16  ;;  %v4948_v15 = vshrl.u32 %v4356_v12, 16  ;;  %6355 = vst.msk [vmem:[#allocation3 + $0x110] sm:$0xff] %vm6337_vm11, %v12395_v47  ;;  %v12460_v31 = vpop.f32.mrb[4].mxu1  ;;  %v12462_v43 = vld [vmem:[#allocation2 + $0x16c] sm:$0xf]  ;;  %v6987_v63 = vor.u32 %v6986_v11, %v6982_v61 }
 0x313   :  { %8016 = vst.msk [vmem:[#allocation3 + $0xd8] sm:$0xff] %vm2164_vm2, %v9732_v28  ;;  %13636 = vst [vmem:[#allocation17_spill] sm:$0xff] %v12462_v43  ;;  %v4937_v44 = vrot.slane %v4935_v22, 4  ;;  %v4954_v14 = vshll.u32 %v4357_v25, 16  ;;  %v4911_v48 = vshrl.u32 %v4352_v41, 16  ;;  %v4940_v62 = vrot.slane %v4938_v21, 5  ;;  %v12473_v28 = vpop.permute.xlu1 %5925 }
 0x314   :  { %v12465_v16 = vld [vmem:[#allocation2 + $0x160] sm:$0xf]  ;;  %v6978_v19 = vrot.slane %v6977_v27, 4  ;;  %v4946_v50 = vrot.slane %v4944_v37, 5  ;;  %5359 = vst.msk [vmem:[#allocation3 + $0x100] sm:$0xff] %vm5342_vm8, %v5279_v38  ;;  %v6988_v13 = vrot.slane %v6987_v63, 4 }
 0x315   :  { %13637 = vst [vmem:[#allocation15_spill] sm:$0xff] %v12465_v16  ;;  %v4950_v58 = vrot.slane %v4948_v15, 4  ;;  %v4956_v12 = vrot.slane %v4954_v14, 5  ;;  %v4354_v18 = vld [vmem:[#allocation2 + $0x134] sm:$0x1]  ;;  %6000 = vst.msk [vmem:[#allocation3 + $0x100] sm:$0xff] %vm5983_vm10, %v12303_v2  ;;  %v4941_v33 = vor.u32 %v4940_v62, %v4937_v44 }
 0x316   :  { %v6983_v56 = vsel %vm10511_vm12, %v6978_v19, %v6982_v61  ;;  %v4913_v17 = vrot.slane %v4911_v48, 4  ;;  %v4914_v34 = vshll.u32 %v4352_v41, 16  ;;  %v2266_v40 = vld [vmem:[#allocation2 + $0x12c] sm:$0xf]  ;;  %6354 = vst.msk [vmem:[#allocation3 + $0x100] sm:$0xff] %vm6337_vm11, %v12136_v10  ;;  %v6993_v4 = vsel %vm10511_vm12, %v6988_v13, %v6992_v52  ;;  %v8061_v37 = vld [vmem:[#allocation3 + $0xd0] sm:$0xff] }
 0x317   :  { %v4951_v53 = vor.u32 %v4950_v58, %v4946_v50  ;;  %v4920_v25 = vshll.u32 %v4353_v60, 16  ;;  %v4924_v11 = vshrl.u32 %v4353_v60, 16  ;;  %v2267_v22 = vld [vmem:[#allocation2 + $0x130] sm:$0xf]  ;;  %7443 = vst.msk [vmem:[#allocation3 + $0x100] sm:$0xff] %vm7426_vm13, %v12359_v39  ;;  %v9676_v2 = vcombine.low %v6983_v56, %v6993_v4  ;;  %v8326_v48 = vpop.f32.mrb[5].mxu1 }
 0x318   :  { %v4942_v61 = vrot.slane %v4941_v33, 4  ;;  %v4916_v27 = vrot.slane %v4914_v34, 5  ;;  %v4930_v41 = vshll.u32 %v4354_v18, 16  ;;  %v2268_v21 = vld [vmem:[#allocation2 + $0x134] sm:$0x1]  ;;  %v2849_v14 = vshrl.u32 %v2266_v40, 16 }
 0x319   :  { %v4952_v63 = vrot.slane %v4951_v53, 4  ;;  %v4922_v44 = vrot.slane %v4920_v25, 5  ;;  %v4926_v10 = vrot.slane %v4924_v11, 4  ;;  %7372 = vrot.lane.b32.xlu1 %v9676_v2, %s10356_s19  ;;  %v2852_v38 = vshll.u32 %v2266_v40, 16  ;;  %v2269_v19 = vld [vmem:[#allocation2 + $0x138] sm:$0xf]  ;;  %v12487_v25 = vpop.permute.xlu1 %3844 }
 0x31a   :  { %v8062_v15 = vld [vmem:[#allocation3 + $0xd8] sm:$0xff]  ;;  %v4947_v52 = vsel %vm10511_vm12, %v4942_v61, %v4946_v50  ;;  %v4917_v39 = vor.u32 %v4916_v27, %v4913_v17  ;;  %v4932_v60 = vrot.slane %v4930_v41, 5  ;;  %v2270_v62 = vld [vmem:[#allocation2 + $0x13c] sm:$0xf]  ;;  %v2851_v18 = vrot.slane %v2849_v14, 4  ;;  %v12489_v11 = vpop.f32.mrb[6].mxu1 }
 0x31b   :  { %9774 = vmatprep.mubr.msk.bf16.mxu1 %vm2164_vm2, %v8062_v15  ;;  %v4957_v13 = vsel %vm10511_vm12, %v4952_v63, %v4956_v12  ;;  %v4927_v58 = vor.u32 %v4926_v10, %v4922_v44  ;;  %v2858_v56 = vshll.u32 %v2267_v22, 16  ;;  %v2854_v4 = vrot.slane %v2852_v38, 5  ;;  %v2271_v41 = vld [vmem:[#allocation2 + $0x140] sm:$0x1]  ;;  %v5450_v15 = vld [vmem:[#allocation2 + $0x150] sm:$0xe] }
 0x31c   :  { %8411 = vmatmul.mubr.bf16.gmra.mrb[48].mxu1 %v8061_v37  ;;  %v9550_v33 = vcombine.low %v4947_v52, %v4957_v13  ;;  %v4918_v34 = vrot.slane %v4917_v39, 4  ;;  %v2862_v53 = vshrl.u32 %v2267_v22, 16  ;;  %v2868_v40 = vshll.u32 %v2268_v21, 16  ;;  %v7501_v63 = vld [vmem:[#allocation2 + $0xc0] sm:$0xe]  ;;  %v10198_v39 = vld [vmem:[#allocation2 + $0x144] sm:$0xff]  }
 0x31d   :  { %v4928_v50 = vrot.slane %v4927_v58, 4  ;;  %v2860_v17 = vrot.slane %v2858_v56, 5  ;;  %v2873_v2 = vshrl.u32 %v2269_v19, 16  ;;  %v2855_v61 = vor.u32 %v2854_v4, %v2851_v18  ;;  %v5451_v52 = vld [vmem:[#allocation2 + $0x154] sm:$0xf] }
 0x31e   :  { %5292 = vrot.lane.b32.xlu0 %v9550_v33, %s10360_s25  ;;  %v4923_v12 = vsel %vm10511_vm12, %v4918_v34, %v4922_v44  ;;  %v2864_v27 = vrot.slane %v2862_v53, 4  ;;  %v2876_v37 = vshll.u32 %v2269_v19, 16  ;;  %v2870_v10 = vrot.slane %v2868_v40, 5  ;;  %v5452_v56 = vld [vmem:[#allocation2 + $0x158] sm:$0x1]  ;;  %v12496_v19 = vpop.permute.xlu0 %5923 }
 0x31f   :  { %v4933_v22 = vsel %vm10511_vm12, %v4928_v50, %v4932_v60  ;;  %v2875_v14 = vrot.slane %v2873_v2, 4  ;;  %v2882_v48 = vshll.u32 %v2270_v62, 16  ;;  %v2856_v38 = vrot.slane %v2855_v61, 4  ;;  %v7503_v40 = vld [vmem:[#allocation2 + $0xc8] sm:$0x1]  ;;  %v12502_v2 = vpop.permute.xlu1 %6281 }
 0x320   :  { %v9549_v21 = vcombine.low %v4923_v12, %v4933_v22  ;;  %v2865_v13 = vor.u32 %v2864_v27, %v2860_v17  ;;  %v2878_v58 = vrot.slane %v2876_v37, 5  ;;  %v2886_v18 = vshrl.u32 %v2270_v62, 16  ;;  %v3366_v47 = vld [vmem:[#allocation2 + $0x14c] sm:$0x1] }
 0x321   :  { %v2884_v44 = vrot.slane %v2882_v48, 5  ;;  %v2892_v33 = vshll.u32 %v2271_v41, 16  ;;  %v9584_v34 = vrot.slane %v5450_v15, 9  ;;  %v2861_v60 = vsel %vm10511_vm12, %v2856_v38, %v2860_v17  ;;  %v3367_v41 = vld [vmem:[#allocation2 + $0x150] sm:$0xe] }
 0x322   :  { %5290 = vrot.lane.b32.xlu1 %v9549_v21, %s10360_s25  ;;  %6287 = vrot.lane.b32.xlu0 %v10198_v39, %s10355_s1  ;;  %v2866_v4 = vrot.slane %v2865_v13, 4  ;;  %v2879_v53 = vor.u32 %v2878_v58, %v2875_v14  ;;  %v5744_v50 = vrot.slane %v5451_v52, 5  ;;  %v2888_v12 = vrot.slane %v2886_v18, 4  ;;  %v3368_v17 = vld [vmem:[#allocation2 + $0x154] sm:$0xf] }
 0x323   :  { %v2894_v61 = vrot.slane %v2892_v33, 5  ;;  %v5747_v62 = vrot.slane %v5452_v56, 5  ;;  %v9701_v27 = vrot.slane %v7501_v63, 9  ;;  %v3369_v21 = vld [vmem:[#allocation2 + $0x158] sm:$0x1]  ;;  %v13638_v39 = vrot.slane %v11444_v55, 5 }
 0x324   :  { %v2871_v37 = vsel %vm10511_vm12, %v2866_v4, %v2870_v10  ;;  %v2880_v15 = vrot.slane %v2879_v53, 4  ;;  %v5745_v22 = vsel %vm10495_vm9, %v9584_v34, %v5744_v50  ;;  %v5746_v48 = vrot.slane %v5744_v50, 4  ;;  %v725_v58 = vld [vmem:[#allocation2 + $0x180] sm:$0x1]  ;;  %v5447_v56 = vld [vmem:[#allocation2 + $0x144] sm:$0xe] }
 0x325   :  { %v9422_v14 = vcombine.low %v2861_v60, %v2871_v37  ;;  %v2889_v52 = vor.u32 %v2888_v12, %v2884_v44  ;;  %v7752_v38 = vsel %vm10495_vm9, %v9701_v27, %v13638_v39  ;;  %v13639_v63 = vmov %v13638_v39  ;;  %v8329_v10 = vpop.f32.mrb[7].mxu1  ;;  %v5448_v4 = vld [vmem:[#allocation2 + $0x148] sm:$0xf]  ;;  %v5449_v55 = vld [vmem:[#allocation2 + $0x14c] sm:$0x1]  ;;  %v12519_v37 = vpop.permute.xlu0 %3842  ;;  %v10215_v39 = vld [vmem:[#allocation2 + $0x114] sm:$0xff]  }
 0x326   :  { %v7753_v13 = vrot.slane %v13639_v63, 4  ;;  %v2885_v18 = vsel %vm10511_vm12, %v2880_v15, %v2884_v44  ;;  %v5748_v33 = vsel %vm10495_vm9, %v5746_v48, %v5747_v62  ;;  %v7754_v34 = vrot.slane %v7503_v40, 5  ;;  %v12526_v15 = vpop.permute.xlu1 %4199  ;;  %v10216_v48 = vld [vmem:[#allocation2 + $0x120] sm:$0xff]   ;;  %2186 = vst.msk [vmem:[#allocation3 + $0x150] sm:$0xff] %vm2164_vm2, %v10215_v39 }
 0x327   :  { %v9457_v60 = vrot.slane %v3367_v41, 9  ;;  %3206 = vrot.lane.b32.xlu1 %v9422_v14, %s10357_s20  ;;  %v2890_v53 = vrot.slane %v2889_v52, 4  ;;  %v9616_v50 = vcombine.low %v5745_v22, %v5748_v33  ;;  %v3668_v12 = vrot.slane %v3368_v17, 5  ;;  %v722_v41 = vld [vmem:[#allocation2 + $0x174] sm:$0x1]  ;;  %2187 = vst.msk [vmem:[#allocation3 + $0x160] sm:$0xff] %vm2164_vm2, %v10216_v48 }
 0x328   :  { %v3671_v27 = vrot.slane %v3369_v21, 5  ;;  %v7755_v63 = vsel %vm10495_vm9, %v7753_v13, %v7754_v34  ;;  %v605_v44 = vmax.f32 %v12404_v0, 0.0  ;;  %v726_v40 = vsel %vm10467_vm4, 0, %v725_v58  ;;  %v832_v34 = vld [vmem:[#allocation2 + $0x17c] sm:$0x1] }
 0x329   :  { %v9583_v62 = vrot.slane %v5447_v56, 9  ;;  %v2895_v22 = vsel %vm10511_vm12, %v2890_v53, %v2894_v61  ;;  %v9733_v17 = vcombine.low %v7752_v38, %v7755_v63  ;;  %v3669_v21 = vsel %vm10495_vm9, %v9457_v60, %v3668_v12  ;;  %727 = vst [vmem:[#allocation2 + $0x180] sm:$0x1] %v726_v40  ;;  %v835_v56 = vld [vmem:[#allocation2 + $0x188] sm:$0x1]  ;;  %v12555_v40 = vpop.f32.mrb[8].mxu1 }
 0x32a   :  { %v3670_v14 = vrot.slane %v3668_v12, 4  ;;  %v9423_v0 = vcombine.low %v2885_v18, %v2895_v22  ;;  %v9885_v52 = vpack.c.bf16 %v605_v44, %v605_v44  ;;  %v5737_v13 = vrot.slane %v5448_v4, 5  ;;  %v12544_v18 = vld [vmem:[%s13524_s2] ss:$0 sm:$0xff]  ;;  %v6439_v60 = vld [vmem:[#allocation2 + $0x144] sm:$0xf] }
 0x32b   :  { %v5740_v58 = vrot.slane %v5449_v55, 5  ;;  %5937 = vrot.lane.b32.xlu1 %v9616_v50, %s10359_s24  ;;  %8017 = vst.msk [vmem:[#allocation3 + $0xe8] sm:$0xff] %vm2164_vm2, %v9733_v17  ;;  %v603_v38 = vmax.f32 %v12408_v26, 0.0  ;;  %v723_v10 = vsel %vm10467_vm4, 0, %v722_v41  ;;  %v528_v33 = vadd.f32 %v12544_v18, %v12146_v49  ;;  %v10200_v4 = vld [vmem:[#allocation2 + $0x144] sm:$0xff]   ;;  %v12553_v49 = vpop.permute.xlu0 %7366  ;;  %v7365_v17 = vpop.permute.xlu1 %7364 }
 0x32c   :  { %v3672_v61 = vsel %vm10495_vm9, %v3670_v14, %v3671_v27  ;;  %3208 = vrot.lane.b32.xlu0 %v9423_v0, %s10357_s20  ;;  %v1535_v50 = vshrl.u32 %v9885_v52, 16  ;;  %v1538_v12 = vshll.u32 %v9885_v52, 16  ;;  %v5738_v26 = vsel %vm10495_vm9, %v9583_v62, %v5737_v13  ;;  %724 = vst [vmem:[#allocation2 + $0x174] sm:$0x1] %v723_v10  ;;  %v6440_v44 = vld [vmem:[#allocation2 + $0x148] sm:$0xf] }
 0x32d   :  { %v9489_v53 = vcombine.low %v3669_v21, %v3672_v61  ;;  %v5739_v27 = vrot.slane %v5737_v13, 4  ;;  %v9883_v55 = vpack.c.bf16 %v603_v38, %v603_v38  ;;  %v606_v39 = vmax.f32 %v528_v33, 0.0  ;;  %v8334_v21 = vpop.f32.mrb[9].mxu1  ;;  %7444 = vst.msk [vmem:[#allocation3 + $0x110] sm:$0xff] %vm7426_vm13, %v7365_v17 }
 0x32e   :  { %v836_v63 = vsel %vm10472_vm6, 0, %v835_v56  ;;  %v1537_v41 = vrot.slane %v1535_v50, 7  ;;  %v520_v48 = vadd.f32 %v12544_v18, %v12150_v45  ;;  %v833_v62 = vsel %vm10472_vm6, 0, %v832_v34  ;;  %v6441_v50 = vld [vmem:[#allocation2 + $0x14c] sm:$0x1] }
 0x32f   :  { %837 = vst [vmem:[#allocation2 + $0x188] sm:$0x1] %v836_v63  ;;  %v7019_v22 = vshrl.u32 %v6439_v60, 16  ;;  %3856 = vrot.lane.b32.xlu1 %v9489_v53, %s10354_s0  ;;  %v5741_v14 = vsel %vm10495_vm9, %v5739_v27, %v5740_v58  ;;  %v1518_v0 = vshrl.u32 %v9883_v55, 16  ;;  %v1521_v52 = vshll.u32 %v9883_v55, 16  ;;  %v8063_v58 = vld [vmem:[#allocation3 + $0xe0] sm:$0xff] }
 0x330   :  { %v9886_v13 = vpack.c.bf16 %v606_v39, %v606_v39  ;;  %834 = vst [vmem:[#allocation2 + $0x17c] sm:$0x1] %v833_v62  ;;  %4205 = vrot.lane.b32.xlu0 %v10200_v4, %s10358_s23  ;;  %v1540_v45 = vor.u32 %v1538_v12, %v1537_v41  ;;  %v1541_v56 = vrot.slane %v1537_v41, 4  ;;  %v1887_v61 = vld [vmem:[#allocation2 + $0x180] sm:$0xf]  ;;  %v9615_v38 = vcombine.low %v5738_v26, %v5741_v14  ;;  %v12568_v27 = vpop.f32.mrb[10].mxu1 }
 0x331   :  { %v604_v10 = vmax.f32 %v520_v48, 0.0  ;;  %v12566_v33 = vrot.slane %v1518_v0, 7  ;;  %v7021_v63 = vrot.slane %v7019_v22, 4  ;;  %v7022_v4 = vshll.u32 %v6439_v60, 16  ;;  %v3364_v41 = vld [vmem:[#allocation2 + $0x144] sm:$0xe]  ;;  %v12575_v0 = vpop.permute.xlu0 %5284 }
 0x332   :  { %v1543_v34 = vshrl.u32 %v9886_v13, 16  ;;  %v1546_v53 = vshll.u32 %v9886_v13, 16  ;;  %v8064_v55 = vld [vmem:[#allocation3 + $0xe8] sm:$0xff]  ;;  %v1888_v39 = vsel %vm10586_vm14, %v1540_v45, %v1887_v61  ;;  %v7028_v12 = vshll.u32 %v6440_v44, 16  ;;  %v8337_v17 = vpop.f32.mrb[11].mxu1 }
 0x333   :  { %v9884_v62 = vpack.c.bf16 %v604_v10, %v604_v10  ;;  %9775 = vmatprep.mubr.msk.bf16.mxu1 %vm2164_vm2, %v8064_v55  ;;  %1889 = vst [vmem:[#allocation2 + $0x180] sm:$0xf] %v1888_v39  ;;  %v1523_v26 = vor.u32 %v1521_v52, %v12566_v33  ;;  %v1524_v48 = vrot.slane %v12566_v33, 4  ;;  %v1880_v22 = vld [vmem:[#allocation2 + $0x174] sm:$0xf]  ;;  %v7032_v14 = vshrl.u32 %v6440_v44, 16 }
 0x334   :  { %v1545_v21 = vrot.slane %v1543_v34, 7  ;;  %5935 = vrot.lane.b32.xlu0 %v9615_v38, %s10359_s24  ;;  %v7024_v60 = vrot.slane %v7022_v4, 5  ;;  %v7030_v61 = vrot.slane %v7028_v12, 5  ;;  %v3365_v10 = vld [vmem:[#allocation2 + $0x148] sm:$0xf]  ;;  %8419 = vmatmul.mubr.bf16.gmra.mrb[52].mxu1 %v8063_v58  ;;  %v7038_v51 = vshll.u32 %v6441_v50, 16 }
 0x335   :  { %v1526_v13 = vshrl.u32 %v9884_v62, 16  ;;  %v1529_v45 = vshll.u32 %v9884_v62, 16  ;;  %v1881_v55 = vsel %vm10586_vm14, %v1523_v26, %v1880_v22  ;;  %v7034_v33 = vrot.slane %v7032_v14, 4  ;;  %v4358_v26 = vld [vmem:[#allocation2 + $0x144] sm:$0xf] }
 0x336   :  { %v1548_v39 = vor.u32 %v1546_v53, %v1545_v21  ;;  %v1550_v52 = vrot.slane %v1545_v21, 4  ;;  %v1891_v17 = vld [vmem:[#allocation2 + $0x188] sm:$0x1]  ;;  %1882 = vst [vmem:[#allocation2 + $0x174] sm:$0xf] %v1881_v55  ;;  %v7025_v44 = vor.u32 %v7024_v60, %v7021_v63  ;;  %v9456_v43 = vrot.slane %v3364_v41, 9  ;;  %v5283_v41 = vpop.permute.xlu1 %5282 }
 0x337   :  { %v1528_v34 = vrot.slane %v1526_v13, 7  ;;  %v1884_v58 = vld [vmem:[#allocation2 + $0x17c] sm:$0x1]  ;;  %v7035_v4 = vor.u32 %v7034_v33, %v7030_v61  ;;  %v3661_v12 = vrot.slane %v3365_v10, 5  ;;  %v7040_v63 = vrot.slane %v7038_v51, 5  ;;  %v12585_v13 = vpop.f32.mrb[12].mxu1 }
 0x338   :  { %v1549_v38 = vsel %vm10593_vm15, %v1541_v56, %v1548_v39  ;;  %v1892_v62 = vsel %vm10467_vm4, %v1550_v52, %v1891_v17  ;;  %v7026_v21 = vrot.slane %v7025_v44, 4  ;;  %v4359_v50 = vld [vmem:[#allocation2 + $0x148] sm:$0xf]  ;;  %v6442_v14 = vld [vmem:[#allocation2 + $0x150] sm:$0xf]  ;;  %v3664_v39 = vrot.slane %v3366_v47, 5  ;;  %v6280_v52 = vpop.permute.xlu0 %6279 }
 0x339   :  { %1890 = vst.msk [vmem:[#allocation2 + $0x184] sm:$0xf] %vm611_vm1, %v1549_v38  ;;  %1893 = vst [vmem:[#allocation2 + $0x188] sm:$0x1] %v1892_v62  ;;  %v1531_v53 = vor.u32 %v1529_v45, %v1528_v34  ;;  %v1533_v22 = vrot.slane %v1528_v34, 4  ;;  %v7036_v56 = vrot.slane %v7035_v4, 4  ;;  %v3662_v60 = vsel %vm10495_vm9, %v9456_v43, %v3661_v12 }
 0x33a   :  { %v3663_v55 = vrot.slane %v3661_v12, 4  ;;  %v4360_v10 = vld [vmem:[#allocation2 + $0x14c] sm:$0x1]  ;;  %5361 = vst.msk [vmem:[#allocation3 + $0x120] sm:$0xff] %vm5342_vm8, %v5283_v41  ;;  %v8342_v17 = vpop.f32.mrb[13].mxu1  ;;  %v7031_v33 = vsel %vm10511_vm12, %v7026_v21, %v7030_v61  ;;  %v4959_v34 = vshrl.u32 %v4358_v26, 16 }
 0x33b   :  { %v1532_v45 = vsel %vm10593_vm15, %v1524_v48, %v1531_v53  ;;  %v1885_v51 = vsel %vm10467_vm4, %v1533_v22, %v1884_v58  ;;  %6002 = vst.msk [vmem:[#allocation3 + $0x120] sm:$0xff] %vm5983_vm10, %v12496_v19  ;;  %v7041_v43 = vsel %vm10511_vm12, %v7036_v56, %v7040_v63  ;;  %v4962_v48 = vshll.u32 %v4358_v26, 16  ;;  %v6443_v38 = vld [vmem:[#allocation2 + $0x154] sm:$0xf]  ;;  %v6444_v19 = vld [vmem:[#allocation2 + $0x158] sm:$0x1]  ;;  %v3199_v53 = vpop.permute.xlu1 %3198 }
 0x33c   :  { %1883 = vst.msk [vmem:[#allocation2 + $0x178] sm:$0xf] %vm611_vm1, %v1532_v45  ;;  %1886 = vst [vmem:[#allocation2 + $0x17c] sm:$0x1] %v1885_v51  ;;  %v3665_v47 = vsel %vm10495_vm9, %v3663_v55, %v3664_v39  ;;  %v4968_v44 = vshll.u32 %v4359_v50, 16  ;;  %v9678_v61 = vcombine.low %v7031_v33, %v7041_v43  ;;  %v4961_v58 = vrot.slane %v4959_v34, 4  ;;  %v3201_v45 = vpop.permute.xlu0 %3200 }
 0x33d   :  { %6356 = vst.msk [vmem:[#allocation3 + $0x120] sm:$0xff] %vm6337_vm11, %v12386_v24  ;;  %v9488_v62 = vcombine.low %v3662_v60, %v3665_v47  ;;  %v4972_v4 = vshrl.u32 %v4359_v50, 16  ;;  %v2272_v12 = vld [vmem:[#allocation2 + $0x144] sm:$0xf]  ;;  %v4964_v22 = vrot.slane %v4962_v48, 5  ;;  %v4978_v63 = vshll.u32 %v4360_v10, 16 }
 0x33e   :  { %7445 = vst.msk [vmem:[#allocation3 + $0x120] sm:$0xff] %vm7426_vm13, %v12553_v49  ;;  %v4970_v21 = vrot.slane %v4968_v44, 5  ;;  %v7043_v41 = vshrl.u32 %v6442_v14, 16  ;;  %v2273_v26 = vld [vmem:[#allocation2 + $0x148] sm:$0xf]  ;;  %7376 = vrot.lane.b32.xlu1 %v9678_v61, %s10356_s19  ;;  %v7046_v56 = vshll.u32 %v6442_v14, 16 }
 0x33f   :  { %3276 = vst.msk [vmem:[#allocation3 + $0x130] sm:$0xff] %vm3256_vm3, %v3199_v53  ;;  %3854 = vrot.lane.b32.xlu0 %v9488_v62, %s10354_s0  ;;  %v4974_v24 = vrot.slane %v4972_v4, 4  ;;  %v7052_v50 = vshll.u32 %v6443_v38, 16  ;;  %v7056_v60 = vshrl.u32 %v6443_v38, 16  ;;  %v4965_v55 = vor.u32 %v4964_v22, %v4961_v58  ;;  %v2274_v43 = vld [vmem:[#allocation2 + $0x14c] sm:$0x1] }
 0x340   :  { %3920 = vst.msk [vmem:[#allocation3 + $0x130] sm:$0xff] %vm3900_vm5, %v12519_v37  ;;  %v12612_v49 = vld [vmem:[#allocation2 + $0x184] sm:$0xf]  ;;  %v4980_v39 = vrot.slane %v4978_v63, 5  ;;  %v7045_v10 = vrot.slane %v7043_v41, 4  ;;  %v7062_v17 = vshll.u32 %v6444_v19, 16  ;;  %v4198_v63 = vpop.permute.xlu0 %4197 }
 0x341   :  { %13640 = vst [vmem:[#allocation20_spill] sm:$0xff] %v12612_v49  ;;  %4273 = vst.msk [vmem:[#allocation3 + $0x130] sm:$0xff] %vm4253_vm7, %v12397_v54  ;;  %v4975_v33 = vor.u32 %v4974_v24, %v4970_v21  ;;  %v7048_v34 = vrot.slane %v7046_v56, 5  ;;  %v7054_v14 = vrot.slane %v7052_v50, 5  ;;  %v4966_v37 = vrot.slane %v4965_v55, 4 }
 0x342   :  { %5362 = vst.msk [vmem:[#allocation3 + $0x130] sm:$0xff] %vm5342_vm8, %v12575_v0  ;;  %v7058_v47 = vrot.slane %v7056_v60, 4  ;;  %v7064_v48 = vrot.slane %v7062_v17, 5  ;;  %v2897_v44 = vshrl.u32 %v2272_v12, 16  ;;  %v2900_v62 = vshll.u32 %v2272_v12, 16 }
 0x343   :  { %3277 = vst.msk [vmem:[#allocation3 + $0x140] sm:$0xff] %vm3256_vm3, %v3201_v45  ;;  %v12624_v54 = vld [vmem:[#allocation2 + $0x178] sm:$0xf]  ;;  %v4976_v38 = vrot.slane %v4975_v33, 4  ;;  %v7049_v61 = vor.u32 %v7048_v34, %v7045_v10  ;;  %v2906_v58 = vshll.u32 %v2273_v26, 16  ;;  %v4971_v4 = vsel %vm10511_vm12, %v4966_v37, %v4970_v21  ;;  %v12633_v21 = vpop.permute.xlu1 %5929 }
 0x344   :  { %3921 = vst.msk [vmem:[#allocation3 + $0x140] sm:$0xff] %vm3900_vm5, %v12487_v25  ;;  %13641 = vst [vmem:[#allocation19_spill] sm:$0xff] %v12624_v54  ;;  %v7059_v19 = vor.u32 %v7058_v47, %v7054_v14  ;;  %v2899_v53 = vrot.slane %v2897_v44, 4  ;;  %v4361_v22 = vld [vmem:[#allocation2 + $0x150] sm:$0xf]  ;;  %v2902_v24 = vrot.slane %v2900_v62, 5 }
 0x345   :  { %6003 = vst.msk [vmem:[#allocation3 + $0x130] sm:$0xff] %vm5983_vm10, %v12473_v28  ;;  %v4362_v25 = vld [vmem:[#allocation2 + $0x154] sm:$0xf]  ;;  %v4981_v28 = vsel %vm10511_vm12, %v4976_v38, %v4980_v39  ;;  %v7050_v41 = vrot.slane %v7049_v61, 4  ;;  %v2908_v56 = vrot.slane %v2906_v58, 5  ;;  %v2910_v50 = vshrl.u32 %v2273_v26, 16 }
 0x346   :  { %6357 = vst.msk [vmem:[#allocation3 + $0x130] sm:$0xff] %vm6337_vm11, %v6280_v52  ;;  %v9551_v12 = vcombine.low %v4971_v4, %v4981_v28  ;;  %v7060_v52 = vrot.slane %v7059_v19, 4  ;;  %v2916_v60 = vshll.u32 %v2274_v43, 16  ;;  %v7504_v55 = vld [vmem:[#allocation2 + $0xcc] sm:$0xe]  ;;  %v2903_v45 = vor.u32 %v2902_v24, %v2899_v53  ;;  %v12640_v43 = vpop.f32.mrb[14].mxu1 }
 0x347   :  { %4274 = vst.msk [vmem:[#allocation3 + $0x140] sm:$0xff] %vm4253_vm7, %v4198_v63  ;;  %v7505_v10 = vld [vmem:[#allocation2 + $0xd0] sm:$0xf]  ;;  %v7055_v17 = vsel %vm10511_vm12, %v7050_v41, %v7054_v14  ;;  %v4363_v33 = vld [vmem:[#allocation2 + $0x158] sm:$0x1]  ;;  %v4983_v34 = vshrl.u32 %v4361_v22, 16 }
 0x348   :  { %v4986_v39 = vshll.u32 %v4361_v22, 16  ;;  %5294 = vrot.lane.b32.xlu1 %v9551_v12, %s10360_s25  ;;  %v7065_v37 = vsel %vm10511_vm12, %v7060_v52, %v7064_v48  ;;  %v2912_v47 = vrot.slane %v2910_v50, 4  ;;  %v2918_v44 = vrot.slane %v2916_v60, 5  ;;  %v7506_v4 = vld [vmem:[#allocation2 + $0xd4] sm:$0x1]  ;;  %v8345_v14 = vpop.f32.mrb[15].mxu1 }
 0x349   :  { %v4992_v26 = vshll.u32 %v4362_v25, 16  ;;  %v9679_v38 = vcombine.low %v7055_v17, %v7065_v37  ;;  %v2904_v61 = vrot.slane %v2903_v45, 4  ;;  %v4985_v62 = vrot.slane %v4983_v34, 4  ;;  %v6445_v28 = vld [vmem:[#allocation2 + $0x15c] sm:$0xf]  ;;  %v12645_v34 = vpop.permute.xlu1 %3848 }
 0x34a   :  { %v4988_v58 = vrot.slane %v4986_v39, 5  ;;  %v2913_v19 = vor.u32 %v2912_v47, %v2908_v56  ;;  %v4996_v63 = vshrl.u32 %v4362_v25, 16  ;;  %v5002_v22 = vshll.u32 %v4363_v33, 16  ;;  %v6446_v52 = vld [vmem:[#allocation2 + $0x160] sm:$0xf] }
 0x34b   :  { %v4994_v53 = vrot.slane %v4992_v26, 5  ;;  %7378 = vrot.lane.b32.xlu0 %v9679_v38, %s10356_s19  ;;  %v2909_v48 = vsel %vm10511_vm12, %v2904_v61, %v2908_v56  ;;  %v9702_v24 = vrot.slane %v7504_v55, 9  ;;  %v7758_v12 = vrot.slane %v7505_v10, 5  ;;  %v7507_v47 = vld [vmem:[#allocation2 + $0xf0] sm:$0xe] }
 0x34c   :  { %v4989_v41 = vor.u32 %v4988_v58, %v4985_v62  ;;  %v2914_v50 = vrot.slane %v2913_v19, 4  ;;  %v4998_v60 = vrot.slane %v4996_v63, 4  ;;  %v5004_v17 = vrot.slane %v5002_v22, 5  ;;  %v10221_v26 = vld [vmem:[#allocation2 + $0x12c] sm:$0xff]   ;;  %v6447_v10 = vld [vmem:[#allocation2 + $0x164] sm:$0x1] }
 0x34d   :  { %v7761_v45 = vrot.slane %v7506_v4, 5  ;;  %v7759_v25 = vsel %vm10495_vm9, %v9702_v24, %v7758_v12  ;;  %v7760_v33 = vrot.slane %v7758_v12, 4  ;;  %v7067_v37 = vshrl.u32 %v6445_v28, 16  ;;  %v7509_v19 = vld [vmem:[#allocation2 + $0xf8] sm:$0x1]  ;;  %2188 = vst.msk [vmem:[#allocation3 + $0x170] sm:$0xff] %vm2164_vm2, %v10221_v26 }
 0x34e   :  { %v4990_v39 = vrot.slane %v4989_v41, 4  ;;  %v2919_v56 = vsel %vm10511_vm12, %v2914_v50, %v2918_v44  ;;  %v4999_v55 = vor.u32 %v4998_v60, %v4994_v53  ;;  %v7070_v38 = vshll.u32 %v6445_v28, 16  ;;  %v4364_v63 = vld [vmem:[#allocation2 + $0x15c] sm:$0xf] }
 0x34f   :  { %v7076_v61 = vshll.u32 %v6446_v52, 16  ;;  %v9424_v62 = vcombine.low %v2909_v48, %v2919_v56  ;;  %v7762_v4 = vsel %vm10495_vm9, %v7760_v33, %v7761_v45  ;;  %v7069_v14 = vrot.slane %v7067_v37, 4  ;;  %v10222_v22 = vld [vmem:[#allocation2 + $0x138] sm:$0xff]   ;;  %v12661_v45 = vpop.permute.xlu0 %5927  ;;  %v4365_v37 = vld [vmem:[#allocation2 + $0x160] sm:$0xf]  ;;  %v12667_v56 = vpop.permute.xlu1 %6285 }
 0x350   :  { %v4995_v58 = vsel %vm10511_vm12, %v4990_v39, %v4994_v53  ;;  %v5000_v41 = vrot.slane %v4999_v55, 4  ;;  %v9734_v24 = vcombine.low %v7759_v25, %v7762_v4  ;;  %v7072_v44 = vrot.slane %v7070_v38, 5  ;;  %2189 = vst.msk [vmem:[#allocation3 + $0x180] sm:$0xff] %vm2164_vm2, %v10222_v22  ;;  %v12675_v22 = vpop.f32.mrb[16].mxu1 }
 0x351   :  { %v12656_v12 = vrot.slane %v7076_v61, 5  ;;  %3210 = vrot.lane.b32.xlu1 %v9424_v62, %s10357_s20  ;;  %v7080_v28 = vshrl.u32 %v6446_v52, 16  ;;  %v7086_v48 = vshll.u32 %v6447_v10, 16  ;;  %v9703_v50 = vrot.slane %v7507_v47, 9  ;;  %v4366_v61 = vld [vmem:[#allocation2 + $0x164] sm:$0x1] }
 0x352   :  { %v13642_v53 = vrot.slane %v11598_v46, 5  ;;  %v5005_v39 = vsel %vm10511_vm12, %v5000_v41, %v5004_v17  ;;  %8018 = vst.msk [vmem:[#allocation3 + $0xf8] sm:$0xff] %vm2164_vm2, %v9734_v24  ;;  %v7073_v25 = vor.u32 %v7072_v44, %v7069_v14  ;;  %v7768_v33 = vrot.slane %v7509_v19, 5  ;;  %v2275_v62 = vld [vmem:[#allocation2 + $0x150] sm:$0xf] }
 0x353   :  { %v5007_v26 = vshrl.u32 %v4364_v63, 16  ;;  %v9552_v52 = vcombine.low %v4995_v58, %v5005_v39  ;;  %v7082_v47 = vrot.slane %v7080_v28, 4  ;;  %v7088_v55 = vrot.slane %v7086_v48, 5  ;;  %v2276_v44 = vld [vmem:[#allocation2 + $0x154] sm:$0xf]  ;;  %v8350_v39 = vpop.f32.mrb[17].mxu1 }
 0x354   :  { %v7767_v60 = vrot.slane %v13642_v53, 4  ;;  %v13643_v10 = vmov %v13642_v53  ;;  %v7074_v4 = vrot.slane %v7073_v25, 4  ;;  %v5010_v19 = vshll.u32 %v4364_v63, 16  ;;  %v2277_v53 = vld [vmem:[#allocation2 + $0x158] sm:$0x1]  ;;  %v8065_v63 = vld [vmem:[#allocation3 + $0xf0] sm:$0xff] }
 0x355   :  { %v7766_v38 = vsel %vm10495_vm9, %v9703_v50, %v13643_v10  ;;  %v5009_v14 = vrot.slane %v5007_v26, 4  ;;  %5296 = vrot.lane.b32.xlu0 %v9552_v52, %s10360_s25  ;;  %v7083_v58 = vor.u32 %v7082_v47, %v12656_v12  ;;  %v5016_v24 = vshll.u32 %v4365_v37, 16  ;;  %v12683_v10 = vpop.permute.xlu0 %3846 }
 0x356   :  { %v7769_v17 = vsel %vm10495_vm9, %v7767_v60, %v7768_v33  ;;  %v5020_v46 = vshrl.u32 %v4365_v37, 16  ;;  %v7079_v28 = vsel %vm10511_vm12, %v7074_v4, %v12656_v12  ;;  %v5012_v48 = vrot.slane %v5010_v19, 5  ;;  %v10201_v33 = vld [vmem:[#allocation2 + $0x15c] sm:$0xff]   ;;  %v12685_v4 = vpop.permute.xlu1 %4203 }
 0x357   :  { %v9735_v41 = vcombine.low %v7766_v38, %v7769_v17  ;;  %v5026_v50 = vshll.u32 %v4366_v61, 16  ;;  %v2921_v60 = vshrl.u32 %v2275_v62, 16  ;;  %v7084_v25 = vrot.slane %v7083_v58, 4  ;;  %v2278_v12 = vld [vmem:[#allocation2 + $0x15c] sm:$0xf]  ;;  %v12687_v61 = vpop.f32.mrb[18].mxu1 }
 0x358   :  { %v5018_v26 = vrot.slane %v5016_v24, 5  ;;  %v5022_v52 = vrot.slane %v5020_v46, 4  ;;  %v2924_v47 = vshll.u32 %v2275_v62, 16  ;;  %v5013_v37 = vor.u32 %v5012_v48, %v5009_v14  ;;  %13644 = vst [vmem:[#allocation16_spill] sm:$0xff] %v12687_v61  ;;  %v2279_v46 = vld [vmem:[#allocation2 + $0x160] sm:$0xf] }
 0x359   :  { %8019 = vst.msk [vmem:[#allocation3 + $0x108] sm:$0xff] %vm2164_vm2, %v9735_v41  ;;  %v5028_v38 = vrot.slane %v5026_v50, 5  ;;  %v2923_v17 = vrot.slane %v2921_v60, 4  ;;  %v2930_v51 = vshll.u32 %v2276_v44, 16  ;;  %v8066_v19 = vld [vmem:[#allocation3 + $0xf8] sm:$0xff]  ;;  %v7089_v58 = vsel %vm10511_vm12, %v7084_v25, %v7088_v55  ;;  %6291 = vrot.lane.b32.xlu0 %v10201_v33, %s10355_s1  ;;  %v8353_v39 = vpop.f32.mrb[19].mxu1 }
 0x35a   :  { %v5023_v41 = vor.u32 %v5022_v52, %v5018_v26  ;;  %v2926_v24 = vrot.slane %v2924_v47, 5  ;;  %v2934_v62 = vshrl.u32 %v2276_v44, 16  ;;  %9776 = vmatprep.mubr.msk.bf16.mxu1 %vm2164_vm2, %v8066_v19  ;;  %v9680_v14 = vcombine.low %v7079_v28, %v7089_v58  ;;  %v731_v61 = vld [vmem:[#allocation2 + $0x198] sm:$0x1]  ;;  %v12693_v55 = vpop.f32.mrb[20].mxu1  ;;  %v12700_v58 = vpop.permute.xlu0 %7370 }
 0x35b   :  { %v5014_v48 = vrot.slane %v5013_v37, 4  ;;  %v2932_v50 = vrot.slane %v2930_v51, 5  ;;  %v2940_v60 = vshll.u32 %v2277_v53, 16  ;;  %8427 = vmatmul.mubr.bf16.gmra.mrb[56].mxu1 %v8065_v63  ;;  %v2945_v16 = vshrl.u32 %v2278_v12, 16  ;;  %v2280_v33 = vld [vmem:[#allocation2 + $0x164] sm:$0x1] }
 0x35c   :  { %v5024_v0 = vrot.slane %v5023_v41, 4  ;;  %v2927_v49 = vor.u32 %v2926_v24, %v2923_v17  ;;  %v2936_v54 = vrot.slane %v2934_v62, 4  ;;  %7380 = vrot.lane.b32.xlu1 %v9680_v14, %s10356_s19  ;;  %v2948_v52 = vshll.u32 %v2278_v12, 16  ;;  %v8358_v47 = vpop.f32.mrb[21].mxu1  ;;  %v5453_v17 = vld [vmem:[#allocation2 + $0x15c] sm:$0xe]  ;;  %v7369_v14 = vpop.permute.xlu1 %7368 }
 0x35d   :  { %v5019_v44 = vsel %vm10511_vm12, %v5014_v48, %v5018_v26  ;;  %v2942_v25 = vrot.slane %v2940_v60, 5  ;;  %v2954_v28 = vshll.u32 %v2279_v46, 16  ;;  %v2947_v37 = vrot.slane %v2945_v16, 4  ;;  %v5454_v19 = vld [vmem:[#allocation2 + $0x160] sm:$0xf]  ;;  %v12702_v48 = vpop.f32.mrb[22].mxu1 }
 0x35e   :  { %v5029_v51 = vsel %vm10511_vm12, %v5024_v0, %v5028_v38  ;;  %v2928_v53 = vrot.slane %v2927_v49, 4  ;;  %v2937_v63 = vor.u32 %v2936_v54, %v2932_v50  ;;  %v2950_v62 = vrot.slane %v2948_v52, 5  ;;  %v10223_v12 = vld [vmem:[#allocation2 + $0x144] sm:$0xff]   ;;  %7446 = vst.msk [vmem:[#allocation3 + $0x130] sm:$0xff] %vm7426_vm13, %v7369_v14  ;;  %v8361_v60 = vpop.f32.mrb[23].mxu1 }
 0x35f   :  { %v9553_v24 = vcombine.low %v5019_v44, %v5029_v51  ;;  %v2956_v39 = vrot.slane %v2954_v28, 5  ;;  %v2958_v26 = vshrl.u32 %v2279_v46, 16  ;;  %v2964_v16 = vshll.u32 %v2280_v33, 16  ;;  %v5455_v38 = vld [vmem:[#allocation2 + $0x164] sm:$0x1]  ;;  %v8067_v51 = vld [vmem:[#allocation3 + $0x100] sm:$0xff] }
 0x360   :  { %v8068_v41 = vld [vmem:[#allocation3 + $0x108] sm:$0xff]  ;;  %v2933_v49 = vsel %vm10511_vm12, %v2928_v53, %v2932_v50  ;;  %v2938_v54 = vrot.slane %v2937_v63, 4  ;;  %v541_v0 = vadd.f32 %v12544_v18, %v12289_v3  ;;  %v2951_v46 = vor.u32 %v2950_v62, %v2947_v37  ;;  %v728_v47 = vld [vmem:[#allocation2 + $0x18c] sm:$0x1]  ;;  %2190 = vst.msk [vmem:[#allocation3 + $0x190] sm:$0xff] %vm2164_vm2, %v10223_v12 }
 0x361   :  { %9777 = vmatprep.mubr.msk.bf16.mxu1 %vm2164_vm2, %v8068_v41  ;;  %5298 = vrot.lane.b32.xlu1 %v9553_v24, %s10360_s25  ;;  %v2960_v44 = vrot.slane %v2958_v26, 4  ;;  %v732_v52 = vsel %vm10467_vm4, 0, %v731_v61  ;;  %v9585_v28 = vrot.slane %v5453_v17, 9  ;;  %v10204_v3 = vld [vmem:[#allocation2 + $0x168] sm:$0xff]   ;;  %v2966_v33 = vrot.slane %v2964_v16, 5 }
 0x362   :  { %v2943_v50 = vsel %vm10511_vm12, %v2938_v54, %v2942_v25  ;;  %v609_v53 = vmax.f32 %v541_v0, 0.0  ;;  %733 = vst [vmem:[#allocation2 + $0x198] sm:$0x1] %v732_v52  ;;  %v5751_v63 = vrot.slane %v5454_v19, 5  ;;  %v2952_v24 = vrot.slane %v2951_v46, 4  ;;  %v12720_v25 = vpop.permute.xlu0 %5288 }
 0x363   :  { %v9425_v41 = vcombine.low %v2933_v49, %v2943_v50  ;;  %v2961_v37 = vor.u32 %v2960_v44, %v2956_v39  ;;  %v5754_v62 = vrot.slane %v5455_v38, 5  ;;  %v533_v14 = vadd.f32 %v12544_v18, %v12305_v7  ;;  %v841_v12 = vld [vmem:[#allocation2 + $0x1a0] sm:$0x1]  ;;  %v838_v60 = vld [vmem:[#allocation2 + $0x194] sm:$0x1]  ;;  %8435 = vmatmul.mubr.bf16.gmra.mrb[60].mxu1 %v8067_v51 }
 0x364   :  { %v9889_v26 = vpack.c.bf16 %v609_v53, %v609_v53  ;;  %v5752_v61 = vsel %vm10495_vm9, %v9585_v28, %v5751_v63  ;;  %v5753_v17 = vrot.slane %v5751_v63, 4  ;;  %v2957_v19 = vsel %vm10511_vm12, %v2952_v24, %v2956_v39  ;;  %v10224_v7 = vld [vmem:[#allocation2 + $0x150] sm:$0xff]   ;;  %v6448_v52 = vld [vmem:[#allocation2 + $0x168] sm:$0xf]  ;;  %v10205_v28 = vld [vmem:[#allocation2 + $0x15c] sm:$0xff]  }
 0x365   :  { %3212 = vrot.lane.b32.xlu0 %v9425_v41, %s10357_s20  ;;  %6293 = vrot.lane.b32.xlu1 %v10204_v3, %s10355_s1  ;;  %v2962_v49 = vrot.slane %v2961_v37, 4  ;;  %v729_v54 = vsel %vm10467_vm4, 0, %v728_v47  ;;  %v544_v16 = vadd.f32 %v12544_v18, %v12309_v29  ;;  %v607_v44 = vmax.f32 %v533_v14, 0.0  ;;  %2191 = vst.msk [vmem:[#allocation3 + $0x1a0] sm:$0xff] %vm2164_vm2, %v10224_v7  ;;  %v6449_v41 = vld [vmem:[#allocation2 + $0x16c] sm:$0xf] }
 0x366   :  { %v1569_v0 = vshrl.u32 %v9889_v26, 16  ;;  %v1572_v38 = vshll.u32 %v9889_v26, 16  ;;  %v5755_v46 = vsel %vm10495_vm9, %v5753_v17, %v5754_v62  ;;  %730 = vst [vmem:[#allocation2 + $0x18c] sm:$0x1] %v729_v54  ;;  %v842_v47 = vsel %vm10472_vm6, 0, %v841_v12  ;;  %v12744_v17 = vpop.permute.xlu0 %6283 }
 0x367   :  { %v2967_v39 = vsel %vm10511_vm12, %v2962_v49, %v2966_v33  ;;  %v9617_v51 = vcombine.low %v5752_v61, %v5755_v46  ;;  %v610_v50 = vmax.f32 %v544_v16, 0.0  ;;  %v9887_v53 = vpack.c.bf16 %v607_v44, %v607_v44  ;;  %843 = vst [vmem:[#allocation2 + $0x1a0] sm:$0x1] %v842_v47  ;;  %v5287_v61 = vpop.permute.xlu1 %5286 }
 0x368   :  { %v9426_v29 = vcombine.low %v2957_v19, %v2967_v39  ;;  %v12737_v3 = vrot.slane %v1569_v0, 7  ;;  %v536_v63 = vadd.f32 %v12544_v18, %v12333_v32  ;;  %v839_v37 = vsel %vm10472_vm6, 0, %v838_v60  ;;  %v6450_v19 = vld [vmem:[#allocation2 + $0x170] sm:$0x1]  ;;  %5363 = vst.msk [vmem:[#allocation3 + $0x140] sm:$0xff] %vm5342_vm8, %v5287_v61 }
 0x369   :  { %4209 = vrot.lane.b32.xlu0 %v10205_v28, %s10358_s23  ;;  %v1901_v24 = vld [vmem:[#allocation2 + $0x198] sm:$0xf]  ;;  %v9890_v33 = vpack.c.bf16 %v610_v50, %v610_v50  ;;  %v7091_v62 = vshrl.u32 %v6448_v52, 16  ;;  %v7094_v26 = vshll.u32 %v6448_v52, 16  ;;  %v1552_v32 = vshrl.u32 %v9887_v53, 16  ;;  %6004 = vst.msk [vmem:[#allocation3 + $0x140] sm:$0xff] %vm5983_vm10, %v12661_v45 }
 0x36a   :  { %3214 = vrot.lane.b32.xlu1 %v9426_v29, %s10357_s20  ;;  %v1574_v14 = vor.u32 %v1572_v38, %v12737_v3  ;;  %v1575_v12 = vrot.slane %v12737_v3, 4  ;;  %v1555_v18 = vshll.u32 %v9887_v53, 16  ;;  %840 = vst [vmem:[#allocation2 + $0x194] sm:$0x1] %v839_v37  ;;  %v608_v60 = vmax.f32 %v536_v63, 0.0  ;;  %v10206_v38 = vld [vmem:[#allocation2 + $0x168] sm:$0xff]  }
 0x36b   :  { %v1577_v49 = vshrl.u32 %v9890_v33, 16  ;;  %v1580_v54 = vshll.u32 %v9890_v33, 16  ;;  %v7093_v16 = vrot.slane %v7091_v62, 4  ;;  %v12754_v0 = vrot.slane %v1552_v32, 7  ;;  %v12756_v52 = vld [vmem:[#allocation2 + $0x168] sm:$0xe]  ;;  %v3203_v53 = vpop.permute.xlu1 %3202 }
 0x36c   :  { %v1902_v7 = vsel %vm10586_vm14, %v1574_v14, %v1901_v24  ;;  %v7096_v46 = vrot.slane %v7094_v26, 5  ;;  %v7100_v44 = vshll.u32 %v6449_v41, 16  ;;  %6358 = vst.msk [vmem:[#allocation3 + $0x140] sm:$0xff] %vm6337_vm11, %v12502_v2  ;;  %v12760_v28 = vpop.f32.mrb[24].mxu1  ;;  %v9888_v50 = vpack.c.bf16 %v608_v60, %v608_v60  ;;  %v5457_v3 = vld [vmem:[#allocation2 + $0x16c] sm:$0xf] }
 0x36d   :  { %1903 = vst [vmem:[#allocation2 + $0x198] sm:$0xf] %v1902_v7  ;;  %5939 = vrot.lane.b32.xlu0 %v9617_v51, %s10359_s24  ;;  %v1894_v39 = vld [vmem:[#allocation2 + $0x18c] sm:$0xf]  ;;  %v1579_v45 = vrot.slane %v1577_v49, 7  ;;  %v7104_v47 = vshrl.u32 %v6449_v41, 16  ;;  %v1557_v24 = vor.u32 %v1555_v18, %v12754_v0 }
 0x36e   :  { %v7110_v29 = vshll.u32 %v6450_v19, 16  ;;  %7447 = vst.msk [vmem:[#allocation3 + $0x140] sm:$0xff] %vm7426_vm13, %v12700_v58  ;;  %v8366_v63 = vpop.f32.mrb[25].mxu1  ;;  %v1558_v2 = vrot.slane %v12754_v0, 4  ;;  %4211 = vrot.lane.b32.xlu1 %v10206_v38, %s10358_s23  ;;  %v7097_v33 = vor.u32 %v7096_v46, %v7093_v16  ;;  %v12768_v37 = vrot.slane %v7100_v44, 5  ;;  %v10225_v62 = vld [vmem:[#allocation2 + $0x15c] sm:$0xff]   ;;  %v3205_v19 = vpop.permute.xlu0 %3204 }
 0x36f   :  { %v5458_v51 = vld [vmem:[#allocation2 + $0x170] sm:$0x1]  ;;  %v12773_v41 = vld [vmem:[%s13526_s4] ss:$0 sm:$0xff]  ;;  %3278 = vst.msk [vmem:[#allocation3 + $0x150] sm:$0xff] %vm3256_vm3, %v3203_v53  ;;  %v12776_v58 = vpop.f32.mrb[26].mxu1  ;;  %v1582_v26 = vor.u32 %v1580_v54, %v1579_v45  ;;  %v1895_v60 = vsel %vm10586_vm14, %v1557_v24, %v1894_v39 }
 0x370   :  { %v1584_v61 = vrot.slane %v1579_v45, 4  ;;  %v1905_v14 = vld [vmem:[#allocation2 + $0x1a0] sm:$0x1]  ;;  %v1560_v32 = vshrl.u32 %v9888_v50, 16  ;;  %v1563_v18 = vshll.u32 %v9888_v50, 16  ;;  %3922 = vst.msk [vmem:[#allocation3 + $0x150] sm:$0xff] %vm3900_vm5, %v12683_v10 }
 0x371   :  { %v8369_v49 = vpop.f32.mrb[27].mxu1  ;;  %v7098_v16 = vrot.slane %v7097_v33, 4  ;;  %v7106_v7 = vrot.slane %v7104_v47, 4  ;;  %v7112_v0 = vrot.slane %v7110_v29, 5  ;;  %v3370_v38 = vld [vmem:[#allocation2 + $0x15c] sm:$0xe]  ;;  %v1583_v10 = vsel %vm10593_vm15, %v1575_v12, %v1582_v26 }
 0x372   :  { %4275 = vst.msk [vmem:[#allocation3 + $0x150] sm:$0xff] %vm4253_vm7, %v12526_v15  ;;  %1896 = vst [vmem:[#allocation2 + $0x18c] sm:$0xf] %v1895_v60  ;;  %v1906_v54 = vsel %vm10467_vm4, %v1584_v61, %v1905_v14  ;;  %v1562_v20 = vrot.slane %v1560_v32, 7  ;;  %v9586_v46 = vrot.slane %v12756_v52, 9  ;;  %v5758_v45 = vrot.slane %v5457_v3, 5  ;;  %v4202_v63 = vpop.permute.xlu0 %4201 }
 0x373   :  { %3279 = vst.msk [vmem:[#allocation3 + $0x160] sm:$0xff] %vm3256_vm3, %v3205_v19  ;;  %v3371_v44 = vld [vmem:[#allocation2 + $0x160] sm:$0xf]  ;;  %1907 = vst [vmem:[#allocation2 + $0x1a0] sm:$0x1] %v1906_v54  ;;  %v7103_v12 = vsel %vm10511_vm12, %v7098_v16, %v12768_v37  ;;  %v7107_v39 = vor.u32 %v7106_v7, %v12768_v37  ;;  %v5761_v50 = vrot.slane %v5458_v51, 5  ;;  %v8312_v60 = vadd.f32 %v12773_v41, %v12388_v23 }
 0x374   :  { %2192 = vst.msk [vmem:[#allocation3 + $0x1b0] sm:$0xff] %vm2164_vm2, %v10225_v62  ;;  %v1898_v15 = vld [vmem:[#allocation2 + $0x194] sm:$0x1]  ;;  %v3372_v52 = vld [vmem:[#allocation2 + $0x164] sm:$0x1]  ;;  %v1567_v47 = vrot.slane %v1562_v20, 4  ;;  %v5759_v3 = vsel %vm10495_vm9, %v9586_v46, %v5758_v45 }
 0x375   :  { %5364 = vst.msk [vmem:[#allocation3 + $0x150] sm:$0xff] %vm5342_vm8, %v12720_v25  ;;  %v1565_v25 = vor.u32 %v1563_v18, %v1562_v20  ;;  %v9458_v29 = vrot.slane %v3370_v38, 9  ;;  %v6451_v53 = vld [vmem:[#allocation2 + $0x174] sm:$0xf]  ;;  %v7108_v24 = vrot.slane %v7107_v39, 4  ;;  %v5760_v33 = vrot.slane %v5758_v45, 4  ;;  %v12820_v18 = vpop.permute.xlu1 %5933 }
 0x376   :  { %3923 = vst.msk [vmem:[#allocation3 + $0x160] sm:$0xff] %vm3900_vm5, %v12645_v34  ;;  %v8309_v34 = vadd.f32 %v12773_v41, %v12370_v42  ;;  %v3675_v37 = vrot.slane %v3371_v44, 5  ;;  %v1899_v42 = vsel %vm10467_vm4, %v1567_v47, %v1898_v15  ;;  %v3678_v62 = vrot.slane %v3372_v52, 5  ;;  %v6452_v26 = vld [vmem:[#allocation2 + $0x178] sm:$0xf] }
 0x377   :  { %1904 = vst.msk [vmem:[#allocation2 + $0x19c] sm:$0xf] %vm611_vm1, %v1583_v10  ;;  %1900 = vst [vmem:[#allocation2 + $0x194] sm:$0x1] %v1899_v42  ;;  %v5762_v61 = vsel %vm10495_vm9, %v5760_v33, %v5761_v50  ;;  %v7510_v32 = vld [vmem:[#allocation2 + $0xfc] sm:$0xe] }
 0x378   :  { %6005 = vst.msk [vmem:[#allocation3 + $0x150] sm:$0xff] %vm5983_vm10, %v12633_v21  ;;  %v1566_v21 = vsel %vm10593_vm15, %v1558_v2, %v1565_v25  ;;  %v8563_v51 = vmax.f32 %v8309_v34, 0.0  ;;  %v3676_v14 = vsel %vm10495_vm9, %v9458_v29, %v3675_v37  ;;  %v3677_v36 = vrot.slane %v3675_v37, 4  ;;  %v6453_v2 = vld [vmem:[#allocation2 + $0x17c] sm:$0x1] }
 0x379   :  { %6359 = vst.msk [vmem:[#allocation3 + $0x150] sm:$0xff] %vm6337_vm11, %v12744_v17  ;;  %v7113_v17 = vsel %vm10511_vm12, %v7108_v24, %v7112_v0  ;;  %v9618_v49 = vcombine.low %v5759_v3, %v5762_v61  ;;  %v7115_v16 = vshrl.u32 %v6451_v53, 16  ;;  %v7512_v7 = vld [vmem:[#allocation2 + $0x104] sm:$0x1]  ;;  %v4367_v38 = vld [vmem:[#allocation2 + $0x168] sm:$0xf] }
 0x37a   :  { %4276 = vst.msk [vmem:[#allocation3 + $0x160] sm:$0xff] %vm4253_vm7, %v4202_v63  ;;  %v9681_v19 = vcombine.low %v7103_v12, %v7113_v17  ;;  %v3679_v0 = vsel %vm10495_vm9, %v3677_v36, %v3678_v62  ;;  %v7118_v10 = vshll.u32 %v6451_v53, 16  ;;  %v7124_v54 = vshll.u32 %v6452_v26, 16  ;;  %v4368_v46 = vld [vmem:[#allocation2 + $0x16c] sm:$0xf]  ;;  %v12833_v62 = vpop.permute.xlu1 %3852 }
 0x37b   :  { %1897 = vst.msk [vmem:[#allocation2 + $0x190] sm:$0xf] %vm611_vm1, %v1566_v21  ;;  %v7128_v20 = vshrl.u32 %v6452_v26, 16  ;;  %5941 = vrot.lane.b32.xlu1 %v9618_v49, %s10359_s24  ;;  %v9490_v15 = vcombine.low %v3676_v14, %v3679_v0  ;;  %v8564_v12 = vmax.f32 %v8312_v60, 0.0  ;;  %v7117_v39 = vrot.slane %v7115_v16, 4 }
 0x37c   :  { %7382 = vrot.lane.b32.xlu0 %v9681_v19, %s10356_s19  ;;  %v7134_v23 = vshll.u32 %v6453_v2, 16  ;;  %v7120_v50 = vrot.slane %v7118_v10, 5  ;;  %v7126_v52 = vrot.slane %v7124_v54, 5  ;;  %v9704_v29 = vrot.slane %v7510_v32, 9  ;;  %v4369_v24 = vld [vmem:[#allocation2 + $0x170] sm:$0x1] }
 0x37d   :  { %v7130_v25 = vrot.slane %v7128_v20, 4  ;;  %v8627_v47 = vpack.c.bf16 %v8564_v12, %v8563_v51  ;;  %v13645_v53 = vrot.slane %v11791_v1, 5  ;;  %v7775_v37 = vrot.slane %v7512_v7, 5  ;;  %v3373_v42 = vld [vmem:[#allocation2 + $0x168] sm:$0xe] }
 0x37e   :  { %v12826_v44 = vld [vmem:[#allocation2 + $0x19c] sm:$0xf]  ;;  %v7136_v34 = vrot.slane %v7134_v23, 5  ;;  %v7121_v3 = vor.u32 %v7120_v50, %v7117_v39  ;;  %v5031_v21 = vshrl.u32 %v4367_v38, 16  ;;  %v5034_v61 = vshll.u32 %v4367_v38, 16 }
 0x37f   :  { %v7863_v45 = vrot.slane %v12826_v44, 5  ;;  %v7774_v63 = vrot.slane %v13645_v53, 4  ;;  %v7131_v33 = vor.u32 %v7130_v25, %v7126_v52  ;;  %v13646_v17 = vmov %v13645_v53  ;;  %10028 = vmatprep.mubr.msk.bf16.mxu0 %vm2164_vm2, %v8627_v47  ;;  %v3374_v60 = vld [vmem:[#allocation2 + $0x16c] sm:$0xf]  ;;  %v3375_v10 = vld [vmem:[#allocation2 + $0x170] sm:$0x1]  ;;  %v12853_v25 = vpop.permute.xlu0 %5931 }
 0x380   :  { %3858 = vrot.lane.b32.xlu0 %v9490_v15, %s10354_s0  ;;  %v7773_v51 = vsel %vm10495_vm9, %v9704_v29, %v13646_v17  ;;  %v5040_v14 = vshll.u32 %v4368_v46, 16  ;;  %v5044_v36 = vshrl.u32 %v4368_v46, 16  ;;  %v7122_v32 = vrot.slane %v7121_v3, 4  ;;  %v4370_v15 = vld [vmem:[#allocation2 + $0x174] sm:$0xf]  ;;  %v12855_v47 = vpop.f32.mrb[28].mxu1  ;;  %v12857_v3 = vpop.permute.xlu1 %6289 }
 0x381   :  { %v7132_v19 = vrot.slane %v7131_v33, 4  ;;  %v7776_v49 = vsel %vm10495_vm9, %v7774_v63, %v7775_v37  ;;  %v5033_v7 = vrot.slane %v5031_v21, 4  ;;  %v5036_v0 = vrot.slane %v5034_v61, 5 }
 0x382   :  { %v12835_v26 = vld [vmem:[#allocation2 + $0x190] sm:$0xf]  ;;  %v9736_v16 = vcombine.low %v7773_v51, %v7776_v49  ;;  %v5042_v1 = vrot.slane %v5040_v14, 5  ;;  %v7127_v38 = vsel %vm10511_vm12, %v7122_v32, %v7126_v52  ;;  %v5046_v20 = vrot.slane %v5044_v36, 4  ;;  %v2281_v36 = vld [vmem:[#allocation2 + $0x168] sm:$0xf] }
 0x383   :  { %v7856_v2 = vrot.slane %v12835_v26, 5  ;;  %v7137_v54 = vsel %vm10511_vm12, %v7132_v19, %v7136_v34  ;;  %v5050_v46 = vshll.u32 %v4369_v24, 16  ;;  %v5037_v39 = vor.u32 %v5036_v0, %v5033_v7  ;;  %v4371_v34 = vld [vmem:[#allocation2 + $0x178] sm:$0xf]  ;;  %v8374_v24 = vpop.f32.mrb[29].mxu1  ;;  %v10226_v0 = vld [vmem:[#allocation2 + $0x168] sm:$0xff]  }
 0x384   :  { %v9682_v12 = vcombine.low %v7127_v38, %v7137_v54  ;;  %8020 = vst.msk [vmem:[#allocation3 + $0x118] sm:$0xff] %vm2164_vm2, %v9736_v16  ;;  %v8317_v23 = vadd.f32 %v12773_v41, %v12411_v59  ;;  %v9459_v50 = vrot.slane %v3373_v42, 9  ;;  %v5047_v29 = vor.u32 %v5046_v20, %v5042_v1  ;;  %v12862_v42 = vpop.f32.mrb[30].mxu1  ;;  %v2282_v20 = vld [vmem:[#allocation2 + $0x16c] sm:$0xf]  ;;  %2193 = vst.msk [vmem:[#allocation3 + $0x1c0] sm:$0xff] %vm2164_vm2, %v10226_v0 }
 0x385   :  { %v5052_v52 = vrot.slane %v5050_v46, 5  ;;  %v3682_v53 = vrot.slane %v3374_v60, 5  ;;  %v3685_v63 = vrot.slane %v3375_v10, 5  ;;  %v5038_v33 = vrot.slane %v5037_v39, 4  ;;  %v8377_v32 = vpop.f32.mrb[31].mxu1 }
 0x386   :  { %7384 = vrot.lane.b32.xlu1 %v9682_v12, %s10356_s19  ;;  %v8565_v37 = vmax.f32 %v8317_v23, 0.0  ;;  %v8320_v59 = vadd.f32 %v12773_v41, %v12421_v8  ;;  %v5055_v21 = vshrl.u32 %v4370_v15, 16  ;;  %v5048_v17 = vrot.slane %v5047_v29, 4  ;;  %v4372_v60 = vld [vmem:[#allocation2 + $0x17c] sm:$0x1] }
 0x387   :  { %v3683_v51 = vsel %vm10495_vm9, %v9459_v50, %v3682_v53  ;;  %v3684_v61 = vrot.slane %v3682_v53, 4  ;;  %v5058_v14 = vshll.u32 %v4370_v15, 16  ;;  %v5043_v19 = vsel %vm10511_vm12, %v5038_v33, %v5042_v1  ;;  %v2283_v46 = vld [vmem:[#allocation2 + $0x170] sm:$0x1]  ;;  %v8069_v1 = vld [vmem:[#allocation3 + $0x110] sm:$0xff] }
 0x388   :  { %v8566_v49 = vmax.f32 %v8320_v59, 0.0  ;;  %v5057_v16 = vrot.slane %v5055_v21, 4  ;;  %v5064_v7 = vshll.u32 %v4371_v34, 16  ;;  %v5053_v8 = vsel %vm10511_vm12, %v5048_v17, %v5052_v52  ;;  %v12873_v52 = vpop.permute.xlu0 %3850  ;;  %v12875_v59 = vpop.permute.xlu1 %4207  ;;  %v7513_v17 = vld [vmem:[#allocation2 + $0x108] sm:$0xe] }
 0x389   :  { %v3686_v10 = vsel %vm10495_vm9, %v3684_v61, %v3685_v63  ;;  %v5060_v38 = vrot.slane %v5058_v14, 5  ;;  %v5068_v54 = vshrl.u32 %v4371_v34, 16  ;;  %v9554_v15 = vcombine.low %v5043_v19, %v5053_v8  ;;  %v7515_v19 = vld [vmem:[#allocation2 + $0x110] sm:$0x1] }
 0x38a   :  { %v9491_v12 = vcombine.low %v3683_v51, %v3686_v10  ;;  %v8628_v39 = vpack.c.bf16 %v8566_v49, %v8565_v37  ;;  %v5066_v23 = vrot.slane %v5064_v7, 5  ;;  %v5074_v24 = vshll.u32 %v4372_v60, 16  ;;  %v10207_v49 = vld [vmem:[#allocation2 + $0x174] sm:$0xff]  }
 0x38b   :  { %v8070_v50 = vld [vmem:[#allocation3 + $0x118] sm:$0xff]  ;;  %v5061_v29 = vor.u32 %v5060_v38, %v5057_v16  ;;  %v5070_v53 = vrot.slane %v5068_v54, 4  ;;  %v2969_v33 = vshrl.u32 %v2281_v36, 16  ;;  %5300 = vrot.lane.b32.xlu0 %v9554_v15, %s10360_s25  ;;  %v2972_v63 = vshll.u32 %v2281_v36, 16 }
 0x38c   :  { %9778 = vmatprep.mubr.msk.bf16.mxu1 %vm2164_vm2, %v8070_v50  ;;  %v2978_v34 = vshll.u32 %v2282_v20, 16  ;;  %v2982_v37 = vshrl.u32 %v2282_v20, 16  ;;  %v2988_v21 = vshll.u32 %v2283_v46, 16  ;;  %3860 = vrot.lane.b32.xlu1 %v9491_v12, %s10354_s0  ;;  %v5076_v14 = vrot.slane %v5074_v24, 5  ;;  %v2286_v24 = vld [vmem:[#allocation2 + $0x17c] sm:$0x1] }
 0x38d   :  { %v5062_v51 = vrot.slane %v5061_v29, 4  ;;  %v5071_v61 = vor.u32 %v5070_v53, %v5066_v23  ;;  %v2971_v32 = vrot.slane %v2969_v33, 4  ;;  %8443 = vmatmul.mubr.bf16.gmra.mrb[64].mxu1 %v8069_v1  ;;  %v2974_v60 = vrot.slane %v2972_v63, 5  ;;  %10029 = vmatmul.mubr.msk.bf16.vlgmr.msra.gmra.mrb[68].mxu0 %vm2164_vm2, %v8628_v39  ;;  %v2284_v1 = vld [vmem:[#allocation2 + $0x174] sm:$0xf]  ;;  %v12896_v33 = vpop.permute.xlu0 %7374  ;;  %v7373_v63 = vpop.permute.xlu1 %7372 }
 0x38e   :  { %v2980_v16 = vrot.slane %v2978_v34, 5  ;;  %v2984_v7 = vrot.slane %v2982_v37, 4  ;;  %v2990_v0 = vrot.slane %v2988_v21, 5  ;;  %v8325_v10 = vadd.f32 %v12773_v41, %v12460_v31  ;;  %v2285_v53 = vld [vmem:[#allocation2 + $0x178] sm:$0xf]  ;;  %7448 = vst.msk [vmem:[#allocation3 + $0x150] sm:$0xff] %vm7426_vm13, %v7373_v63 }
 0x38f   :  { %v5067_v36 = vsel %vm10511_vm12, %v5062_v51, %v5066_v23  ;;  %v5072_v8 = vrot.slane %v5071_v61, 4  ;;  %v9705_v38 = vrot.slane %v7513_v17, 9  ;;  %6295 = vrot.lane.b32.xlu0 %v10207_v49, %s10355_s1  ;;  %v2975_v54 = vor.u32 %v2974_v60, %v2971_v32  ;;  %v10227_v34 = vld [vmem:[#allocation2 + $0x174] sm:$0xff]  }
 0x390   :  { %v2985_v20 = vor.u32 %v2984_v7, %v2980_v16  ;;  %v13647_v46 = vrot.slane %v11788_v30, 5  ;;  %v7782_v12 = vrot.slane %v7515_v19, 5  ;;  %v8567_v50 = vmax.f32 %v8325_v10, 0.0  ;;  %v5459_v61 = vld [vmem:[#allocation2 + $0x174] sm:$0xe]  ;;  %2194 = vst.msk [vmem:[#allocation3 + $0x1d0] sm:$0xff] %vm2164_vm2, %v10227_v34 }
 0x391   :  { %v5077_v39 = vsel %vm10511_vm12, %v5072_v8, %v5076_v14  ;;  %v8328_v31 = vadd.f32 %v12773_v41, %v12489_v11  ;;  %v2976_v21 = vrot.slane %v2975_v54, 4  ;;  %v5460_v30 = vld [vmem:[#allocation2 + $0x178] sm:$0xf]  ;;  %v7516_v14 = vld [vmem:[#allocation2 + $0x114] sm:$0xe]  ;;  %v2993_v11 = vshrl.u32 %v2284_v1, 16 }
 0x392   :  { %v7781_v15 = vrot.slane %v13647_v46, 4  ;;  %v13648_v23 = vmov %v13647_v46  ;;  %v9555_v37 = vcombine.low %v5067_v36, %v5077_v39  ;;  %v2986_v17 = vrot.slane %v2985_v20, 4  ;;  %v5461_v10 = vld [vmem:[#allocation2 + $0x17c] sm:$0x1] }
 0x393   :  { %v7780_v29 = vsel %vm10495_vm9, %v9705_v38, %v13648_v23  ;;  %v8568_v19 = vmax.f32 %v8328_v31, 0.0  ;;  %v2996_v49 = vshll.u32 %v2284_v1, 16  ;;  %v2981_v60 = vsel %vm10511_vm12, %v2976_v21, %v2980_v16  ;;  %v10211_v1 = vld [vmem:[#allocation2 + $0x180] sm:$0xff]  }
 0x394   :  { %v7783_v51 = vsel %vm10495_vm9, %v7781_v15, %v7782_v12  ;;  %5302 = vrot.lane.b32.xlu1 %v9555_v37, %s10360_s25  ;;  %v2991_v7 = vsel %vm10511_vm12, %v2986_v17, %v2990_v0  ;;  %v3002_v36 = vshll.u32 %v2285_v53, 16  ;;  %v3006_v8 = vshrl.u32 %v2285_v53, 16  ;;  %v7518_v15 = vld [vmem:[#allocation2 + $0x11c] sm:$0x1]  ;;  %v12908_v12 = vpop.f32.mrb[32].mxu1  ;;  %v12912_v37 = vpop.permute.xlu0 %5292 }
 0x395   :  { %v9737_v32 = vcombine.low %v7780_v29, %v7783_v51  ;;  %v9427_v38 = vcombine.low %v2981_v60, %v2991_v7  ;;  %v8629_v54 = vpack.c.bf16 %v8568_v19, %v8567_v50  ;;  %v2995_v20 = vrot.slane %v2993_v11, 4  ;;  %v8382_v31 = vpop.f32.mrb[33].mxu1  ;;  %v6454_v50 = vld [vmem:[#allocation2 + $0x180] sm:$0xf]  ;;  %v6455_v19 = vld [vmem:[#allocation2 + $0x184] sm:$0xf] }
 0x396   :  { %v2998_v46 = vrot.slane %v2996_v49, 5  ;;  %v3004_v39 = vrot.slane %v3002_v36, 5  ;;  %v3008_v23 = vrot.slane %v3006_v8, 4  ;;  %v3012_v29 = vshll.u32 %v2286_v24, 16  ;;  %v12914_v21 = vpop.f32.mrb[34].mxu1 }
 0x397   :  { %8021 = vst.msk [vmem:[#allocation3 + $0x128] sm:$0xff] %vm2164_vm2, %v9737_v32  ;;  %v9587_v16 = vrot.slane %v5459_v61, 9  ;;  %3216 = vrot.lane.b32.xlu0 %v9427_v38, %s10357_s20  ;;  %v5765_v53 = vrot.slane %v5460_v30, 5  ;;  %v5768_v63 = vrot.slane %v5461_v10, 5  ;;  %v9706_v34 = vrot.slane %v7516_v14, 9  ;;  %10032 = vmatprep.mubr.msk.bf16.mxu0 %vm2164_vm2, %v8629_v54  ;;  %v8385_v11 = vpop.f32.mrb[35].mxu1  ;;  %v5291_v38 = vpop.permute.xlu1 %5290 }
 0x398   :  { %v2999_v0 = vor.u32 %v2998_v46, %v2995_v20  ;;  %6297 = vrot.lane.b32.xlu1 %v10211_v1, %s10355_s1  ;;  %v3009_v17 = vor.u32 %v3008_v23, %v3004_v39  ;;  %v3014_v51 = vrot.slane %v3012_v29, 5  ;;  %v13649_v24 = vrot.slane %v11963_v57, 5  ;;  %v10212_v30 = vld [vmem:[#allocation2 + $0x174] sm:$0xff]   ;;  %v6456_v8 = vld [vmem:[#allocation2 + $0x188] sm:$0x1]  ;;  %5365 = vst.msk [vmem:[#allocation3 + $0x160] sm:$0xff] %vm5342_vm8, %v5291_v38 }
 0x399   :  { %v7789_v32 = vrot.slane %v7518_v15, 5  ;;  %v5766_v14 = vsel %vm10495_vm9, %v9587_v16, %v5765_v53  ;;  %v5767_v60 = vrot.slane %v5765_v53, 4  ;;  %v5462_v10 = vld [vmem:[#allocation2 + $0x180] sm:$0xe]  ;;  %v7139_v46 = vshrl.u32 %v6454_v50, 16  ;;  %v8071_v29 = vld [vmem:[#allocation3 + $0x120] sm:$0xff] }
 0x39a   :  { %v7788_v61 = vrot.slane %v13649_v24, 4  ;;  %v3000_v49 = vrot.slane %v2999_v0, 4  ;;  %v13650_v7 = vmov %v13649_v24  ;;  %v3010_v54 = vrot.slane %v3009_v17, 4  ;;  %v5463_v1 = vld [vmem:[#allocation2 + $0x184] sm:$0xf]  ;;  %6006 = vst.msk [vmem:[#allocation3 + $0x160] sm:$0xff] %vm5983_vm10, %v12853_v25 }
 0x39b   :  { %v7787_v36 = vsel %vm10495_vm9, %v9706_v34, %v13650_v7  ;;  %v7142_v15 = vshll.u32 %v6454_v50, 16  ;;  %4213 = vrot.lane.b32.xlu0 %v10212_v30, %s10358_s23  ;;  %v5769_v23 = vsel %vm10495_vm9, %v5767_v60, %v5768_v63  ;;  %v7148_v31 = vshll.u32 %v6455_v19, 16  ;;  %v5464_v0 = vld [vmem:[#allocation2 + $0x188] sm:$0x1]  ;;  %v3376_v53 = vld [vmem:[#allocation2 + $0x174] sm:$0xe] }
 0x39c   :  { %v7790_v20 = vsel %vm10495_vm9, %v7788_v61, %v7789_v32  ;;  %v3005_v57 = vsel %vm10511_vm12, %v3000_v49, %v3004_v39  ;;  %v3015_v50 = vsel %vm10511_vm12, %v3010_v54, %v3014_v51  ;;  %v9619_v17 = vcombine.low %v5766_v14, %v5769_v23  ;;  %v3377_v32 = vld [vmem:[#allocation2 + $0x178] sm:$0xf]  ;;  %6360 = vst.msk [vmem:[#allocation3 + $0x160] sm:$0xff] %vm6337_vm11, %v12667_v56  ;;  %v3378_v30 = vld [vmem:[#allocation2 + $0x17c] sm:$0x1]  ;;  %v6288_v51 = vpop.permute.xlu0 %6287 }
 0x39d   :  { %v9738_v16 = vcombine.low %v7787_v36, %v7790_v20  ;;  %v7141_v24 = vrot.slane %v7139_v46, 4  ;;  %v7144_v61 = vrot.slane %v7142_v15, 5  ;;  %v9428_v39 = vcombine.low %v3005_v57, %v3015_v50  ;;  %7449 = vst.msk [vmem:[#allocation3 + $0x160] sm:$0xff] %vm7426_vm13, %v12896_v33  ;;  %v6457_v56 = vld [vmem:[#allocation2 + $0x18c] sm:$0xf]  ;;  %v3207_v36 = vpop.permute.xlu1 %3206 }
 0x39e   :  { %v8072_v34 = vld [vmem:[#allocation3 + $0x128] sm:$0xff]  ;;  %v12941_v63 = vrot.slane %v7148_v31, 5  ;;  %v7152_v11 = vshrl.u32 %v6455_v19, 16  ;;  %v7158_v25 = vshll.u32 %v6456_v8, 16  ;;  %v9588_v14 = vrot.slane %v5462_v10, 9  ;;  %3280 = vst.msk [vmem:[#allocation3 + $0x170] sm:$0xff] %vm3256_vm3, %v3207_v36 }
 0x39f   :  { %9779 = vmatprep.mubr.msk.bf16.mxu1 %vm2164_vm2, %v8072_v34  ;;  %8022 = vst.msk [vmem:[#allocation3 + $0x138] sm:$0xff] %vm2164_vm2, %v9738_v16  ;;  %v7145_v49 = vor.u32 %v7144_v61, %v7141_v24  ;;  %v5772_v60 = vrot.slane %v5463_v1, 5  ;;  %v5775_v7 = vrot.slane %v5464_v0, 5  ;;  %3218 = vrot.lane.b32.xlu1 %v9428_v39, %s10357_s20  ;;  %v9460_v19 = vrot.slane %v3376_v53, 9  ;;  %v6458_v20 = vld [vmem:[#allocation2 + $0x190] sm:$0xf] }
 0x3a0   :  { %8451 = vmatmul.mubr.bf16.gmra.mrb[68].mxu1 %v8071_v29  ;;  %5943 = vrot.lane.b32.xlu0 %v9619_v17, %s10359_s24  ;;  %v7154_v38 = vrot.slane %v7152_v11, 4  ;;  %v7160_v54 = vrot.slane %v7158_v25, 5  ;;  %v3689_v8 = vrot.slane %v3377_v32, 5  ;;  %v3692_v15 = vrot.slane %v3378_v30, 5  ;;  %3924 = vst.msk [vmem:[#allocation3 + $0x170] sm:$0xff] %vm3900_vm5, %v12873_v52  ;;  %v10213_v1 = vld [vmem:[#allocation2 + $0x180] sm:$0xff]   ;;  %v3209_v11 = vpop.permute.xlu0 %3208 }
 0x3a1   :  { %v7146_v33 = vrot.slane %v7145_v49, 4  ;;  %v5773_v46 = vsel %vm10495_vm9, %v9588_v14, %v5772_v60  ;;  %v5774_v10 = vrot.slane %v5772_v60, 4  ;;  %v7163_v16 = vshrl.u32 %v6457_v56, 16  ;;  %v4373_v31 = vld [vmem:[#allocation2 + $0x180] sm:$0xf]  ;;  %4277 = vst.msk [vmem:[#allocation3 + $0x170] sm:$0xff] %vm4253_vm7, %v12685_v4 }
 0x3a2   :  { %v7155_v57 = vor.u32 %v7154_v38, %v12941_v63  ;;  %v12955_v23 = vsel %vm10495_vm9, %v9460_v19, %v3689_v8  ;;  %v3691_v29 = vrot.slane %v3689_v8, 4  ;;  %v6459_v53 = vld [vmem:[#allocation2 + $0x194] sm:$0x1]  ;;  %v7166_v34 = vshll.u32 %v6457_v56, 16  ;;  %5366 = vst.msk [vmem:[#allocation3 + $0x170] sm:$0xff] %vm5342_vm8, %v12912_v37  ;;  %v10228_v17 = vld [vmem:[#allocation2 + $0x180] sm:$0xff]  }
 0x3a3   :  { %v7151_v0 = vsel %vm10511_vm12, %v7146_v33, %v12941_v63  ;;  %v5776_v52 = vsel %vm10495_vm9, %v5774_v10, %v5775_v7  ;;  %v7172_v50 = vshll.u32 %v6458_v20, 16  ;;  %4215 = vrot.lane.b32.xlu1 %v10213_v1, %s10358_s23  ;;  %v7165_v32 = vrot.slane %v7163_v16, 4  ;;  %v4374_v39 = vld [vmem:[#allocation2 + $0x184] sm:$0xf]  ;;  %6007 = vst.msk [vmem:[#allocation3 + $0x170] sm:$0xff] %vm5983_vm10, %v12820_v18 }
 0x3a4   :  { %v7156_v24 = vrot.slane %v7155_v57, 4  ;;  %v9620_v61 = vcombine.low %v5773_v46, %v5776_v52  ;;  %v3693_v4 = vsel %vm10495_vm9, %v3691_v29, %v3692_v15  ;;  %v8073_v63 = vld [vmem:[#allocation3 + $0x130] sm:$0xff]  ;;  %v7168_v49 = vrot.slane %v7166_v34, 5  ;;  %3281 = vst.msk [vmem:[#allocation3 + $0x180] sm:$0xff] %vm3256_vm3, %v3209_v11  ;;  %v4375_v56 = vld [vmem:[#allocation2 + $0x188] sm:$0x1]  ;;  %v4206_v1 = vpop.permute.xlu0 %4205  ;;  %v12985_v34 = vpop.permute.xlu1 %5937 }
 0x3a5   :  { %v9492_v30 = vcombine.low %v12955_v23, %v3693_v4  ;;  %v7174_v37 = vrot.slane %v7172_v50, 5  ;;  %v7176_v14 = vshrl.u32 %v6458_v20, 16  ;;  %6361 = vst.msk [vmem:[#allocation3 + $0x170] sm:$0xff] %vm6337_vm11, %v6288_v51  ;;  %v7182_v7 = vshll.u32 %v6459_v53, 16  ;;  %v3379_v33 = vld [vmem:[#allocation2 + $0x180] sm:$0xe] }
 0x3a6   :  { %v8074_v25 = vld [vmem:[#allocation3 + $0x138] sm:$0xff]  ;;  %2195 = vst.msk [vmem:[#allocation3 + $0x1e0] sm:$0xff] %vm2164_vm2, %v10228_v17  ;;  %v7161_v60 = vsel %vm10511_vm12, %v7156_v24, %v7160_v54  ;;  %v5079_v18 = vshrl.u32 %v4373_v31, 16  ;;  %v5082_v36 = vshll.u32 %v4373_v31, 16  ;;  %v7169_v19 = vor.u32 %v7168_v49, %v7165_v32  ;;  %v3380_v54 = vld [vmem:[#allocation2 + $0x184] sm:$0xf] }
 0x3a7   :  { %9780 = vmatprep.mubr.msk.bf16.mxu1 %vm2164_vm2, %v8074_v25  ;;  %3925 = vst.msk [vmem:[#allocation3 + $0x180] sm:$0xff] %vm3900_vm5, %v12833_v62  ;;  %v9683_v38 = vcombine.low %v7151_v0, %v7161_v60  ;;  %v7178_v8 = vrot.slane %v7176_v14, 4  ;;  %v5088_v20 = vshll.u32 %v4374_v39, 16  ;;  %5945 = vrot.lane.b32.xlu1 %v9620_v61, %s10359_s24  ;;  %v7184_v51 = vrot.slane %v7182_v7, 5  ;;  %v3381_v16 = vld [vmem:[#allocation2 + $0x188] sm:$0x1] }
 0x3a8   :  { %8459 = vmatmul.mubr.bf16.gmra.mrb[72].mxu1 %v8073_v63  ;;  %v5081_v46 = vrot.slane %v5079_v18, 4  ;;  %v5084_v10 = vrot.slane %v5082_v36, 5  ;;  %v5092_v15 = vshrl.u32 %v4374_v39, 16  ;;  %v7170_v57 = vrot.slane %v7169_v19, 4  ;;  %4278 = vst.msk [vmem:[#allocation3 + $0x180] sm:$0xff] %vm4253_vm7, %v4206_v1 }
 0x3a9   :  { %7386 = vrot.lane.b32.xlu0 %v9683_v38, %s10356_s19  ;;  %v7179_v23 = vor.u32 %v7178_v8, %v7174_v37  ;;  %v5090_v29 = vrot.slane %v5088_v20, 5  ;;  %v5098_v62 = vshll.u32 %v4375_v56, 16  ;;  %v8333_v52 = vadd.f32 %v12773_v41, %v12555_v40  ;;  %v4376_v4 = vld [vmem:[#allocation2 + $0x18c] sm:$0xf]  ;;  %v4377_v25 = vld [vmem:[#allocation2 + $0x190] sm:$0xf] }
 0x3aa   :  { %v5085_v31 = vor.u32 %v5084_v10, %v5081_v46  ;;  %v5094_v0 = vrot.slane %v5092_v15, 4  ;;  %v9461_v53 = vrot.slane %v3379_v33, 9  ;;  %v7175_v50 = vsel %vm10511_vm12, %v7170_v57, %v7174_v37  ;;  %v2287_v36 = vld [vmem:[#allocation2 + $0x180] sm:$0xf]  ;;  %v4378_v19 = vld [vmem:[#allocation2 + $0x194] sm:$0x1] }
 0x3ab   :  { %v7180_v17 = vrot.slane %v7179_v23, 4  ;;  %v5100_v24 = vrot.slane %v5098_v62, 5  ;;  %v3696_v61 = vrot.slane %v3380_v54, 5  ;;  %v8569_v63 = vmax.f32 %v8333_v52, 0.0  ;;  %v2288_v10 = vld [vmem:[#allocation2 + $0x184] sm:$0xf]  ;;  %v13003_v54 = vpop.permute.xlu1 %3856 }
 0x3ac   :  { %v5086_v32 = vrot.slane %v5085_v31, 4  ;;  %v5095_v39 = vor.u32 %v5094_v0, %v5090_v29  ;;  %v3699_v11 = vrot.slane %v3381_v16, 5  ;;  %v8336_v37 = vadd.f32 %v12773_v41, %v12568_v27  ;;  %v2289_v15 = vld [vmem:[#allocation2 + $0x188] sm:$0x1] }
 0x3ad   :  { %3862 = vrot.lane.b32.xlu0 %v9492_v30, %s10354_s0  ;;  %v7185_v40 = vsel %vm10511_vm12, %v7180_v17, %v7184_v51  ;;  %v3697_v49 = vsel %vm10495_vm9, %v9461_v53, %v3696_v61  ;;  %v3698_v14 = vrot.slane %v3696_v61, 4  ;;  %v5103_v18 = vshrl.u32 %v4376_v4, 16 }
 0x3ae   :  { %v9684_v60 = vcombine.low %v7175_v50, %v7185_v40  ;;  %v5091_v7 = vsel %vm10511_vm12, %v5086_v32, %v5090_v29  ;;  %v5096_v56 = vrot.slane %v5095_v39, 4  ;;  %v8570_v38 = vmax.f32 %v8336_v37, 0.0 }
 0x3af   :  { %v3700_v30 = vsel %vm10495_vm9, %v3698_v14, %v3699_v11  ;;  %v5106_v8 = vshll.u32 %v4376_v4, 16  ;;  %v5112_v20 = vshll.u32 %v4377_v25, 16  ;;  %v5105_v51 = vrot.slane %v5103_v18, 4  ;;  %v13008_v11 = vpop.f32.mrb[36].mxu1 }
 0x3b0   :  { %7388 = vrot.lane.b32.xlu1 %v9684_v60, %s10356_s19  ;;  %v5101_v33 = vsel %vm10511_vm12, %v5096_v56, %v5100_v24  ;;  %v9493_v27 = vcombine.low %v3697_v49, %v3700_v30  ;;  %v5116_v46 = vshrl.u32 %v4377_v25, 16  ;;  %v8630_v57 = vpack.c.bf16 %v8570_v38, %v8569_v63  ;;  %v7519_v24 = vld [vmem:[#allocation2 + $0x120] sm:$0xe]  ;;  %v7521_v63 = vld [vmem:[#allocation2 + $0x128] sm:$0x1]  ;;  %v10214_v25 = vld [vmem:[#allocation2 + $0x18c] sm:$0xff]   ;;  %v13012_v30 = vpop.permute.xlu0 %5935  ;;  %v7377_v38 = vpop.permute.xlu1 %7376 }
 0x3b1   :  { %v9556_v1 = vcombine.low %v5091_v7, %v5101_v33  ;;  %v5108_v23 = vrot.slane %v5106_v8, 5  ;;  %v5114_v29 = vrot.slane %v5112_v20, 5  ;;  %v5122_v16 = vshll.u32 %v4378_v19, 16  ;;  %v8390_v60 = vpop.f32.mrb[37].mxu1  ;;  %v10229_v19 = vld [vmem:[#allocation2 + $0x18c] sm:$0xff]   ;;  %7450 = vst.msk [vmem:[#allocation3 + $0x170] sm:$0xff] %vm7426_vm13, %v7377_v38 }
 0x3b2   :  { %v5118_v62 = vrot.slane %v5116_v46, 4  ;;  %v3017_v31 = vshrl.u32 %v2287_v36, 16  ;;  %v3020_v0 = vshll.u32 %v2287_v36, 16  ;;  %v3026_v53 = vshll.u32 %v2288_v10, 16  ;;  %10033 = vmatmul.mubr.msk.bf16.gmra.mrb[72].mxu0 %vm2164_vm2, %v8630_v57  ;;  %v13651_v33 = vld [vmem:[#allocation10_spill] sm:$0xff]  ;;  %2196 = vst.msk [vmem:[#allocation3 + $0x1f0] sm:$0xff] %vm2164_vm2, %v10229_v19 }
 0x3b3   :  { %5304 = vrot.lane.b32.xlu0 %v9556_v1, %s10360_s25  ;;  %v5109_v52 = vor.u32 %v5108_v23, %v5105_v51  ;;  %v3030_v50 = vshrl.u32 %v2288_v10, 16  ;;  %v3036_v17 = vshll.u32 %v2289_v15, 16  ;;  %v5124_v4 = vrot.slane %v5122_v16, 5  ;;  %v2290_v10 = vld [vmem:[#allocation2 + $0x18c] sm:$0xf]  ;;  %v13020_v15 = vpop.f32.mrb[38].mxu1 }
 0x3b4   :  { %3864 = vrot.lane.b32.xlu1 %v9493_v27, %s10354_s0  ;;  %v5119_v61 = vor.u32 %v5118_v62, %v5114_v29  ;;  %v3019_v32 = vrot.slane %v3017_v31, 4  ;;  %v3022_v39 = vrot.slane %v3020_v0, 5  ;;  %v3028_v49 = vrot.slane %v3026_v53, 5  ;;  %v2291_v62 = vld [vmem:[#allocation2 + $0x190] sm:$0xf]  ;;  %v8393_v16 = vpop.f32.mrb[39].mxu1 }
 0x3b5   :  { %v5110_v40 = vrot.slane %v5109_v52, 4  ;;  %v3032_v14 = vrot.slane %v3030_v50, 4  ;;  %v3038_v37 = vrot.slane %v3036_v17, 5  ;;  %v8341_v18 = vadd.f32 %v12773_v41, %v12585_v13  ;;  %v2292_v50 = vld [vmem:[#allocation2 + $0x194] sm:$0x1]  ;;  %v10217_v38 = vld [vmem:[#allocation2 + $0x198] sm:$0xff]  }
 0x3b6   :  { %v5120_v7 = vrot.slane %v5119_v61, 4  ;;  %v3023_v56 = vor.u32 %v3022_v39, %v3019_v32  ;;  %v9707_v36 = vrot.slane %v7519_v24, 9  ;;  %v13652_v27 = vrot.slane %v13651_v33, 5  ;;  %v5465_v32 = vld [vmem:[#allocation2 + $0x18c] sm:$0xe] }
 0x3b7   :  { %6299 = vrot.lane.b32.xlu0 %v10214_v25, %s10355_s1  ;;  %v5115_v8 = vsel %vm10511_vm12, %v5110_v40, %v5114_v29  ;;  %v3033_v20 = vor.u32 %v3032_v14, %v3028_v49  ;;  %v7796_v46 = vrot.slane %v7521_v63, 5  ;;  %v8571_v57 = vmax.f32 %v8341_v18, 0.0  ;;  %v5466_v39 = vld [vmem:[#allocation2 + $0x190] sm:$0xf]  ;;  %v7522_v63 = vld [vmem:[#allocation2 + $0x12c] sm:$0xe] }
 0x3b8   :  { %v7795_v51 = vrot.slane %v13652_v27, 4  ;;  %v5125_v13 = vsel %vm10511_vm12, %v5120_v7, %v5124_v4  ;;  %v3024_v1 = vrot.slane %v3023_v56, 4  ;;  %v13653_v23 = vmov %v13652_v27  ;;  %v5467_v7 = vld [vmem:[#allocation2 + $0x194] sm:$0x1]  ;;  %v6460_v27 = vld [vmem:[#allocation2 + $0x198] sm:$0xf] }
 0x3b9   :  { %v7794_v29 = vsel %vm10495_vm9, %v9707_v36, %v13653_v23  ;;  %v9557_v31 = vcombine.low %v5115_v8, %v5125_v13  ;;  %v3034_v0 = vrot.slane %v3033_v20, 4  ;;  %v8344_v53 = vadd.f32 %v12773_v41, %v12640_v43  ;;  %v7524_v18 = vld [vmem:[#allocation2 + $0x134] sm:$0x1]  ;;  %v13039_v36 = vpop.permute.xlu0 %3854  ;;  %v13654_v23 = vld [vmem:[#allocation11_spill] sm:$0xff] }
 0x3ba   :  { %v7797_v52 = vsel %vm10495_vm9, %v7795_v51, %v7796_v46  ;;  %v3029_v17 = vsel %vm10511_vm12, %v3024_v1, %v3028_v49  ;;  %v3041_v61 = vshrl.u32 %v2290_v10, 16  ;;  %v3044_v4 = vshll.u32 %v2290_v10, 16 }
 0x3bb   :  { %v9739_v24 = vcombine.low %v7794_v29, %v7797_v52  ;;  %5306 = vrot.lane.b32.xlu1 %v9557_v31, %s10360_s25  ;;  %v3039_v25 = vsel %vm10511_vm12, %v3034_v0, %v3038_v37  ;;  %v8572_v40 = vmax.f32 %v8344_v53, 0.0  ;;  %v3050_v14 = vshll.u32 %v2291_v62, 16  ;;  %v5295_v31 = vpop.permute.xlu1 %5294  ;;  %v10218_v0 = vld [vmem:[#allocation2 + $0x18c] sm:$0xff]  }
 0x3bc   :  { %v3054_v60 = vshrl.u32 %v2291_v62, 16  ;;  %v9429_v43 = vcombine.low %v3029_v17, %v3039_v25  ;;  %v3043_v41 = vrot.slane %v3041_v61, 4  ;;  %v3046_v49 = vrot.slane %v3044_v4, 5  ;;  %v6461_v17 = vld [vmem:[#allocation2 + $0x19c] sm:$0xf]  ;;  %5367 = vst.msk [vmem:[#allocation3 + $0x180] sm:$0xff] %vm5342_vm8, %v5295_v31 }
 0x3bd   :  { %8023 = vst.msk [vmem:[#allocation3 + $0x148] sm:$0xff] %vm2164_vm2, %v9739_v24  ;;  %v3060_v56 = vshll.u32 %v2292_v50, 16  ;;  %v8631_v19 = vpack.c.bf16 %v8572_v40, %v8571_v57  ;;  %v3052_v8 = vrot.slane %v3050_v14, 5  ;;  %v9589_v33 = vrot.slane %v5465_v32, 9  ;;  %v5468_v57 = vld [vmem:[#allocation2 + $0x198] sm:$0xe] }
 0x3be   :  { %v3056_v20 = vrot.slane %v3054_v60, 4  ;;  %3220 = vrot.lane.b32.xlu0 %v9429_v43, %s10357_s20  ;;  %v3047_v37 = vor.u32 %v3046_v49, %v3043_v41  ;;  %v5779_v46 = vrot.slane %v5466_v39, 5  ;;  %v5782_v10 = vrot.slane %v5467_v7, 5  ;;  %v5469_v40 = vld [vmem:[#allocation2 + $0x19c] sm:$0xf]  ;;  %6008 = vst.msk [vmem:[#allocation3 + $0x180] sm:$0xff] %vm5983_vm10, %v13012_v30 }
 0x3bf   :  { %v3062_v51 = vrot.slane %v3060_v56, 5  ;;  %6301 = vrot.lane.b32.xlu1 %v10217_v38, %s10355_s1  ;;  %v9708_v1 = vrot.slane %v7522_v63, 9  ;;  %v13655_v29 = vrot.slane %v13654_v23, 5  ;;  %v7803_v16 = vrot.slane %v7524_v18, 5  ;;  %10036 = vmatprep.mubr.msk.bf16.mxu0 %vm2164_vm2, %v8631_v19  ;;  %v6462_v63 = vld [vmem:[#allocation2 + $0x1a0] sm:$0x1]  ;;  %v7379_v18 = vpop.permute.xlu0 %7378 }
 0x3c0   :  { %v3057_v13 = vor.u32 %v3056_v20, %v3052_v8  ;;  %v3048_v52 = vrot.slane %v3047_v37, 4  ;;  %v5780_v53 = vsel %vm10495_vm9, %v9589_v33, %v5779_v46  ;;  %v5781_v50 = vrot.slane %v5779_v46, 4  ;;  %v8075_v7 = vld [vmem:[#allocation3 + $0x140] sm:$0xff]  ;;  %v5470_v49 = vld [vmem:[#allocation2 + $0x1a0] sm:$0x1]  ;;  %6362 = vst.msk [vmem:[#allocation3 + $0x180] sm:$0xff] %vm6337_vm11, %v12857_v3 }
 0x3c1   :  { %v7802_v62 = vrot.slane %v13655_v29, 4  ;;  %v7187_v24 = vshrl.u32 %v6460_v27, 16  ;;  %v13656_v4 = vmov %v13655_v29  ;;  %v7190_v25 = vshll.u32 %v6460_v27, 16  ;;  %v3382_v56 = vld [vmem:[#allocation2 + $0x18c] sm:$0xe]  ;;  %7451 = vst.msk [vmem:[#allocation3 + $0x180] sm:$0xff] %vm7426_vm13, %v7379_v18 }
 0x3c2   :  { %v3058_v61 = vrot.slane %v3057_v13, 4  ;;  %v7801_v32 = vsel %vm10495_vm9, %v9708_v1, %v13656_v4  ;;  %4217 = vrot.lane.b32.xlu0 %v10218_v0, %s10358_s23  ;;  %v3053_v14 = vsel %vm10511_vm12, %v3048_v52, %v3052_v8  ;;  %v5783_v60 = vsel %vm10495_vm9, %v5781_v50, %v5782_v10  ;;  %v3383_v8 = vld [vmem:[#allocation2 + $0x190] sm:$0xf]  ;;  %v4379_v27 = vld [vmem:[#allocation2 + $0x198] sm:$0xf]  ;;  %v13067_v37 = vpop.f32.mrb[40].mxu1 }
 0x3c3   :  { %v7804_v39 = vsel %vm10495_vm9, %v7802_v62, %v7803_v16  ;;  %v7189_v41 = vrot.slane %v7187_v24, 4  ;;  %v9621_v19 = vcombine.low %v5780_v53, %v5783_v60  ;;  %v7192_v20 = vrot.slane %v7190_v25, 5  ;;  %v3384_v1 = vld [vmem:[#allocation2 + $0x194] sm:$0x1]  ;;  %v8398_v23 = vpop.f32.mrb[41].mxu1  ;;  %v3211_v60 = vpop.permute.xlu1 %3210 }
 0x3c4   :  { %v9740_v43 = vcombine.low %v7801_v32, %v7804_v39  ;;  %v8076_v38 = vld [vmem:[#allocation3 + $0x148] sm:$0xff]  ;;  %v3063_v30 = vsel %vm10511_vm12, %v3058_v61, %v3062_v51  ;;  %v7196_v33 = vshll.u32 %v6461_v17, 16  ;;  %v7200_v3 = vshrl.u32 %v6461_v17, 16  ;;  %v13071_v0 = vpop.f32.mrb[42].mxu1  ;;  %v734_v18 = vld [vmem:[#allocation2 + $0x1a4] sm:$0x1] }
 0x3c5   :  { %9781 = vmatprep.mubr.msk.bf16.mxu1 %vm2164_vm2, %v8076_v38  ;;  %v9430_v46 = vcombine.low %v3053_v14, %v3063_v30  ;;  %v7206_v10 = vshll.u32 %v6462_v63, 16  ;;  %v9590_v13 = vrot.slane %v5468_v57, 9  ;;  %v7193_v51 = vor.u32 %v7192_v20, %v7189_v41  ;;  %v4380_v31 = vld [vmem:[#allocation2 + $0x19c] sm:$0xf]  ;;  %v8401_v24 = vpop.f32.mrb[43].mxu1  ;;  %3282 = vst.msk [vmem:[#allocation3 + $0x190] sm:$0xff] %vm3256_vm3, %v3211_v60 }
 0x3c6   :  { %8024 = vst.msk [vmem:[#allocation3 + $0x158] sm:$0xff] %vm2164_vm2, %v9740_v43  ;;  %8467 = vmatmul.mubr.bf16.gmra.mrb[76].mxu1 %v8075_v7  ;;  %v7198_v29 = vrot.slane %v7196_v33, 5  ;;  %v5786_v62 = vrot.slane %v5469_v40, 5  ;;  %v5789_v16 = vrot.slane %v5470_v49, 5  ;;  %5947 = vrot.lane.b32.xlu0 %v9621_v19, %s10359_s24  ;;  %v7202_v52 = vrot.slane %v7200_v3, 4  ;;  %v10219_v39 = vld [vmem:[#allocation2 + $0x198] sm:$0xff]  }
 0x3c7   :  { %3222 = vrot.lane.b32.xlu1 %v9430_v46, %s10357_s20  ;;  %v7208_v53 = vrot.slane %v7206_v10, 5  ;;  %v9462_v50 = vrot.slane %v3382_v56, 9  ;;  %v3703_v17 = vrot.slane %v3383_v8, 5  ;;  %v7194_v57 = vrot.slane %v7193_v51, 4  ;;  %v4381_v41 = vld [vmem:[#allocation2 + $0x1a0] sm:$0x1] }
 0x3c8   :  { %v5787_v61 = vsel %vm10495_vm9, %v9590_v13, %v5786_v62  ;;  %v5788_v4 = vrot.slane %v5786_v62, 4  ;;  %v3706_v32 = vrot.slane %v3384_v1, 5  ;;  %v7203_v63 = vor.u32 %v7202_v52, %v7198_v29  ;;  %v844_v33 = vld [vmem:[#allocation2 + $0x1ac] sm:$0x1]  ;;  %v8077_v8 = vld [vmem:[#allocation3 + $0x150] sm:$0xff]  ;;  %3926 = vst.msk [vmem:[#allocation3 + $0x190] sm:$0xff] %vm3900_vm5, %v13039_v36 }
 0x3c9   :  { %v13079_v25 = vsel %vm10495_vm9, %v9462_v50, %v3703_v17  ;;  %v3705_v40 = vrot.slane %v3703_v17, 4  ;;  %v5127_v14 = vshrl.u32 %v4379_v27, 16  ;;  %v7199_v7 = vsel %vm10511_vm12, %v7194_v57, %v7198_v29  ;;  %v6464_v1 = vld [vmem:[#allocation2 + $0x1a8] sm:$0xf]  ;;  %4279 = vst.msk [vmem:[#allocation3 + $0x190] sm:$0xff] %vm4253_vm7, %v12875_v59  ;;  %v13657_v50 = vld [vmem:[#allocation16_spill] sm:$0xff] }
 0x3ca   :  { %v5790_v43 = vsel %vm10495_vm9, %v5788_v4, %v5789_v16  ;;  %v5130_v49 = vshll.u32 %v4379_v27, 16  ;;  %v5136_v56 = vshll.u32 %v4380_v31, 16  ;;  %v7204_v38 = vrot.slane %v7203_v63, 4  ;;  %v13100_v36 = vld [vmem:[%s13526_s4] ss:$0 sm:$0xff]  ;;  %v5297_v16 = vpop.permute.xlu0 %5296 }
 0x3cb   :  { %4219 = vrot.lane.b32.xlu1 %v10219_v39, %s10358_s23  ;;  %v9622_v30 = vcombine.low %v5787_v61, %v5790_v43  ;;  %v3707_v19 = vsel %vm10495_vm9, %v3705_v40, %v3706_v32  ;;  %v5129_v20 = vrot.slane %v5127_v14, 4  ;;  %v5140_v13 = vshrl.u32 %v4380_v31, 16  ;;  %v7525_v17 = vld [vmem:[#allocation2 + $0x138] sm:$0xe]  ;;  %5368 = vst.msk [vmem:[#allocation3 + $0x190] sm:$0xff] %vm5342_vm8, %v5297_v16 }
 0x3cc   :  { %v9494_v27 = vcombine.low %v13079_v25, %v3707_v19  ;;  %v5132_v3 = vrot.slane %v5130_v49, 5  ;;  %v5138_v10 = vrot.slane %v5136_v56, 5  ;;  %v7209_v23 = vsel %vm10511_vm12, %v7204_v38, %v7208_v53  ;;  %6009 = vst.msk [vmem:[#allocation3 + $0x190] sm:$0xff] %vm5983_vm10, %v12985_v34  ;;  %v7527_v63 = vld [vmem:[#allocation2 + $0x140] sm:$0x1] }
 0x3cd   :  { %v8078_v46 = vld [vmem:[#allocation3 + $0x158] sm:$0xff]  ;;  %v5146_v51 = vshll.u32 %v4381_v41, 16  ;;  %v8349_v29 = vadd.f32 %v13100_v36, %v12675_v22  ;;  %v735_v62 = vsel %vm10467_vm4, 0, %v734_v18  ;;  %v9685_v31 = vcombine.low %v7199_v7, %v7209_v23  ;;  %v7528_v43 = vld [vmem:[#allocation2 + $0x144] sm:$0xe] }
 0x3ce   :  { %9782 = vmatprep.mubr.msk.bf16.mxu1 %vm2164_vm2, %v8078_v46  ;;  %v5133_v59 = vor.u32 %v5132_v3, %v5129_v20  ;;  %v5142_v52 = vrot.slane %v5140_v13, 4  ;;  %736 = vst [vmem:[#allocation2 + $0x1a4] sm:$0x1] %v735_v62  ;;  %v8352_v53 = vadd.f32 %v13100_v36, %v13657_v50  ;;  %v845_v5 = vsel %vm10472_vm6, 0, %v844_v33  ;;  %v6292_v41 = vpop.permute.xlu0 %6291  ;;  %v7530_v46 = vld [vmem:[#allocation2 + $0x14c] sm:$0x1] }
 0x3cf   :  { %8475 = vmatmul.mubr.bf16.gmra.mrb[80].mxu1 %v8077_v8  ;;  %5949 = vrot.lane.b32.xlu1 %v9622_v30, %s10359_s24  ;;  %v5148_v24 = vrot.slane %v5146_v51, 5  ;;  %v8573_v57 = vmax.f32 %v8349_v29, 0.0  ;;  %v7220_v22 = vshll.u32 %v6464_v1, 16  ;;  %846 = vst [vmem:[#allocation2 + $0x1ac] sm:$0x1] %v845_v5  ;;  %v7224_v39 = vshrl.u32 %v6464_v1, 16  ;;  %v7381_v51 = vpop.permute.xlu1 %7380 }
 0x3d0   :  { %7390 = vrot.lane.b32.xlu0 %v9685_v31, %s10356_s19  ;;  %v5134_v61 = vrot.slane %v5133_v59, 4  ;;  %v5143_v4 = vor.u32 %v5142_v52, %v5138_v10  ;;  %v8574_v32 = vmax.f32 %v8352_v53, 0.0  ;;  %v8357_v40 = vadd.f32 %v13100_v36, %v12693_v55  ;;  %6363 = vst.msk [vmem:[#allocation3 + $0x190] sm:$0xff] %vm6337_vm11, %v6292_v41  ;;  %v7531_v23 = vld [vmem:[#allocation2 + $0x150] sm:$0xe] }
 0x3d1   :  { %v13115_v25 = vrot.slane %v7220_v22, 5  ;;  %v9709_v14 = vrot.slane %v7525_v17, 9  ;;  %v13659_v60 = vrot.slane %v13658_v6, 5  ;;  %v7226_v18 = vrot.slane %v7224_v39, 4  ;;  %7452 = vst.msk [vmem:[#allocation3 + $0x190] sm:$0xff] %vm7426_vm13, %v7381_v51 }
 0x3d2   :  { %v5139_v34 = vsel %vm10511_vm12, %v5134_v61, %v5138_v10  ;;  %v5144_v49 = vrot.slane %v5143_v4, 4  ;;  %v8632_v56 = vpack.c.bf16 %v8574_v32, %v8573_v57  ;;  %v8575_v38 = vmax.f32 %v8357_v40, 0.0  ;;  %v13661_v10 = vld [vmem:[#allocation13_spill] sm:$0xff]  ;;  %v7533_v53 = vld [vmem:[#allocation2 + $0x158] sm:$0x1] }
 0x3d3   :  { %v7809_v7 = vrot.slane %v13659_v60, 4  ;;  %v13660_v30 = vmov %v13659_v60  ;;  %v7810_v19 = vrot.slane %v7527_v63, 5  ;;  %v8360_v20 = vadd.f32 %v13100_v36, %v12702_v48  ;;  %v7534_v4 = vld [vmem:[#allocation2 + $0x15c] sm:$0xe]  ;;  %v13664_v60 = vld [vmem:[#allocation14_spill] sm:$0xff] }
 0x3d4   :  { %v7808_v55 = vsel %vm10495_vm9, %v9709_v14, %v13660_v30  ;;  %3866 = vrot.lane.b32.xlu0 %v9494_v27, %s10354_s0  ;;  %v5149_v33 = vsel %vm10511_vm12, %v5144_v49, %v5148_v24  ;;  %v7227_v8 = vor.u32 %v7226_v18, %v13115_v25  ;;  %10037 = vmatmul.mubr.msk.bf16.gmra.mrb[76].mxu0 %vm2164_vm2, %v8632_v56  ;;  %v9710_v3 = vrot.slane %v7528_v43, 9  ;;  %v13148_v14 = vpop.permute.xlu1 %5298 }
 0x3d5   :  { %v13662_v13 = vrot.slane %v13661_v10, 5  ;;  %v9558_v29 = vcombine.low %v5139_v34, %v5149_v33  ;;  %v6463_v62 = vld [vmem:[#allocation2 + $0x1a4] sm:$0xf]  ;;  %v7811_v48 = vsel %vm10495_vm9, %v7809_v7, %v7810_v19  ;;  %v8576_v27 = vmax.f32 %v8360_v20, 0.0 }
 0x3d6   :  { %v8365_v16 = vadd.f32 %v13100_v36, %v12760_v28  ;;  %v7211_v31 = vshrl.u32 %v6463_v62, 16  ;;  %v7214_v59 = vshll.u32 %v6463_v62, 16  ;;  %v7228_v52 = vrot.slane %v7227_v8, 4  ;;  %v6465_v17 = vld [vmem:[#allocation2 + $0x1ac] sm:$0x1]  ;;  %v10220_v28 = vld [vmem:[#allocation2 + $0x1a4] sm:$0xff]  }
 0x3d7   :  { %v7816_v1 = vrot.slane %v13662_v13, 4  ;;  %v9741_v50 = vcombine.low %v7808_v55, %v7811_v48  ;;  %v8633_v24 = vpack.c.bf16 %v8576_v27, %v8575_v38  ;;  %v13663_v57 = vmov %v13662_v13  ;;  %v7536_v55 = vld [vmem:[#allocation2 + $0x164] sm:$0x1]  ;;  %v3213_v13 = vpop.permute.xlu0 %3212  ;;  %v7539_v62 = vld [vmem:[#allocation2 + $0x170] sm:$0x1] }
 0x3d8   :  { %v7815_v5 = vsel %vm10495_vm9, %v9710_v3, %v13663_v57  ;;  %v7817_v22 = vrot.slane %v7530_v46, 5  ;;  %v8577_v61 = vmax.f32 %v8365_v16, 0.0  ;;  %5308 = vrot.lane.b32.xlu0 %v9558_v29, %s10360_s25  ;;  %v7213_v32 = vrot.slane %v7211_v31, 4  ;;  %v7537_v46 = vld [vmem:[#allocation2 + $0x168] sm:$0xe]  ;;  %v13171_v29 = vpop.permute.xlu1 %6293  ;;  %3283 = vst.msk [vmem:[#allocation3 + $0x1a0] sm:$0xff] %vm3256_vm3, %v3213_v13 }
 0x3d9   :  { %v7216_v39 = vrot.slane %v7214_v59, 5  ;;  %v7230_v63 = vshll.u32 %v6465_v17, 16  ;;  %8025 = vst.msk [vmem:[#allocation3 + $0x168] sm:$0xff] %vm2164_vm2, %v9741_v50  ;;  %v9711_v40 = vrot.slane %v7531_v23, 9  ;;  %10040 = vmatprep.mubr.msk.bf16.mxu0 %vm2164_vm2, %v8633_v24  ;;  %v13665_v7 = vrot.slane %v13664_v60, 5  ;;  %v13670_v17 = vld [vmem:[#allocation17_spill] sm:$0xff] }
 0x3da   :  { %v7818_v6 = vsel %vm10495_vm9, %v7816_v1, %v7817_v22  ;;  %v7824_v41 = vrot.slane %v7533_v53, 5  ;;  %v8368_v34 = vadd.f32 %v13100_v36, %v12776_v58  ;;  %v8373_v33 = vadd.f32 %v13100_v36, %v12855_v47  ;;  %v13667_v1 = vld [vmem:[#allocation15_spill] sm:$0xff]  ;;  %3927 = vst.msk [vmem:[#allocation3 + $0x1a0] sm:$0xff] %vm3900_vm5, %v13003_v54 }
 0x3db   :  { %v7823_v43 = vrot.slane %v13665_v7, 4  ;;  %v7217_v49 = vor.u32 %v7216_v39, %v7213_v32  ;;  %v7232_v56 = vrot.slane %v7230_v63, 5  ;;  %v9742_v18 = vcombine.low %v7815_v5, %v7818_v6  ;;  %v7540_v5 = vld [vmem:[#allocation2 + $0x174] sm:$0xe]  ;;  %v7542_v54 = vld [vmem:[#allocation2 + $0x17c] sm:$0x1]  ;;  %v4210_v32 = vpop.permute.xlu0 %4209 }
 0x3dc   :  { %v13666_v38 = vmov %v13665_v7  ;;  %v8578_v20 = vmax.f32 %v8368_v34, 0.0  ;;  %v9712_v8 = vrot.slane %v7534_v4, 9  ;;  %6303 = vrot.lane.b32.xlu0 %v10220_v28, %s10355_s1  ;;  %v13668_v23 = vrot.slane %v13667_v1, 5  ;;  %v7543_v6 = vld [vmem:[#allocation2 + $0x180] sm:$0xe]  ;;  %4280 = vst.msk [vmem:[#allocation3 + $0x1a0] sm:$0xff] %vm4253_vm7, %v4210_v32 }
 0x3dd   :  { %v7822_v30 = vsel %vm10495_vm9, %v9711_v40, %v13666_v38  ;;  %v7825_v19 = vsel %vm10495_vm9, %v7823_v43, %v7824_v41  ;;  %v7218_v58 = vrot.slane %v7217_v49, 4  ;;  %v7233_v3 = vsel %vm10511_vm12, %v7228_v52, %v7232_v56  ;;  %8026 = vst.msk [vmem:[#allocation3 + $0x178] sm:$0xff] %vm2164_vm2, %v9742_v18  ;;  %v8079_v52 = vld [vmem:[#allocation3 + $0x160] sm:$0xff]  ;;  %v13673_v41 = vld [vmem:[#allocation19_spill] sm:$0xff]  ;;  %v7545_v56 = vld [vmem:[#allocation2 + $0x188] sm:$0x1] }
 0x3de   :  { %v9743_v10 = vcombine.low %v7822_v30, %v7825_v19  ;;  %v7830_v51 = vrot.slane %v13668_v23, 4  ;;  %v8634_v48 = vpack.c.bf16 %v8578_v20, %v8577_v61  ;;  %v8579_v47 = vmax.f32 %v8373_v33, 0.0  ;;  %5369 = vst.msk [vmem:[#allocation3 + $0x1a0] sm:$0xff] %vm5342_vm8, %v13148_v14  ;;  %v8404_v14 = vpop.f32.mrb[44].mxu1  ;;  %v13676_v1 = vld [vmem:[#allocation20_spill] sm:$0xff] }
 0x3df   :  { %v13669_v27 = vmov %v13668_v23  ;;  %v7831_v31 = vrot.slane %v7536_v55, 5  ;;  %v7223_v59 = vsel %vm10511_vm12, %v7218_v58, %v13115_v25  ;;  %v8376_v50 = vadd.f32 %v13100_v36, %v12862_v42  ;;  %v7546_v58 = vld [vmem:[#allocation2 + $0x18c] sm:$0xe] }
 0x3e0   :  { %v7829_v16 = vsel %vm10495_vm9, %v9712_v8, %v13669_v27  ;;  %8027 = vst.msk [vmem:[#allocation3 + $0x188] sm:$0xff] %vm2164_vm2, %v9743_v10  ;;  %v9713_v53 = vrot.slane %v7537_v46, 9  ;;  %v13671_v24 = vrot.slane %v13670_v17, 5  ;;  %v9686_v22 = vcombine.low %v7223_v59, %v7233_v3  ;;  %v8080_v61 = vld [vmem:[#allocation3 + $0x168] sm:$0xff]  ;;  %10041 = vmatmul.mubr.msk.bf16.gmra.mrb[80].mxu0 %vm2164_vm2, %v8634_v48  ;;  %v5940_v3 = vpop.permute.xlu0 %5939 }
 0x3e1   :  { %v7832_v9 = vsel %vm10495_vm9, %v7830_v51, %v7831_v31  ;;  %v7838_v25 = vrot.slane %v7539_v62, 5  ;;  %v8381_v4 = vadd.f32 %v13100_v36, %v12908_v12  ;;  %9783 = vmatprep.mubr.msk.bf16.mxu1 %vm2164_vm2, %v8080_v61  ;;  %v8580_v28 = vmax.f32 %v8376_v50, 0.0  ;;  %v3215_v12 = vpop.permute.xlu1 %3214  ;;  %v7548_v62 = vld [vmem:[#allocation2 + $0x194] sm:$0x1]  ;;  %6010 = vst.msk [vmem:[#allocation3 + $0x1a0] sm:$0xff] %vm5983_vm10, %v5940_v3 }
 0x3e2   :  { %v7837_v57 = vrot.slane %v13671_v24, 4  ;;  %v9744_v42 = vcombine.low %v7829_v16, %v7832_v9  ;;  %v13672_v39 = vmov %v13671_v24  ;;  %v8384_v40 = vadd.f32 %v13100_v36, %v12914_v21  ;;  %7392 = vrot.lane.b32.xlu1 %v9686_v22, %s10356_s19  ;;  %8483 = vmatmul.mubr.bf16.gmra.mrb[84].mxu1 %v8079_v52  ;;  %3284 = vst.msk [vmem:[#allocation3 + $0x1b0] sm:$0xff] %vm3256_vm3, %v3215_v12  ;;  %v8081_v52 = vld [vmem:[#allocation3 + $0x170] sm:$0xff] }
 0x3e3   :  { %v7836_v63 = vsel %vm10495_vm9, %v9713_v53, %v13672_v39  ;;  %v8581_v7 = vmax.f32 %v8381_v4, 0.0  ;;  %v9714_v43 = vrot.slane %v7540_v5, 9  ;;  %v13674_v34 = vrot.slane %v13673_v41, 5  ;;  %6364 = vst.msk [vmem:[#allocation3 + $0x1a0] sm:$0xff] %vm6337_vm11, %v13171_v29  ;;  %v7549_v5 = vld [vmem:[#allocation2 + $0x198] sm:$0xe] }
 0x3e4   :  { %v7839_v60 = vsel %vm10495_vm9, %v7837_v57, %v7838_v25  ;;  %8028 = vst.msk [vmem:[#allocation3 + $0x198] sm:$0xff] %vm2164_vm2, %v9744_v42  ;;  %v8635_v18 = vpack.c.bf16 %v8580_v28, %v8579_v47  ;;  %v8582_v38 = vmax.f32 %v8384_v40, 0.0  ;;  %v7845_v30 = vrot.slane %v7542_v54, 5  ;;  %v8082_v55 = vld [vmem:[#allocation3 + $0x178] sm:$0xff]  ;;  %v7551_v25 = vld [vmem:[#allocation2 + $0x1a0] sm:$0x1] }
 0x3e5   :  { %v7844_v49 = vrot.slane %v13674_v34, 4  ;;  %v9745_v21 = vcombine.low %v7836_v63, %v7839_v60  ;;  %v13675_v19 = vmov %v13674_v34  ;;  %v8389_v33 = vadd.f32 %v13100_v36, %v13008_v11  ;;  %9784 = vmatprep.mubr.msk.bf16.mxu1 %vm2164_vm2, %v8082_v55  ;;  %v7552_v42 = vld [vmem:[#allocation2 + $0x1a4] sm:$0xe]  ;;  %v7553_v28 = vld [vmem:[#allocation2 + $0x1a8] sm:$0xf] }
 0x3e6   :  { %v7843_v20 = vsel %vm10495_vm9, %v9714_v43, %v13675_v19  ;;  %v8392_v8 = vadd.f32 %v13100_v36, %v13020_v15  ;;  %v9715_v46 = vrot.slane %v7543_v6, 9  ;;  %10044 = vmatprep.mubr.msk.bf16.mxu0 %vm2164_vm2, %v8635_v18  ;;  %v8636_v10 = vpack.c.bf16 %v8582_v38, %v8581_v7  ;;  %v8406_v15 = vpop.f32.mrb[45].mxu1  ;;  %v8083_v19 = vld [vmem:[#allocation3 + $0x180] sm:$0xff] }
 0x3e7   :  { %8029 = vst.msk [vmem:[#allocation3 + $0x1a8] sm:$0xff] %vm2164_vm2, %v9745_v21  ;;  %v7846_v13 = vsel %vm10495_vm9, %v7844_v49, %v7845_v30  ;;  %v13677_v23 = vrot.slane %v13676_v1, 5  ;;  %v7852_v51 = vrot.slane %v7545_v56, 5  ;;  %v8583_v47 = vmax.f32 %v8389_v33, 0.0  ;;  %v8407_v59 = vpop.f32.mrb[46].mxu1  ;;  %v8084_v32 = vld [vmem:[#allocation3 + $0x188] sm:$0xff] }
 0x3e8   :  { %v9746_v48 = vcombine.low %v7843_v20, %v7846_v13  ;;  %v8584_v27 = vmax.f32 %v8392_v8, 0.0  ;;  %v8397_v53 = vadd.f32 %v13100_v36, %v13067_v37  ;;  %v8400_v17 = vadd.f32 %v13100_v36, %v13071_v0  ;;  %v8409_v57 = vpop.f32.mrb[47].mxu1  ;;  %10045 = vmatmul.mubr.msk.bf16.gmra.mrb[84].mxu0 %vm2164_vm2, %v8636_v10 }
 0x3e9   :  { %v7851_v11 = vrot.slane %v13677_v23, 4  ;;  %v13678_v16 = vmov %v13677_v23  ;;  %v9716_v24 = vrot.slane %v7546_v58, 9  ;;  %v7858_v29 = vrot.slane %v7856_v2, 4 }
 0x3ea   :  { %v7850_v31 = vsel %vm10495_vm9, %v9715_v46, %v13678_v16  ;;  %8030 = vst.msk [vmem:[#allocation3 + $0x1b8] sm:$0xff] %vm2164_vm2, %v9746_v48  ;;  %v8637_v22 = vpack.c.bf16 %v8584_v27, %v8583_v47  ;;  %v7859_v9 = vrot.slane %v7548_v62, 5  ;;  %v8585_v4 = vmax.f32 %v8397_v53, 0.0  ;;  %8491 = vmatmul.mubr.bf16.gmra.mrb[88].mxu1 %v8081_v52 }
 0x3eb   :  { %v7853_v50 = vsel %vm10495_vm9, %v7851_v11, %v7852_v51  ;;  %v8586_v54 = vmax.f32 %v8400_v17, 0.0  ;;  %v7857_v37 = vsel %vm10495_vm9, %v9716_v24, %v7856_v2  ;;  %v8405_v0 = vadd.f32 %v13100_v36, %v8404_v14  ;;  %v7554_v2 = vld [vmem:[#allocation2 + $0x1ac] sm:$0x1]  ;;  %9785 = vmatprep.mubr.msk.bf16.mxu1 %vm2164_vm2, %v8084_v32  ;;  %v8085_v14 = vld [vmem:[#allocation3 + $0x190] sm:$0xff] }
 0x3ec   :  { %v9747_v61 = vcombine.low %v7850_v31, %v7853_v50  ;;  %10048 = vmatprep.mubr.msk.bf16.mxu0 %vm2164_vm2, %v8637_v22  ;;  %v7860_v39 = vsel %vm10495_vm9, %v7858_v29, %v7859_v9  ;;  %v8408_v63 = vadd.f32 %v13100_v36, %v8407_v59  ;;  %v9717_v40 = vrot.slane %v7549_v5, 9  ;;  %v8086_v8 = vld [vmem:[#allocation3 + $0x198] sm:$0xff] }
 0x3ed   :  { %v7865_v26 = vrot.slane %v7863_v45, 4  ;;  %v8638_v6 = vpack.c.bf16 %v8586_v54, %v8585_v4  ;;  %v9748_v12 = vcombine.low %v7857_v37, %v7860_v39  ;;  %v8587_v60 = vmax.f32 %v8405_v0, 0.0 }
 0x3ee   :  { %8031 = vst.msk [vmem:[#allocation3 + $0x1c8] sm:$0xff] %vm2164_vm2, %v9747_v61  ;;  %v7866_v7 = vrot.slane %v7551_v25, 5  ;;  %v8588_v43 = vmax.f32 %v8408_v63, 0.0  ;;  %v7864_v41 = vsel %vm10495_vm9, %v9717_v40, %v7863_v45  ;;  %v9718_v34 = vrot.slane %v7552_v42, 9  ;;  %v4212_v45 = vpop.permute.xlu1 %4211  ;;  %v7383_v20 = vpop.permute.xlu0 %7382  ;;  %v8088_v11 = vld [vmem:[#allocation3 + $0x1a8] sm:$0xff] }
 0x3ef   :  { %v7870_v49 = vrot.slane %v7553_v28, 5  ;;  %8032 = vst.msk [vmem:[#allocation3 + $0x1d8] sm:$0xff] %vm2164_vm2, %v9748_v12  ;;  %v7873_v18 = vrot.slane %v7554_v2, 5  ;;  %v8412_v58 = vpop.f32.mrb[48].mxu1 }
 0x3f0   :  { %v7867_v56 = vsel %vm10495_vm9, %v7865_v26, %v7866_v7  ;;  %v8639_v21 = vpack.c.bf16 %v8588_v43, %v8587_v60  ;;  %10049 = vmatmul.mubr.msk.bf16.gmra.mrb[88].mxu0 %vm2164_vm2, %v8638_v6  ;;  %7453 = vst.msk [vmem:[#allocation3 + $0x1a0] sm:$0xff] %vm7426_vm13, %v7383_v20  ;;  %v8413_v3 = vadd.f32 %v13100_v36, %v8412_v58  ;;  %v8414_v10 = vpop.f32.mrb[49].mxu1 }
 0x3f1   :  { %v9749_v38 = vcombine.low %v7864_v41, %v7867_v56  ;;  %v7871_v30 = vsel %vm10495_vm9, %v9718_v34, %v7870_v49  ;;  %v7872_v55 = vrot.slane %v7870_v49, 4  ;;  %v8415_v13 = vpop.f32.mrb[50].mxu1  ;;  %v8090_v16 = vld [vmem:[#allocation3 + $0x1b8] sm:$0xff] }
 0x3f2   :  { %10052 = vmatprep.mubr.msk.bf16.mxu0 %vm2164_vm2, %v8639_v21  ;;  %8499 = vmatmul.mubr.bf16.gmra.mrb[92].mxu1 %v8083_v19  ;;  %v3859_v46 = vpop.permute.xlu0 %3858  ;;  %v5942_v35 = vpop.permute.xlu1 %5941  ;;  %v8416_v1 = vadd.f32 %v13100_v36, %v8415_v13  ;;  %v8589_v51 = vmax.f32 %v8413_v3, 0.0 }
 0x3f3   :  { %8033 = vst.msk [vmem:[#allocation3 + $0x1e8] sm:$0xff] %vm2164_vm2, %v9749_v38  ;;  %v7874_v44 = vsel %vm10495_vm9, %v7872_v55, %v7873_v18  ;;  %9786 = vmatprep.mubr.msk.bf16.mxu1 %vm2164_vm2, %v8086_v8  ;;  %v8417_v23 = vpop.f32.mrb[51].mxu1 }
 0x3f4   :  { %v9750_v33 = vcombine.low %v7871_v30, %v7874_v44  ;;  %3928 = vst.msk [vmem:[#allocation3 + $0x1b0] sm:$0xff] %vm3900_vm5, %v3859_v46  ;;  %v8590_v62 = vmax.f32 %v8416_v1, 0.0 }
 0x3f5   :  { %4281 = vst.msk [vmem:[#allocation3 + $0x1b0] sm:$0xff] %vm4253_vm7, %v4212_v45  ;;  %v8092_v24 = vld [vmem:[#allocation3 + $0x1c8] sm:$0xff] }
 0x3f6   :  { %8034 = vst.msk [vmem:[#allocation3 + $0x1f8] sm:$0xff] %vm2164_vm2, %v9750_v33  ;;  %v8640_v48 = vpack.c.bf16 %v8590_v62, %v8589_v51  ;;  %v8094_v2 = vld [vmem:[#allocation3 + $0x1d8] sm:$0xff] }
 0x3f7   :  { %v8087_v47 = vld [vmem:[#allocation3 + $0x1a0] sm:$0xff] }
 0x3f8   :  { %v7385_v15 = vpop.permute.xlu1 %7384  ;;  %10053 = vmatmul.mubr.msk.bf16.gmra.mrb[92].mxu0 %vm2164_vm2, %v8640_v48 }
 0x3fa   :  { %8507 = vmatmul.mubr.bf16.gmra.mrb[96].mxu1 %v8085_v14  ;;  %v8096_v49 = vld [vmem:[#allocation3 + $0x1e8] sm:$0xff] }
 0x3fb   :  { %9787 = vmatprep.mubr.msk.bf16.mxu1 %vm2164_vm2, %v8088_v11 }
 0x3fd   :  { %v5301_v27 = vpop.permute.xlu0 %5300 }
 0x3fe   :  { %5370 = vst.msk [vmem:[#allocation3 + $0x1b0] sm:$0xff] %vm5342_vm8, %v5301_v27  ;;  %v3861_v31 = vpop.permute.xlu1 %3860 }
 0x3ff   :  { %6011 = vst.msk [vmem:[#allocation3 + $0x1b0] sm:$0xff] %vm5983_vm10, %v5942_v35 }
 0x401   :  { %v6296_v59 = vpop.permute.xlu0 %6295 }
 0x402   :  { %8515 = vmatmul.mubr.bf16.gmra.mrb[100].mxu1 %v8087_v47  ;;  %6365 = vst.msk [vmem:[#allocation3 + $0x1b0] sm:$0xff] %vm6337_vm11, %v6296_v59 }
 0x403   :  { %9788 = vmatprep.mubr.msk.bf16.mxu1 %vm2164_vm2, %v8090_v16  ;;  %7454 = vst.msk [vmem:[#allocation3 + $0x1b0] sm:$0xff] %vm7426_vm13, %v7385_v15  ;;  %v8098_v15 = vld [vmem:[#allocation3 + $0x1f8] sm:$0xff] }
 0x406   :  { %v5303_v52 = vpop.permute.xlu1 %5302 }
 0x407   :  { %v8420_v57 = vpop.f32.mrb[52].mxu1 }
 0x408   :  { %v8421_v22 = vadd.f32 %v13100_v36, %v8420_v57  ;;  %v8422_v61 = vpop.f32.mrb[53].mxu1 }
 0x409   :  { %v3217_v50 = vpop.permute.xlu0 %3216  ;;  %v8423_v29 = vpop.f32.mrb[54].mxu1 }
 0x40a   :  { %3285 = vst.msk [vmem:[#allocation3 + $0x1c0] sm:$0xff] %vm3256_vm3, %v3217_v50  ;;  %v6298_v53 = vpop.permute.xlu1 %6297  ;;  %v8089_v17 = vld [vmem:[#allocation3 + $0x1b0] sm:$0xff]  ;;  %v8424_v9 = vadd.f32 %v13100_v36, %v8423_v29  ;;  %v8425_v25 = vpop.f32.mrb[55].mxu1  ;;  %v8591_v37 = vmax.f32 %v8421_v22, 0.0 }
 0x40b   :  { %3929 = vst.msk [vmem:[#allocation3 + $0x1c0] sm:$0xff] %vm3900_vm5, %v3861_v31  ;;  %8523 = vmatmul.mubr.bf16.gmra.mrb[104].mxu1 %v8089_v17 }
 0x40c   :  { %9789 = vmatprep.mubr.msk.bf16.mxu1 %vm2164_vm2, %v8092_v24  ;;  %v8592_v0 = vmax.f32 %v8424_v9, 0.0 }
 0x40d   :  { %v4214_v5 = vpop.permute.xlu0 %4213 }
 0x40e   :  { %4282 = vst.msk [vmem:[#allocation3 + $0x1c0] sm:$0xff] %vm4253_vm7, %v4214_v5  ;;  %v8641_v42 = vpack.c.bf16 %v8592_v0, %v8591_v37 }
 0x40f   :  { %5371 = vst.msk [vmem:[#allocation3 + $0x1c0] sm:$0xff] %vm5342_vm8, %v5303_v52  ;;  %v13327_v52 = vld [vmem:[%s13528_s6] ss:$0 sm:$0xff] }
 0x410   :  { %10056 = vmatprep.mubr.msk.bf16.mxu0 %vm2164_vm2, %v8641_v42 }
 0x411   :  { %v3219_v4 = vpop.permute.xlu1 %3218 }
 0x412   :  { %v5944_v54 = vpop.permute.xlu0 %5943  ;;  %3286 = vst.msk [vmem:[#allocation3 + $0x1d0] sm:$0xff] %vm3256_vm3, %v3219_v4 }
 0x413   :  { %6012 = vst.msk [vmem:[#allocation3 + $0x1c0] sm:$0xff] %vm5983_vm10, %v5944_v54 }
 0x414   :  { %6366 = vst.msk [vmem:[#allocation3 + $0x1c0] sm:$0xff] %vm6337_vm11, %v6298_v53 }
 0x415   :  { %v4216_v28 = vpop.permute.xlu1 %4215 }
 0x419   :  { %v5946_v39 = vpop.permute.xlu1 %5945 }
 0x41b   :  { %v7387_v32 = vpop.permute.xlu0 %7386 }
 0x41c   :  { %7455 = vst.msk [vmem:[#allocation3 + $0x1c0] sm:$0xff] %vm7426_vm13, %v7387_v32 }
 0x41f   :  { %v3863_v63 = vpop.permute.xlu0 %3862 }
 0x420   :  { %3930 = vst.msk [vmem:[#allocation3 + $0x1d0] sm:$0xff] %vm3900_vm5, %v3863_v63 }
 0x421   :  { %4283 = vst.msk [vmem:[#allocation3 + $0x1d0] sm:$0xff] %vm4253_vm7, %v4216_v28 }
 0x422   :  { %v7389_v40 = vpop.permute.xlu1 %7388 }
 0x423   :  { %v8091_v26 = vld [vmem:[#allocation3 + $0x1c0] sm:$0xff] }
 0x424   :  { %8531 = vmatmul.mubr.bf16.gmra.mrb[108].mxu1 %v8091_v26 }
 0x425   :  { %v5305_v6 = vpop.permute.xlu0 %5304  ;;  %9790 = vmatprep.mubr.msk.bf16.mxu1 %vm2164_vm2, %v8094_v2  ;;  %v10238_v2 = vld [vmem:[#allocation4] sm:$0xff] }
 0x426   :  { %5372 = vst.msk [vmem:[#allocation3 + $0x1d0] sm:$0xff] %vm5342_vm8, %v5305_v6  ;;  %v3865_v12 = vpop.permute.xlu1 %3864 }
 0x427   :  { %6013 = vst.msk [vmem:[#allocation3 + $0x1d0] sm:$0xff] %vm5983_vm10, %v5946_v39  ;;  %v10237_v39 = vld [vmem:[#allocation4 + $0x10] sm:$0xff] }
 0x429   :  { %v6300_v60 = vpop.permute.xlu0 %6299 }
 0x42a   :  { %6367 = vst.msk [vmem:[#allocation3 + $0x1d0] sm:$0xff] %vm6337_vm11, %v6300_v60  ;;  %v10239_v60 = vld [vmem:[#allocation4 + $0x18] sm:$0xff] }
 0x42b   :  { %7456 = vst.msk [vmem:[#allocation3 + $0x1d0] sm:$0xff] %vm7426_vm13, %v7389_v40 }
 0x42d   :  { %v5307_v7 = vpop.permute.xlu1 %5306 }
 0x42e   :  { %v8428_v56 = vpop.f32.mrb[56].mxu1 }
 0x42f   :  { %v8429_v21 = vadd.f32 %v13100_v36, %v8428_v56  ;;  %v8430_v38 = vpop.f32.mrb[57].mxu1 }
 0x430   :  { %v3221_v43 = vpop.permute.xlu0 %3220  ;;  %v8431_v30 = vpop.f32.mrb[58].mxu1 }
 0x431   :  { %3287 = vst.msk [vmem:[#allocation3 + $0x1e0] sm:$0xff] %vm3256_vm3, %v3221_v43  ;;  %v6302_v41 = vpop.permute.xlu1 %6301  ;;  %v8432_v55 = vadd.f32 %v13100_v36, %v8431_v30  ;;  %v8433_v19 = vpop.f32.mrb[59].mxu1  ;;  %v8593_v20 = vmax.f32 %v8429_v21, 0.0  ;;  %v10240_v43 = vld [vmem:[#allocation4 + $0x8] sm:$0xff] }
 0x432   :  { %3931 = vst.msk [vmem:[#allocation3 + $0x1e0] sm:$0xff] %vm3900_vm5, %v3865_v12  ;;  %v8093_v34 = vld [vmem:[#allocation3 + $0x1d0] sm:$0xff] }
 0x433   :  { %8539 = vmatmul.mubr.bf16.gmra.mrb[112].mxu1 %v8093_v34  ;;  %v8594_v33 = vmax.f32 %v8432_v55, 0.0 }
 0x434   :  { %v4218_v18 = vpop.permute.xlu0 %4217  ;;  %9791 = vmatprep.mubr.msk.bf16.mxu1 %vm2164_vm2, %v8096_v49 }
 0x435   :  { %4284 = vst.msk [vmem:[#allocation3 + $0x1e0] sm:$0xff] %vm4253_vm7, %v4218_v18  ;;  %v8642_v8 = vpack.c.bf16 %v8594_v33, %v8593_v20 }
 0x436   :  { %5373 = vst.msk [vmem:[#allocation3 + $0x1e0] sm:$0xff] %vm5342_vm8, %v5307_v7  ;;  %v8436_v46 = vpop.f32.mrb[60].mxu1 }
 0x437   :  { %10057 = vmatmul.mubr.msk.bf16.gmra.mrb[96].mxu0 %vm2164_vm2, %v8642_v8  ;;  %v8437_v58 = vadd.f32 %v13100_v36, %v8436_v46  ;;  %v8438_v14 = vpop.f32.mrb[61].mxu1 }
 0x438   :  { %v5948_v45 = vpop.permute.xlu0 %5947  ;;  %v8439_v35 = vpop.f32.mrb[62].mxu1 }
 0x439   :  { %v3223_v44 = vpop.permute.xlu1 %3222  ;;  %6014 = vst.msk [vmem:[#allocation3 + $0x1e0] sm:$0xff] %vm5983_vm10, %v5948_v45  ;;  %v8440_v3 = vadd.f32 %v13100_v36, %v8439_v35  ;;  %v8441_v10 = vpop.f32.mrb[63].mxu1  ;;  %v8595_v13 = vmax.f32 %v8437_v58, 0.0 }
 0x43a   :  { %3288 = vst.msk [vmem:[#allocation3 + $0x1f0] sm:$0xff] %vm3256_vm3, %v3223_v44 }
 0x43b   :  { %6368 = vst.msk [vmem:[#allocation3 + $0x1e0] sm:$0xff] %vm6337_vm11, %v6302_v41  ;;  %v8596_v1 = vmax.f32 %v8440_v3, 0.0 }
 0x43d   :  { %v8643_v11 = vpack.c.bf16 %v8596_v1, %v8595_v13  ;;  %v4220_v51 = vpop.permute.xlu1 %4219 }
 0x43f   :  { %10060 = vmatprep.mubr.msk.bf16.mxu0 %vm2164_vm2, %v8643_v11 }
 0x441   :  { %v5950_v27 = vpop.permute.xlu1 %5949 }
 0x442   :  { %v7391_v23 = vpop.permute.xlu0 %7390 }
 0x443   :  { %7457 = vst.msk [vmem:[#allocation3 + $0x1e0] sm:$0xff] %vm7426_vm13, %v7391_v23 }
 0x446   :  { %v3867_v62 = vpop.permute.xlu0 %3866 }
 0x447   :  { %3932 = vst.msk [vmem:[#allocation3 + $0x1f0] sm:$0xff] %vm3900_vm5, %v3867_v62 }
 0x448   :  { %4285 = vst.msk [vmem:[#allocation3 + $0x1f0] sm:$0xff] %vm4253_vm7, %v4220_v51 }
 0x44a   :  { %v5309_v48 = vpop.permute.xlu0 %5308  ;;  %v8095_v47 = vld [vmem:[#allocation3 + $0x1e0] sm:$0xff] }
 0x44b   :  { %5374 = vst.msk [vmem:[#allocation3 + $0x1f0] sm:$0xff] %vm5342_vm8, %v5309_v48  ;;  %8547 = vmatmul.mubr.bf16.gmra.mrb[116].mxu1 %v8095_v47  ;;  %v10241_v47 = vld [vmem:[#allocation4 + $0x30] sm:$0xff] }
 0x44c   :  { %6015 = vst.msk [vmem:[#allocation3 + $0x1f0] sm:$0xff] %vm5983_vm10, %v5950_v27  ;;  %9792 = vmatprep.mubr.msk.bf16.mxu1 %vm2164_vm2, %v8098_v15 }
 0x44e   :  { %v6304_v16 = vpop.permute.xlu0 %6303 }
 0x44f   :  { %6369 = vst.msk [vmem:[#allocation3 + $0x1f0] sm:$0xff] %vm6337_vm11, %v6304_v16 }
 0x454   :  { %v7393_v31 = vpop.permute.xlu1 %7392 }
 0x455   :  { %7458 = vst.msk [vmem:[#allocation3 + $0x1f0] sm:$0xff] %vm7426_vm13, %v7393_v31  ;;  %v10242_v31 = vld [vmem:[#allocation4 + $0x20] sm:$0xff] }
 0x45c   :  { %v8097_v59 = vld [vmem:[#allocation3 + $0x1f0] sm:$0xff] }
 0x45d   :  { %8555 = vmatmul.mubr.bf16.gmra.mrb[120].mxu1 %v8097_v59 }
 0x460   :  { %v8444_v50 = vpop.f32.mrb[64].mxu1  ;;  %v10030_v24 = vpop.f32.mrb[68].mxu0 }
 0x461   :  { %v8445_v53 = vadd.f32 %v13100_v36, %v8444_v50  ;;  %v8446_v17 = vpop.f32.mrb[65].mxu1  ;;  %v8813_v57 = vadd.f32 %v10030_v24, %v13327_v52  ;;  %v8804_v22 = vpop.f32.mrb[69].mxu0  ;;  %v10244_v24 = vld [vmem:[#allocation4 + $0x28] sm:$0xff] }
 0x462   :  { %v8447_v5 = vpop.f32.mrb[66].mxu1  ;;  %v8805_v29 = vadd.f32 %v13327_v52, %v8804_v22  ;;  %v10031_v25 = vpop.f32.mrb[70].mxu0 }
 0x463   :  { %v8448_v61 = vadd.f32 %v13100_v36, %v8447_v5  ;;  %v8449_v9 = vpop.f32.mrb[67].mxu1  ;;  %v9061_v4 = vmax.f32 %v8813_v57, 0.0  ;;  %v8816_v54 = vadd.f32 %v10031_v25, %v13327_v52  ;;  %v8807_v37 = vpop.f32.mrb[71].mxu0  ;;  %v8597_v0 = vmax.f32 %v8445_v53, 0.0  ;;  %v10243_v53 = vld [vmem:[#allocation4 + $0x38] sm:$0xff] }
 0x464   :  { %v9059_v28 = vmax.f32 %v8805_v29, 0.0  ;;  %v8808_v32 = vadd.f32 %v13327_v52, %v8807_v37 }
 0x465   :  { %v8598_v42 = vmax.f32 %v8448_v61, 0.0  ;;  %v9125_v63 = vadd.f32 %v10237_v39, %v9061_v4  ;;  %v9062_v40 = vmax.f32 %v8816_v54, 0.0 }
 0x466   :  { %v9123_v6 = vadd.f32 %v10238_v2, %v9059_v28  ;;  %v9060_v12 = vmax.f32 %v8808_v32, 0.0 }
 0x467   :  { %v8644_v26 = vpack.c.bf16 %v8598_v42, %v8597_v0  ;;  %9189 = vst.msk [vmem:[#allocation7 + $0x10] sm:$0xff] %vm161_vm0, %v9125_v63  ;;  %v9126_v7 = vadd.f32 %v10239_v60, %v9062_v40 }
 0x468   :  { %9187 = vst.msk [vmem:[#allocation7] sm:$0xff] %vm161_vm0, %v9123_v6  ;;  %v9124_v41 = vadd.f32 %v10240_v43, %v9060_v12 }
 0x469   :  { %10061 = vmatmul.mubr.msk.bf16.gmra.mrb[100].mxu0 %vm2164_vm2, %v8644_v26  ;;  %9190 = vst.msk [vmem:[#allocation7 + $0x18] sm:$0xff] %vm161_vm0, %v9126_v7 }
 0x46a   :  { %9188 = vst.msk [vmem:[#allocation7 + $0x8] sm:$0xff] %vm161_vm0, %v9124_v41 }
 0x473   :  { %v8452_v34 = vpop.f32.mrb[68].mxu1 }
 0x474   :  { %v8453_v49 = vadd.f32 %v13100_v36, %v8452_v34  ;;  %v8454_v56 = vpop.f32.mrb[69].mxu1 }
 0x475   :  { %v8455_v18 = vpop.f32.mrb[70].mxu1 }
 0x476   :  { %v8456_v21 = vadd.f32 %v13100_v36, %v8455_v18  ;;  %v8457_v38 = vpop.f32.mrb[71].mxu1  ;;  %v8599_v30 = vmax.f32 %v8453_v49, 0.0 }
 0x478   :  { %v8600_v55 = vmax.f32 %v8456_v21, 0.0  ;;  %v10245_v21 = vld [vmem:[#allocation4 + $0x50] sm:$0xff] }
 0x47a   :  { %v8645_v19 = vpack.c.bf16 %v8600_v55, %v8599_v30  ;;  %v10246_v55 = vld [vmem:[#allocation4 + $0x40] sm:$0xff] }
 0x47b   :  { %v8460_v44 = vpop.f32.mrb[72].mxu1 }
 0x47c   :  { %10064 = vmatprep.mubr.msk.bf16.mxu0 %vm2164_vm2, %v8645_v19  ;;  %v8461_v45 = vadd.f32 %v13100_v36, %v8460_v44  ;;  %v8462_v20 = vpop.f32.mrb[73].mxu1 }
 0x47d   :  { %v8463_v33 = vpop.f32.mrb[74].mxu1 }
 0x47e   :  { %v8464_v8 = vadd.f32 %v13100_v36, %v8463_v33  ;;  %v8465_v46 = vpop.f32.mrb[75].mxu1  ;;  %v8601_v58 = vmax.f32 %v8461_v45, 0.0  ;;  %v10247_v45 = vld [vmem:[#allocation4 + $0x58] sm:$0xff]  ;;  %v10248_v33 = vld [vmem:[#allocation4 + $0x48] sm:$0xff] }
 0x480   :  { %v8602_v14 = vmax.f32 %v8464_v8, 0.0 }
 0x482   :  { %v8646_v35 = vpack.c.bf16 %v8602_v14, %v8601_v58 }
 0x484   :  { %10065 = vmatmul.mubr.msk.bf16.gmra.mrb[104].mxu0 %vm2164_vm2, %v8646_v35 }
 0x485   :  { %v10034_v3 = vpop.f32.mrb[72].mxu0 }
 0x486   :  { %v8829_v10 = vadd.f32 %v10034_v3, %v13327_v52  ;;  %v8820_v13 = vpop.f32.mrb[73].mxu0 }
 0x487   :  { %v8821_v1 = vadd.f32 %v13327_v52, %v8820_v13  ;;  %v10035_v23 = vpop.f32.mrb[74].mxu0 }
 0x488   :  { %v9065_v11 = vmax.f32 %v8829_v10, 0.0  ;;  %v8832_v51 = vadd.f32 %v10035_v23, %v13327_v52  ;;  %v8823_v62 = vpop.f32.mrb[75].mxu0 }
 0x489   :  { %v9063_v15 = vmax.f32 %v8821_v1, 0.0  ;;  %v8824_v48 = vadd.f32 %v13327_v52, %v8823_v62 }
 0x48a   :  { %v9129_v27 = vadd.f32 %v10241_v47, %v9065_v11  ;;  %v9066_v16 = vmax.f32 %v8832_v51, 0.0 }
 0x48b   :  { %v9127_v59 = vadd.f32 %v10242_v31, %v9063_v15  ;;  %v9064_v50 = vmax.f32 %v8824_v48, 0.0 }
 0x48c   :  { %9193 = vst.msk [vmem:[#allocation7 + $0x30] sm:$0xff] %vm161_vm0, %v9129_v27  ;;  %v9130_v17 = vadd.f32 %v10243_v53, %v9066_v16  ;;  %v10249_v16 = vld [vmem:[#allocation4 + $0x70] sm:$0xff] }
 0x48d   :  { %9191 = vst.msk [vmem:[#allocation7 + $0x20] sm:$0xff] %vm161_vm0, %v9127_v59  ;;  %v9128_v57 = vadd.f32 %v10244_v24, %v9064_v50  ;;  %v10250_v50 = vld [vmem:[#allocation4 + $0x60] sm:$0xff] }
 0x48e   :  { %9194 = vst.msk [vmem:[#allocation7 + $0x38] sm:$0xff] %vm161_vm0, %v9130_v17 }
 0x48f   :  { %9192 = vst.msk [vmem:[#allocation7 + $0x28] sm:$0xff] %vm161_vm0, %v9128_v57 }
 0x499   :  { %v8468_v5 = vpop.f32.mrb[76].mxu1 }
 0x49a   :  { %v8469_v22 = vadd.f32 %v13100_v36, %v8468_v5  ;;  %v8470_v61 = vpop.f32.mrb[77].mxu1  ;;  %v10251_v5 = vld [vmem:[#allocation4 + $0x78] sm:$0xff] }
 0x49b   :  { %v8471_v29 = vpop.f32.mrb[78].mxu1  ;;  %v10252_v61 = vld [vmem:[#allocation4 + $0x68] sm:$0xff] }
 0x49c   :  { %v8472_v9 = vadd.f32 %v13100_v36, %v8471_v29  ;;  %v8473_v25 = vpop.f32.mrb[79].mxu1  ;;  %v8603_v4 = vmax.f32 %v8469_v22, 0.0 }
 0x49e   :  { %v8604_v54 = vmax.f32 %v8472_v9, 0.0 }
 0x4a0   :  { %v8647_v37 = vpack.c.bf16 %v8604_v54, %v8603_v4 }
 0x4a2   :  { %v8476_v0 = vpop.f32.mrb[80].mxu1  ;;  %10068 = vmatprep.mubr.msk.bf16.mxu0 %vm2164_vm2, %v8647_v37 }
 0x4a3   :  { %v8477_v42 = vadd.f32 %v13100_v36, %v8476_v0  ;;  %v8478_v28 = vpop.f32.mrb[81].mxu1 }
 0x4a4   :  { %v8479_v32 = vpop.f32.mrb[82].mxu1 }
 0x4a5   :  { %v8480_v39 = vadd.f32 %v13100_v36, %v8479_v32  ;;  %v8481_v63 = vpop.f32.mrb[83].mxu1  ;;  %v8605_v40 = vmax.f32 %v8477_v42, 0.0 }
 0x4a7   :  { %v8606_v26 = vmax.f32 %v8480_v39, 0.0  ;;  %v10038_v2 = vpop.f32.mrb[76].mxu0 }
 0x4a8   :  { %v8845_v6 = vadd.f32 %v10038_v2, %v13327_v52  ;;  %v8836_v60 = vpop.f32.mrb[77].mxu0 }
 0x4a9   :  { %v8648_v12 = vpack.c.bf16 %v8606_v26, %v8605_v40  ;;  %v8837_v7 = vadd.f32 %v13327_v52, %v8836_v60  ;;  %v10039_v43 = vpop.f32.mrb[78].mxu0 }
 0x4aa   :  { %v9069_v41 = vmax.f32 %v8845_v6, 0.0  ;;  %v8848_v34 = vadd.f32 %v10039_v43, %v13327_v52  ;;  %v8839_v49 = vpop.f32.mrb[79].mxu0 }
 0x4ab   :  { %10069 = vmatmul.mubr.msk.bf16.gmra.mrb[108].mxu0 %vm2164_vm2, %v8648_v12  ;;  %v9067_v56 = vmax.f32 %v8837_v7, 0.0  ;;  %v8840_v18 = vadd.f32 %v13327_v52, %v8839_v49  ;;  %v10253_v7 = vld [vmem:[#allocation4 + $0x90] sm:$0xff] }
 0x4ac   :  { %v9133_v38 = vadd.f32 %v10245_v21, %v9069_v41  ;;  %v9070_v30 = vmax.f32 %v8848_v34, 0.0  ;;  %v10254_v34 = vld [vmem:[#allocation4 + $0x80] sm:$0xff] }
 0x4ad   :  { %v9131_v19 = vadd.f32 %v10246_v55, %v9067_v56  ;;  %v9068_v44 = vmax.f32 %v8840_v18, 0.0  ;;  %v10256_v55 = vld [vmem:[#allocation4 + $0x88] sm:$0xff] }
 0x4ae   :  { %9197 = vst.msk [vmem:[#allocation7 + $0x50] sm:$0xff] %vm161_vm0, %v9133_v38  ;;  %v9134_v20 = vadd.f32 %v10247_v45, %v9070_v30  ;;  %v10255_v38 = vld [vmem:[#allocation4 + $0x98] sm:$0xff] }
 0x4af   :  { %9195 = vst.msk [vmem:[#allocation7 + $0x40] sm:$0xff] %vm161_vm0, %v9131_v19  ;;  %v9132_v8 = vadd.f32 %v10248_v33, %v9068_v44 }
 0x4b0   :  { %9198 = vst.msk [vmem:[#allocation7 + $0x58] sm:$0xff] %vm161_vm0, %v9134_v20 }
 0x4b1   :  { %9196 = vst.msk [vmem:[#allocation7 + $0x48] sm:$0xff] %vm161_vm0, %v9132_v8 }
 0x4b3   :  { %v10042_v46 = vpop.f32.mrb[80].mxu0 }
 0x4b4   :  { %v8861_v58 = vadd.f32 %v10042_v46, %v13327_v52  ;;  %v8852_v14 = vpop.f32.mrb[81].mxu0 }
 0x4b5   :  { %v8484_v35 = vpop.f32.mrb[84].mxu1  ;;  %v8853_v3 = vadd.f32 %v13327_v52, %v8852_v14  ;;  %v10043_v10 = vpop.f32.mrb[82].mxu0 }
 0x4b6   :  { %v8485_v13 = vadd.f32 %v13100_v36, %v8484_v35  ;;  %v8486_v1 = vpop.f32.mrb[85].mxu1  ;;  %v9073_v23 = vmax.f32 %v8861_v58, 0.0  ;;  %v8864_v11 = vadd.f32 %v10043_v10, %v13327_v52  ;;  %v8855_v51 = vpop.f32.mrb[83].mxu0  ;;  %v13394_v58 = vld [vmem:[%s13526_s4] ss:$0 sm:$0xff]  ;;  %s10361_s4 = smov [#allocation7]  }
 0x4b7   :  { %v8487_v62 = vpop.f32.mrb[86].mxu1  ;;  %v9071_v15 = vmax.f32 %v8853_v3, 0.0  ;;  %v8856_v48 = vadd.f32 %v13327_v52, %v8855_v51  ;;  %s9256_s24 = sshll.u32 %s10361_s4, 4  ;;  %s9257_s24 = int_to_ptr.vmem [resolvable:$true] %s9256_s24 }
 0x4b8   :  { %v8488_v47 = vadd.f32 %v13100_v36, %v8487_v62  ;;  %v8489_v27 = vpop.f32.mrb[87].mxu1  ;;  %v9137_v31 = vadd.f32 %v10249_v16, %v9073_v23  ;;  %v9074_v59 = vmax.f32 %v8864_v11, 0.0  ;;  %v8607_v24 = vmax.f32 %v8485_v13, 0.0  ;;  %s10324_s25 = scalar_lea.vmem %s9257_s24, 8192  ;;  %p10329_p9 = scmp.lt.s32.totalorder %s9257_s24, %s9257_s24 }
 0x4b9   :  { %v9135_v53 = vadd.f32 %v10250_v50, %v9071_v15  ;;  %v9072_v17 = vmax.f32 %v8856_v48, 0.0  ;;  %v10258_v15 = vld [vmem:[#allocation4 + $0xb0] sm:$0xff]  ;;  %v10259_v27 = vld [vmem:[#allocation4 + $0xa0] sm:$0xff]  ;;  %p10325_p8 = scmp.ne.s32.totalorder %s9257_s24, %s10324_s25  ;;  %p10330_p10 = scmp.lt.s32.totalorder %s10324_s25, %s10324_s25 }
 0x4ba   :  { %v8608_v57 = vmax.f32 %v8488_v47, 0.0  ;;  %9201 = vst.msk [vmem:[#allocation7 + $0x70] sm:$0xff] %vm161_vm0, %v9137_v31  ;;  %v9138_v22 = vadd.f32 %v10251_v5, %v9074_v59 }
 0x4bb   :  { %9199 = vst.msk [vmem:[#allocation7 + $0x60] sm:$0xff] %vm161_vm0, %v9135_v53  ;;  %v9136_v29 = vadd.f32 %v10252_v61, %v9072_v17  ;;  %v10046_v9 = vpop.f32.mrb[84].mxu0  ;;  %v10260_v53 = vld [vmem:[#allocation4 + $0xb8] sm:$0xff]  ;;  %p10331_p11 = por %p10330_p10, %p10329_p9 }
 0x4bc   :  { %v8649_v25 = vpack.c.bf16 %v8608_v57, %v8607_v24  ;;  %9202 = vst.msk [vmem:[#allocation7 + $0x78] sm:$0xff] %vm161_vm0, %v9138_v22  ;;  %v8877_v4 = vadd.f32 %v10046_v9, %v13327_v52  ;;  %v8868_v54 = vpop.f32.mrb[85].mxu0  ;;  %v10261_v24 = vld [vmem:[#allocation4 + $0xa8] sm:$0xff] }
 0x4bd   :  { %v8492_v37 = vpop.f32.mrb[88].mxu1  ;;  %9200 = vst.msk [vmem:[#allocation7 + $0x68] sm:$0xff] %vm161_vm0, %v9136_v29  ;;  %v8869_v0 = vadd.f32 %v13327_v52, %v8868_v54  ;;  %v10047_v42 = vpop.f32.mrb[86].mxu0  ;;  %p10332_p12 = pnand %p10331_p11, %p10325_p8 }
 0x4be   :  { %10072 = vmatprep.mubr.msk.bf16.mxu0 %vm2164_vm2, %v8649_v25  ;;  %v8493_v28 = vadd.f32 %v13100_v36, %v8492_v37  ;;  %v8494_v32 = vpop.f32.mrb[89].mxu1  ;;  %v9077_v39 = vmax.f32 %v8877_v4, 0.0  ;;  %v8880_v63 = vadd.f32 %v10047_v42, %v13327_v52  ;;  %v8871_v40 = vpop.f32.mrb[87].mxu0 }
 0x4bf   :  { %v8495_v26 = vpop.f32.mrb[90].mxu1  ;;  %v9075_v2 = vmax.f32 %v8869_v0, 0.0  ;;  %v8872_v6 = vadd.f32 %v13327_v52, %v8871_v40 }
 0x4c0   :  { %v8496_v12 = vadd.f32 %v13100_v36, %v8495_v26  ;;  %v8497_v60 = vpop.f32.mrb[91].mxu1  ;;  %v9141_v43 = vadd.f32 %v10253_v7, %v9077_v39  ;;  %v9078_v41 = vmax.f32 %v8880_v63, 0.0  ;;  %v8609_v18 = vmax.f32 %v8493_v28, 0.0 }
 0x4c1   :  { %v9139_v49 = vadd.f32 %v10254_v34, %v9075_v2  ;;  %v9076_v56 = vmax.f32 %v8872_v6, 0.0  ;;  %v10262_v34 = vld [vmem:[#allocation4 + $0xd0] sm:$0xff] }
 0x4c2   :  { %v8610_v21 = vmax.f32 %v8496_v12, 0.0  ;;  %9205 = vst.msk [vmem:[#allocation7 + $0x90] sm:$0xff] %vm161_vm0, %v9141_v43  ;;  %v9142_v30 = vadd.f32 %v10255_v38, %v9078_v41  ;;  %v10263_v38 = vld [vmem:[#allocation4 + $0xc0] sm:$0xff] }
 0x4c3   :  { %9203 = vst.msk [vmem:[#allocation7 + $0x80] sm:$0xff] %vm161_vm0, %v9139_v49  ;;  %v9140_v19 = vadd.f32 %v10256_v55, %v9076_v56  ;;  %v10050_v44 = vpop.f32.mrb[88].mxu0 }
 0x4c4   :  { %v8650_v45 = vpack.c.bf16 %v8610_v21, %v8609_v18  ;;  %9206 = vst.msk [vmem:[#allocation7 + $0x98] sm:$0xff] %vm161_vm0, %v9142_v30  ;;  %v8893_v36 = vadd.f32 %v10050_v44, %v13327_v52  ;;  %v8884_v20 = vpop.f32.mrb[89].mxu0 }
 0x4c5   :  { %v8500_v33 = vpop.f32.mrb[92].mxu1  ;;  %9204 = vst.msk [vmem:[#allocation7 + $0x88] sm:$0xff] %vm161_vm0, %v9140_v19  ;;  %v8885_v8 = vadd.f32 %v13327_v52, %v8884_v20  ;;  %v10051_v46 = vpop.f32.mrb[90].mxu0  ;;  %v10264_v19 = vld [vmem:[#allocation4 + $0xd8] sm:$0xff]  ;;  %v10265_v20 = vld [vmem:[#allocation4 + $0xc8] sm:$0xff] }
 0x4c6   :  { %v8501_v14 = vadd.f32 %v13394_v58, %v8500_v33  ;;  %v8502_v35 = vpop.f32.mrb[93].mxu1  ;;  %10073 = vmatmul.mubr.msk.bf16.gmra.mrb[112].mxu0 %vm2164_vm2, %v8650_v45  ;;  %v9081_v3 = vmax.f32 %v8893_v36, 0.0  ;;  %v8896_v10 = vadd.f32 %v10051_v46, %v13327_v52  ;;  %v8887_v13 = vpop.f32.mrb[91].mxu0 }
 0x4c7   :  { %v8503_v1 = vpop.f32.mrb[94].mxu1  ;;  %v9079_v23 = vmax.f32 %v8885_v8, 0.0  ;;  %v8888_v11 = vadd.f32 %v13327_v52, %v8887_v13 }
 0x4c8   :  { %v8504_v51 = vadd.f32 %v13394_v58, %v8503_v1  ;;  %v8505_v62 = vpop.f32.mrb[95].mxu1  ;;  %v9145_v48 = vadd.f32 %v10258_v15, %v9081_v3  ;;  %v9082_v47 = vmax.f32 %v8896_v10, 0.0  ;;  %v8611_v59 = vmax.f32 %v8501_v14, 0.0 }
 0x4c9   :  { %v9143_v16 = vadd.f32 %v10259_v27, %v9079_v23  ;;  %v9080_v31 = vmax.f32 %v8888_v11, 0.0 }
 0x4ca   :  { %v8612_v50 = vmax.f32 %v8504_v51, 0.0  ;;  %9209 = vst.msk [vmem:[#allocation7 + $0xb0] sm:$0xff] %vm161_vm0, %v9145_v48  ;;  %v9146_v17 = vadd.f32 %v10260_v53, %v9082_v47 }
 0x4cb   :  { %9207 = vst.msk [vmem:[#allocation7 + $0xa0] sm:$0xff] %vm161_vm0, %v9143_v16  ;;  %v9144_v57 = vadd.f32 %v10261_v24, %v9080_v31  ;;  %v10054_v0 = vpop.f32.mrb[92].mxu0 }
 0x4cc   :  { %v8651_v5 = vpack.c.bf16 %v8612_v50, %v8611_v59  ;;  %9210 = vst.msk [vmem:[#allocation7 + $0xb8] sm:$0xff] %vm161_vm0, %v9146_v17  ;;  %v8909_v42 = vadd.f32 %v10054_v0, %v13327_v52  ;;  %v8900_v28 = vpop.f32.mrb[93].mxu0 }
 0x4cd   :  { %v8508_v22 = vpop.f32.mrb[96].mxu1  ;;  %9208 = vst.msk [vmem:[#allocation7 + $0xa8] sm:$0xff] %vm161_vm0, %v9144_v57  ;;  %v8901_v39 = vadd.f32 %v13327_v52, %v8900_v28  ;;  %v10055_v63 = vpop.f32.mrb[94].mxu0 }
 0x4ce   :  { %v8509_v61 = vadd.f32 %v13394_v58, %v8508_v22  ;;  %v8510_v29 = vpop.f32.mrb[97].mxu1  ;;  %10076 = vmatprep.mubr.msk.bf16.mxu0 %vm2164_vm2, %v8651_v5  ;;  %v9085_v26 = vmax.f32 %v8909_v42, 0.0  ;;  %v8912_v2 = vadd.f32 %v10055_v63, %v13327_v52  ;;  %v8903_v6 = vpop.f32.mrb[95].mxu0  ;;  %v10266_v63 = vld [vmem:[#allocation4 + $0xf0] sm:$0xff] }
 0x4cf   :  { %v8511_v9 = vpop.f32.mrb[98].mxu1  ;;  %v9083_v7 = vmax.f32 %v8901_v39, 0.0  ;;  %v8904_v43 = vadd.f32 %v13327_v52, %v8903_v6 }
 0x4d0   :  { %v8512_v25 = vadd.f32 %v13394_v58, %v8511_v9  ;;  %v8513_v4 = vpop.f32.mrb[99].mxu1  ;;  %v8613_v54 = vmax.f32 %v8509_v61, 0.0  ;;  %v9149_v49 = vadd.f32 %v10262_v34, %v9085_v26  ;;  %v9086_v56 = vmax.f32 %v8912_v2, 0.0  ;;  %v10267_v2 = vld [vmem:[#allocation4 + $0xe0] sm:$0xff] }
 0x4d1   :  { %v9147_v30 = vadd.f32 %v10263_v38, %v9083_v7  ;;  %v9084_v55 = vmax.f32 %v8904_v43, 0.0  ;;  %v10269_v43 = vld [vmem:[#allocation4 + $0xe8] sm:$0xff] }
 0x4d2   :  { %v8614_v37 = vmax.f32 %v8512_v25, 0.0  ;;  %9213 = vst.msk [vmem:[#allocation7 + $0xd0] sm:$0xff] %vm161_vm0, %v9149_v49  ;;  %v9150_v44 = vadd.f32 %v10264_v19, %v9086_v56 }
 0x4d3   :  { %9211 = vst.msk [vmem:[#allocation7 + $0xc0] sm:$0xff] %vm161_vm0, %v9147_v30  ;;  %v9148_v33 = vadd.f32 %v10265_v20, %v9084_v55 }
 0x4d4   :  { %v8652_v32 = vpack.c.bf16 %v8614_v37, %v8613_v54  ;;  %9214 = vst.msk [vmem:[#allocation7 + $0xd8] sm:$0xff] %vm161_vm0, %v9150_v44 }
 0x4d5   :  { %v8516_v40 = vpop.f32.mrb[100].mxu1  ;;  %9212 = vst.msk [vmem:[#allocation7 + $0xc8] sm:$0xff] %vm161_vm0, %v9148_v33 }
 0x4d6   :  { %10077 = vmatmul.mubr.msk.bf16.gmra.mrb[116].mxu0 %vm2164_vm2, %v8652_v32  ;;  %v8517_v12 = vadd.f32 %v13394_v58, %v8516_v40  ;;  %v8518_v60 = vpop.f32.mrb[101].mxu1 }
 0x4d7   :  { %v8519_v41 = vpop.f32.mrb[102].mxu1  ;;  %v10268_v60 = vld [vmem:[#allocation4 + $0xf8] sm:$0xff] }
 0x4d8   :  { %v8520_v18 = vadd.f32 %v13394_v58, %v8519_v41  ;;  %v8521_v21 = vpop.f32.mrb[103].mxu1  ;;  %v8615_v45 = vmax.f32 %v8517_v12, 0.0 }
 0x4da   :  { %v8616_v36 = vmax.f32 %v8520_v18, 0.0 }
 0x4dc   :  { %v8653_v8 = vpack.c.bf16 %v8616_v36, %v8615_v45 }
 0x4de   :  { %10080 = vmatprep.mubr.msk.bf16.mxu0 %vm2164_vm2, %v8653_v8  ;;  %v8524_v46 = vpop.f32.mrb[104].mxu1 }
 0x4df   :  { %v8525_v14 = vadd.f32 %v13394_v58, %v8524_v46  ;;  %v8526_v35 = vpop.f32.mrb[105].mxu1 }
 0x4e0   :  { %v8527_v3 = vpop.f32.mrb[106].mxu1 }
 0x4e1   :  { %v8528_v10 = vadd.f32 %v13394_v58, %v8527_v3  ;;  %v8529_v13 = vpop.f32.mrb[107].mxu1  ;;  %v8617_v1 = vmax.f32 %v8525_v14, 0.0 }
 0x4e3   :  { %v8618_v23 = vmax.f32 %v8528_v10, 0.0 }
 0x4e5   :  { %v8654_v11 = vpack.c.bf16 %v8618_v23, %v8617_v1 }
 0x4e7   :  { %10081 = vmatmul.mubr.msk.bf16.gmra.mrb[120].mxu0 %vm2164_vm2, %v8654_v11 }
 0x4f7   :  { %v8532_v51 = vpop.f32.mrb[108].mxu1 }
 0x4f8   :  { %v8533_v62 = vadd.f32 %v13394_v58, %v8532_v51  ;;  %v8534_v15 = vpop.f32.mrb[109].mxu1 }
 0x4f9   :  { %v8535_v48 = vpop.f32.mrb[110].mxu1 }
 0x4fa   :  { %v8536_v47 = vadd.f32 %v13394_v58, %v8535_v48  ;;  %v8537_v27 = vpop.f32.mrb[111].mxu1  ;;  %v8619_v16 = vmax.f32 %v8533_v62, 0.0  ;;  %v10270_v48 = vld [vmem:[#allocation4 + $0x110] sm:$0xff] }
 0x4fc   :  { %v8620_v31 = vmax.f32 %v8536_v47, 0.0 }
 0x4fe   :  { %v8655_v59 = vpack.c.bf16 %v8620_v31, %v8619_v16  ;;  %v10271_v16 = vld [vmem:[#allocation4 + $0x100] sm:$0xff] }
 0x500   :  { %10084 = vmatprep.mubr.msk.bf16.mxu0 %vm2164_vm2, %v8655_v59 }
 0x506   :  { %v8540_v50 = vpop.f32.mrb[112].mxu1 }
 0x507   :  { %v8541_v53 = vadd.f32 %v13394_v58, %v8540_v50  ;;  %v8542_v17 = vpop.f32.mrb[113].mxu1  ;;  %v10272_v50 = vld [vmem:[#allocation4 + $0x118] sm:$0xff] }
 0x508   :  { %v8543_v24 = vpop.f32.mrb[114].mxu1  ;;  %v10273_v17 = vld [vmem:[#allocation4 + $0x108] sm:$0xff] }
 0x509   :  { %v8544_v57 = vadd.f32 %v13394_v58, %v8543_v24  ;;  %v8545_v5 = vpop.f32.mrb[115].mxu1  ;;  %v8621_v22 = vmax.f32 %v8541_v53, 0.0 }
 0x50a   :  { %v10058_v9 = vpop.f32.mrb[96].mxu0 }
 0x50b   :  { %v8622_v61 = vmax.f32 %v8544_v57, 0.0  ;;  %v8925_v25 = vadd.f32 %v10058_v9, %v13327_v52  ;;  %v8916_v4 = vpop.f32.mrb[97].mxu0 }
 0x50c   :  { %v8917_v54 = vadd.f32 %v13327_v52, %v8916_v4  ;;  %v10059_v37 = vpop.f32.mrb[98].mxu0 }
 0x50d   :  { %v8656_v29 = vpack.c.bf16 %v8622_v61, %v8621_v22  ;;  %v9089_v0 = vmax.f32 %v8925_v25, 0.0  ;;  %v8928_v42 = vadd.f32 %v10059_v37, %v13327_v52  ;;  %v8919_v28 = vpop.f32.mrb[99].mxu0 }
 0x50e   :  { %v9087_v32 = vmax.f32 %v8917_v54, 0.0  ;;  %v8920_v39 = vadd.f32 %v13327_v52, %v8919_v28 }
 0x50f   :  { %10085 = vmatmul.mubr.msk.bf16.gmra.mrb[124].mxu0 %vm2164_vm2, %v8656_v29  ;;  %v9153_v40 = vadd.f32 %v10266_v63, %v9089_v0  ;;  %v9090_v26 = vmax.f32 %v8928_v42, 0.0  ;;  %v10274_v0 = vld [vmem:[#allocation4 + $0x130] sm:$0xff] }
 0x510   :  { %v9151_v6 = vadd.f32 %v10267_v2, %v9087_v32  ;;  %v9088_v12 = vmax.f32 %v8920_v39, 0.0  ;;  %v10275_v32 = vld [vmem:[#allocation4 + $0x120] sm:$0xff]  ;;  %v10277_v2 = vld [vmem:[#allocation4 + $0x128] sm:$0xff] }
 0x511   :  { %9217 = vst.msk [vmem:[#allocation7 + $0xf0] sm:$0xff] %vm161_vm0, %v9153_v40  ;;  %v9154_v7 = vadd.f32 %v10268_v60, %v9090_v26  ;;  %v10276_v40 = vld [vmem:[#allocation4 + $0x138] sm:$0xff] }
 0x512   :  { %9215 = vst.msk [vmem:[#allocation7 + $0xe0] sm:$0xff] %vm161_vm0, %v9151_v6  ;;  %v9152_v41 = vadd.f32 %v10269_v43, %v9088_v12 }
 0x513   :  { %9218 = vst.msk [vmem:[#allocation7 + $0xf8] sm:$0xff] %vm161_vm0, %v9154_v7 }
 0x514   :  { %9216 = vst.msk [vmem:[#allocation7 + $0xe8] sm:$0xff] %vm161_vm0, %v9152_v41 }
 0x51e   :  { %v8548_v34 = vpop.f32.mrb[116].mxu1 }
 0x51f   :  { %v8549_v49 = vadd.f32 %v13394_v58, %v8548_v34  ;;  %v8550_v56 = vpop.f32.mrb[117].mxu1 }
 0x520   :  { %v8551_v18 = vpop.f32.mrb[118].mxu1 }
 0x521   :  { %v8552_v21 = vadd.f32 %v13394_v58, %v8551_v18  ;;  %v8553_v38 = vpop.f32.mrb[119].mxu1  ;;  %v8623_v30 = vmax.f32 %v8549_v49, 0.0 }
 0x522   :  { %v10278_v38 = vld [vmem:[#allocation4 + $0x150] sm:$0xff] }
 0x523   :  { %v8624_v55 = vmax.f32 %v8552_v21, 0.0 }
 0x525   :  { %v8657_v19 = vpack.c.bf16 %v8624_v55, %v8623_v30 }
 0x527   :  { %10088 = vmatprep.mubr.msk.bf16.mxu0 %vm2164_vm2, %v8657_v19  ;;  %v10279_v19 = vld [vmem:[#allocation4 + $0x140] sm:$0xff] }
 0x530   :  { %v8556_v44 = vpop.f32.mrb[120].mxu1 }
 0x531   :  { %v8557_v45 = vadd.f32 %v13394_v58, %v8556_v44  ;;  %v8558_v36 = vpop.f32.mrb[121].mxu1 }
 0x532   :  { %v8559_v20 = vpop.f32.mrb[122].mxu1  ;;  %v10280_v36 = vld [vmem:[#allocation4 + $0x158] sm:$0xff] }
 0x533   :  { %v8560_v33 = vadd.f32 %v13394_v58, %v8559_v20  ;;  %v8561_v8 = vpop.f32.mrb[123].mxu1  ;;  %v8625_v46 = vmax.f32 %v8557_v45, 0.0 }
 0x535   :  { %v8626_v14 = vmax.f32 %v8560_v33, 0.0  ;;  %v10281_v33 = vld [vmem:[#allocation4 + $0x148] sm:$0xff] }
 0x537   :  { %v8658_v35 = vpack.c.bf16 %v8626_v14, %v8625_v46 }
 0x539   :  { %10089 = vmatmul.mubr.msk.bf16.gmra.mrb[128].mxu0 %vm2164_vm2, %v8658_v35 }
 0x53c   :  { %v10062_v3 = vpop.f32.mrb[100].mxu0 }
 0x53d   :  { %v8941_v10 = vadd.f32 %v10062_v3, %v13327_v52  ;;  %v8932_v13 = vpop.f32.mrb[101].mxu0 }
 0x53e   :  { %v8933_v1 = vadd.f32 %v13327_v52, %v8932_v13  ;;  %v10063_v23 = vpop.f32.mrb[102].mxu0 }
 0x53f   :  { %v9093_v11 = vmax.f32 %v8941_v10, 0.0  ;;  %v8944_v51 = vadd.f32 %v10063_v23, %v13327_v52  ;;  %v8935_v62 = vpop.f32.mrb[103].mxu0 }
 0x540   :  { %v9091_v15 = vmax.f32 %v8933_v1, 0.0  ;;  %v8936_v58 = vadd.f32 %v13327_v52, %v8935_v62  ;;  %v10282_v62 = vld [vmem:[#allocation4 + $0x170] sm:$0xff] }
 0x541   :  { %v9157_v47 = vadd.f32 %v10270_v48, %v9093_v11  ;;  %v9094_v27 = vmax.f32 %v8944_v51, 0.0  ;;  %v10283_v48 = vld [vmem:[#allocation4 + $0x160] sm:$0xff] }
 0x542   :  { %v9155_v31 = vadd.f32 %v10271_v16, %v9091_v15  ;;  %v9092_v59 = vmax.f32 %v8936_v58, 0.0  ;;  %v10284_v16 = vld [vmem:[#allocation4 + $0x178] sm:$0xff] }
 0x543   :  { %9221 = vst.msk [vmem:[#allocation7 + $0x110] sm:$0xff] %vm161_vm0, %v9157_v47  ;;  %v9158_v53 = vadd.f32 %v10272_v50, %v9094_v27 }
 0x544   :  { %9219 = vst.msk [vmem:[#allocation7 + $0x100] sm:$0xff] %vm161_vm0, %v9155_v31  ;;  %v9156_v24 = vadd.f32 %v10273_v17, %v9092_v59  ;;  %v10285_v59 = vld [vmem:[#allocation4 + $0x168] sm:$0xff] }
 0x545   :  { %9222 = vst.msk [vmem:[#allocation7 + $0x118] sm:$0xff] %vm161_vm0, %v9158_v53 }
 0x546   :  { %9220 = vst.msk [vmem:[#allocation7 + $0x108] sm:$0xff] %vm161_vm0, %v9156_v24 }
 0x557   :  { %v10066_v57 = vpop.f32.mrb[104].mxu0 }
 0x558   :  { %v8957_v5 = vadd.f32 %v10066_v57, %v13327_v52  ;;  %v8948_v22 = vpop.f32.mrb[105].mxu0 }
 0x559   :  { %v8949_v61 = vadd.f32 %v13327_v52, %v8948_v22  ;;  %v10067_v29 = vpop.f32.mrb[106].mxu0 }
 0x55a   :  { %v9097_v9 = vmax.f32 %v8957_v5, 0.0  ;;  %v8960_v25 = vadd.f32 %v10067_v29, %v13327_v52  ;;  %v8951_v4 = vpop.f32.mrb[107].mxu0 }
 0x55b   :  { %v9095_v54 = vmax.f32 %v8949_v61, 0.0  ;;  %v8952_v37 = vadd.f32 %v13327_v52, %v8951_v4  ;;  %v10286_v4 = vld [vmem:[#allocation4 + $0x190] sm:$0xff] }
 0x55c   :  { %v9161_v42 = vadd.f32 %v10274_v0, %v9097_v9  ;;  %v9098_v28 = vmax.f32 %v8960_v25, 0.0  ;;  %v10287_v0 = vld [vmem:[#allocation4 + $0x180] sm:$0xff] }
 0x55d   :  { %v9159_v39 = vadd.f32 %v10275_v32, %v9095_v54  ;;  %v9096_v63 = vmax.f32 %v8952_v37, 0.0  ;;  %v10288_v32 = vld [vmem:[#allocation4 + $0x198] sm:$0xff] }
 0x55e   :  { %9225 = vst.msk [vmem:[#allocation7 + $0x130] sm:$0xff] %vm161_vm0, %v9161_v42  ;;  %v9162_v26 = vadd.f32 %v10276_v40, %v9098_v28 }
 0x55f   :  { %9223 = vst.msk [vmem:[#allocation7 + $0x120] sm:$0xff] %vm161_vm0, %v9159_v39  ;;  %v9160_v6 = vadd.f32 %v10277_v2, %v9096_v63  ;;  %v10289_v63 = vld [vmem:[#allocation4 + $0x188] sm:$0xff] }
 0x560   :  { %9226 = vst.msk [vmem:[#allocation7 + $0x138] sm:$0xff] %vm161_vm0, %v9162_v26 }
 0x561   :  { %9224 = vst.msk [vmem:[#allocation7 + $0x128] sm:$0xff] %vm161_vm0, %v9160_v6 }
 0x57e   :  { %v10070_v12 = vpop.f32.mrb[108].mxu0 }
 0x57f   :  { %v8973_v60 = vadd.f32 %v10070_v12, %v13327_v52  ;;  %v8964_v7 = vpop.f32.mrb[109].mxu0 }
 0x580   :  { %v8965_v43 = vadd.f32 %v13327_v52, %v8964_v7  ;;  %v10071_v41 = vpop.f32.mrb[110].mxu0 }
 0x581   :  { %v9101_v34 = vmax.f32 %v8973_v60, 0.0  ;;  %v8976_v49 = vadd.f32 %v10071_v41, %v13327_v52  ;;  %v8967_v56 = vpop.f32.mrb[111].mxu0 }
 0x582   :  { %v9099_v18 = vmax.f32 %v8965_v43, 0.0  ;;  %v8968_v21 = vadd.f32 %v13327_v52, %v8967_v56  ;;  %v10290_v56 = vld [vmem:[#allocation4 + $0x1b0] sm:$0xff] }
 0x583   :  { %v9165_v30 = vadd.f32 %v10278_v38, %v9101_v34  ;;  %v9102_v55 = vmax.f32 %v8976_v49, 0.0  ;;  %v10291_v38 = vld [vmem:[#allocation4 + $0x1a0] sm:$0xff] }
 0x584   :  { %v9163_v44 = vadd.f32 %v10279_v19, %v9099_v18  ;;  %v9100_v45 = vmax.f32 %v8968_v21, 0.0  ;;  %v10292_v19 = vld [vmem:[#allocation4 + $0x1b8] sm:$0xff] }
 0x585   :  { %9229 = vst.msk [vmem:[#allocation7 + $0x150] sm:$0xff] %vm161_vm0, %v9165_v30  ;;  %v9166_v20 = vadd.f32 %v10280_v36, %v9102_v55 }
 0x586   :  { %9227 = vst.msk [vmem:[#allocation7 + $0x140] sm:$0xff] %vm161_vm0, %v9163_v44  ;;  %v9164_v8 = vadd.f32 %v10281_v33, %v9100_v45  ;;  %v10293_v45 = vld [vmem:[#allocation4 + $0x1a8] sm:$0xff] }
 0x587   :  { %9230 = vst.msk [vmem:[#allocation7 + $0x158] sm:$0xff] %vm161_vm0, %v9166_v20 }
 0x588   :  { %9228 = vst.msk [vmem:[#allocation7 + $0x148] sm:$0xff] %vm161_vm0, %v9164_v8 }
 0x599   :  { %v10074_v46 = vpop.f32.mrb[112].mxu0 }
 0x59a   :  { %v8989_v14 = vadd.f32 %v10074_v46, %v13327_v52  ;;  %v8980_v35 = vpop.f32.mrb[113].mxu0 }
 0x59b   :  { %v8981_v3 = vadd.f32 %v13327_v52, %v8980_v35  ;;  %v10075_v10 = vpop.f32.mrb[114].mxu0 }
 0x59c   :  { %v9105_v13 = vmax.f32 %v8989_v14, 0.0  ;;  %v8992_v1 = vadd.f32 %v10075_v10, %v13327_v52  ;;  %v8983_v23 = vpop.f32.mrb[115].mxu0 }
 0x59d   :  { %v9103_v11 = vmax.f32 %v8981_v3, 0.0  ;;  %v8984_v51 = vadd.f32 %v13327_v52, %v8983_v23  ;;  %v10294_v23 = vld [vmem:[#allocation4 + $0x1d0] sm:$0xff] }
 0x59e   :  { %v9169_v15 = vadd.f32 %v10282_v62, %v9105_v13  ;;  %v9106_v58 = vmax.f32 %v8992_v1, 0.0  ;;  %v10295_v62 = vld [vmem:[#allocation4 + $0x1c0] sm:$0xff] }
 0x59f   :  { %v9167_v47 = vadd.f32 %v10283_v48, %v9103_v11  ;;  %v9104_v27 = vmax.f32 %v8984_v51, 0.0  ;;  %v10296_v48 = vld [vmem:[#allocation4 + $0x1d8] sm:$0xff] }
 0x5a0   :  { %9233 = vst.msk [vmem:[#allocation7 + $0x170] sm:$0xff] %vm161_vm0, %v9169_v15  ;;  %v9170_v31 = vadd.f32 %v10284_v16, %v9106_v58 }
 0x5a1   :  { %9231 = vst.msk [vmem:[#allocation7 + $0x160] sm:$0xff] %vm161_vm0, %v9167_v47  ;;  %v9168_v50 = vadd.f32 %v10285_v59, %v9104_v27  ;;  %v10297_v27 = vld [vmem:[#allocation4 + $0x1c8] sm:$0xff] }
 0x5a2   :  { %9234 = vst.msk [vmem:[#allocation7 + $0x178] sm:$0xff] %vm161_vm0, %v9170_v31 }
 0x5a3   :  { %9232 = vst.msk [vmem:[#allocation7 + $0x168] sm:$0xff] %vm161_vm0, %v9168_v50 }
 0x5a9   :  { %v10078_v53 = vpop.f32.mrb[116].mxu0 }
 0x5aa   :  { %v9005_v17 = vadd.f32 %v10078_v53, %v13327_v52  ;;  %v8996_v24 = vpop.f32.mrb[117].mxu0 }
 0x5ab   :  { %v8997_v57 = vadd.f32 %v13327_v52, %v8996_v24  ;;  %v10079_v5 = vpop.f32.mrb[118].mxu0 }
 0x5ac   :  { %v9109_v22 = vmax.f32 %v9005_v17, 0.0  ;;  %v9008_v61 = vadd.f32 %v10079_v5, %v13327_v52  ;;  %v8999_v29 = vpop.f32.mrb[119].mxu0 }
 0x5ad   :  { %v9107_v9 = vmax.f32 %v8997_v57, 0.0  ;;  %v9000_v25 = vadd.f32 %v13327_v52, %v8999_v29  ;;  %v10298_v29 = vld [vmem:[#allocation4 + $0x1f0] sm:$0xff] }
 0x5ae   :  { %v9173_v54 = vadd.f32 %v10286_v4, %v9109_v22  ;;  %v9110_v37 = vmax.f32 %v9008_v61, 0.0  ;;  %v10299_v4 = vld [vmem:[#allocation4 + $0x1e0] sm:$0xff] }
 0x5af   :  { %v9171_v42 = vadd.f32 %v10287_v0, %v9107_v9  ;;  %v9108_v28 = vmax.f32 %v9000_v25, 0.0  ;;  %v10300_v0 = vld [vmem:[#allocation4 + $0x1f8] sm:$0xff] }
 0x5b0   :  { %9237 = vst.msk [vmem:[#allocation7 + $0x190] sm:$0xff] %vm161_vm0, %v9173_v54  ;;  %v9174_v39 = vadd.f32 %v10288_v32, %v9110_v37 }
 0x5b1   :  { %9235 = vst.msk [vmem:[#allocation7 + $0x180] sm:$0xff] %vm161_vm0, %v9171_v42  ;;  %v9172_v40 = vadd.f32 %v10289_v63, %v9108_v28  ;;  %v10301_v28 = vld [vmem:[#allocation4 + $0x1e8] sm:$0xff] }
 0x5b2   :  { %9238 = vst.msk [vmem:[#allocation7 + $0x198] sm:$0xff] %vm161_vm0, %v9174_v39 }
 0x5b3   :  { %9236 = vst.msk [vmem:[#allocation7 + $0x188] sm:$0xff] %vm161_vm0, %v9172_v40 }
 0x5ba   :  { %v10082_v26 = vpop.f32.mrb[120].mxu0 }
 0x5bb   :  { %v9021_v2 = vadd.f32 %v10082_v26, %v13327_v52  ;;  %v9012_v6 = vpop.f32.mrb[121].mxu0 }
 0x5bc   :  { %v9013_v12 = vadd.f32 %v13327_v52, %v9012_v6  ;;  %v10083_v60 = vpop.f32.mrb[122].mxu0 }
 0x5bd   :  { %v9113_v7 = vmax.f32 %v9021_v2, 0.0  ;;  %v9024_v43 = vadd.f32 %v10083_v60, %v13327_v52  ;;  %v9015_v41 = vpop.f32.mrb[123].mxu0 }
 0x5be   :  { %v9111_v34 = vmax.f32 %v9013_v12, 0.0  ;;  %v9016_v49 = vadd.f32 %v13327_v52, %v9015_v41 }
 0x5bf   :  { %v9177_v18 = vadd.f32 %v10290_v56, %v9113_v7  ;;  %v9114_v21 = vmax.f32 %v9024_v43, 0.0 }
 0x5c0   :  { %v9175_v30 = vadd.f32 %v10291_v38, %v9111_v34  ;;  %v9112_v55 = vmax.f32 %v9016_v49, 0.0 }
 0x5c1   :  { %9241 = vst.msk [vmem:[#allocation7 + $0x1b0] sm:$0xff] %vm161_vm0, %v9177_v18  ;;  %v9178_v44 = vadd.f32 %v10292_v19, %v9114_v21 }
 0x5c2   :  { %9239 = vst.msk [vmem:[#allocation7 + $0x1a0] sm:$0xff] %vm161_vm0, %v9175_v30  ;;  %v9176_v36 = vadd.f32 %v10293_v45, %v9112_v55 }
 0x5c3   :  { %9242 = vst.msk [vmem:[#allocation7 + $0x1b8] sm:$0xff] %vm161_vm0, %v9178_v44 }
 0x5c4   :  { %9240 = vst.msk [vmem:[#allocation7 + $0x1a8] sm:$0xff] %vm161_vm0, %v9176_v36 }
 0x5e2   :  { %v10086_v20 = vpop.f32.mrb[124].mxu0 }
 0x5e3   :  { %v9037_v33 = vadd.f32 %v10086_v20, %v13327_v52  ;;  %v9028_v8 = vpop.f32.mrb[125].mxu0 }
 0x5e4   :  { %v9029_v46 = vadd.f32 %v13327_v52, %v9028_v8  ;;  %v10087_v14 = vpop.f32.mrb[126].mxu0 }
 0x5e5   :  { %v9117_v35 = vmax.f32 %v9037_v33, 0.0  ;;  %v9040_v3 = vadd.f32 %v10087_v14, %v13327_v52  ;;  %v9031_v10 = vpop.f32.mrb[127].mxu0 }
 0x5e6   :  { %v9115_v13 = vmax.f32 %v9029_v46, 0.0  ;;  %v9032_v1 = vadd.f32 %v13327_v52, %v9031_v10 }
 0x5e7   :  { %v9181_v11 = vadd.f32 %v10294_v23, %v9117_v35  ;;  %v9118_v51 = vmax.f32 %v9040_v3, 0.0 }
 0x5e8   :  { %v9179_v15 = vadd.f32 %v10295_v62, %v9115_v13  ;;  %v9116_v58 = vmax.f32 %v9032_v1, 0.0 }
 0x5e9   :  { %9245 = vst.msk [vmem:[#allocation7 + $0x1d0] sm:$0xff] %vm161_vm0, %v9181_v11  ;;  %v9182_v47 = vadd.f32 %v10296_v48, %v9118_v51 }
 0x5ea   :  { %9243 = vst.msk [vmem:[#allocation7 + $0x1c0] sm:$0xff] %vm161_vm0, %v9179_v15  ;;  %v9180_v16 = vadd.f32 %v10297_v27, %v9116_v58 }
 0x5eb   :  { %9246 = vst.msk [vmem:[#allocation7 + $0x1d8] sm:$0xff] %vm161_vm0, %v9182_v47 }
 0x5ec   :  { %9244 = vst.msk [vmem:[#allocation7 + $0x1c8] sm:$0xff] %vm161_vm0, %v9180_v16 }
 0x60c   :  { %v10090_v31 = vpop.f32.mrb[128].mxu0 }
 0x60d   :  { %v9053_v59 = vadd.f32 %v10090_v31, %v13327_v52  ;;  %v9044_v50 = vpop.f32.mrb[129].mxu0 }
 0x60e   :  { %v9045_v53 = vadd.f32 %v13327_v52, %v9044_v50  ;;  %v10091_v17 = vpop.f32.mrb[130].mxu0 }
 0x60f   :  { %v9121_v24 = vmax.f32 %v9053_v59, 0.0  ;;  %v9056_v57 = vadd.f32 %v10091_v17, %v13327_v52  ;;  %v9047_v5 = vpop.f32.mrb[131].mxu0 }
 0x610   :  { %v9119_v22 = vmax.f32 %v9045_v53, 0.0  ;;  %v9048_v61 = vadd.f32 %v13327_v52, %v9047_v5 }
 0x611   :  { %v9185_v9 = vadd.f32 %v10298_v29, %v9121_v24  ;;  %v9122_v25 = vmax.f32 %v9056_v57, 0.0 }
 0x612   :  { %v9183_v54 = vadd.f32 %v10299_v4, %v9119_v22  ;;  %v9120_v37 = vmax.f32 %v9048_v61, 0.0 }
 0x613   :  { %9249 = vst.msk [vmem:[#allocation7 + $0x1f0] sm:$0xff] %vm161_vm0, %v9185_v9  ;;  %v9186_v42 = vadd.f32 %v10300_v0, %v9122_v25 }
 0x614   :  { %9247 = vst.msk [vmem:[#allocation7 + $0x1e0] sm:$0xff] %vm161_vm0, %v9183_v54  ;;  %v9184_v32 = vadd.f32 %v10301_v28, %v9120_v37 }
 0x615   :  { %9250 = vst.msk [vmem:[#allocation7 + $0x1f8] sm:$0xff] %vm161_vm0, %v9186_v42 }
 0x616   :  { %9248 = vst.msk [vmem:[#allocation7 + $0x1e8] sm:$0xff] %vm161_vm0, %v9184_v32 }
 0x617   :  { %10335 = shalt.err (!%p10332_p12)
}
 0x618   :  { %s10336_s27 = scalar_lea.hbm %s13529_s7, 8192 }
 0x619   :  { %p10337_p13 = scmp.ne.s32.totalorder %s13529_s7, %s10336_s27  ;;  %p10340_p0 = scmp.lt.u32.totalorder %s10336_s27, %s13529_s7 }
 0x61b   :  { %p10342_p1 = pnand %p10340_p0, %p10337_p13 }
 0x61d   :  { %10345 = shalt.err (!%p10342_p1)
}
 0x61e   :  { %9262 = dma.vmem_to_hbm [thread:$0]  %s9257_s24, 8192, %s13529_s7, [#allocation6], %s10351_s11, %s10351_s11, %s10352_s12  }
 0x61f   :  { %10348 = dma.done.wait [#allocation6], 8192  }
 0x620   :  { %10349 = vsyncadd [#allocation6], 4294959104 }
 0x621   :  { %9266 = vsyncpa [#allocation5], 1 }
 0x622   :  { %9267 = vsyncpa [#allocation6], 1 }

</bundles_post_ra>
